<compile_context>
chip_gen: v5e
topology: v5e:2x2
jax: 0.10.0
libtpu: 0.0.40
codegen_flags: <defaults>
</compile_context>

<pallas_src>
import functools

import jax
import jax.numpy as jnp
import numpy as np
from jax.experimental import pallas as pl
from jax.experimental.pallas import tpu as pltpu


def _round_up(x, m):
    return ((x + m - 1) // m) * m


def _bilstm_kernel(x_ref, wih_ref, b_ref, whh_ref, out_ref, gx_ref, *, T, Bp, HP):
    """x_ref: (T*Bp, E); wih_ref: (E, 8*HP); b_ref: (1, 8*HP) f32;
    whh_ref: (2*HP, 8*HP) block-diagonal; out_ref: (T*Bp, HP) f32;
    gx_ref: (T*Bp, 8*HP) scratch (compute dtype).

    Fused gate-column layout (each block HP lanes):
        [ i_f, i_b, f_f, f_b, o_f, o_b, g_f, g_b ]
    """
    # Hoisted input projection for both directions / all gates:
    # one big (T*Bp, E) x (E, 8*HP) MXU matmul with fused biases.
    gx_ref[...] = (
        jnp.dot(x_ref[...], wih_ref[...], preferred_element_type=jnp.float32)
        + b_ref[...]).astype(gx_ref.dtype)

    cdt = whh_ref.dtype

    def sigmoid(z):                       # single EUP tanh, no exp + divide
        return 0.5 * (jnp.tanh(0.5 * z) + 1.0)

    def gx_at(rf, rb):
        # fwd gate pre-acts come from the forward timestep's rows (rf),
        # bwd gate pre-acts from the backward timestep's rows (rb).
        parts = []
        for grp in range(4):                               # i, f, o, g groups
            c = 2 * grp * HP
            parts.append(gx_ref[pl.ds(rf, Bp), c:c + HP])            # fwd
            parts.append(gx_ref[pl.ds(rb, Bp), c + HP:c + 2 * HP])   # bwd
        return jnp.concatenate(parts, axis=1)              # (Bp, 8*HP)

    def make_step(fwd_accumulate, bwd_accumulate):
        def step(t, carry):
            h, c = carry                  # (Bp, 2*HP) f32, lanes [fwd | bwd]
            rf = pl.multiple_of(t * Bp, 8)               # fwd timestep rows
            rb = pl.multiple_of((T - 1 - t) * Bp, 8)     # bwd timestep rows
            # One block-diagonal recurrent matmul covers BOTH directions.
            gates = gx_at(rf, rb) + jnp.dot(
                h.astype(cdt), whh_ref[...], preferred_element_type=jnp.float32)
            ifo = sigmoid(gates[:, 0:6 * HP])            # i, f, o in one push
            g = jnp.tanh(gates[:, 6 * HP:8 * HP])
            c = ifo[:, 2 * HP:4 * HP] * c + ifo[:, 0:2 * HP] * g
            h = ifo[:, 4 * HP:6 * HP] * jnp.tanh(c)
            h_f = h[:, 0:HP]
            h_b = h[:, HP:2 * HP]
            if fwd_accumulate:
                out_ref[pl.ds(rf, Bp), :] = out_ref[pl.ds(rf, Bp), :] + h_f
            else:
                out_ref[pl.ds(rf, Bp), :] = h_f
            if bwd_accumulate:
                out_ref[pl.ds(rb, Bp), :] = out_ref[pl.ds(rb, Bp), :] + h_b
            else:
                out_ref[pl.ds(rb, Bp), :] = h_b
            return h, c
        return step

    zeros = jnp.zeros((Bp, 2 * HP), jnp.float32)
    carry = (zeros, zeros)
    # Phase A: both row slots untouched -> plain stores (no reads of out_ref).
    carry = jax.lax.fori_loop(0, T // 2, make_step(False, False), carry,
                              unroll=4)
    # Middle step for odd T: fwd stores, bwd accumulates into the same rows.
    if T % 2 == 1:
        carry = make_step(False, True)(T // 2, carry)
    # Phase B: both row slots already hold the other direction -> accumulate.
    jax.lax.fori_loop((T + 1) // 2, T, make_step(True, True), carry, unroll=4)


def prepare_encoder_params(params, compute_dtype=jnp.float32):
    """Pad / transpose / fuse the LSTM weights ONCE (not per forward call)."""
    H = int(params["h_dim"])
    E = params["embed"].shape[1]
    HP = _round_up(max(H, 128), 128)     # lane-dense gates / output
    cdt = compute_dtype

    # PyTorch gate row order inside w_ih / w_hh / b_* is (i, f, g, o).
    FUSED_PT_ORDER = (0, 1, 3, 2)        # fused group order (i, f, o, g)

    def ih_blocks(w):                    # (4H, E) -> 4 x (E, HP)
        w4 = jnp.pad(w.reshape(4, H, E), ((0, 0), (0, HP - H), (0, 0)))
        return [w4[g].T for g in range(4)]

    def hh_blocks(w):                    # (4H, H) -> 4 x (HP, HP)
        w4 = jnp.pad(w.reshape(4, H, H), ((0, 0), (0, HP - H), (0, HP - H)))
        return [w4[g].T for g in range(4)]

    def b_blocks(b):                     # (4H,) -> 4 x (HP,)
        b4 = jnp.pad(b.reshape(4, H), ((0, 0), (0, HP - H)))
        return [b4[g] for g in range(4)]

    ihf, ihb = ih_blocks(params["w_ih_f"]), ih_blocks(params["w_ih_b"])
    wih = jnp.concatenate(
        [blk for pt in FUSED_PT_ORDER for blk in (ihf[pt], ihb[pt])], axis=1)

    bf = b_blocks(params["b_ih_f"] + params["b_hh_f"])
    bb = b_blocks(params["b_ih_b"] + params["b_hh_b"])
    bias = jnp.concatenate(
        [blk for pt in FUSED_PT_ORDER for blk in (bf[pt], bb[pt])]
    ).reshape(1, 8 * HP).astype(jnp.float32)

    hhf, hhb = hh_blocks(params["w_hh_f"]), hh_blocks(params["w_hh_b"])
    zero = jnp.zeros((HP, HP), jnp.float32)
    top = jnp.concatenate(
        [blk for pt in FUSED_PT_ORDER for blk in (hhf[pt], zero)], axis=1)
    bot = jnp.concatenate(
        [blk for pt in FUSED_PT_ORDER for blk in (zero, hhb[pt])], axis=1)
    whh = jnp.concatenate([top, bot], axis=0)            # (2*HP, 8*HP)

    return {
        "h_dim": H,
        "hp": HP,
        "compute_dtype": cdt,
        "embed": params["embed"].astype(cdt),
        "wih": wih.astype(cdt),
        "whh": whh.astype(cdt),
        "bias": bias,
    }


def encoder_rnn_forward(sentence, prep):
    """sentence: (B, T) int32 token ids  ->  (B, T, H) float32."""
    H, HP = prep["h_dim"], prep["hp"]
    cdt = prep["compute_dtype"]
    emb = prep["embed"][sentence]                        # (B, T, E) glue gather
    B, T, E = emb.shape
    Bp = _round_up(max(B, 8), 8)                         # full sublanes

    # (B, T, E) -> (T, B, E) -> pad batch -> flatten to (T*Bp, E) rows.
    x = jnp.transpose(emb, (1, 0, 2))
    x = jnp.pad(x, ((0, 0), (0, Bp - B), (0, 0))).reshape(T * Bp, E).astype(cdt)

    itemsize = jnp.dtype(cdt).itemsize
    footprint = (x.size * itemsize + prep["wih"].size * itemsize
                 + prep["whh"].size * itemsize + prep["bias"].size * 4
                 + T * Bp * HP * 4                       # out (f32)
                 + T * Bp * 8 * HP * itemsize)           # gx scratch
    try:                                                 # generation-aware budget
        cap = int(getattr(pltpu.get_tpu_info(), "vmem_capacity_bytes", 128 << 20))
    except Exception:                                    # noqa: BLE001
        cap = 128 << 20
    budget = int(cap * 0.85)                             # leave compiler headroom
    need = int(footprint * 1.25) + (4 << 20)
    if need > budget:
        # TODO(synk): fall back to the streaming (T-chunked pl.ANY + DMA) path.
        raise NotImplementedError(
            f"resident-VMEM BiLSTM kernel needs ~{need >> 20} MiB "
            f"(> {budget >> 20} MiB budget); streaming path not implemented")
    vmem_limit = max(need, 16 << 20)

    kernel = functools.partial(_bilstm_kernel, T=T, Bp=Bp, HP=HP)
    out = pl.pallas_call(
        kernel,
        out_shape=jax.ShapeDtypeStruct((T * Bp, HP), jnp.float32),
        in_specs=[pl.BlockSpec(memory_space=pltpu.MemorySpace.VMEM)] * 4,
        out_specs=pl.BlockSpec(memory_space=pltpu.MemorySpace.VMEM),
        scratch_shapes=[pltpu.VMEM((T * Bp, 8 * HP), cdt)],
        compiler_params=pltpu.CompilerParams(vmem_limit_bytes=vmem_limit),
    )(x, prep["wih"], prep["bias"], prep["whh"])

    out = out.reshape(T, Bp, HP)[:, :B, :H]              # strip batch / hidden pad
    return jnp.transpose(out, (1, 0, 2))                 # (B, T, H)


def init_params(key, v_size, emb_dim, h_dim, pad_idx=None):
    ks = jax.random.split(key, 9)
    bound = 1.0 / np.sqrt(h_dim)

    def u(k, shape):
        return jax.random.uniform(k, shape, jnp.float32, -bound, bound)

    embed = jax.random.normal(ks[0], (v_size, emb_dim), jnp.float32)
    if pad_idx is not None:
        embed = embed.at[pad_idx].set(0.0)   # padding_idx row is zero

    return {
        "h_dim": h_dim,
        "embed": embed,
        "w_ih_f": u(ks[1], (4 * h_dim, emb_dim)),
        "w_hh_f": u(ks[2], (4 * h_dim, h_dim)),
        "b_ih_f": u(ks[3], (4 * h_dim,)),
        "b_hh_f": u(ks[4], (4 * h_dim,)),
        "w_ih_b": u(ks[5], (4 * h_dim, emb_dim)),
        "w_hh_b": u(ks[6], (4 * h_dim, h_dim)),
        "b_ih_b": u(ks[7], (4 * h_dim,)),
        "b_hh_b": u(ks[8], (4 * h_dim,)),
    }


def reference_forward(sentence, params):
    """Pure-JAX reference of the PyTorch forward (lengths=None path)."""
    H = params["h_dim"]
    emb = params["embed"][sentence].astype(jnp.float32)     # (B, T, E)
    B, T, E = emb.shape

    def run_dir(x_tbe, w_ih, w_hh, b_ih, b_hh):
        def step(carry, x_t):
            h, c = carry
            gates = x_t @ w_ih.T + b_ih + h @ w_hh.T + b_hh
            i = jax.nn.sigmoid(gates[:, :H])
            f = jax.nn.sigmoid(gates[:, H:2 * H])
            g = jnp.tanh(gates[:, 2 * H:3 * H])
            o = jax.nn.sigmoid(gates[:, 3 * H:])
            c = f * c + i * g
            h = o * jnp.tanh(c)
            return (h, c), h
        h0 = jnp.zeros((B, H), jnp.float32)
        c0 = jnp.zeros((B, H), jnp.float32)
        _, hs = jax.lax.scan(step, (h0, c0), x_tbe)
        return hs                                            # (T, B, H)

    x_tbe = jnp.transpose(emb, (1, 0, 2))
    h_f = run_dir(x_tbe, params["w_ih_f"], params["w_hh_f"],
                  params["b_ih_f"], params["b_hh_f"])
    h_b = run_dir(x_tbe[::-1], params["w_ih_b"], params["w_hh_b"],
                  params["b_ih_b"], params["b_hh_b"])[::-1]
    out = h_f + h_b                                          # fwd + bwd summed
    return jnp.transpose(out, (1, 0, 2))                     # (B, T, H)


if __name__ == "__main__":
    V_SIZE, EMB_DIM, H_DIM = 50, 16, 32
    B, T = 2, 8
    PAD_IDX = 0

    key = jax.random.PRNGKey(0)
    k_param, k_sent = jax.random.split(key)
    params = init_params(k_param, V_SIZE, EMB_DIM, H_DIM, pad_idx=PAD_IDX)
    sentence = jax.random.randint(k_sent, (B, T), 0, V_SIZE, dtype=jnp.int32)

    ref = jax.block_until_ready(reference_forward(sentence, params))

    # f32 path: strict correctness check.
    prep32 = prepare_encoder_params(params, compute_dtype=jnp.float32)
    out32 = jax.block_until_ready(encoder_rnn_forward(sentence, prep32))
    assert out32.shape == (B, T, H_DIM), out32.shape
    assert np.allclose(np.asarray(out32), np.asarray(ref), rtol=1e-5, atol=1e-5), \
        np.max(np.abs(np.asarray(out32) - np.asarray(ref)))

    # bf16 compute path (f32 accumulation / state): loose check; exercises the
    # halved weight-streaming + half-size gx-scratch configuration.
    prep16 = prepare_encoder_params(params, compute_dtype=jnp.bfloat16)
    out16 = jax.block_until_ready(encoder_rnn_forward(sentence, prep16))
    assert out16.shape == (B, T, H_DIM), out16.shape
    assert np.allclose(np.asarray(out16), np.asarray(ref), rtol=5e-2, atol=7.5e-2), \
        np.max(np.abs(np.asarray(out16) - np.asarray(ref)))

    print("KERNEL_OK")
</pallas_src>

<mosaic_0001>
module attributes {stable_mosaic.version = 11 : i64} {
  func.func @_bilstm_kernel(%arg0: memref<64x16xf32, #tpu.memory_space<vmem>>, %arg1: memref<16x1024xf32, #tpu.memory_space<vmem>>, %arg2: memref<1x1024xf32, #tpu.memory_space<vmem>>, %arg3: memref<256x1024xf32, #tpu.memory_space<vmem>>, %arg4: memref<64x128xf32, #tpu.memory_space<vmem>>, %arg5: memref<64x1024xf32, #tpu.memory_space<vmem>>) attributes {dimension_semantics = [], scalar_prefetch = 0 : i64, scratch_operands = 1 : i64, tpu.core_type = #tpu.core_type<tc>} {
    %c0 = arith.constant 0 : index
    %c0_0 = arith.constant 0 : index
    %0 = vector.load %arg0[%c0, %c0_0] : memref<64x16xf32, #tpu.memory_space<vmem>>, vector<64x16xf32>
    %c0_1 = arith.constant 0 : index
    %c0_2 = arith.constant 0 : index
    %1 = vector.load %arg1[%c0_1, %c0_2] : memref<16x1024xf32, #tpu.memory_space<vmem>>, vector<16x1024xf32>
    %cst = arith.constant dense<0.000000e+00> : vector<64x1024xf32>
    %2 = tpu.matmul %0, %1, %cst {dimension_numbers = #tpu.dot_dimension_numbers<[1], [0], [0], [1], [0, 0, 1, 1], [], []>} : vector<64x16xf32>, vector<16x1024xf32>, vector<64x1024xf32> -> vector<64x1024xf32>
    %c0_3 = arith.constant 0 : index
    %c0_4 = arith.constant 0 : index
    %3 = vector.load %arg2[%c0_3, %c0_4] : memref<1x1024xf32, #tpu.memory_space<vmem>>, vector<1x1024xf32>
    %4 = vector.broadcast %3 : vector<1x1024xf32> to vector<64x1024xf32>
    %5 = arith.addf %2, %4 : vector<64x1024xf32>
    %c0_5 = arith.constant 0 : index
    %c0_6 = arith.constant 0 : index
    %6 = vector.load %arg5[%c0_5, %c0_6] : memref<64x1024xf32, #tpu.memory_space<vmem>>, vector<64x1024xf32>
    tpu.vector_store %arg5[%c0_5, %c0_6], %5 {strides = array<i32>} : memref<64x1024xf32, #tpu.memory_space<vmem>>, vector<64x1024xf32>,
    %cst_7 = arith.constant 0.000000e+00 : f32
    %7 = vector.broadcast %cst_7 : f32 to vector<8x256xf32>
    %c0_i32 = arith.constant 0 : i32
    %c8_i32 = arith.constant 8 : i32
    %8 = arith.muli %c0_i32, %c8_i32 : i32
    %9 = tpu.assume_multiple %8, 8 : i32
    %c7_i32 = arith.constant 7 : i32
    %10 = arith.subi %c7_i32, %c0_i32 : i32
    %c8_i32_8 = arith.constant 8 : i32
    %11 = arith.muli %10, %c8_i32_8 : i32
    %12 = tpu.assume_multiple %11, 8 : i32
    %13 = arith.index_cast %9 : i32 to index
    %c0_9 = arith.constant 0 : index
    %14 = vector.load %arg5[%13, %c0_9] : memref<64x1024xf32, #tpu.memory_space<vmem>>, vector<8x128xf32>
    %15 = arith.index_cast %12 : i32 to index
    %c128 = arith.constant 128 : index
    %16 = vector.load %arg5[%15, %c128] : memref<64x1024xf32, #tpu.memory_space<vmem>>, vector<8x128xf32>
    %17 = arith.index_cast %9 : i32 to index
    %c256 = arith.constant 256 : index
    %18 = vector.load %arg5[%17, %c256] : memref<64x1024xf32, #tpu.memory_space<vmem>>, vector<8x128xf32>
    %19 = arith.index_cast %12 : i32 to index
    %c384 = arith.constant 384 : index
    %20 = vector.load %arg5[%19, %c384] : memref<64x1024xf32, #tpu.memory_space<vmem>>, vector<8x128xf32>
    %21 = arith.index_cast %9 : i32 to index
    %c512 = arith.constant 512 : index
    %22 = vector.load %arg5[%21, %c512] : memref<64x1024xf32, #tpu.memory_space<vmem>>, vector<8x128xf32>
    %23 = arith.index_cast %12 : i32 to index
    %c640 = arith.constant 640 : index
    %24 = vector.load %arg5[%23, %c640] : memref<64x1024xf32, #tpu.memory_space<vmem>>, vector<8x128xf32>
    %25 = arith.index_cast %9 : i32 to index
    %c768 = arith.constant 768 : index
    %26 = vector.load %arg5[%25, %c768] : memref<64x1024xf32, #tpu.memory_space<vmem>>, vector<8x128xf32>
    %27 = arith.index_cast %12 : i32 to index
    %c896 = arith.constant 896 : index
    %28 = vector.load %arg5[%27, %c896] : memref<64x1024xf32, #tpu.memory_space<vmem>>, vector<8x128xf32>
    %29 = tpu.concatenate %14, %16, %18, %20, %22, %24, %26, %28 in 1 : vector<8x128xf32>, vector<8x128xf32>, vector<8x128xf32>, vector<8x128xf32>, vector<8x128xf32>, vector<8x128xf32>, vector<8x128xf32>, vector<8x128xf32> -> vector<8x1024xf32>
    %c0_10 = arith.constant 0 : index
    %c0_11 = arith.constant 0 : index
    %30 = vector.load %arg3[%c0_10, %c0_11] : memref<256x1024xf32, #tpu.memory_space<vmem>>, vector<256x1024xf32>
    %cst_12 = arith.constant dense<0.000000e+00> : vector<8x1024xf32>
    %31 = tpu.matmul %7, %30, %cst_12 {dimension_numbers = #tpu.dot_dimension_numbers<[1], [0], [0], [1], [0, 0, 1, 1], [], []>} : vector<8x256xf32>, vector<256x1024xf32>, vector<8x1024xf32> -> vector<8x1024xf32>
    %32 = arith.addf %29, %31 : vector<8x1024xf32>
    %33 = vector.extract_strided_slice %32 {offsets = [0, 0], sizes = [8, 768], strides = [1, 1]} : vector<8x1024xf32> to vector<8x768xf32>
    %cst_13 = arith.constant 5.000000e-01 : f32
    %34 = vector.broadcast %cst_13 : f32 to vector<8x768xf32>
    %35 = arith.mulf %34, %33 : vector<8x768xf32>
    %36 = math.tanh %35 : vector<8x768xf32>
    %cst_14 = arith.constant 1.000000e+00 : f32
    %37 = vector.broadcast %cst_14 : f32 to vector<8x768xf32>
    %38 = arith.addf %36, %37 : vector<8x768xf32>
    %cst_15 = arith.constant 5.000000e-01 : f32
    %39 = vector.broadcast %cst_15 : f32 to vector<8x768xf32>
    %40 = arith.mulf %39, %38 : vector<8x768xf32>
    %41 = vector.extract_strided_slice %32 {offsets = [0, 768], sizes = [8, 256], strides = [1, 1]} : vector<8x1024xf32> to vector<8x256xf32>
    %42 = math.tanh %41 : vector<8x256xf32>
    %43 = vector.extract_strided_slice %40 {offsets = [0, 256], sizes = [8, 256], strides = [1, 1]} : vector<8x768xf32> to vector<8x256xf32>
    %44 = arith.mulf %43, %7 : vector<8x256xf32>
    %45 = vector.extract_strided_slice %40 {offsets = [0, 0], sizes = [8, 256], strides = [1, 1]} : vector<8x768xf32> to vector<8x256xf32>
    %46 = arith.mulf %45, %42 : vector<8x256xf32>
    %47 = arith.addf %44, %46 : vector<8x256xf32>
    %48 = vector.extract_strided_slice %40 {offsets = [0, 512], sizes = [8, 256], strides = [1, 1]} : vector<8x768xf32> to vector<8x256xf32>
    %49 = math.tanh %47 : vector<8x256xf32>
    %50 = arith.mulf %48, %49 : vector<8x256xf32>
    %51 = vector.extract_strided_slice %50 {offsets = [0, 0], sizes = [8, 128], strides = [1, 1]} : vector<8x256xf32> to vector<8x128xf32>
    %52 = vector.extract_strided_slice %50 {offsets = [0, 128], sizes = [8, 128], strides = [1, 1]} : vector<8x256xf32> to vector<8x128xf32>
    %53 = arith.index_cast %9 : i32 to index
    %c0_16 = arith.constant 0 : index
    %54 = vector.load %arg4[%53, %c0_16] : memref<64x128xf32, #tpu.memory_space<vmem>>, vector<8x128xf32>
    tpu.vector_store %arg4[%53, %c0_16], %51 {strides = array<i32>} : memref<64x128xf32, #tpu.memory_space<vmem>>, vector<8x128xf32>,
    %55 = arith.index_cast %12 : i32 to index
    %c0_17 = arith.constant 0 : index
    %56 = vector.load %arg4[%55, %c0_17] : memref<64x128xf32, #tpu.memory_space<vmem>>, vector<8x128xf32>
    tpu.vector_store %arg4[%55, %c0_17], %52 {strides = array<i32>} : memref<64x128xf32, #tpu.memory_space<vmem>>, vector<8x128xf32>,
    %c1_i32 = arith.constant 1 : i32
    %c8_i32_18 = arith.constant 8 : i32
    %57 = arith.muli %c1_i32, %c8_i32_18 : i32
    %58 = tpu.assume_multiple %57, 8 : i32
    %c7_i32_19 = arith.constant 7 : i32
    %59 = arith.subi %c7_i32_19, %c1_i32 : i32
    %c8_i32_20 = arith.constant 8 : i32
    %60 = arith.muli %59, %c8_i32_20 : i32
    %61 = tpu.assume_multiple %60, 8 : i32
    %62 = arith.index_cast %58 : i32 to index
    %c0_21 = arith.constant 0 : index
    %63 = vector.load %arg5[%62, %c0_21] : memref<64x1024xf32, #tpu.memory_space<vmem>>, vector<8x128xf32>
    %64 = arith.index_cast %61 : i32 to index
    %c128_22 = arith.constant 128 : index
    %65 = vector.load %arg5[%64, %c128_22] : memref<64x1024xf32, #tpu.memory_space<vmem>>, vector<8x128xf32>
    %66 = arith.index_cast %58 : i32 to index
    %c256_23 = arith.constant 256 : index
    %67 = vector.load %arg5[%66, %c256_23] : memref<64x1024xf32, #tpu.memory_space<vmem>>, vector<8x128xf32>
    %68 = arith.index_cast %61 : i32 to index
    %c384_24 = arith.constant 384 : index
    %69 = vector.load %arg5[%68, %c384_24] : memref<64x1024xf32, #tpu.memory_space<vmem>>, vector<8x128xf32>
    %70 = arith.index_cast %58 : i32 to index
    %c512_25 = arith.constant 512 : index
    %71 = vector.load %arg5[%70, %c512_25] : memref<64x1024xf32, #tpu.memory_space<vmem>>, vector<8x128xf32>
    %72 = arith.index_cast %61 : i32 to index
    %c640_26 = arith.constant 640 : index
    %73 = vector.load %arg5[%72, %c640_26] : memref<64x1024xf32, #tpu.memory_space<vmem>>, vector<8x128xf32>
    %74 = arith.index_cast %58 : i32 to index
    %c768_27 = arith.constant 768 : index
    %75 = vector.load %arg5[%74, %c768_27] : memref<64x1024xf32, #tpu.memory_space<vmem>>, vector<8x128xf32>
    %76 = arith.index_cast %61 : i32 to index
    %c896_28 = arith.constant 896 : index
    %77 = vector.load %arg5[%76, %c896_28] : memref<64x1024xf32, #tpu.memory_space<vmem>>, vector<8x128xf32>
    %78 = tpu.concatenate %63, %65, %67, %69, %71, %73, %75, %77 in 1 : vector<8x128xf32>, vector<8x128xf32>, vector<8x128xf32>, vector<8x128xf32>, vector<8x128xf32>, vector<8x128xf32>, vector<8x128xf32>, vector<8x128xf32> -> vector<8x1024xf32>
    %c0_29 = arith.constant 0 : index
    %c0_30 = arith.constant 0 : index
    %79 = vector.load %arg3[%c0_29, %c0_30] : memref<256x1024xf32, #tpu.memory_space<vmem>>, vector<256x1024xf32>
    %cst_31 = arith.constant dense<0.000000e+00> : vector<8x1024xf32>
    %80 = tpu.matmul %50, %79, %cst_31 {dimension_numbers = #tpu.dot_dimension_numbers<[1], [0], [0], [1], [0, 0, 1, 1], [], []>} : vector<8x256xf32>, vector<256x1024xf32>, vector<8x1024xf32> -> vector<8x1024xf32>
    %81 = arith.addf %78, %80 : vector<8x1024xf32>
    %82 = vector.extract_strided_slice %81 {offsets = [0, 0], sizes = [8, 768], strides = [1, 1]} : vector<8x1024xf32> to vector<8x768xf32>
    %cst_32 = arith.constant 5.000000e-01 : f32
    %83 = vector.broadcast %cst_32 : f32 to vector<8x768xf32>
    %84 = arith.mulf %83, %82 : vector<8x768xf32>
    %85 = math.tanh %84 : vector<8x768xf32>
    %cst_33 = arith.constant 1.000000e+00 : f32
    %86 = vector.broadcast %cst_33 : f32 to vector<8x768xf32>
    %87 = arith.addf %85, %86 : vector<8x768xf32>
    %cst_34 = arith.constant 5.000000e-01 : f32
    %88 = vector.broadcast %cst_34 : f32 to vector<8x768xf32>
    %89 = arith.mulf %88, %87 : vector<8x768xf32>
    %90 = vector.extract_strided_slice %81 {offsets = [0, 768], sizes = [8, 256], strides = [1, 1]} : vector<8x1024xf32> to vector<8x256xf32>
    %91 = math.tanh %90 : vector<8x256xf32>
    %92 = vector.extract_strided_slice %89 {offsets = [0, 256], sizes = [8, 256], strides = [1, 1]} : vector<8x768xf32> to vector<8x256xf32>
    %93 = arith.mulf %92, %47 : vector<8x256xf32>
    %94 = vector.extract_strided_slice %89 {offsets = [0, 0], sizes = [8, 256], strides = [1, 1]} : vector<8x768xf32> to vector<8x256xf32>
    %95 = arith.mulf %94, %91 : vector<8x256xf32>
    %96 = arith.addf %93, %95 : vector<8x256xf32>
    %97 = vector.extract_strided_slice %89 {offsets = [0, 512], sizes = [8, 256], strides = [1, 1]} : vector<8x768xf32> to vector<8x256xf32>
    %98 = math.tanh %96 : vector<8x256xf32>
    %99 = arith.mulf %97, %98 : vector<8x256xf32>
    %100 = vector.extract_strided_slice %99 {offsets = [0, 0], sizes = [8, 128], strides = [1, 1]} : vector<8x256xf32> to vector<8x128xf32>
    %101 = vector.extract_strided_slice %99 {offsets = [0, 128], sizes = [8, 128], strides = [1, 1]} : vector<8x256xf32> to vector<8x128xf32>
    %102 = arith.index_cast %58 : i32 to index
    %c0_35 = arith.constant 0 : index
    %103 = vector.load %arg4[%102, %c0_35] : memref<64x128xf32, #tpu.memory_space<vmem>>, vector<8x128xf32>
    tpu.vector_store %arg4[%102, %c0_35], %100 {strides = array<i32>} : memref<64x128xf32, #tpu.memory_space<vmem>>, vector<8x128xf32>,
    %104 = arith.index_cast %61 : i32 to index
    %c0_36 = arith.constant 0 : index
    %105 = vector.load %arg4[%104, %c0_36] : memref<64x128xf32, #tpu.memory_space<vmem>>, vector<8x128xf32>
    tpu.vector_store %arg4[%104, %c0_36], %101 {strides = array<i32>} : memref<64x128xf32, #tpu.memory_space<vmem>>, vector<8x128xf32>,
    %c2_i32 = arith.constant 2 : i32
    %c8_i32_37 = arith.constant 8 : i32
    %106 = arith.muli %c2_i32, %c8_i32_37 : i32
    %107 = tpu.assume_multiple %106, 8 : i32
    %c7_i32_38 = arith.constant 7 : i32
    %108 = arith.subi %c7_i32_38, %c2_i32 : i32
    %c8_i32_39 = arith.constant 8 : i32
    %109 = arith.muli %108, %c8_i32_39 : i32
    %110 = tpu.assume_multiple %109, 8 : i32
    %111 = arith.index_cast %107 : i32 to index
    %c0_40 = arith.constant 0 : index
    %112 = vector.load %arg5[%111, %c0_40] : memref<64x1024xf32, #tpu.memory_space<vmem>>, vector<8x128xf32>
    %113 = arith.index_cast %110 : i32 to index
    %c128_41 = arith.constant 128 : index
    %114 = vector.load %arg5[%113, %c128_41] : memref<64x1024xf32, #tpu.memory_space<vmem>>, vector<8x128xf32>
    %115 = arith.index_cast %107 : i32 to index
    %c256_42 = arith.constant 256 : index
    %116 = vector.load %arg5[%115, %c256_42] : memref<64x1024xf32, #tpu.memory_space<vmem>>, vector<8x128xf32>
    %117 = arith.index_cast %110 : i32 to index
    %c384_43 = arith.constant 384 : index
    %118 = vector.load %arg5[%117, %c384_43] : memref<64x1024xf32, #tpu.memory_space<vmem>>, vector<8x128xf32>
    %119 = arith.index_cast %107 : i32 to index
    %c512_44 = arith.constant 512 : index
    %120 = vector.load %arg5[%119, %c512_44] : memref<64x1024xf32, #tpu.memory_space<vmem>>, vector<8x128xf32>
    %121 = arith.index_cast %110 : i32 to index
    %c640_45 = arith.constant 640 : index
    %122 = vector.load %arg5[%121, %c640_45] : memref<64x1024xf32, #tpu.memory_space<vmem>>, vector<8x128xf32>
    %123 = arith.index_cast %107 : i32 to index
    %c768_46 = arith.constant 768 : index
    %124 = vector.load %arg5[%123, %c768_46] : memref<64x1024xf32, #tpu.memory_space<vmem>>, vector<8x128xf32>
    %125 = arith.index_cast %110 : i32 to index
    %c896_47 = arith.constant 896 : index
    %126 = vector.load %arg5[%125, %c896_47] : memref<64x1024xf32, #tpu.memory_space<vmem>>, vector<8x128xf32>
    %127 = tpu.concatenate %112, %114, %116, %118, %120, %122, %124, %126 in 1 : vector<8x128xf32>, vector<8x128xf32>, vector<8x128xf32>, vector<8x128xf32>, vector<8x128xf32>, vector<8x128xf32>, vector<8x128xf32>, vector<8x128xf32> -> vector<8x1024xf32>
    %c0_48 = arith.constant 0 : index
    %c0_49 = arith.constant 0 : index
    %128 = vector.load %arg3[%c0_48, %c0_49] : memref<256x1024xf32, #tpu.memory_space<vmem>>, vector<256x1024xf32>
    %cst_50 = arith.constant dense<0.000000e+00> : vector<8x1024xf32>
    %129 = tpu.matmul %99, %128, %cst_50 {dimension_numbers = #tpu.dot_dimension_numbers<[1], [0], [0], [1], [0, 0, 1, 1], [], []>} : vector<8x256xf32>, vector<256x1024xf32>, vector<8x1024xf32> -> vector<8x1024xf32>
    %130 = arith.addf %127, %129 : vector<8x1024xf32>
    %131 = vector.extract_strided_slice %130 {offsets = [0, 0], sizes = [8, 768], strides = [1, 1]} : vector<8x1024xf32> to vector<8x768xf32>
    %cst_51 = arith.constant 5.000000e-01 : f32
    %132 = vector.broadcast %cst_51 : f32 to vector<8x768xf32>
    %133 = arith.mulf %132, %131 : vector<8x768xf32>
    %134 = math.tanh %133 : vector<8x768xf32>
    %cst_52 = arith.constant 1.000000e+00 : f32
    %135 = vector.broadcast %cst_52 : f32 to vector<8x768xf32>
    %136 = arith.addf %134, %135 : vector<8x768xf32>
    %cst_53 = arith.constant 5.000000e-01 : f32
    %137 = vector.broadcast %cst_53 : f32 to vector<8x768xf32>
    %138 = arith.mulf %137, %136 : vector<8x768xf32>
    %139 = vector.extract_strided_slice %130 {offsets = [0, 768], sizes = [8, 256], strides = [1, 1]} : vector<8x1024xf32> to vector<8x256xf32>
    %140 = math.tanh %139 : vector<8x256xf32>
    %141 = vector.extract_strided_slice %138 {offsets = [0, 256], sizes = [8, 256], strides = [1, 1]} : vector<8x768xf32> to vector<8x256xf32>
    %142 = arith.mulf %141, %96 : vector<8x256xf32>
    %143 = vector.extract_strided_slice %138 {offsets = [0, 0], sizes = [8, 256], strides = [1, 1]} : vector<8x768xf32> to vector<8x256xf32>
    %144 = arith.mulf %143, %140 : vector<8x256xf32>
    %145 = arith.addf %142, %144 : vector<8x256xf32>
    %146 = vector.extract_strided_slice %138 {offsets = [0, 512], sizes = [8, 256], strides = [1, 1]} : vector<8x768xf32> to vector<8x256xf32>
    %147 = math.tanh %145 : vector<8x256xf32>
    %148 = arith.mulf %146, %147 : vector<8x256xf32>
    %149 = vector.extract_strided_slice %148 {offsets = [0, 0], sizes = [8, 128], strides = [1, 1]} : vector<8x256xf32> to vector<8x128xf32>
    %150 = vector.extract_strided_slice %148 {offsets = [0, 128], sizes = [8, 128], strides = [1, 1]} : vector<8x256xf32> to vector<8x128xf32>
    %151 = arith.index_cast %107 : i32 to index
    %c0_54 = arith.constant 0 : index
    %152 = vector.load %arg4[%151, %c0_54] : memref<64x128xf32, #tpu.memory_space<vmem>>, vector<8x128xf32>
    tpu.vector_store %arg4[%151, %c0_54], %149 {strides = array<i32>} : memref<64x128xf32, #tpu.memory_space<vmem>>, vector<8x128xf32>,
    %153 = arith.index_cast %110 : i32 to index
    %c0_55 = arith.constant 0 : index
    %154 = vector.load %arg4[%153, %c0_55] : memref<64x128xf32, #tpu.memory_space<vmem>>, vector<8x128xf32>
    tpu.vector_store %arg4[%153, %c0_55], %150 {strides = array<i32>} : memref<64x128xf32, #tpu.memory_space<vmem>>, vector<8x128xf32>,
    %c3_i32 = arith.constant 3 : i32
    %c8_i32_56 = arith.constant 8 : i32
    %155 = arith.muli %c3_i32, %c8_i32_56 : i32
    %156 = tpu.assume_multiple %155, 8 : i32
    %c7_i32_57 = arith.constant 7 : i32
    %157 = arith.subi %c7_i32_57, %c3_i32 : i32
    %c8_i32_58 = arith.constant 8 : i32
    %158 = arith.muli %157, %c8_i32_58 : i32
    %159 = tpu.assume_multiple %158, 8 : i32
    %160 = arith.index_cast %156 : i32 to index
    %c0_59 = arith.constant 0 : index
    %161 = vector.load %arg5[%160, %c0_59] : memref<64x1024xf32, #tpu.memory_space<vmem>>, vector<8x128xf32>
    %162 = arith.index_cast %159 : i32 to index
    %c128_60 = arith.constant 128 : index
    %163 = vector.load %arg5[%162, %c128_60] : memref<64x1024xf32, #tpu.memory_space<vmem>>, vector<8x128xf32>
    %164 = arith.index_cast %156 : i32 to index
    %c256_61 = arith.constant 256 : index
    %165 = vector.load %arg5[%164, %c256_61] : memref<64x1024xf32, #tpu.memory_space<vmem>>, vector<8x128xf32>
    %166 = arith.index_cast %159 : i32 to index
    %c384_62 = arith.constant 384 : index
    %167 = vector.load %arg5[%166, %c384_62] : memref<64x1024xf32, #tpu.memory_space<vmem>>, vector<8x128xf32>
    %168 = arith.index_cast %156 : i32 to index
    %c512_63 = arith.constant 512 : index
    %169 = vector.load %arg5[%168, %c512_63] : memref<64x1024xf32, #tpu.memory_space<vmem>>, vector<8x128xf32>
    %170 = arith.index_cast %159 : i32 to index
    %c640_64 = arith.constant 640 : index
    %171 = vector.load %arg5[%170, %c640_64] : memref<64x1024xf32, #tpu.memory_space<vmem>>, vector<8x128xf32>
    %172 = arith.index_cast %156 : i32 to index
    %c768_65 = arith.constant 768 : index
    %173 = vector.load %arg5[%172, %c768_65] : memref<64x1024xf32, #tpu.memory_space<vmem>>, vector<8x128xf32>
    %174 = arith.index_cast %159 : i32 to index
    %c896_66 = arith.constant 896 : index
    %175 = vector.load %arg5[%174, %c896_66] : memref<64x1024xf32, #tpu.memory_space<vmem>>, vector<8x128xf32>
    %176 = tpu.concatenate %161, %163, %165, %167, %169, %171, %173, %175 in 1 : vector<8x128xf32>, vector<8x128xf32>, vector<8x128xf32>, vector<8x128xf32>, vector<8x128xf32>, vector<8x128xf32>, vector<8x128xf32>, vector<8x128xf32> -> vector<8x1024xf32>
    %c0_67 = arith.constant 0 : index
    %c0_68 = arith.constant 0 : index
    %177 = vector.load %arg3[%c0_67, %c0_68] : memref<256x1024xf32, #tpu.memory_space<vmem>>, vector<256x1024xf32>
    %cst_69 = arith.constant dense<0.000000e+00> : vector<8x1024xf32>
    %178 = tpu.matmul %148, %177, %cst_69 {dimension_numbers = #tpu.dot_dimension_numbers<[1], [0], [0], [1], [0, 0, 1, 1], [], []>} : vector<8x256xf32>, vector<256x1024xf32>, vector<8x1024xf32> -> vector<8x1024xf32>
    %179 = arith.addf %176, %178 : vector<8x1024xf32>
    %180 = vector.extract_strided_slice %179 {offsets = [0, 0], sizes = [8, 768], strides = [1, 1]} : vector<8x1024xf32> to vector<8x768xf32>
    %cst_70 = arith.constant 5.000000e-01 : f32
    %181 = vector.broadcast %cst_70 : f32 to vector<8x768xf32>
    %182 = arith.mulf %181, %180 : vector<8x768xf32>
    %183 = math.tanh %182 : vector<8x768xf32>
    %cst_71 = arith.constant 1.000000e+00 : f32
    %184 = vector.broadcast %cst_71 : f32 to vector<8x768xf32>
    %185 = arith.addf %183, %184 : vector<8x768xf32>
    %cst_72 = arith.constant 5.000000e-01 : f32
    %186 = vector.broadcast %cst_72 : f32 to vector<8x768xf32>
    %187 = arith.mulf %186, %185 : vector<8x768xf32>
    %188 = vector.extract_strided_slice %179 {offsets = [0, 768], sizes = [8, 256], strides = [1, 1]} : vector<8x1024xf32> to vector<8x256xf32>
    %189 = math.tanh %188 : vector<8x256xf32>
    %190 = vector.extract_strided_slice %187 {offsets = [0, 256], sizes = [8, 256], strides = [1, 1]} : vector<8x768xf32> to vector<8x256xf32>
    %191 = arith.mulf %190, %145 : vector<8x256xf32>
    %192 = vector.extract_strided_slice %187 {offsets = [0, 0], sizes = [8, 256], strides = [1, 1]} : vector<8x768xf32> to vector<8x256xf32>
    %193 = arith.mulf %192, %189 : vector<8x256xf32>
    %194 = arith.addf %191, %193 : vector<8x256xf32>
    %195 = vector.extract_strided_slice %187 {offsets = [0, 512], sizes = [8, 256], strides = [1, 1]} : vector<8x768xf32> to vector<8x256xf32>
    %196 = math.tanh %194 : vector<8x256xf32>
    %197 = arith.mulf %195, %196 : vector<8x256xf32>
    %198 = vector.extract_strided_slice %197 {offsets = [0, 0], sizes = [8, 128], strides = [1, 1]} : vector<8x256xf32> to vector<8x128xf32>
    %199 = vector.extract_strided_slice %197 {offsets = [0, 128], sizes = [8, 128], strides = [1, 1]} : vector<8x256xf32> to vector<8x128xf32>
    %200 = arith.index_cast %156 : i32 to index
    %c0_73 = arith.constant 0 : index
    %201 = vector.load %arg4[%200, %c0_73] : memref<64x128xf32, #tpu.memory_space<vmem>>, vector<8x128xf32>
    tpu.vector_store %arg4[%200, %c0_73], %198 {strides = array<i32>} : memref<64x128xf32, #tpu.memory_space<vmem>>, vector<8x128xf32>,
    %202 = arith.index_cast %159 : i32 to index
    %c0_74 = arith.constant 0 : index
    %203 = vector.load %arg4[%202, %c0_74] : memref<64x128xf32, #tpu.memory_space<vmem>>, vector<8x128xf32>
    tpu.vector_store %arg4[%202, %c0_74], %199 {strides = array<i32>} : memref<64x128xf32, #tpu.memory_space<vmem>>, vector<8x128xf32>,
    %c4_i32 = arith.constant 4 : i32
    %c4_i32_75 = arith.constant 4 : i32
    %c8_i32_76 = arith.constant 8 : i32
    %204 = arith.muli %c4_i32_75, %c8_i32_76 : i32
    %205 = tpu.assume_multiple %204, 8 : i32
    %c7_i32_77 = arith.constant 7 : i32
    %206 = arith.subi %c7_i32_77, %c4_i32_75 : i32
    %c8_i32_78 = arith.constant 8 : i32
    %207 = arith.muli %206, %c8_i32_78 : i32
    %208 = tpu.assume_multiple %207, 8 : i32
    %209 = arith.index_cast %205 : i32 to index
    %c0_79 = arith.constant 0 : index
    %210 = vector.load %arg5[%209, %c0_79] : memref<64x1024xf32, #tpu.memory_space<vmem>>, vector<8x128xf32>
    %211 = arith.index_cast %208 : i32 to index
    %c128_80 = arith.constant 128 : index
    %212 = vector.load %arg5[%211, %c128_80] : memref<64x1024xf32, #tpu.memory_space<vmem>>, vector<8x128xf32>
    %213 = arith.index_cast %205 : i32 to index
    %c256_81 = arith.constant 256 : index
    %214 = vector.load %arg5[%213, %c256_81] : memref<64x1024xf32, #tpu.memory_space<vmem>>, vector<8x128xf32>
    %215 = arith.index_cast %208 : i32 to index
    %c384_82 = arith.constant 384 : index
    %216 = vector.load %arg5[%215, %c384_82] : memref<64x1024xf32, #tpu.memory_space<vmem>>, vector<8x128xf32>
    %217 = arith.index_cast %205 : i32 to index
    %c512_83 = arith.constant 512 : index
    %218 = vector.load %arg5[%217, %c512_83] : memref<64x1024xf32, #tpu.memory_space<vmem>>, vector<8x128xf32>
    %219 = arith.index_cast %208 : i32 to index
    %c640_84 = arith.constant 640 : index
    %220 = vector.load %arg5[%219, %c640_84] : memref<64x1024xf32, #tpu.memory_space<vmem>>, vector<8x128xf32>
    %221 = arith.index_cast %205 : i32 to index
    %c768_85 = arith.constant 768 : index
    %222 = vector.load %arg5[%221, %c768_85] : memref<64x1024xf32, #tpu.memory_space<vmem>>, vector<8x128xf32>
    %223 = arith.index_cast %208 : i32 to index
    %c896_86 = arith.constant 896 : index
    %224 = vector.load %arg5[%223, %c896_86] : memref<64x1024xf32, #tpu.memory_space<vmem>>, vector<8x128xf32>
    %225 = tpu.concatenate %210, %212, %214, %216, %218, %220, %222, %224 in 1 : vector<8x128xf32>, vector<8x128xf32>, vector<8x128xf32>, vector<8x128xf32>, vector<8x128xf32>, vector<8x128xf32>, vector<8x128xf32>, vector<8x128xf32> -> vector<8x1024xf32>
    %c0_87 = arith.constant 0 : index
    %c0_88 = arith.constant 0 : index
    %226 = vector.load %arg3[%c0_87, %c0_88] : memref<256x1024xf32, #tpu.memory_space<vmem>>, vector<256x1024xf32>
    %cst_89 = arith.constant dense<0.000000e+00> : vector<8x1024xf32>
    %227 = tpu.matmul %197, %226, %cst_89 {dimension_numbers = #tpu.dot_dimension_numbers<[1], [0], [0], [1], [0, 0, 1, 1], [], []>} : vector<8x256xf32>, vector<256x1024xf32>, vector<8x1024xf32> -> vector<8x1024xf32>
    %228 = arith.addf %225, %227 : vector<8x1024xf32>
    %229 = vector.extract_strided_slice %228 {offsets = [0, 0], sizes = [8, 768], strides = [1, 1]} : vector<8x1024xf32> to vector<8x768xf32>
    %cst_90 = arith.constant 5.000000e-01 : f32
    %230 = vector.broadcast %cst_90 : f32 to vector<8x768xf32>
    %231 = arith.mulf %230, %229 : vector<8x768xf32>
    %232 = math.tanh %231 : vector<8x768xf32>
    %cst_91 = arith.constant 1.000000e+00 : f32
    %233 = vector.broadcast %cst_91 : f32 to vector<8x768xf32>
    %234 = arith.addf %232, %233 : vector<8x768xf32>
    %cst_92 = arith.constant 5.000000e-01 : f32
    %235 = vector.broadcast %cst_92 : f32 to vector<8x768xf32>
    %236 = arith.mulf %235, %234 : vector<8x768xf32>
    %237 = vector.extract_strided_slice %228 {offsets = [0, 768], sizes = [8, 256], strides = [1, 1]} : vector<8x1024xf32> to vector<8x256xf32>
    %238 = math.tanh %237 : vector<8x256xf32>
    %239 = vector.extract_strided_slice %236 {offsets = [0, 256], sizes = [8, 256], strides = [1, 1]} : vector<8x768xf32> to vector<8x256xf32>
    %240 = arith.mulf %239, %194 : vector<8x256xf32>
    %241 = vector.extract_strided_slice %236 {offsets = [0, 0], sizes = [8, 256], strides = [1, 1]} : vector<8x768xf32> to vector<8x256xf32>
    %242 = arith.mulf %241, %238 : vector<8x256xf32>
    %243 = arith.addf %240, %242 : vector<8x256xf32>
    %244 = vector.extract_strided_slice %236 {offsets = [0, 512], sizes = [8, 256], strides = [1, 1]} : vector<8x768xf32> to vector<8x256xf32>
    %245 = math.tanh %243 : vector<8x256xf32>
    %246 = arith.mulf %244, %245 : vector<8x256xf32>
    %247 = vector.extract_strided_slice %246 {offsets = [0, 0], sizes = [8, 128], strides = [1, 1]} : vector<8x256xf32> to vector<8x128xf32>
    %248 = vector.extract_strided_slice %246 {offsets = [0, 128], sizes = [8, 128], strides = [1, 1]} : vector<8x256xf32> to vector<8x128xf32>
    %249 = arith.index_cast %205 : i32 to index
    %c0_93 = arith.constant 0 : index
    %250 = vector.load %arg4[%249, %c0_93] : memref<64x128xf32, #tpu.memory_space<vmem>>, vector<8x128xf32>
    %251 = arith.addf %250, %247 : vector<8x128xf32>
    %252 = arith.index_cast %205 : i32 to index
    %c0_94 = arith.constant 0 : index
    %253 = vector.load %arg4[%252, %c0_94] : memref<64x128xf32, #tpu.memory_space<vmem>>, vector<8x128xf32>
    tpu.vector_store %arg4[%252, %c0_94], %251 {strides = array<i32>} : memref<64x128xf32, #tpu.memory_space<vmem>>, vector<8x128xf32>,
    %254 = arith.index_cast %208 : i32 to index
    %c0_95 = arith.constant 0 : index
    %255 = vector.load %arg4[%254, %c0_95] : memref<64x128xf32, #tpu.memory_space<vmem>>, vector<8x128xf32>
    %256 = arith.addf %255, %248 : vector<8x128xf32>
    %257 = arith.index_cast %208 : i32 to index
    %c0_96 = arith.constant 0 : index
    %258 = vector.load %arg4[%257, %c0_96] : memref<64x128xf32, #tpu.memory_space<vmem>>, vector<8x128xf32>
    tpu.vector_store %arg4[%257, %c0_96], %256 {strides = array<i32>} : memref<64x128xf32, #tpu.memory_space<vmem>>, vector<8x128xf32>,
    %c5_i32 = arith.constant 5 : i32
    %c8_i32_97 = arith.constant 8 : i32
    %259 = arith.muli %c5_i32, %c8_i32_97 : i32
    %260 = tpu.assume_multiple %259, 8 : i32
    %c7_i32_98 = arith.constant 7 : i32
    %261 = arith.subi %c7_i32_98, %c5_i32 : i32
    %c8_i32_99 = arith.constant 8 : i32
    %262 = arith.muli %261, %c8_i32_99 : i32
    %263 = tpu.assume_multiple %262, 8 : i32
    %264 = arith.index_cast %260 : i32 to index
    %c0_100 = arith.constant 0 : index
    %265 = vector.load %arg5[%264, %c0_100] : memref<64x1024xf32, #tpu.memory_space<vmem>>, vector<8x128xf32>
    %266 = arith.index_cast %263 : i32 to index
    %c128_101 = arith.constant 128 : index
    %267 = vector.load %arg5[%266, %c128_101] : memref<64x1024xf32, #tpu.memory_space<vmem>>, vector<8x128xf32>
    %268 = arith.index_cast %260 : i32 to index
    %c256_102 = arith.constant 256 : index
    %269 = vector.load %arg5[%268, %c256_102] : memref<64x1024xf32, #tpu.memory_space<vmem>>, vector<8x128xf32>
    %270 = arith.index_cast %263 : i32 to index
    %c384_103 = arith.constant 384 : index
    %271 = vector.load %arg5[%270, %c384_103] : memref<64x1024xf32, #tpu.memory_space<vmem>>, vector<8x128xf32>
    %272 = arith.index_cast %260 : i32 to index
    %c512_104 = arith.constant 512 : index
    %273 = vector.load %arg5[%272, %c512_104] : memref<64x1024xf32, #tpu.memory_space<vmem>>, vector<8x128xf32>
    %274 = arith.index_cast %263 : i32 to index
    %c640_105 = arith.constant 640 : index
    %275 = vector.load %arg5[%274, %c640_105] : memref<64x1024xf32, #tpu.memory_space<vmem>>, vector<8x128xf32>
    %276 = arith.index_cast %260 : i32 to index
    %c768_106 = arith.constant 768 : index
    %277 = vector.load %arg5[%276, %c768_106] : memref<64x1024xf32, #tpu.memory_space<vmem>>, vector<8x128xf32>
    %278 = arith.index_cast %263 : i32 to index
    %c896_107 = arith.constant 896 : index
    %279 = vector.load %arg5[%278, %c896_107] : memref<64x1024xf32, #tpu.memory_space<vmem>>, vector<8x128xf32>
    %280 = tpu.concatenate %265, %267, %269, %271, %273, %275, %277, %279 in 1 : vector<8x128xf32>, vector<8x128xf32>, vector<8x128xf32>, vector<8x128xf32>, vector<8x128xf32>, vector<8x128xf32>, vector<8x128xf32>, vector<8x128xf32> -> vector<8x1024xf32>
    %c0_108 = arith.constant 0 : index
    %c0_109 = arith.constant 0 : index
    %281 = vector.load %arg3[%c0_108, %c0_109] : memref<256x1024xf32, #tpu.memory_space<vmem>>, vector<256x1024xf32>
    %cst_110 = arith.constant dense<0.000000e+00> : vector<8x1024xf32>
    %282 = tpu.matmul %246, %281, %cst_110 {dimension_numbers = #tpu.dot_dimension_numbers<[1], [0], [0], [1], [0, 0, 1, 1], [], []>} : vector<8x256xf32>, vector<256x1024xf32>, vector<8x1024xf32> -> vector<8x1024xf32>
    %283 = arith.addf %280, %282 : vector<8x1024xf32>
    %284 = vector.extract_strided_slice %283 {offsets = [0, 0], sizes = [8, 768], strides = [1, 1]} : vector<8x1024xf32> to vector<8x768xf32>
    %cst_111 = arith.constant 5.000000e-01 : f32
    %285 = vector.broadcast %cst_111 : f32 to vector<8x768xf32>
    %286 = arith.mulf %285, %284 : vector<8x768xf32>
    %287 = math.tanh %286 : vector<8x768xf32>
    %cst_112 = arith.constant 1.000000e+00 : f32
    %288 = vector.broadcast %cst_112 : f32 to vector<8x768xf32>
    %289 = arith.addf %287, %288 : vector<8x768xf32>
    %cst_113 = arith.constant 5.000000e-01 : f32
    %290 = vector.broadcast %cst_113 : f32 to vector<8x768xf32>
    %291 = arith.mulf %290, %289 : vector<8x768xf32>
    %292 = vector.extract_strided_slice %283 {offsets = [0, 768], sizes = [8, 256], strides = [1, 1]} : vector<8x1024xf32> to vector<8x256xf32>
    %293 = math.tanh %292 : vector<8x256xf32>
    %294 = vector.extract_strided_slice %291 {offsets = [0, 256], sizes = [8, 256], strides = [1, 1]} : vector<8x768xf32> to vector<8x256xf32>
    %295 = arith.mulf %294, %243 : vector<8x256xf32>
    %296 = vector.extract_strided_slice %291 {offsets = [0, 0], sizes = [8, 256], strides = [1, 1]} : vector<8x768xf32> to vector<8x256xf32>
    %297 = arith.mulf %296, %293 : vector<8x256xf32>
    %298 = arith.addf %295, %297 : vector<8x256xf32>
    %299 = vector.extract_strided_slice %291 {offsets = [0, 512], sizes = [8, 256], strides = [1, 1]} : vector<8x768xf32> to vector<8x256xf32>
    %300 = math.tanh %298 : vector<8x256xf32>
    %301 = arith.mulf %299, %300 : vector<8x256xf32>
    %302 = vector.extract_strided_slice %301 {offsets = [0, 0], sizes = [8, 128], strides = [1, 1]} : vector<8x256xf32> to vector<8x128xf32>
    %303 = vector.extract_strided_slice %301 {offsets = [0, 128], sizes = [8, 128], strides = [1, 1]} : vector<8x256xf32> to vector<8x128xf32>
    %304 = arith.index_cast %260 : i32 to index
    %c0_114 = arith.constant 0 : index
    %305 = vector.load %arg4[%304, %c0_114] : memref<64x128xf32, #tpu.memory_space<vmem>>, vector<8x128xf32>
    %306 = arith.addf %305, %302 : vector<8x128xf32>
    %307 = arith.index_cast %260 : i32 to index
    %c0_115 = arith.constant 0 : index
    %308 = vector.load %arg4[%307, %c0_115] : memref<64x128xf32, #tpu.memory_space<vmem>>, vector<8x128xf32>
    tpu.vector_store %arg4[%307, %c0_115], %306 {strides = array<i32>} : memref<64x128xf32, #tpu.memory_space<vmem>>, vector<8x128xf32>,
    %309 = arith.index_cast %263 : i32 to index
    %c0_116 = arith.constant 0 : index
    %310 = vector.load %arg4[%309, %c0_116] : memref<64x128xf32, #tpu.memory_space<vmem>>, vector<8x128xf32>
    %311 = arith.addf %310, %303 : vector<8x128xf32>
    %312 = arith.index_cast %263 : i32 to index
    %c0_117 = arith.constant 0 : index
    %313 = vector.load %arg4[%312, %c0_117] : memref<64x128xf32, #tpu.memory_space<vmem>>, vector<8x128xf32>
    tpu.vector_store %arg4[%312, %c0_117], %311 {strides = array<i32>} : memref<64x128xf32, #tpu.memory_space<vmem>>, vector<8x128xf32>,
    %c6_i32 = arith.constant 6 : i32
    %c8_i32_118 = arith.constant 8 : i32
    %314 = arith.muli %c6_i32, %c8_i32_118 : i32
    %315 = tpu.assume_multiple %314, 8 : i32
    %c7_i32_119 = arith.constant 7 : i32
    %316 = arith.subi %c7_i32_119, %c6_i32 : i32
    %c8_i32_120 = arith.constant 8 : i32
    %317 = arith.muli %316, %c8_i32_120 : i32
    %318 = tpu.assume_multiple %317, 8 : i32
    %319 = arith.index_cast %315 : i32 to index
    %c0_121 = arith.constant 0 : index
    %320 = vector.load %arg5[%319, %c0_121] : memref<64x1024xf32, #tpu.memory_space<vmem>>, vector<8x128xf32>
    %321 = arith.index_cast %318 : i32 to index
    %c128_122 = arith.constant 128 : index
    %322 = vector.load %arg5[%321, %c128_122] : memref<64x1024xf32, #tpu.memory_space<vmem>>, vector<8x128xf32>
    %323 = arith.index_cast %315 : i32 to index
    %c256_123 = arith.constant 256 : index
    %324 = vector.load %arg5[%323, %c256_123] : memref<64x1024xf32, #tpu.memory_space<vmem>>, vector<8x128xf32>
    %325 = arith.index_cast %318 : i32 to index
    %c384_124 = arith.constant 384 : index
    %326 = vector.load %arg5[%325, %c384_124] : memref<64x1024xf32, #tpu.memory_space<vmem>>, vector<8x128xf32>
    %327 = arith.index_cast %315 : i32 to index
    %c512_125 = arith.constant 512 : index
    %328 = vector.load %arg5[%327, %c512_125] : memref<64x1024xf32, #tpu.memory_space<vmem>>, vector<8x128xf32>
    %329 = arith.index_cast %318 : i32 to index
    %c640_126 = arith.constant 640 : index
    %330 = vector.load %arg5[%329, %c640_126] : memref<64x1024xf32, #tpu.memory_space<vmem>>, vector<8x128xf32>
    %331 = arith.index_cast %315 : i32 to index
    %c768_127 = arith.constant 768 : index
    %332 = vector.load %arg5[%331, %c768_127] : memref<64x1024xf32, #tpu.memory_space<vmem>>, vector<8x128xf32>
    %333 = arith.index_cast %318 : i32 to index
    %c896_128 = arith.constant 896 : index
    %334 = vector.load %arg5[%333, %c896_128] : memref<64x1024xf32, #tpu.memory_space<vmem>>, vector<8x128xf32>
    %335 = tpu.concatenate %320, %322, %324, %326, %328, %330, %332, %334 in 1 : vector<8x128xf32>, vector<8x128xf32>, vector<8x128xf32>, vector<8x128xf32>, vector<8x128xf32>, vector<8x128xf32>, vector<8x128xf32>, vector<8x128xf32> -> vector<8x1024xf32>
    %c0_129 = arith.constant 0 : index
    %c0_130 = arith.constant 0 : index
    %336 = vector.load %arg3[%c0_129, %c0_130] : memref<256x1024xf32, #tpu.memory_space<vmem>>, vector<256x1024xf32>
    %cst_131 = arith.constant dense<0.000000e+00> : vector<8x1024xf32>
    %337 = tpu.matmul %301, %336, %cst_131 {dimension_numbers = #tpu.dot_dimension_numbers<[1], [0], [0], [1], [0, 0, 1, 1], [], []>} : vector<8x256xf32>, vector<256x1024xf32>, vector<8x1024xf32> -> vector<8x1024xf32>
    %338 = arith.addf %335, %337 : vector<8x1024xf32>
    %339 = vector.extract_strided_slice %338 {offsets = [0, 0], sizes = [8, 768], strides = [1, 1]} : vector<8x1024xf32> to vector<8x768xf32>
    %cst_132 = arith.constant 5.000000e-01 : f32
    %340 = vector.broadcast %cst_132 : f32 to vector<8x768xf32>
    %341 = arith.mulf %340, %339 : vector<8x768xf32>
    %342 = math.tanh %341 : vector<8x768xf32>
    %cst_133 = arith.constant 1.000000e+00 : f32
    %343 = vector.broadcast %cst_133 : f32 to vector<8x768xf32>
    %344 = arith.addf %342, %343 : vector<8x768xf32>
    %cst_134 = arith.constant 5.000000e-01 : f32
    %345 = vector.broadcast %cst_134 : f32 to vector<8x768xf32>
    %346 = arith.mulf %345, %344 : vector<8x768xf32>
    %347 = vector.extract_strided_slice %338 {offsets = [0, 768], sizes = [8, 256], strides = [1, 1]} : vector<8x1024xf32> to vector<8x256xf32>
    %348 = math.tanh %347 : vector<8x256xf32>
    %349 = vector.extract_strided_slice %346 {offsets = [0, 256], sizes = [8, 256], strides = [1, 1]} : vector<8x768xf32> to vector<8x256xf32>
    %350 = arith.mulf %349, %298 : vector<8x256xf32>
    %351 = vector.extract_strided_slice %346 {offsets = [0, 0], sizes = [8, 256], strides = [1, 1]} : vector<8x768xf32> to vector<8x256xf32>
    %352 = arith.mulf %351, %348 : vector<8x256xf32>
    %353 = arith.addf %350, %352 : vector<8x256xf32>
    %354 = vector.extract_strided_slice %346 {offsets = [0, 512], sizes = [8, 256], strides = [1, 1]} : vector<8x768xf32> to vector<8x256xf32>
    %355 = math.tanh %353 : vector<8x256xf32>
    %356 = arith.mulf %354, %355 : vector<8x256xf32>
    %357 = vector.extract_strided_slice %356 {offsets = [0, 0], sizes = [8, 128], strides = [1, 1]} : vector<8x256xf32> to vector<8x128xf32>
    %358 = vector.extract_strided_slice %356 {offsets = [0, 128], sizes = [8, 128], strides = [1, 1]} : vector<8x256xf32> to vector<8x128xf32>
    %359 = arith.index_cast %315 : i32 to index
    %c0_135 = arith.constant 0 : index
    %360 = vector.load %arg4[%359, %c0_135] : memref<64x128xf32, #tpu.memory_space<vmem>>, vector<8x128xf32>
    %361 = arith.addf %360, %357 : vector<8x128xf32>
    %362 = arith.index_cast %315 : i32 to index
    %c0_136 = arith.constant 0 : index
    %363 = vector.load %arg4[%362, %c0_136] : memref<64x128xf32, #tpu.memory_space<vmem>>, vector<8x128xf32>
    tpu.vector_store %arg4[%362, %c0_136], %361 {strides = array<i32>} : memref<64x128xf32, #tpu.memory_space<vmem>>, vector<8x128xf32>,
    %364 = arith.index_cast %318 : i32 to index
    %c0_137 = arith.constant 0 : index
    %365 = vector.load %arg4[%364, %c0_137] : memref<64x128xf32, #tpu.memory_space<vmem>>, vector<8x128xf32>
    %366 = arith.addf %365, %358 : vector<8x128xf32>
    %367 = arith.index_cast %318 : i32 to index
    %c0_138 = arith.constant 0 : index
    %368 = vector.load %arg4[%367, %c0_138] : memref<64x128xf32, #tpu.memory_space<vmem>>, vector<8x128xf32>
    tpu.vector_store %arg4[%367, %c0_138], %366 {strides = array<i32>} : memref<64x128xf32, #tpu.memory_space<vmem>>, vector<8x128xf32>,
    %c7_i32_139 = arith.constant 7 : i32
    %c8_i32_140 = arith.constant 8 : i32
    %369 = arith.muli %c7_i32_139, %c8_i32_140 : i32
    %370 = tpu.assume_multiple %369, 8 : i32
    %c7_i32_141 = arith.constant 7 : i32
    %371 = arith.subi %c7_i32_141, %c7_i32_139 : i32
    %c8_i32_142 = arith.constant 8 : i32
    %372 = arith.muli %371, %c8_i32_142 : i32
    %373 = tpu.assume_multiple %372, 8 : i32
    %374 = arith.index_cast %370 : i32 to index
    %c0_143 = arith.constant 0 : index
    %375 = vector.load %arg5[%374, %c0_143] : memref<64x1024xf32, #tpu.memory_space<vmem>>, vector<8x128xf32>
    %376 = arith.index_cast %373 : i32 to index
    %c128_144 = arith.constant 128 : index
    %377 = vector.load %arg5[%376, %c128_144] : memref<64x1024xf32, #tpu.memory_space<vmem>>, vector<8x128xf32>
    %378 = arith.index_cast %370 : i32 to index
    %c256_145 = arith.constant 256 : index
    %379 = vector.load %arg5[%378, %c256_145] : memref<64x1024xf32, #tpu.memory_space<vmem>>, vector<8x128xf32>
    %380 = arith.index_cast %373 : i32 to index
    %c384_146 = arith.constant 384 : index
    %381 = vector.load %arg5[%380, %c384_146] : memref<64x1024xf32, #tpu.memory_space<vmem>>, vector<8x128xf32>
    %382 = arith.index_cast %370 : i32 to index
    %c512_147 = arith.constant 512 : index
    %383 = vector.load %arg5[%382, %c512_147] : memref<64x1024xf32, #tpu.memory_space<vmem>>, vector<8x128xf32>
    %384 = arith.index_cast %373 : i32 to index
    %c640_148 = arith.constant 640 : index
    %385 = vector.load %arg5[%384, %c640_148] : memref<64x1024xf32, #tpu.memory_space<vmem>>, vector<8x128xf32>
    %386 = arith.index_cast %370 : i32 to index
    %c768_149 = arith.constant 768 : index
    %387 = vector.load %arg5[%386, %c768_149] : memref<64x1024xf32, #tpu.memory_space<vmem>>, vector<8x128xf32>
    %388 = arith.index_cast %373 : i32 to index
    %c896_150 = arith.constant 896 : index
    %389 = vector.load %arg5[%388, %c896_150] : memref<64x1024xf32, #tpu.memory_space<vmem>>, vector<8x128xf32>
    %390 = tpu.concatenate %375, %377, %379, %381, %383, %385, %387, %389 in 1 : vector<8x128xf32>, vector<8x128xf32>, vector<8x128xf32>, vector<8x128xf32>, vector<8x128xf32>, vector<8x128xf32>, vector<8x128xf32>, vector<8x128xf32> -> vector<8x1024xf32>
    %c0_151 = arith.constant 0 : index
    %c0_152 = arith.constant 0 : index
    %391 = vector.load %arg3[%c0_151, %c0_152] : memref<256x1024xf32, #tpu.memory_space<vmem>>, vector<256x1024xf32>
    %cst_153 = arith.constant dense<0.000000e+00> : vector<8x1024xf32>
    %392 = tpu.matmul %356, %391, %cst_153 {dimension_numbers = #tpu.dot_dimension_numbers<[1], [0], [0], [1], [0, 0, 1, 1], [], []>} : vector<8x256xf32>, vector<256x1024xf32>, vector<8x1024xf32> -> vector<8x1024xf32>
    %393 = arith.addf %390, %392 : vector<8x1024xf32>
    %394 = vector.extract_strided_slice %393 {offsets = [0, 0], sizes = [8, 768], strides = [1, 1]} : vector<8x1024xf32> to vector<8x768xf32>
    %cst_154 = arith.constant 5.000000e-01 : f32
    %395 = vector.broadcast %cst_154 : f32 to vector<8x768xf32>
    %396 = arith.mulf %395, %394 : vector<8x768xf32>
    %397 = math.tanh %396 : vector<8x768xf32>
    %cst_155 = arith.constant 1.000000e+00 : f32
    %398 = vector.broadcast %cst_155 : f32 to vector<8x768xf32>
    %399 = arith.addf %397, %398 : vector<8x768xf32>
    %cst_156 = arith.constant 5.000000e-01 : f32
    %400 = vector.broadcast %cst_156 : f32 to vector<8x768xf32>
    %401 = arith.mulf %400, %399 : vector<8x768xf32>
    %402 = vector.extract_strided_slice %393 {offsets = [0, 768], sizes = [8, 256], strides = [1, 1]} : vector<8x1024xf32> to vector<8x256xf32>
    %403 = math.tanh %402 : vector<8x256xf32>
    %404 = vector.extract_strided_slice %401 {offsets = [0, 256], sizes = [8, 256], strides = [1, 1]} : vector<8x768xf32> to vector<8x256xf32>
    %405 = arith.mulf %404, %353 : vector<8x256xf32>
    %406 = vector.extract_strided_slice %401 {offsets = [0, 0], sizes = [8, 256], strides = [1, 1]} : vector<8x768xf32> to vector<8x256xf32>
    %407 = arith.mulf %406, %403 : vector<8x256xf32>
    %408 = arith.addf %405, %407 : vector<8x256xf32>
    %409 = vector.extract_strided_slice %401 {offsets = [0, 512], sizes = [8, 256], strides = [1, 1]} : vector<8x768xf32> to vector<8x256xf32>
    %410 = math.tanh %408 : vector<8x256xf32>
    %411 = arith.mulf %409, %410 : vector<8x256xf32>
    %412 = vector.extract_strided_slice %411 {offsets = [0, 0], sizes = [8, 128], strides = [1, 1]} : vector<8x256xf32> to vector<8x128xf32>
    %413 = vector.extract_strided_slice %411 {offsets = [0, 128], sizes = [8, 128], strides = [1, 1]} : vector<8x256xf32> to vector<8x128xf32>
    %414 = arith.index_cast %370 : i32 to index
    %c0_157 = arith.constant 0 : index
    %415 = vector.load %arg4[%414, %c0_157] : memref<64x128xf32, #tpu.memory_space<vmem>>, vector<8x128xf32>
    %416 = arith.addf %415, %412 : vector<8x128xf32>
    %417 = arith.index_cast %370 : i32 to index
    %c0_158 = arith.constant 0 : index
    %418 = vector.load %arg4[%417, %c0_158] : memref<64x128xf32, #tpu.memory_space<vmem>>, vector<8x128xf32>
    tpu.vector_store %arg4[%417, %c0_158], %416 {strides = array<i32>} : memref<64x128xf32, #tpu.memory_space<vmem>>, vector<8x128xf32>,
    %419 = arith.index_cast %373 : i32 to index
    %c0_159 = arith.constant 0 : index
    %420 = vector.load %arg4[%419, %c0_159] : memref<64x128xf32, #tpu.memory_space<vmem>>, vector<8x128xf32>
    %421 = arith.addf %420, %413 : vector<8x128xf32>
    %422 = arith.index_cast %373 : i32 to index
    %c0_160 = arith.constant 0 : index
    %423 = vector.load %arg4[%422, %c0_160] : memref<64x128xf32, #tpu.memory_space<vmem>>, vector<8x128xf32>
    tpu.vector_store %arg4[%422, %c0_160], %421 {strides = array<i32>} : memref<64x128xf32, #tpu.memory_space<vmem>>, vector<8x128xf32>,
    %c4_i32_161 = arith.constant 4 : i32
    return
  }
}

</mosaic_0001>

<bundles_post_ra>
// kernel: tpu_custom_call.1
= control target key start
LH: loop header
LB: loop body
LE: loop exit
PB: predicated region body
PF: predicated region fallthrough
CT: control target
= control target key end

     0   :  { %9 = vsyncpa [#allocation4], 0  ;;  %s6720_s0 = inlined_call_operand.vmem [shape: f32[64,16], index: 0, kind: input, shape index: {}]   ;;  %s6721_s1 = inlined_call_operand.hbm [shape: f32[16,1024], index: 1, kind: input, shape index: {}]   ;;  %s6722_s2 = inlined_call_operand.vmem [shape: f32[1,1024], index: 2, kind: input, shape index: {}]   ;;  %s6723_s3 = inlined_call_operand.hbm [shape: f32[256,1024], index: 3, kind: input, shape index: {}]   ;;  %s6724_s4 = inlined_call_operand.hbm [shape: f32[64,128], index: 4, kind: output, shape index: {}]  }
   0x1   :  { %10 = vsyncpa [#allocation7], 0 }
   0x2   :  { %11 = vsyncpa [#allocation5], 0  ;;  %s18_s17 = sshll.u32 %s6721_s1, 4  ;;  %s5933_s18 = smov [#allocation3]   ;;  %s19_s17 = int_to_ptr.hbm [resolvable:$true] %s18_s17 }
   0x3   :  { %s20_s19 = sshll.u32 %s5933_s18, 4  ;;  %s33_s22 = sshll.u32 %s6723_s3, 4  ;;  %s21_s19 = int_to_ptr.vmem [resolvable:$true] %s20_s19  ;;  %s34_s22 = int_to_ptr.hbm [resolvable:$true] %s33_s22 }
   0x4   :  { %s5934_s23 = smov 1024   ;;  %s5935_s24 = smov 64  }
   0x5   :  { %26 = dma.hbm_to_vmem [thread:$0]  %s19_s17, 2048, %s21_s19, [#allocation4], %s5934_s23, %s5934_s23, %s5935_s24  }
   0x6   :  { %s5936_s25 = smov [#allocation6]  }
   0x7   :  { %s35_s26 = sshll.u32 %s5936_s25, 4  ;;  %s36_s26 = int_to_ptr.vmem [resolvable:$true] %s35_s26 }
   0x8   :  { %41 = dma.hbm_to_vmem [thread:$0]  %s34_s22, 32768, %s36_s26, [#allocation7], %s5934_s23, %s5934_s23, %s5935_s24  }
   0x9   :  { %5927 = dma.done.wait [#allocation4], 2048  }
   0xa   :  { %5928 = vsyncadd [#allocation4], 4294965248 }
   0xb   :  { %5929 = dma.done.wait [#allocation7], 32768  }
   0xc   :  { %5930 = vsyncadd [#allocation7], 4294934528  ;;  %v66_v0 = vld [vmem:[#allocation3 + $0x40] sm:$0xff]  ;;  %v67_v1 = vld [vmem:[#allocation3 + $0x48] sm:$0xff]  ;;  %vm92_vm0 = vcmask 130048   ;;  %s5602_s19 = sshll.u32 %s6724_s4, 4  ;;  %s5603_s19 = int_to_ptr.hbm [resolvable:$true] %s5602_s19 }
   0xd   :  { %v68_v2 = vld [vmem:[#allocation3 + $0x50] sm:$0xff]  ;;  %131 = vmatpush.msra.mxu0 %v66_v0  ;;  %172 = vmatpush.msra.mxu1 %v67_v1  ;;  %v69_v3 = vld [vmem:[#allocation3 + $0x58] sm:$0xff]  ;;  %v58_v4 = vld [vmem:[#allocation3] sm:$0xff]  ;;  %s5939_s20 = smov 128   ;;  %s5940_s21 = smov 8  }
   0xe   :  { %v59_v5 = vld [vmem:[#allocation3 + $0x8] sm:$0xff]  ;;  %213 = vmatpush.msra.mxu2 %v68_v2  ;;  %254 = vmatpush.msra.mxu3 %v69_v3  ;;  %v60_v6 = vld [vmem:[#allocation3 + $0x10] sm:$0xff]  ;;  %v61_v7 = vld [vmem:[#allocation3 + $0x18] sm:$0xff] }
   0xf   :  { %v5975_v8 = vld [vmem:[%s6720_s0] sm:$0xff]  ;;  %132 = vmatpush.msra.mxu0 %v58_v4  ;;  %173 = vmatpush.msra.mxu1 %v59_v5  ;;  %v5988_v9 = vld [vmem:[%s6720_s0 + $0x8] sm:$0xff]  ;;  %v6001_v10 = vld [vmem:[%s6720_s0 + $0x10] sm:$0xff] }
  0x10   :  { %214 = vmatpush.msra.mxu2 %v60_v6  ;;  %255 = vmatpush.msra.mxu3 %v61_v7  ;;  %v6014_v11 = vld [vmem:[%s6720_s0 + $0x18] sm:$0xff]  ;;  %v70_v12 = vld [vmem:[#allocation3 + $0x60] sm:$0xff]  ;;  %v71_v13 = vld [vmem:[#allocation3 + $0x68] sm:$0xff] }
  0x11   :  { %5623 = vmatmul.msk.f32.vlgmr.msra.gmra.mxu0 %vm92_vm0, %v5975_v8  ;;  %5631 = vmatmul.msk.f32.vlgmr.msra.gmra.mxu1 %vm92_vm0, %v5975_v8  ;;  %v72_v14 = vld [vmem:[#allocation3 + $0x70] sm:$0xff]  ;;  %v73_v15 = vld [vmem:[#allocation3 + $0x78] sm:$0xff]  ;;  %v62_v16 = vld [vmem:[#allocation3 + $0x20] sm:$0xff] }
  0x12   :  { %5639 = vmatmul.msk.f32.vlgmr.msra.gmra.mxu2 %vm92_vm0, %v5975_v8  ;;  %5647 = vmatmul.msk.f32.vlgmr.msra.gmra.mxu3 %vm92_vm0, %v5975_v8  ;;  %v63_v17 = vld [vmem:[#allocation3 + $0x28] sm:$0xff]  ;;  %v64_v18 = vld [vmem:[#allocation3 + $0x30] sm:$0xff]  ;;  %v65_v19 = vld [vmem:[#allocation3 + $0x38] sm:$0xff] }
  0x13   :  { %295 = vmatpush.msrb.mxu0 %v70_v12  ;;  %336 = vmatpush.msrb.mxu1 %v71_v13  ;;  %v6027_v20 = vld [vmem:[%s6720_s0 + $0x20] sm:$0xff]  ;;  %v644_v23 = vld [vmem:[#allocation6 + $0x3c8] sm:$0xff]  ;;  %v6053_v46 = vld [vmem:[%s6720_s0 + $0x30] sm:$0xff] }
  0x14   :  { %377 = vmatpush.msrb.mxu2 %v72_v14  ;;  %418 = vmatpush.msrb.mxu3 %v73_v15  ;;  %v643_v21 = vld [vmem:[#allocation6 + $0x3c0] sm:$0xff]  ;;  %v772_v24 = vld [vmem:[#allocation6 + $0x7c8] sm:$0xff]  ;;  %v6066_v59 = vld [vmem:[%s6720_s0 + $0x38] sm:$0xff] }
  0x15   :  { %296 = vmatpush.msrb.mxu0 %v62_v16  ;;  %337 = vmatpush.msrb.mxu1 %v63_v17  ;;  %v771_v22 = vld [vmem:[#allocation6 + $0x7c0] sm:$0xff]  ;;  %v636_v27 = vld [vmem:[#allocation6 + $0x388] sm:$0xff] }
  0x16   :  { %378 = vmatpush.msrb.mxu2 %v64_v18  ;;  %419 = vmatpush.msrb.mxu3 %v65_v19  ;;  %v635_v25 = vld [vmem:[#allocation6 + $0x380] sm:$0xff]  ;;  %v764_v28 = vld [vmem:[#allocation6 + $0x788] sm:$0xff] }
  0x17   :  { %779 = vmatpush.msra.mxu0 %v643_v21  ;;  %799 = vmatpush.msra.mxu1 %v771_v22  ;;  %v763_v26 = vld [vmem:[#allocation6 + $0x780] sm:$0xff]  ;;  %v628_v31 = vld [vmem:[#allocation6 + $0x348] sm:$0xff] }
  0x18   :  { %819 = vmatpush.msra.mxu2 %v644_v23  ;;  %839 = vmatpush.msra.mxu3 %v772_v24  ;;  %v627_v29 = vld [vmem:[#allocation6 + $0x340] sm:$0xff]  ;;  %v756_v32 = vld [vmem:[#allocation6 + $0x748] sm:$0xff] }
  0x19   :  { %5624 = vmatmul.msk.f32.gmra.mxu0 %vm92_vm0, %v5988_v9  ;;  %5632 = vmatmul.msk.f32.gmra.mxu1 %vm92_vm0, %v5988_v9  ;;  %v755_v30 = vld [vmem:[#allocation6 + $0x740] sm:$0xff]  ;;  %v6040_v33 = vld [vmem:[%s6720_s0 + $0x28] sm:$0xff] }
  0x1a   :  { %5640 = vmatmul.msk.f32.gmra.mxu2 %vm92_vm0, %v5988_v9  ;;  %5648 = vmatmul.msk.f32.gmra.mxu3 %vm92_vm0, %v5988_v9  ;;  %v619_v34 = vld [vmem:[#allocation6 + $0x300] sm:$0xff]  ;;  %v620_v36 = vld [vmem:[#allocation6 + $0x308] sm:$0xff] }
  0x1b   :  { %780 = vmatpush.msra.mxu0 %v635_v25  ;;  %800 = vmatpush.msra.mxu1 %v763_v26  ;;  %v747_v35 = vld [vmem:[#allocation6 + $0x700] sm:$0xff]  ;;  %v748_v37 = vld [vmem:[#allocation6 + $0x708] sm:$0xff] }
  0x1c   :  { %820 = vmatpush.msra.mxu2 %v636_v27  ;;  %840 = vmatpush.msra.mxu3 %v764_v28  ;;  %v611_v38 = vld [vmem:[#allocation6 + $0x2c0] sm:$0xff]  ;;  %v612_v40 = vld [vmem:[#allocation6 + $0x2c8] sm:$0xff]  ;;  %v645_v28 = vld [vmem:[#allocation6 + $0x3d0] sm:$0xff] }
  0x1d   :  { %781 = vmatpush.msra.mxu0 %v627_v29  ;;  %801 = vmatpush.msra.mxu1 %v755_v30  ;;  %v739_v39 = vld [vmem:[#allocation6 + $0x6c0] sm:$0xff]  ;;  %v740_v41 = vld [vmem:[#allocation6 + $0x6c8] sm:$0xff]  ;;  %v773_v29 = vld [vmem:[#allocation6 + $0x7d0] sm:$0xff] }
  0x1e   :  { %821 = vmatpush.msra.mxu2 %v628_v31  ;;  %841 = vmatpush.msra.mxu3 %v756_v32  ;;  %v603_v42 = vld [vmem:[#allocation6 + $0x280] sm:$0xff]  ;;  %v604_v44 = vld [vmem:[#allocation6 + $0x288] sm:$0xff]  ;;  %v646_v30 = vld [vmem:[#allocation6 + $0x3d8] sm:$0xff] }
  0x1f   :  { %782 = vmatpush.msra.mxu0 %v619_v34  ;;  %802 = vmatpush.msra.mxu1 %v747_v35  ;;  %v731_v43 = vld [vmem:[#allocation6 + $0x680] sm:$0xff]  ;;  %v732_v45 = vld [vmem:[#allocation6 + $0x688] sm:$0xff]  ;;  %v774_v31 = vld [vmem:[#allocation6 + $0x7d8] sm:$0xff] }
  0x20   :  { %822 = vmatpush.msra.mxu2 %v620_v36  ;;  %842 = vmatpush.msra.mxu3 %v748_v37  ;;  %v595_v47 = vld [vmem:[#allocation6 + $0x240] sm:$0xff]  ;;  %v596_v49 = vld [vmem:[#allocation6 + $0x248] sm:$0xff]  ;;  %v637_v32 = vld [vmem:[#allocation6 + $0x390] sm:$0xff] }
  0x21   :  { %5625 = vmatmul.msk.f32.gmra.mxu0 %vm92_vm0, %v6001_v10  ;;  %5633 = vmatmul.msk.f32.gmra.mxu1 %vm92_vm0, %v6001_v10  ;;  %v723_v48 = vld [vmem:[#allocation6 + $0x640] sm:$0xff]  ;;  %v724_v50 = vld [vmem:[#allocation6 + $0x648] sm:$0xff]  ;;  %v765_v34 = vld [vmem:[#allocation6 + $0x790] sm:$0xff] }
  0x22   :  { %5641 = vmatmul.msk.f32.gmra.mxu2 %vm92_vm0, %v6001_v10  ;;  %5649 = vmatmul.msk.f32.gmra.mxu3 %vm92_vm0, %v6001_v10  ;;  %v587_v51 = vld [vmem:[#allocation6 + $0x200] sm:$0xff]  ;;  %v588_v53 = vld [vmem:[#allocation6 + $0x208] sm:$0xff]  ;;  %v638_v35 = vld [vmem:[#allocation6 + $0x398] sm:$0xff] }
  0x23   :  { %783 = vmatpush.msra.mxu0 %v611_v38  ;;  %803 = vmatpush.msra.mxu1 %v739_v39  ;;  %v715_v52 = vld [vmem:[#allocation6 + $0x600] sm:$0xff]  ;;  %v716_v54 = vld [vmem:[#allocation6 + $0x608] sm:$0xff]  ;;  %v766_v36 = vld [vmem:[#allocation6 + $0x798] sm:$0xff] }
  0x24   :  { %823 = vmatpush.msra.mxu2 %v612_v40  ;;  %843 = vmatpush.msra.mxu3 %v740_v41  ;;  %v579_v55 = vld [vmem:[#allocation6 + $0x1c0] sm:$0xff]  ;;  %v580_v57 = vld [vmem:[#allocation6 + $0x1c8] sm:$0xff]  ;;  %v757_v37 = vld [vmem:[#allocation6 + $0x750] sm:$0xff] }
  0x25   :  { %784 = vmatpush.msra.mxu0 %v603_v42  ;;  %804 = vmatpush.msra.mxu1 %v731_v43  ;;  %v707_v56 = vld [vmem:[#allocation6 + $0x5c0] sm:$0xff]  ;;  %v708_v58 = vld [vmem:[#allocation6 + $0x5c8] sm:$0xff]  ;;  %v630_v38 = vld [vmem:[#allocation6 + $0x358] sm:$0xff] }
  0x26   :  { %824 = vmatpush.msra.mxu2 %v604_v44  ;;  %844 = vmatpush.msra.mxu3 %v732_v45  ;;  %v571_v60 = vld [vmem:[#allocation6 + $0x180] sm:$0xff]  ;;  %v572_v62 = vld [vmem:[#allocation6 + $0x188] sm:$0xff]  ;;  %v758_v39 = vld [vmem:[#allocation6 + $0x758] sm:$0xff] }
  0x27   :  { %785 = vmatpush.msra.mxu0 %v595_v47  ;;  %805 = vmatpush.msra.mxu1 %v723_v48  ;;  %v699_v61 = vld [vmem:[#allocation6 + $0x580] sm:$0xff]  ;;  %v700_v63 = vld [vmem:[#allocation6 + $0x588] sm:$0xff]  ;;  %v621_v40 = vld [vmem:[#allocation6 + $0x310] sm:$0xff] }
  0x28   :  { %825 = vmatpush.msra.mxu2 %v596_v49  ;;  %845 = vmatpush.msra.mxu3 %v724_v50  ;;  %v563_v0 = vld [vmem:[#allocation6 + $0x140] sm:$0xff]  ;;  %v564_v2 = vld [vmem:[#allocation6 + $0x148] sm:$0xff]  ;;  %v749_v41 = vld [vmem:[#allocation6 + $0x710] sm:$0xff] }
  0x29   :  { %5626 = vmatmul.msk.f32.gmra.mxu0 %vm92_vm0, %v6014_v11  ;;  %5634 = vmatmul.msk.f32.gmra.mxu1 %vm92_vm0, %v6014_v11  ;;  %v691_v1 = vld [vmem:[#allocation6 + $0x540] sm:$0xff]  ;;  %v692_v3 = vld [vmem:[#allocation6 + $0x548] sm:$0xff]  ;;  %v622_v42 = vld [vmem:[#allocation6 + $0x318] sm:$0xff] }
  0x2a   :  { %5642 = vmatmul.msk.f32.gmra.mxu2 %vm92_vm0, %v6014_v11  ;;  %5650 = vmatmul.msk.f32.gmra.mxu3 %vm92_vm0, %v6014_v11  ;;  %v555_v4 = vld [vmem:[#allocation6 + $0x100] sm:$0xff]  ;;  %v556_v6 = vld [vmem:[#allocation6 + $0x108] sm:$0xff]  ;;  %v750_v43 = vld [vmem:[#allocation6 + $0x718] sm:$0xff] }
  0x2b   :  { %786 = vmatpush.msra.mxu0 %v587_v51  ;;  %806 = vmatpush.msra.mxu1 %v715_v52  ;;  %v683_v5 = vld [vmem:[#allocation6 + $0x500] sm:$0xff]  ;;  %v684_v7 = vld [vmem:[#allocation6 + $0x508] sm:$0xff]  ;;  %v613_v44 = vld [vmem:[#allocation6 + $0x2d0] sm:$0xff] }
  0x2c   :  { %826 = vmatpush.msra.mxu2 %v588_v53  ;;  %846 = vmatpush.msra.mxu3 %v716_v54  ;;  %v547_v12 = vld [vmem:[#allocation6 + $0xc0] sm:$0xff]  ;;  %v548_v14 = vld [vmem:[#allocation6 + $0xc8] sm:$0xff]  ;;  %v741_v45 = vld [vmem:[#allocation6 + $0x6d0] sm:$0xff] }
  0x2d   :  { %787 = vmatpush.msra.mxu0 %v579_v55  ;;  %807 = vmatpush.msra.mxu1 %v707_v56  ;;  %v675_v13 = vld [vmem:[#allocation6 + $0x4c0] sm:$0xff]  ;;  %v676_v15 = vld [vmem:[#allocation6 + $0x4c8] sm:$0xff]  ;;  %v614_v47 = vld [vmem:[#allocation6 + $0x2d8] sm:$0xff] }
  0x2e   :  { %827 = vmatpush.msra.mxu2 %v580_v57  ;;  %847 = vmatpush.msra.mxu3 %v708_v58  ;;  %v539_v16 = vld [vmem:[#allocation6 + $0x80] sm:$0xff]  ;;  %v540_v18 = vld [vmem:[#allocation6 + $0x88] sm:$0xff]  ;;  %v742_v48 = vld [vmem:[#allocation6 + $0x6d8] sm:$0xff] }
  0x2f   :  { %788 = vmatpush.msra.mxu0 %v571_v60  ;;  %808 = vmatpush.msra.mxu1 %v699_v61  ;;  %v667_v17 = vld [vmem:[#allocation6 + $0x480] sm:$0xff]  ;;  %v668_v19 = vld [vmem:[#allocation6 + $0x488] sm:$0xff]  ;;  %v733_v49 = vld [vmem:[#allocation6 + $0x690] sm:$0xff] }
  0x30   :  { %828 = vmatpush.msra.mxu2 %v572_v62  ;;  %848 = vmatpush.msra.mxu3 %v700_v63  ;;  %v531_v21 = vld [vmem:[#allocation6 + $0x40] sm:$0xff]  ;;  %v532_v23 = vld [vmem:[#allocation6 + $0x48] sm:$0xff]  ;;  %v606_v50 = vld [vmem:[#allocation6 + $0x298] sm:$0xff] }
  0x31   :  { %5627 = vmatmul.msk.f32.gmra.mxu0 %vm92_vm0, %v6027_v20  ;;  %5635 = vmatmul.msk.f32.gmra.mxu1 %vm92_vm0, %v6027_v20  ;;  %v659_v22 = vld [vmem:[#allocation6 + $0x440] sm:$0xff]  ;;  %v660_v24 = vld [vmem:[#allocation6 + $0x448] sm:$0xff]  ;;  %v734_v51 = vld [vmem:[#allocation6 + $0x698] sm:$0xff] }
  0x32   :  { %5643 = vmatmul.msk.f32.gmra.mxu2 %vm92_vm0, %v6027_v20  ;;  %5651 = vmatmul.msk.f32.gmra.mxu3 %vm92_vm0, %v6027_v20  ;;  %v651_v25 = vld [vmem:[#allocation6 + $0x400] sm:$0xff]  ;;  %v524_v26 = vld [vmem:[#allocation6 + $0x8] sm:$0xff]  ;;  %v597_v52 = vld [vmem:[#allocation6 + $0x250] sm:$0xff] }
  0x33   :  { %789 = vmatpush.msra.mxu0 %v563_v0  ;;  %809 = vmatpush.msra.mxu1 %v691_v1  ;;  %v652_v27 = vld [vmem:[#allocation6 + $0x408] sm:$0xff]  ;;  %v725_v53 = vld [vmem:[#allocation6 + $0x650] sm:$0xff]  ;;  %v598_v54 = vld [vmem:[#allocation6 + $0x258] sm:$0xff] }
  0x34   :  { %829 = vmatpush.msra.mxu2 %v564_v2  ;;  %849 = vmatpush.msra.mxu3 %v692_v3  ;;  %v726_v55 = vld [vmem:[#allocation6 + $0x658] sm:$0xff]  ;;  %v589_v56 = vld [vmem:[#allocation6 + $0x210] sm:$0xff] }
  0x35   :  { %790 = vmatpush.msra.mxu0 %v555_v4  ;;  %810 = vmatpush.msra.mxu1 %v683_v5  ;;  %v717_v57 = vld [vmem:[#allocation6 + $0x610] sm:$0xff]  ;;  %v590_v58 = vld [vmem:[#allocation6 + $0x218] sm:$0xff] }
  0x36   :  { %830 = vmatpush.msra.mxu2 %v556_v6  ;;  %850 = vmatpush.msra.mxu3 %v684_v7  ;;  %v718_v60 = vld [vmem:[#allocation6 + $0x618] sm:$0xff]  ;;  %v709_v61 = vld [vmem:[#allocation6 + $0x5d0] sm:$0xff] }
  0x37   :  { %791 = vmatpush.msra.mxu0 %v547_v12  ;;  %811 = vmatpush.msra.mxu1 %v675_v13  ;;  %v582_v62 = vld [vmem:[#allocation6 + $0x1d8] sm:$0xff]  ;;  %v573_v0 = vld [vmem:[#allocation6 + $0x190] sm:$0xff] }
  0x38   :  { %831 = vmatpush.msra.mxu2 %v548_v14  ;;  %851 = vmatpush.msra.mxu3 %v676_v15  ;;  %v710_v63 = vld [vmem:[#allocation6 + $0x5d8] sm:$0xff]  ;;  %v701_v1 = vld [vmem:[#allocation6 + $0x590] sm:$0xff] }
  0x39   :  { %5628 = vmatmul.msk.f32.gmra.mxu0 %vm92_vm0, %v6040_v33  ;;  %5636 = vmatmul.msk.f32.gmra.mxu1 %vm92_vm0, %v6040_v33  ;;  %v574_v2 = vld [vmem:[#allocation6 + $0x198] sm:$0xff]  ;;  %v565_v4 = vld [vmem:[#allocation6 + $0x150] sm:$0xff] }
  0x3a   :  { %5644 = vmatmul.msk.f32.gmra.mxu2 %vm92_vm0, %v6040_v33  ;;  %5652 = vmatmul.msk.f32.gmra.mxu3 %vm92_vm0, %v6040_v33  ;;  %v702_v3 = vld [vmem:[#allocation6 + $0x598] sm:$0xff]  ;;  %v693_v5 = vld [vmem:[#allocation6 + $0x550] sm:$0xff] }
  0x3b   :  { %792 = vmatpush.msra.mxu0 %v539_v16  ;;  %812 = vmatpush.msra.mxu1 %v667_v17  ;;  %v566_v6 = vld [vmem:[#allocation6 + $0x158] sm:$0xff]  ;;  %v685_v12 = vld [vmem:[#allocation6 + $0x510] sm:$0xff] }
  0x3c   :  { %832 = vmatpush.msra.mxu2 %v540_v18  ;;  %852 = vmatpush.msra.mxu3 %v668_v19  ;;  %v694_v7 = vld [vmem:[#allocation6 + $0x558] sm:$0xff]  ;;  %v549_v15 = vld [vmem:[#allocation6 + $0xd0] sm:$0xff] }
  0x3d   :  { %793 = vmatpush.msra.mxu0 %v531_v21  ;;  %813 = vmatpush.msra.mxu1 %v659_v22  ;;  %v558_v13 = vld [vmem:[#allocation6 + $0x118] sm:$0xff]  ;;  %v677_v16 = vld [vmem:[#allocation6 + $0x4d0] sm:$0xff] }
  0x3e   :  { %833 = vmatpush.msra.mxu2 %v532_v23  ;;  %853 = vmatpush.msra.mxu3 %v660_v24  ;;  %v686_v14 = vld [vmem:[#allocation6 + $0x518] sm:$0xff]  ;;  %v541_v19 = vld [vmem:[#allocation6 + $0x90] sm:$0xff] }
  0x3f   :  { %814 = vmatpush.msra.mxu1 %v651_v25  ;;  %v550_v17 = vld [vmem:[#allocation6 + $0xd8] sm:$0xff]  ;;  %v669_v21 = vld [vmem:[#allocation6 + $0x490] sm:$0xff] }
  0x40   :  { %834 = vmatpush.msra.mxu2 %v524_v26  ;;  %854 = vmatpush.msra.mxu3 %v652_v27  ;;  %v678_v18 = vld [vmem:[#allocation6 + $0x4d8] sm:$0xff]  ;;  %v661_v24 = vld [vmem:[#allocation6 + $0x450] sm:$0xff] }
  0x41   :  { %5629 = vmatmul.msk.f32.gmra.mxu0 %vm92_vm0, %v6053_v46  ;;  %5637 = vmatmul.msk.f32.gmra.mxu1 %vm92_vm0, %v6053_v46  ;;  %v542_v22 = vld [vmem:[#allocation6 + $0x98] sm:$0xff]  ;;  %v525_v26 = vld [vmem:[#allocation6 + $0x10] sm:$0xff] }
  0x42   :  { %5645 = vmatmul.msk.f32.gmra.mxu2 %vm92_vm0, %v6053_v46  ;;  %5653 = vmatmul.msk.f32.gmra.mxu3 %vm92_vm0, %v6053_v46  ;;  %v670_v23 = vld [vmem:[#allocation6 + $0x498] sm:$0xff]  ;;  %v653_v27 = vld [vmem:[#allocation6 + $0x410] sm:$0xff] }
  0x43   :  { %v662_v25 = vld [vmem:[#allocation6 + $0x458] sm:$0xff] }
  0x49   :  { %5630 = vmatmul.msk.f32.gmra.mxu0 %vm92_vm0, %v6066_v59  ;;  %5638 = vmatmul.msk.f32.gmra.mxu1 %vm92_vm0, %v6066_v59 }
  0x4a   :  { %5646 = vmatmul.msk.f32.gmra.mxu2 %vm92_vm0, %v6066_v59  ;;  %5654 = vmatmul.msk.f32.gmra.mxu3 %vm92_vm0, %v6066_v59 }
  0x51   :  { %5655 = vmatmul.msk.f32.vlgmr.msrb.gmra.mxu0 %vm92_vm0, %v5975_v8  ;;  %5663 = vmatmul.msk.f32.vlgmr.msrb.gmra.mxu1 %vm92_vm0, %v5975_v8 }
  0x52   :  { %5671 = vmatmul.msk.f32.vlgmr.msrb.gmra.mxu2 %vm92_vm0, %v5975_v8  ;;  %5679 = vmatmul.msk.f32.vlgmr.msrb.gmra.mxu3 %vm92_vm0, %v5975_v8  ;;  %v523_v8 = vld [vmem:[#allocation6] sm:$0xff] }
  0x53   :  { %794 = vmatpush.msra.mxu0 %v523_v8  ;;  %879 = vmatpush.msrb.mxu1 %v773_v29  ;;  %v534_v8 = vld [vmem:[#allocation6 + $0x58] sm:$0xff] }
  0x54   :  { %899 = vmatpush.msrb.mxu2 %v646_v30  ;;  %919 = vmatpush.msrb.mxu3 %v774_v31  ;;  %v654_v29 = vld [vmem:[#allocation6 + $0x418] sm:$0xff]  ;;  %v775_v30 = vld [vmem:[#allocation6 + $0x7e0] sm:$0xff]  ;;  %v5937_v31 = vmov 0.0  }
  0x55   :  { %859 = vmatpush.msrb.mxu0 %v645_v28  ;;  %880 = vmatpush.msrb.mxu1 %v765_v34  ;;  %v526_v28 = vld [vmem:[#allocation6 + $0x18] sm:$0xff]  ;;  %v776_v34 = vld [vmem:[#allocation6 + $0x7e8] sm:$0xff] }
  0x56   :  { %900 = vmatpush.msrb.mxu2 %v638_v35  ;;  %920 = vmatpush.msrb.mxu3 %v766_v36  ;;  %v639_v35 = vld [vmem:[#allocation6 + $0x3a0] sm:$0xff] }
  0x57   :  { %860 = vmatpush.msrb.mxu0 %v637_v32  ;;  %881 = vmatpush.msrb.mxu1 %v757_v37  ;;  %v648_v32 = vld [vmem:[#allocation6 + $0x3e8] sm:$0xff]  ;;  %v767_v36 = vld [vmem:[#allocation6 + $0x7a0] sm:$0xff] }
  0x58   :  { %901 = vmatpush.msrb.mxu2 %v630_v38  ;;  %921 = vmatpush.msrb.mxu3 %v758_v39  ;;  %v768_v37 = vld [vmem:[#allocation6 + $0x7a8] sm:$0xff]  ;;  %v759_v38 = vld [vmem:[#allocation6 + $0x760] sm:$0xff] }
  0x59   :  { %5656 = vmatmul.msk.f32.gmra.mxu0 %vm92_vm0, %v5988_v9  ;;  %5664 = vmatmul.msk.f32.gmra.mxu1 %vm92_vm0, %v5988_v9  ;;  %v632_v39 = vld [vmem:[#allocation6 + $0x368] sm:$0xff] }
  0x5a   :  { %5672 = vmatmul.msk.f32.gmra.mxu2 %vm92_vm0, %v5988_v9  ;;  %5680 = vmatmul.msk.f32.gmra.mxu3 %vm92_vm0, %v5988_v9  ;;  %v629_v9 = vld [vmem:[#allocation6 + $0x350] sm:$0xff] }
  0x5b   :  { %861 = vmatpush.msrb.mxu0 %v629_v9  ;;  %882 = vmatpush.msrb.mxu1 %v749_v41  ;;  %v640_v9 = vld [vmem:[#allocation6 + $0x3a8] sm:$0xff] }
  0x5c   :  { %902 = vmatpush.msrb.mxu2 %v622_v42  ;;  %922 = vmatpush.msrb.mxu3 %v750_v43  ;;  %v623_v43 = vld [vmem:[#allocation6 + $0x320] sm:$0xff] }
  0x5d   :  { %862 = vmatpush.msrb.mxu0 %v621_v40  ;;  %883 = vmatpush.msrb.mxu1 %v741_v45  ;;  %v760_v40 = vld [vmem:[#allocation6 + $0x768] sm:$0xff] }
  0x5e   :  { %903 = vmatpush.msrb.mxu2 %v614_v47  ;;  %923 = vmatpush.msrb.mxu3 %v742_v48  ;;  %v624_v45 = vld [vmem:[#allocation6 + $0x328] sm:$0xff]  ;;  %v615_v48 = vld [vmem:[#allocation6 + $0x2e0] sm:$0xff] }
  0x5f   :  { %863 = vmatpush.msrb.mxu0 %v613_v44  ;;  %884 = vmatpush.msrb.mxu1 %v733_v49  ;;  %v751_v44 = vld [vmem:[#allocation6 + $0x720] sm:$0xff]  ;;  %v752_v47 = vld [vmem:[#allocation6 + $0x728] sm:$0xff] }
  0x60   :  { %904 = vmatpush.msrb.mxu2 %v606_v50  ;;  %924 = vmatpush.msrb.mxu3 %v734_v51  ;;  %v616_v49 = vld [vmem:[#allocation6 + $0x2e8] sm:$0xff]  ;;  %v607_v51 = vld [vmem:[#allocation6 + $0x2a0] sm:$0xff] }
  0x61   :  { %5657 = vmatmul.msk.f32.gmra.mxu0 %vm92_vm0, %v6001_v10  ;;  %5665 = vmatmul.msk.f32.gmra.mxu1 %vm92_vm0, %v6001_v10  ;;  %v744_v50 = vld [vmem:[#allocation6 + $0x6e8] sm:$0xff] }
  0x62   :  { %5673 = vmatmul.msk.f32.gmra.mxu2 %vm92_vm0, %v6001_v10  ;;  %5681 = vmatmul.msk.f32.gmra.mxu3 %vm92_vm0, %v6001_v10  ;;  %v605_v10 = vld [vmem:[#allocation6 + $0x290] sm:$0xff] }
  0x63   :  { %864 = vmatpush.msrb.mxu0 %v605_v10  ;;  %885 = vmatpush.msrb.mxu1 %v725_v53  ;;  %v743_v10 = vld [vmem:[#allocation6 + $0x6e0] sm:$0xff] }
  0x64   :  { %905 = vmatpush.msrb.mxu2 %v598_v54  ;;  %925 = vmatpush.msrb.mxu3 %v726_v55  ;;  %v608_v55 = vld [vmem:[#allocation6 + $0x2a8] sm:$0xff] }
  0x65   :  { %865 = vmatpush.msrb.mxu0 %v597_v52  ;;  %886 = vmatpush.msrb.mxu1 %v717_v57  ;;  %v735_v52 = vld [vmem:[#allocation6 + $0x6a0] sm:$0xff] }
  0x66   :  { %906 = vmatpush.msrb.mxu2 %v590_v58  ;;  %926 = vmatpush.msrb.mxu3 %v718_v60  ;;  %v599_v57 = vld [vmem:[#allocation6 + $0x260] sm:$0xff]  ;;  %v600_v60 = vld [vmem:[#allocation6 + $0x268] sm:$0xff] }
  0x67   :  { %866 = vmatpush.msrb.mxu0 %v589_v56  ;;  %887 = vmatpush.msrb.mxu1 %v709_v61  ;;  %v736_v56 = vld [vmem:[#allocation6 + $0x6a8] sm:$0xff]  ;;  %v727_v58 = vld [vmem:[#allocation6 + $0x660] sm:$0xff] }
  0x68   :  { %907 = vmatpush.msrb.mxu2 %v582_v62  ;;  %927 = vmatpush.msrb.mxu3 %v710_v63  ;;  %v591_v63 = vld [vmem:[#allocation6 + $0x220] sm:$0xff] }
  0x69   :  { %5658 = vmatmul.msk.f32.gmra.mxu0 %vm92_vm0, %v6014_v11  ;;  %5666 = vmatmul.msk.f32.gmra.mxu1 %vm92_vm0, %v6014_v11 }
  0x6a   :  { %5674 = vmatmul.msk.f32.gmra.mxu2 %vm92_vm0, %v6014_v11  ;;  %5682 = vmatmul.msk.f32.gmra.mxu3 %vm92_vm0, %v6014_v11  ;;  %v581_v11 = vld [vmem:[#allocation6 + $0x1d0] sm:$0xff] }
  0x6b   :  { %867 = vmatpush.msrb.mxu0 %v581_v11  ;;  %888 = vmatpush.msrb.mxu1 %v701_v1  ;;  %v728_v11 = vld [vmem:[#allocation6 + $0x668] sm:$0xff] }
  0x6c   :  { %908 = vmatpush.msrb.mxu2 %v574_v2  ;;  %928 = vmatpush.msrb.mxu3 %v702_v3  ;;  %v592_v1 = vld [vmem:[#allocation6 + $0x228] sm:$0xff]  ;;  %v583_v3 = vld [vmem:[#allocation6 + $0x1e0] sm:$0xff] }
  0x6d   :  { %868 = vmatpush.msrb.mxu0 %v573_v0  ;;  %889 = vmatpush.msrb.mxu1 %v693_v5  ;;  %v719_v0 = vld [vmem:[#allocation6 + $0x620] sm:$0xff]  ;;  %v720_v2 = vld [vmem:[#allocation6 + $0x628] sm:$0xff] }
  0x6e   :  { %909 = vmatpush.msrb.mxu2 %v566_v6  ;;  %929 = vmatpush.msrb.mxu3 %v694_v7  ;;  %v584_v5 = vld [vmem:[#allocation6 + $0x1e8] sm:$0xff]  ;;  %v575_v7 = vld [vmem:[#allocation6 + $0x1a0] sm:$0xff] }
  0x6f   :  { %869 = vmatpush.msrb.mxu0 %v565_v4  ;;  %890 = vmatpush.msrb.mxu1 %v685_v12  ;;  %v711_v4 = vld [vmem:[#allocation6 + $0x5e0] sm:$0xff]  ;;  %v712_v6 = vld [vmem:[#allocation6 + $0x5e8] sm:$0xff] }
  0x70   :  { %910 = vmatpush.msrb.mxu2 %v558_v13  ;;  %930 = vmatpush.msrb.mxu3 %v686_v14  ;;  %v576_v12 = vld [vmem:[#allocation6 + $0x1a8] sm:$0xff]  ;;  %v567_v14 = vld [vmem:[#allocation6 + $0x160] sm:$0xff] }
  0x71   :  { %5659 = vmatmul.msk.f32.gmra.mxu0 %vm92_vm0, %v6027_v20  ;;  %5667 = vmatmul.msk.f32.gmra.mxu1 %vm92_vm0, %v6027_v20  ;;  %v704_v13 = vld [vmem:[#allocation6 + $0x5a8] sm:$0xff] }
  0x72   :  { %5675 = vmatmul.msk.f32.gmra.mxu2 %vm92_vm0, %v6027_v20  ;;  %5683 = vmatmul.msk.f32.gmra.mxu3 %vm92_vm0, %v6027_v20  ;;  %v557_v20 = vld [vmem:[#allocation6 + $0x110] sm:$0xff] }
  0x73   :  { %870 = vmatpush.msrb.mxu0 %v557_v20  ;;  %891 = vmatpush.msrb.mxu1 %v677_v16  ;;  %v703_v20 = vld [vmem:[#allocation6 + $0x5a0] sm:$0xff] }
  0x74   :  { %911 = vmatpush.msrb.mxu2 %v550_v17  ;;  %931 = vmatpush.msrb.mxu3 %v678_v18  ;;  %v568_v18 = vld [vmem:[#allocation6 + $0x168] sm:$0xff] }
  0x75   :  { %871 = vmatpush.msrb.mxu0 %v549_v15  ;;  %892 = vmatpush.msrb.mxu1 %v669_v21  ;;  %v695_v15 = vld [vmem:[#allocation6 + $0x560] sm:$0xff] }
  0x76   :  { %912 = vmatpush.msrb.mxu2 %v542_v22  ;;  %932 = vmatpush.msrb.mxu3 %v670_v23  ;;  %v559_v21 = vld [vmem:[#allocation6 + $0x120] sm:$0xff]  ;;  %v560_v23 = vld [vmem:[#allocation6 + $0x128] sm:$0xff] }
  0x77   :  { %872 = vmatpush.msrb.mxu0 %v541_v19  ;;  %893 = vmatpush.msrb.mxu1 %v661_v24  ;;  %v696_v19 = vld [vmem:[#allocation6 + $0x568] sm:$0xff]  ;;  %v687_v22 = vld [vmem:[#allocation6 + $0x520] sm:$0xff] }
  0x78   :  { %913 = vmatpush.msrb.mxu2 %v534_v8  ;;  %933 = vmatpush.msrb.mxu3 %v662_v25  ;;  %v551_v25 = vld [vmem:[#allocation6 + $0xe0] sm:$0xff] }
  0x79   :  { %5660 = vmatmul.msk.f32.gmra.mxu0 %vm92_vm0, %v6040_v33  ;;  %5668 = vmatmul.msk.f32.gmra.mxu1 %vm92_vm0, %v6040_v33 }
  0x7a   :  { %5676 = vmatmul.msk.f32.gmra.mxu2 %vm92_vm0, %v6040_v33  ;;  %5684 = vmatmul.msk.f32.gmra.mxu3 %vm92_vm0, %v6040_v33  ;;  %v533_v33 = vld [vmem:[#allocation6 + $0x50] sm:$0xff] }
  0x7b   :  { %873 = vmatpush.msrb.mxu0 %v533_v33  ;;  %894 = vmatpush.msrb.mxu1 %v653_v27  ;;  %v688_v33 = vld [vmem:[#allocation6 + $0x528] sm:$0xff] }
  0x7c   :  { %914 = vmatpush.msrb.mxu2 %v526_v28  ;;  %934 = vmatpush.msrb.mxu3 %v654_v29  ;;  %v552_v27 = vld [vmem:[#allocation6 + $0xe8] sm:$0xff]  ;;  %v543_v29 = vld [vmem:[#allocation6 + $0xa0] sm:$0xff] }
  0x7d   :  { %874 = vmatpush.msrb.mxu0 %v525_v26  ;;  %v679_v26 = vld [vmem:[#allocation6 + $0x4e0] sm:$0xff]  ;;  %v680_v28 = vld [vmem:[#allocation6 + $0x4e8] sm:$0xff] }
  0x81   :  { %5661 = vmatmul.msk.f32.gmra.mxu0 %vm92_vm0, %v6053_v46  ;;  %5669 = vmatmul.msk.f32.gmra.mxu1 %vm92_vm0, %v6053_v46 }
  0x82   :  { %5677 = vmatmul.msk.f32.gmra.mxu2 %vm92_vm0, %v6053_v46  ;;  %5685 = vmatmul.msk.f32.gmra.mxu3 %vm92_vm0, %v6053_v46  ;;  %v647_v46 = vld [vmem:[#allocation6 + $0x3e0] sm:$0xff] }
  0x89   :  { %5662 = vmatmul.msk.f32.gmra.mxu0 %vm92_vm0, %v6066_v59  ;;  %5670 = vmatmul.msk.f32.gmra.mxu1 %vm92_vm0, %v6066_v59 }
  0x8a   :  { %5678 = vmatmul.msk.f32.gmra.mxu2 %vm92_vm0, %v6066_v59  ;;  %5686 = vmatmul.msk.f32.gmra.mxu3 %vm92_vm0, %v6066_v59  ;;  %v631_v59 = vld [vmem:[#allocation6 + $0x360] sm:$0xff] }
  0x8e   :  { %v6144_v41 = vpop.f32.mrf.mxu0  ;;  %v6146_v42 = vpop.f32.mrf.mxu1 }
  0x8f   :  { %6725 = vst [vmem:[#allocation12_spill] sm:$0xff] %v6146_v42 }
  0x91   :  { %795 = vmatmul.f32.vlgmr.msra.gmra.mxu0 %v5937_v31  ;;  %815 = vmatmul.f32.vlgmr.msra.gmra.mxu1 %v5937_v31 }
  0x92   :  { %835 = vmatmul.f32.vlgmr.msra.gmra.mxu2 %v5937_v31  ;;  %855 = vmatmul.f32.vlgmr.msra.gmra.mxu3 %v5937_v31 }
  0x93   :  { %939 = vmatpush.msra.mxu0 %v647_v46  ;;  %959 = vmatpush.msra.mxu1 %v775_v30  ;;  %v671_v46 = vld [vmem:[#allocation6 + $0x4a0] sm:$0xff]  ;;  %v544_v30 = vld [vmem:[#allocation6 + $0xa8] sm:$0xff] }
  0x94   :  { %979 = vmatpush.msra.mxu2 %v648_v32  ;;  %999 = vmatpush.msra.mxu3 %v776_v34  ;;  %v672_v32 = vld [vmem:[#allocation6 + $0x4a8] sm:$0xff]  ;;  %v535_v34 = vld [vmem:[#allocation6 + $0x60] sm:$0xff] }
  0x95   :  { %940 = vmatpush.msra.mxu0 %v639_v35  ;;  %960 = vmatpush.msra.mxu1 %v767_v36  ;;  %v6152_v53 = vpop.f32.mrf.mxu2  ;;  %v6154_v54 = vpop.f32.mrf.mxu3  ;;  %v663_v35 = vld [vmem:[#allocation6 + $0x460] sm:$0xff]  ;;  %v536_v36 = vld [vmem:[#allocation6 + $0x68] sm:$0xff] }
  0x96   :  { %980 = vmatpush.msra.mxu2 %v640_v9  ;;  %1000 = vmatpush.msra.mxu3 %v768_v37  ;;  %6726 = vst [vmem:[#allocation13_spill] sm:$0xff] %v6154_v54  ;;  %v6156_v61 = vpop.f32.mrf.mxu0  ;;  %v6158_v62 = vpop.f32.mrf.mxu1  ;;  %v664_v9 = vld [vmem:[#allocation6 + $0x468] sm:$0xff]  ;;  %v527_v37 = vld [vmem:[#allocation6 + $0x20] sm:$0xff] }
  0x97   :  { %941 = vmatpush.msra.mxu0 %v631_v59  ;;  %961 = vmatpush.msra.mxu1 %v759_v38  ;;  %6727 = vst [vmem:[#allocation14_spill] sm:$0xff] %v6158_v62  ;;  %v655_v59 = vld [vmem:[#allocation6 + $0x420] sm:$0xff]  ;;  %v1361_v54 = vld [vmem:[#allocation6 + $0x648] sm:$0xff]  ;;  %v1274_v62 = vld [vmem:[#allocation6 + $0x390] sm:$0xff] }
  0x98   :  { %981 = vmatpush.msra.mxu2 %v632_v39  ;;  %1001 = vmatpush.msra.mxu3 %v760_v40  ;;  %v528_v40 = vld [vmem:[#allocation6 + $0x28] sm:$0xff] }
  0x99   :  { %942 = vmatpush.msra.mxu0 %v623_v43  ;;  %962 = vmatpush.msra.mxu1 %v751_v44  ;;  %v656_v43 = vld [vmem:[#allocation6 + $0x428] sm:$0xff] }
  0x9a   :  { %982 = vmatpush.msra.mxu2 %v624_v45  ;;  %1002 = vmatpush.msra.mxu3 %v752_v47  ;;  %v649_v47 = vld [vmem:[#allocation6 + $0x3f0] sm:$0xff] }
  0x9b   :  { %875 = vmatmul.f32.vlgmr.msrb.gmra.mxu0 %v5937_v31  ;;  %895 = vmatmul.f32.vlgmr.msrb.gmra.mxu1 %v5937_v31 }
  0x9c   :  { %915 = vmatmul.f32.vlgmr.msrb.gmra.mxu2 %v5937_v31  ;;  %935 = vmatmul.f32.vlgmr.msrb.gmra.mxu3 %v5937_v31 }
  0x9d   :  { %943 = vmatpush.msra.mxu0 %v615_v48  ;;  %963 = vmatpush.msra.mxu1 %v743_v10  ;;  %v6160_v16 = vpop.f32.mrf.mxu2  ;;  %v6162_v17 = vpop.f32.mrf.mxu3  ;;  %v777_v48 = vld [vmem:[#allocation6 + $0x7f0] sm:$0xff]  ;;  %v650_v10 = vld [vmem:[#allocation6 + $0x3f8] sm:$0xff] }
  0x9e   :  { %983 = vmatpush.msra.mxu2 %v616_v49  ;;  %1003 = vmatpush.msra.mxu3 %v744_v50  ;;  %6728 = vst [vmem:[#allocation15_spill] sm:$0xff] %v6162_v17  ;;  %v6164_v24 = vpop.f32.mrf.mxu0  ;;  %v6166_v8 = vpop.f32.mrf.mxu1  ;;  %v778_v49 = vld [vmem:[#allocation6 + $0x7f8] sm:$0xff]  ;;  %v641_v50 = vld [vmem:[#allocation6 + $0x3b0] sm:$0xff] }
  0x9f   :  { %944 = vmatpush.msra.mxu0 %v607_v51  ;;  %964 = vmatpush.msra.mxu1 %v735_v52  ;;  %6729 = vst [vmem:[#allocation16_spill] sm:$0xff] %v6166_v8  ;;  %v769_v51 = vld [vmem:[#allocation6 + $0x7b0] sm:$0xff]  ;;  %v642_v52 = vld [vmem:[#allocation6 + $0x3b8] sm:$0xff] }
  0xa0   :  { %984 = vmatpush.msra.mxu2 %v608_v55  ;;  %1004 = vmatpush.msra.mxu3 %v736_v56  ;;  %v770_v55 = vld [vmem:[#allocation6 + $0x7b8] sm:$0xff]  ;;  %v633_v56 = vld [vmem:[#allocation6 + $0x370] sm:$0xff] }
  0xa1   :  { %945 = vmatpush.msra.mxu0 %v599_v57  ;;  %965 = vmatpush.msra.mxu1 %v727_v58  ;;  %v761_v57 = vld [vmem:[#allocation6 + $0x770] sm:$0xff]  ;;  %v634_v58 = vld [vmem:[#allocation6 + $0x378] sm:$0xff] }
  0xa2   :  { %985 = vmatpush.msra.mxu2 %v600_v60  ;;  %1005 = vmatpush.msra.mxu3 %v728_v11  ;;  %v762_v60 = vld [vmem:[#allocation6 + $0x778] sm:$0xff]  ;;  %v625_v11 = vld [vmem:[#allocation6 + $0x330] sm:$0xff] }
  0xa3   :  { %946 = vmatpush.msra.mxu0 %v591_v63  ;;  %966 = vmatpush.msra.mxu1 %v719_v0  ;;  %v753_v63 = vld [vmem:[#allocation6 + $0x730] sm:$0xff]  ;;  %v1275_v17 = vld [vmem:[#allocation6 + $0x398] sm:$0xff] }
  0xa4   :  { %986 = vmatpush.msra.mxu2 %v592_v1  ;;  %1006 = vmatpush.msra.mxu3 %v720_v2  ;;  %v626_v2 = vld [vmem:[#allocation6 + $0x338] sm:$0xff] }
  0xa5   :  { %947 = vmatpush.msra.mxu0 %v583_v3  ;;  %967 = vmatpush.msra.mxu1 %v711_v4  ;;  %v6168_v38 = vpop.f32.mrf.mxu2  ;;  %v6170_v39 = vpop.f32.mrf.mxu3  ;;  %v754_v3 = vld [vmem:[#allocation6 + $0x738] sm:$0xff]  ;;  %v617_v4 = vld [vmem:[#allocation6 + $0x2f0] sm:$0xff] }
  0xa6   :  { %987 = vmatpush.msra.mxu2 %v584_v5  ;;  %1007 = vmatpush.msra.mxu3 %v712_v6  ;;  %6730 = vst [vmem:[#allocation17_spill] sm:$0xff] %v6170_v39  ;;  %v6172_v44 = vpop.f32.mrf.mxu0  ;;  %v6174_v45 = vpop.f32.mrf.mxu1  ;;  %v745_v5 = vld [vmem:[#allocation6 + $0x6f0] sm:$0xff]  ;;  %v618_v6 = vld [vmem:[#allocation6 + $0x2f8] sm:$0xff] }
  0xa7   :  { %948 = vmatpush.msra.mxu0 %v575_v7  ;;  %968 = vmatpush.msra.mxu1 %v703_v20  ;;  %v746_v7 = vld [vmem:[#allocation6 + $0x6f8] sm:$0xff]  ;;  %v1346_v39 = vld [vmem:[#allocation6 + $0x5d0] sm:$0xff] }
  0xa8   :  { %988 = vmatpush.msra.mxu2 %v576_v12  ;;  %1008 = vmatpush.msra.mxu3 %v704_v13  ;;  %v609_v13 = vld [vmem:[#allocation6 + $0x2b0] sm:$0xff] }
  0xa9   :  { %949 = vmatpush.msra.mxu0 %v567_v14  ;;  %969 = vmatpush.msra.mxu1 %v695_v15  ;;  %v737_v14 = vld [vmem:[#allocation6 + $0x6b0] sm:$0xff]  ;;  %v610_v15 = vld [vmem:[#allocation6 + $0x2b8] sm:$0xff] }
  0xaa   :  { %989 = vmatpush.msra.mxu2 %v568_v18  ;;  %1009 = vmatpush.msra.mxu3 %v696_v19  ;;  %v738_v18 = vld [vmem:[#allocation6 + $0x6b8] sm:$0xff]  ;;  %v601_v19 = vld [vmem:[#allocation6 + $0x270] sm:$0xff] }
  0xab   :  { %950 = vmatpush.msra.mxu0 %v559_v21  ;;  %970 = vmatpush.msra.mxu1 %v687_v22  ;;  %v729_v21 = vld [vmem:[#allocation6 + $0x670] sm:$0xff]  ;;  %v602_v22 = vld [vmem:[#allocation6 + $0x278] sm:$0xff] }
  0xac   :  { %990 = vmatpush.msra.mxu2 %v560_v23  ;;  %1010 = vmatpush.msra.mxu3 %v688_v33  ;;  %v730_v23 = vld [vmem:[#allocation6 + $0x678] sm:$0xff]  ;;  %v593_v33 = vld [vmem:[#allocation6 + $0x230] sm:$0xff] }
  0xad   :  { %951 = vmatpush.msra.mxu0 %v551_v25  ;;  %971 = vmatpush.msra.mxu1 %v679_v26  ;;  %v6180_v0 = vpop.f32.mrf.mxu2  ;;  %v6182_v1 = vpop.f32.mrf.mxu3  ;;  %v721_v25 = vld [vmem:[#allocation6 + $0x630] sm:$0xff]  ;;  %v594_v26 = vld [vmem:[#allocation6 + $0x238] sm:$0xff] }
  0xae   :  { %991 = vmatpush.msra.mxu2 %v552_v27  ;;  %1011 = vmatpush.msra.mxu3 %v680_v28  ;;  %v6184_v20 = vpop.f32.mrf.mxu0  ;;  %v6186_v12 = vpop.f32.mrf.mxu1  ;;  %v722_v27 = vld [vmem:[#allocation6 + $0x638] sm:$0xff]  ;;  %v585_v28 = vld [vmem:[#allocation6 + $0x1f0] sm:$0xff] }
  0xaf   :  { %952 = vmatpush.msra.mxu0 %v543_v29  ;;  %972 = vmatpush.msra.mxu1 %v671_v46  ;;  %v713_v29 = vld [vmem:[#allocation6 + $0x5f0] sm:$0xff] }
  0xb0   :  { %992 = vmatpush.msra.mxu2 %v544_v30  ;;  %1012 = vmatpush.msra.mxu3 %v672_v32  ;;  %v586_v32 = vld [vmem:[#allocation6 + $0x1f8] sm:$0xff] }
  0xb1   :  { %953 = vmatpush.msra.mxu0 %v535_v34  ;;  %973 = vmatpush.msra.mxu1 %v663_v35  ;;  %v714_v34 = vld [vmem:[#allocation6 + $0x5f8] sm:$0xff]  ;;  %v577_v35 = vld [vmem:[#allocation6 + $0x1b0] sm:$0xff] }
  0xb2   :  { %993 = vmatpush.msra.mxu2 %v536_v36  ;;  %1013 = vmatpush.msra.mxu3 %v664_v9  ;;  %v705_v36 = vld [vmem:[#allocation6 + $0x5b0] sm:$0xff]  ;;  %v578_v9 = vld [vmem:[#allocation6 + $0x1b8] sm:$0xff] }
  0xb3   :  { %954 = vmatpush.msra.mxu0 %v527_v37  ;;  %974 = vmatpush.msra.mxu1 %v655_v59  ;;  %v706_v37 = vld [vmem:[#allocation6 + $0x5b8] sm:$0xff] }
  0xb4   :  { %994 = vmatpush.msra.mxu2 %v528_v40  ;;  %1014 = vmatpush.msra.mxu3 %v656_v43  ;;  %v569_v43 = vld [vmem:[#allocation6 + $0x170] sm:$0xff] }
  0xb5   :  { %955 = vmatmul.f32.vlgmr.msra.gmra.mxu0 %v5937_v31  ;;  %975 = vmatmul.f32.vlgmr.msra.gmra.mxu1 %v5937_v31  ;;  %v6188_v46 = vpop.f32.mrf.mxu2  ;;  %v6190_v30 = vpop.f32.mrf.mxu3 }
  0xb6   :  { %995 = vmatmul.f32.vlgmr.msra.gmra.mxu2 %v5937_v31  ;;  %1015 = vmatmul.f32.vlgmr.msra.gmra.mxu3 %v5937_v31  ;;  %v6192_v59 = vpop.f32.mrf.mxu0  ;;  %v6194_v40 = vpop.f32.mrf.mxu1 }
  0xb7   :  { %1019 = vmatpush.msrb.mxu0 %v649_v47  ;;  %1039 = vmatpush.msrb.mxu1 %v777_v48  ;;  %6731 = vst [vmem:[#allocation18_spill] sm:$0xff] %v6192_v59  ;;  %v697_v47 = vld [vmem:[#allocation6 + $0x570] sm:$0xff]  ;;  %v570_v48 = vld [vmem:[#allocation6 + $0x178] sm:$0xff] }
  0xb8   :  { %1059 = vmatpush.msrb.mxu2 %v650_v10  ;;  %1079 = vmatpush.msrb.mxu3 %v778_v49  ;;  %v698_v10 = vld [vmem:[#allocation6 + $0x578] sm:$0xff]  ;;  %v561_v49 = vld [vmem:[#allocation6 + $0x130] sm:$0xff] }
  0xb9   :  { %1020 = vmatpush.msrb.mxu0 %v641_v50  ;;  %1040 = vmatpush.msrb.mxu1 %v769_v51  ;;  %v689_v50 = vld [vmem:[#allocation6 + $0x530] sm:$0xff]  ;;  %v562_v51 = vld [vmem:[#allocation6 + $0x138] sm:$0xff] }
  0xba   :  { %1060 = vmatpush.msrb.mxu2 %v642_v52  ;;  %1080 = vmatpush.msrb.mxu3 %v770_v55  ;;  %v690_v52 = vld [vmem:[#allocation6 + $0x538] sm:$0xff]  ;;  %v553_v55 = vld [vmem:[#allocation6 + $0xf0] sm:$0xff] }
  0xbb   :  { %1021 = vmatpush.msrb.mxu0 %v633_v56  ;;  %1041 = vmatpush.msrb.mxu1 %v761_v57  ;;  %v681_v56 = vld [vmem:[#allocation6 + $0x4f0] sm:$0xff]  ;;  %v554_v57 = vld [vmem:[#allocation6 + $0xf8] sm:$0xff] }
  0xbc   :  { %1061 = vmatpush.msrb.mxu2 %v634_v58  ;;  %1081 = vmatpush.msrb.mxu3 %v762_v60  ;;  %v682_v58 = vld [vmem:[#allocation6 + $0x4f8] sm:$0xff]  ;;  %v545_v60 = vld [vmem:[#allocation6 + $0xb0] sm:$0xff] }
  0xbd   :  { %1022 = vmatpush.msrb.mxu0 %v625_v11  ;;  %1042 = vmatpush.msrb.mxu1 %v753_v63  ;;  %v673_v11 = vld [vmem:[#allocation6 + $0x4b0] sm:$0xff]  ;;  %v6196_v63 = vpop.f32.mrf.mxu2  ;;  %v1195_v59 = vld [vmem:[#allocation6 + $0x118] sm:$0xff] }
  0xbe   :  { %1062 = vmatpush.msrb.mxu2 %v626_v2  ;;  %1082 = vmatpush.msrb.mxu3 %v754_v3  ;;  %6732 = vst [vmem:[#allocation19_spill] sm:$0xff] %v6196_v63  ;;  %v6198_v2 = vpop.f32.mrf.mxu3  ;;  %v546_v3 = vld [vmem:[#allocation6 + $0xb8] sm:$0xff] }
  0xbf   :  { %1023 = vmatpush.msrb.mxu0 %v617_v4  ;;  %1043 = vmatpush.msrb.mxu1 %v745_v5  ;;  %v674_v4 = vld [vmem:[#allocation6 + $0x4b8] sm:$0xff]  ;;  %v537_v5 = vld [vmem:[#allocation6 + $0x70] sm:$0xff] }
  0xc0   :  { %1063 = vmatpush.msrb.mxu2 %v618_v6  ;;  %1083 = vmatpush.msrb.mxu3 %v746_v7  ;;  %v665_v6 = vld [vmem:[#allocation6 + $0x470] sm:$0xff]  ;;  %v538_v7 = vld [vmem:[#allocation6 + $0x78] sm:$0xff] }
  0xc1   :  { %1024 = vmatpush.msrb.mxu0 %v609_v13  ;;  %1044 = vmatpush.msrb.mxu1 %v737_v14  ;;  %v666_v13 = vld [vmem:[#allocation6 + $0x478] sm:$0xff]  ;;  %v6200_v14 = vpop.f32.mrf.mxu0 }
  0xc2   :  { %1064 = vmatpush.msrb.mxu2 %v610_v15  ;;  %1084 = vmatpush.msrb.mxu3 %v738_v18  ;;  %6733 = vst [vmem:[#allocation20_spill] sm:$0xff] %v6200_v14  ;;  %v6202_v15 = vpop.f32.mrf.mxu1  ;;  %v529_v18 = vld [vmem:[#allocation6 + $0x30] sm:$0xff]  ;;  %v1267_v14 = vld [vmem:[#allocation6 + $0x358] sm:$0xff] }
  0xc3   :  { %1025 = vmatpush.msrb.mxu0 %v601_v19  ;;  %1045 = vmatpush.msrb.mxu1 %v729_v21  ;;  %v657_v19 = vld [vmem:[#allocation6 + $0x430] sm:$0xff]  ;;  %v530_v21 = vld [vmem:[#allocation6 + $0x38] sm:$0xff] }
  0xc4   :  { %1065 = vmatpush.msrb.mxu2 %v602_v22  ;;  %1085 = vmatpush.msrb.mxu3 %v730_v23  ;;  %v658_v22 = vld [vmem:[#allocation6 + $0x438] sm:$0xff] }
  0xc5   :  { %1026 = vmatpush.msrb.mxu0 %v593_v33  ;;  %1046 = vmatpush.msrb.mxu1 %v721_v25  ;;  %v6208_v23 = vpop.f32.mrf.mxu2 }
  0xc6   :  { %1066 = vmatpush.msrb.mxu2 %v594_v26  ;;  %1086 = vmatpush.msrb.mxu3 %v722_v27  ;;  %6734 = vst [vmem:[#allocation21_spill] sm:$0xff] %v6208_v23  ;;  %v6210_v33 = vpop.f32.mrf.mxu3  ;;  %v1386_v23 = vld [vmem:[#allocation6 + $0x710] sm:$0xff] }
  0xc7   :  { %1027 = vmatpush.msrb.mxu0 %v585_v28  ;;  %1047 = vmatpush.msrb.mxu1 %v713_v29 }
  0xc8   :  { %1067 = vmatpush.msrb.mxu2 %v586_v32  ;;  %1087 = vmatpush.msrb.mxu3 %v714_v34 }
  0xc9   :  { %1028 = vmatpush.msrb.mxu0 %v577_v35  ;;  %1048 = vmatpush.msrb.mxu1 %v705_v36  ;;  %v6212_v25 = vpop.f32.mrf.mxu0 }
  0xca   :  { %1068 = vmatpush.msrb.mxu2 %v578_v9  ;;  %1088 = vmatpush.msrb.mxu3 %v706_v37  ;;  %6735 = vst [vmem:[#allocation22_spill] sm:$0xff] %v6212_v25  ;;  %v6214_v26 = vpop.f32.mrf.mxu1  ;;  %v1201_v25 = vld [vmem:[#allocation6 + $0x148] sm:$0xff] }
  0xcb   :  { %1029 = vmatpush.msrb.mxu0 %v569_v43  ;;  %1049 = vmatpush.msrb.mxu1 %v697_v47 }
  0xcc   :  { %1069 = vmatpush.msrb.mxu2 %v570_v48  ;;  %1089 = vmatpush.msrb.mxu3 %v698_v10 }
  0xcd   :  { %1030 = vmatpush.msrb.mxu0 %v561_v49  ;;  %1050 = vmatpush.msrb.mxu1 %v689_v50  ;;  %v6216_v27 = vpop.f32.mrf.mxu2 }
  0xce   :  { %1070 = vmatpush.msrb.mxu2 %v562_v51  ;;  %1090 = vmatpush.msrb.mxu3 %v690_v52  ;;  %6736 = vst [vmem:[#allocation23_spill] sm:$0xff] %v6216_v27  ;;  %v6218_v28 = vpop.f32.mrf.mxu3  ;;  %v1345_v27 = vld [vmem:[#allocation6 + $0x5c8] sm:$0xff] }
  0xcf   :  { %1031 = vmatpush.msrb.mxu0 %v553_v55  ;;  %1051 = vmatpush.msrb.mxu1 %v681_v56 }
  0xd0   :  { %1071 = vmatpush.msrb.mxu2 %v554_v57  ;;  %1091 = vmatpush.msrb.mxu3 %v682_v58  ;;  %v1280_v57 = vld [vmem:[#allocation6 + $0x3c0] sm:$0xff]  ;;  %v1281_v58 = vld [vmem:[#allocation6 + $0x3c8] sm:$0xff] }
  0xd1   :  { %1032 = vmatpush.msrb.mxu0 %v545_v60  ;;  %1052 = vmatpush.msrb.mxu1 %v673_v11  ;;  %v6220_v29 = vpop.f32.mrf.mxu0  ;;  %v1272_v60 = vld [vmem:[#allocation6 + $0x380] sm:$0xff]  ;;  %v1273_v11 = vld [vmem:[#allocation6 + $0x388] sm:$0xff] }
  0xd2   :  { %1072 = vmatpush.msrb.mxu2 %v546_v3  ;;  %1092 = vmatpush.msrb.mxu3 %v674_v4  ;;  %v6222_v32 = vpop.f32.mrf.mxu1  ;;  %v1264_v3 = vld [vmem:[#allocation6 + $0x340] sm:$0xff]  ;;  %v1265_v4 = vld [vmem:[#allocation6 + $0x348] sm:$0xff] }
  0xd3   :  { %1033 = vmatpush.msrb.mxu0 %v537_v5  ;;  %1053 = vmatpush.msrb.mxu1 %v665_v6  ;;  %6737 = vst [vmem:[#allocation24_spill] sm:$0xff] %v6222_v32  ;;  %v1385_v32 = vld [vmem:[#allocation6 + $0x708] sm:$0xff] }
  0xd4   :  { %1073 = vmatpush.msrb.mxu2 %v538_v7  ;;  %1093 = vmatpush.msrb.mxu3 %v666_v13  ;;  %v1256_v7 = vld [vmem:[#allocation6 + $0x300] sm:$0xff] }
  0xd5   :  { %1034 = vmatpush.msrb.mxu0 %v529_v18  ;;  %1054 = vmatpush.msrb.mxu1 %v657_v19  ;;  %v6224_v34 = vpop.f32.mrf.mxu2  ;;  %v1408_v13 = vld [vmem:[#allocation6 + $0x7c0] sm:$0xff]  ;;  %v1257_v18 = vld [vmem:[#allocation6 + $0x308] sm:$0xff] }
  0xd6   :  { %1074 = vmatpush.msrb.mxu2 %v530_v21  ;;  %1094 = vmatpush.msrb.mxu3 %v658_v22  ;;  %v6226_v35 = vpop.f32.mrf.mxu3  ;;  %v1409_v19 = vld [vmem:[#allocation6 + $0x7c8] sm:$0xff]  ;;  %v1248_v21 = vld [vmem:[#allocation6 + $0x2c0] sm:$0xff] }
  0xd7   :  { %1035 = vmatmul.f32.vlgmr.msrb.gmra.mxu0 %v5937_v31  ;;  %1055 = vmatmul.f32.vlgmr.msrb.gmra.mxu1 %v5937_v31  ;;  %6738 = vst [vmem:[#allocation25_spill] sm:$0xff] %v6226_v35  ;;  %v1400_v22 = vld [vmem:[#allocation6 + $0x780] sm:$0xff]  ;;  %v1241_v35 = vld [vmem:[#allocation6 + $0x288] sm:$0xff] }
  0xd8   :  { %1075 = vmatmul.f32.vlgmr.msrb.gmra.mxu2 %v5937_v31  ;;  %1095 = vmatmul.f32.vlgmr.msrb.gmra.mxu3 %v5937_v31 }
  0xd9   :  { %v6228_v31 = vpop.f32.mrf.mxu0  ;;  %1416 = vmatpush.msra.mxu0 %v1280_v57  ;;  %1456 = vmatpush.msra.mxu2 %v1281_v58  ;;  %v1249_v57 = vld [vmem:[#allocation6 + $0x2c8] sm:$0xff] }
  0xda   :  { %v6230_v36 = vpop.f32.mrf.mxu1  ;;  %1436 = vmatpush.msra.mxu1 %v1408_v13  ;;  %1476 = vmatpush.msra.mxu3 %v1409_v19  ;;  %v1232_v13 = vld [vmem:[#allocation6 + $0x240] sm:$0xff]  ;;  %v1233_v19 = vld [vmem:[#allocation6 + $0x248] sm:$0xff] }
  0xdb   :  { %6739 = vst [vmem:[#allocation26_spill] sm:$0xff] %v6230_v36  ;;  %1417 = vmatpush.msra.mxu0 %v1272_v60  ;;  %1457 = vmatpush.msra.mxu2 %v1273_v11  ;;  %v1401_v11 = vld [vmem:[#allocation6 + $0x788] sm:$0xff] }
  0xdc   :  { %1437 = vmatpush.msra.mxu1 %v1400_v22  ;;  %1477 = vmatpush.msra.mxu3 %v1401_v11  ;;  %v1376_v22 = vld [vmem:[#allocation6 + $0x6c0] sm:$0xff]  ;;  %v1377_v11 = vld [vmem:[#allocation6 + $0x6c8] sm:$0xff] }
  0xdd   :  { %v6232_v9 = vpop.f32.mrf.mxu2  ;;  %1418 = vmatpush.msra.mxu0 %v1264_v3  ;;  %1458 = vmatpush.msra.mxu2 %v1265_v4  ;;  %v1240_v3 = vld [vmem:[#allocation6 + $0x280] sm:$0xff] }
  0xde   :  { %v6234_v37 = vpop.f32.mrf.mxu3  ;;  %v1392_v4 = vld [vmem:[#allocation6 + $0x740] sm:$0xff] }
  0xdf   :  { %6740 = vst [vmem:[#allocation27_spill] sm:$0xff] %v6234_v37  ;;  %1419 = vmatpush.msra.mxu0 %v1256_v7  ;;  %1459 = vmatpush.msra.mxu2 %v1257_v18  ;;  %v1393_v7 = vld [vmem:[#allocation6 + $0x748] sm:$0xff]  ;;  %v1384_v18 = vld [vmem:[#allocation6 + $0x700] sm:$0xff] }
  0xe0   :  { %1438 = vmatpush.msra.mxu1 %v1392_v4  ;;  %1478 = vmatpush.msra.mxu3 %v1393_v7  ;;  %v1368_v4 = vld [vmem:[#allocation6 + $0x680] sm:$0xff]  ;;  %v1217_v7 = vld [vmem:[#allocation6 + $0x1c8] sm:$0xff] }
  0xe1   :  { %v6236_v43 = vpop.f32.mrf.mxu0  ;;  %1420 = vmatpush.msra.mxu0 %v1248_v21  ;;  %1460 = vmatpush.msra.mxu2 %v1249_v57  ;;  %v1224_v21 = vld [vmem:[#allocation6 + $0x200] sm:$0xff]  ;;  %v1225_v57 = vld [vmem:[#allocation6 + $0x208] sm:$0xff] }
  0xe2   :  { %v6238_v47 = vpop.f32.mrf.mxu1  ;;  %1439 = vmatpush.msra.mxu1 %v1384_v18  ;;  %1479 = vmatpush.msra.mxu3 %v1385_v32  ;;  %v1208_v32 = vld [vmem:[#allocation6 + $0x180] sm:$0xff] }
  0xe3   :  { %6741 = vst [vmem:[#allocation28_spill] sm:$0xff] %v6238_v47  ;;  %1421 = vmatpush.msra.mxu0 %v1240_v3  ;;  %1461 = vmatpush.msra.mxu2 %v1241_v35  ;;  %v1216_v35 = vld [vmem:[#allocation6 + $0x1c0] sm:$0xff]  ;;  %v1210_v47 = vld [vmem:[#allocation6 + $0x190] sm:$0xff] }
  0xe4   :  { %1440 = vmatpush.msra.mxu1 %v1376_v22  ;;  %1480 = vmatpush.msra.mxu3 %v1377_v11  ;;  %v1360_v18 = vld [vmem:[#allocation6 + $0x640] sm:$0xff] }
  0xe5   :  { %v6240_v48 = vpop.f32.mrf.mxu2  ;;  %1422 = vmatpush.msra.mxu0 %v1232_v13  ;;  %1462 = vmatpush.msra.mxu2 %v1233_v19  ;;  %v1369_v13 = vld [vmem:[#allocation6 + $0x688] sm:$0xff]  ;;  %v1352_v11 = vld [vmem:[#allocation6 + $0x600] sm:$0xff] }
  0xe6   :  { %v6242_v10 = vpop.f32.mrf.mxu3  ;;  %1441 = vmatpush.msra.mxu1 %v1368_v4  ;;  %1481 = vmatpush.msra.mxu3 %v1369_v13  ;;  %v1209_v19 = vld [vmem:[#allocation6 + $0x188] sm:$0xff]  ;;  %v1192_v4 = vld [vmem:[#allocation6 + $0x100] sm:$0xff] }
  0xe7   :  { %6742 = vst [vmem:[#allocation29_spill] sm:$0xff] %v6242_v10  ;;  %1423 = vmatpush.msra.mxu0 %v1224_v21  ;;  %1463 = vmatpush.msra.mxu2 %v1225_v57  ;;  %v1200_v57 = vld [vmem:[#allocation6 + $0x140] sm:$0xff]  ;;  %v1193_v13 = vld [vmem:[#allocation6 + $0x108] sm:$0xff] }
  0xe8   :  { %1442 = vmatpush.msra.mxu1 %v1360_v18  ;;  %1482 = vmatpush.msra.mxu3 %v1361_v54  ;;  %v1336_v18 = vld [vmem:[#allocation6 + $0x580] sm:$0xff]  ;;  %v1337_v54 = vld [vmem:[#allocation6 + $0x588] sm:$0xff] }
  0xe9   :  { %v6244_v49 = vpop.f32.mrf.mxu0  ;;  %1424 = vmatpush.msra.mxu0 %v1216_v35  ;;  %1464 = vmatpush.msra.mxu2 %v1217_v7  ;;  %v1353_v35 = vld [vmem:[#allocation6 + $0x608] sm:$0xff]  ;;  %v1344_v7 = vld [vmem:[#allocation6 + $0x5c0] sm:$0xff] }
  0xea   :  { %v6246_v50 = vpop.f32.mrf.mxu1  ;;  %1443 = vmatpush.msra.mxu1 %v1352_v11  ;;  %1483 = vmatpush.msra.mxu3 %v1353_v35  ;;  %v1328_v11 = vld [vmem:[#allocation6 + $0x540] sm:$0xff]  ;;  %v1177_v35 = vld [vmem:[#allocation6 + $0x88] sm:$0xff] }
  0xeb   :  { %1425 = vmatpush.msra.mxu0 %v1208_v32  ;;  %1465 = vmatpush.msra.mxu2 %v1209_v19  ;;  %v1184_v32 = vld [vmem:[#allocation6 + $0xc0] sm:$0xff]  ;;  %v1185_v19 = vld [vmem:[#allocation6 + $0xc8] sm:$0xff] }
  0xec   :  { %1444 = vmatpush.msra.mxu1 %v1344_v7  ;;  %1484 = vmatpush.msra.mxu3 %v1345_v27  ;;  %v1168_v7 = vld [vmem:[#allocation6 + $0x40] sm:$0xff] }
  0xed   :  { %v6248_v51 = vpop.f32.mrf.mxu2  ;;  %1426 = vmatpush.msra.mxu0 %v1200_v57  ;;  %1466 = vmatpush.msra.mxu2 %v1201_v25  ;;  %v1176_v25 = vld [vmem:[#allocation6 + $0x80] sm:$0xff] }
  0xee   :  { %v6250_v52 = vpop.f32.mrf.mxu3  ;;  %1445 = vmatpush.msra.mxu1 %v1336_v18  ;;  %1485 = vmatpush.msra.mxu3 %v1337_v54  ;;  %v1320_v27 = vld [vmem:[#allocation6 + $0x500] sm:$0xff]  ;;  %v1161_v54 = vld [vmem:[#allocation6 + $0x8] sm:$0xff] }
  0xef   :  { %1427 = vmatpush.msra.mxu0 %v1192_v4  ;;  %1467 = vmatpush.msra.mxu2 %v1193_v13  ;;  %v1329_v4 = vld [vmem:[#allocation6 + $0x548] sm:$0xff]  ;;  %v1160_v18 = vld [vmem:[#allocation6] sm:$0xff] }
  0xf0   :  { %1446 = vmatpush.msra.mxu1 %v1328_v11  ;;  %1486 = vmatpush.msra.mxu3 %v1329_v4  ;;  %v1169_v13 = vld [vmem:[#allocation6 + $0x48] sm:$0xff]  ;;  %v1283_v11 = vld [vmem:[#allocation6 + $0x3d8] sm:$0xff] }
  0xf1   :  { %v6252_v55 = vpop.f32.mrf.mxu0  ;;  %1428 = vmatpush.msra.mxu0 %v1184_v32  ;;  %1468 = vmatpush.msra.mxu2 %v1185_v19  ;;  %v1321_v32 = vld [vmem:[#allocation6 + $0x508] sm:$0xff]  ;;  %v1312_v19 = vld [vmem:[#allocation6 + $0x4c0] sm:$0xff] }
  0xf2   :  { %v6254_v56 = vpop.f32.mrf.mxu1  ;;  %1447 = vmatpush.msra.mxu1 %v1320_v27  ;;  %1487 = vmatpush.msra.mxu3 %v1321_v32  ;;  %v1305_v4 = vld [vmem:[#allocation6 + $0x488] sm:$0xff]  ;;  %v1266_v27 = vld [vmem:[#allocation6 + $0x350] sm:$0xff] }
  0xf3   :  { %1429 = vmatpush.msra.mxu0 %v1176_v25  ;;  %1469 = vmatpush.msra.mxu2 %v1177_v35  ;;  %v1282_v25 = vld [vmem:[#allocation6 + $0x3d0] sm:$0xff]  ;;  %v1304_v35 = vld [vmem:[#allocation6 + $0x480] sm:$0xff]  ;;  %v1289_v32 = vld [vmem:[#allocation6 + $0x408] sm:$0xff] }
  0xf4   :  { %1448 = vmatpush.msra.mxu1 %v1312_v19 }
  0xf5   :  { %v6256_v5 = vpop.f32.mrf.mxu2  ;;  %1430 = vmatpush.msra.mxu0 %v1168_v7  ;;  %1470 = vmatpush.msra.mxu2 %v1169_v13  ;;  %v1297_v7 = vld [vmem:[#allocation6 + $0x448] sm:$0xff]  ;;  %v1288_v13 = vld [vmem:[#allocation6 + $0x400] sm:$0xff] }
  0xf6   :  { %v6258_v6 = vpop.f32.mrf.mxu3  ;;  %1449 = vmatpush.msra.mxu1 %v1304_v35 }
  0xf7   :  { %1431 = vmatpush.msra.mxu0 %v1160_v18  ;;  %1471 = vmatpush.msra.mxu2 %v1161_v54  ;;  %v1410_v54 = vld [vmem:[#allocation6 + $0x7d0] sm:$0xff] }
  0xf9   :  { %v6260_v58 = vpop.f32.mrf.mxu0  ;;  %1496 = vmatpush.msrb.mxu0 %v1282_v25  ;;  %1536 = vmatpush.msrb.mxu2 %v1283_v11  ;;  %v1259_v25 = vld [vmem:[#allocation6 + $0x318] sm:$0xff] }
  0xfa   :  { %6743 = vst [vmem:[#allocation30_spill] sm:$0xff] %v6260_v58  ;;  %v6262_v60 = vpop.f32.mrf.mxu1  ;;  %v1411_v11 = vld [vmem:[#allocation6 + $0x7d8] sm:$0xff] }
  0xfb   :  { %1497 = vmatpush.msrb.mxu0 %v1274_v62  ;;  %1537 = vmatpush.msrb.mxu2 %v1275_v17  ;;  %v1250_v17 = vld [vmem:[#allocation6 + $0x2d0] sm:$0xff]  ;;  %v1211_v58 = vld [vmem:[#allocation6 + $0x198] sm:$0xff] }
  0xfd   :  { %v6264_v42 = vpop.f32.mrf.mxu2  ;;  %1498 = vmatpush.msrb.mxu0 %v1266_v27  ;;  %1538 = vmatpush.msrb.mxu2 %v1267_v14  ;;  %v1242_v14 = vld [vmem:[#allocation6 + $0x290] sm:$0xff]  ;;  %v1243_v27 = vld [vmem:[#allocation6 + $0x298] sm:$0xff] }
  0xfe   :  { %6744 = vst [vmem:[#allocation31_spill] sm:$0xff] %v6264_v42  ;;  %v6266_v3 = vpop.f32.mrf.mxu3  ;;  %v1362_v42 = vld [vmem:[#allocation6 + $0x650] sm:$0xff] }
  0xff   :  { %1539 = vmatpush.msrb.mxu2 %v1259_v25  ;;  %v1226_v25 = vld [vmem:[#allocation6 + $0x210] sm:$0xff] }
 0x101   :  { %v6268_v21 = vpop.f32.mrf.mxu0 }
 0x102   :  { %6745 = vst [vmem:[#allocation32_spill] sm:$0xff] %v6268_v21  ;;  %v6270_v22 = vpop.f32.mrf.mxu1  ;;  %v1313_v21 = vld [vmem:[#allocation6 + $0x4c8] sm:$0xff] }
 0x103   :  { %1488 = vmatpush.msra.mxu3 %v1313_v21  ;;  %v1258_v21 = vld [vmem:[#allocation6 + $0x310] sm:$0xff] }
 0x104   :  { %1499 = vmatpush.msrb.mxu0 %v1258_v21  ;;  %v1235_v21 = vld [vmem:[#allocation6 + $0x258] sm:$0xff] }
 0x105   :  { %v6272_v37 = vpop.f32.mrf.mxu2  ;;  %1489 = vmatpush.msra.mxu3 %v1305_v4  ;;  %v1402_v4 = vld [vmem:[#allocation6 + $0x790] sm:$0xff] }
 0x106   :  { %6746 = vst [vmem:[#allocation33_spill] sm:$0xff] %v6272_v37  ;;  %v6274_v57 = vpop.f32.mrf.mxu3  ;;  %1500 = vmatpush.msrb.mxu0 %v1250_v17  ;;  %v1227_v17 = vld [vmem:[#allocation6 + $0x218] sm:$0xff] }
 0x107   :  { %1490 = vmatpush.msra.mxu3 %v1297_v7  ;;  %v1394_v7 = vld [vmem:[#allocation6 + $0x750] sm:$0xff] }
 0x108   :  { %1501 = vmatpush.msrb.mxu0 %v1242_v14  ;;  %v1379_v14 = vld [vmem:[#allocation6 + $0x6d8] sm:$0xff] }
 0x109   :  { %v6276_v36 = vpop.f32.mrf.mxu0  ;;  %1491 = vmatpush.msra.mxu3 %v1289_v32  ;;  %v1234_v32 = vld [vmem:[#allocation6 + $0x250] sm:$0xff] }
 0x10a   :  { %6747 = vst [vmem:[#allocation34_spill] sm:$0xff] %v6276_v36  ;;  %v6278_v37 = vpop.f32.mrf.mxu1  ;;  %v1296_v36 = vld [vmem:[#allocation6 + $0x440] sm:$0xff]  ;;  %1502 = vmatpush.msrb.mxu0 %v1234_v32 }
 0x10b   :  { %1450 = vmatpush.msra.mxu1 %v1296_v36  ;;  %1556 = vmatpush.msrb.mxu3 %v1411_v11  ;;  %v1403_v36 = vld [vmem:[#allocation6 + $0x798] sm:$0xff]  ;;  %v1378_v11 = vld [vmem:[#allocation6 + $0x6d0] sm:$0xff] }
 0x10c   :  { %1503 = vmatpush.msrb.mxu0 %v1226_v25  ;;  %v1354_v25 = vld [vmem:[#allocation6 + $0x610] sm:$0xff] }
 0x10d   :  { %v6280_v18 = vpop.f32.mrf.mxu2  ;;  %1451 = vmatpush.msra.mxu1 %v1288_v13  ;;  %1557 = vmatpush.msrb.mxu3 %v1403_v36  ;;  %v1395_v13 = vld [vmem:[#allocation6 + $0x758] sm:$0xff] }
 0x10e   :  { %6748 = vst [vmem:[#allocation35_spill] sm:$0xff] %v6280_v18  ;;  %v6282_v19 = vpop.f32.mrf.mxu3  ;;  %v1251_v18 = vld [vmem:[#allocation6 + $0x2d8] sm:$0xff] }
 0x10f   :  { %1516 = vmatpush.msrb.mxu1 %v1410_v54  ;;  %1540 = vmatpush.msrb.mxu2 %v1251_v18  ;;  %v1387_v54 = vld [vmem:[#allocation6 + $0x718] sm:$0xff] }
 0x110   :  { %1558 = vmatpush.msrb.mxu3 %v1395_v13  ;;  %v1371_v13 = vld [vmem:[#allocation6 + $0x698] sm:$0xff] }
 0x111   :  { %v6284_v35 = vpop.f32.mrf.mxu0  ;;  %1517 = vmatpush.msrb.mxu1 %v1402_v4  ;;  %1541 = vmatpush.msrb.mxu2 %v1243_v27  ;;  %v6291_v4 = vld [vmem:[%s6722_s2] sm:$0xff]  ;;  %v1370_v27 = vld [vmem:[#allocation6 + $0x690] sm:$0xff]  ;;  %s5938_s2 = smov [#allocation8]  }
 0x112   :  { %v6286_v62 = vpop.f32.mrf.mxu1  ;;  %1559 = vmatpush.msrb.mxu3 %v1387_v54  ;;  %v6298_v8 = vperm.slane %v6291_v4, 2  ;;  %v1202_v54 = vld [vmem:[#allocation6 + $0x150] sm:$0xff]  ;;  %s5600_s16 = sshll.u32 %s5938_s2, 4  ;;  %s5601_s16 = int_to_ptr.vmem [resolvable:$true] %s5600_s16 }
 0x113   :  { %1518 = vmatpush.msrb.mxu1 %v1394_v7  ;;  %1542 = vmatpush.msrb.mxu2 %v1235_v21  ;;  %v1218_v7 = vld [vmem:[#allocation6 + $0x1d0] sm:$0xff]  ;;  %v1363_v21 = vld [vmem:[#allocation6 + $0x658] sm:$0xff] }
 0x114   :  { %1560 = vmatpush.msrb.mxu3 %v1379_v14  ;;  %1504 = vmatpush.msrb.mxu0 %v1218_v7  ;;  %v1355_v7 = vld [vmem:[#allocation6 + $0x618] sm:$0xff] }
 0x115   :  { %1519 = vmatpush.msrb.mxu1 %v1386_v23  ;;  %v6293_v18 = vpop.f32.mrf.mxu2  ;;  %v1219_v23 = vld [vmem:[#allocation6 + $0x1d8] sm:$0xff]  ;;  %1543 = vmatpush.msrb.mxu2 %v1227_v17  ;;  %v6301_v17 = vperm.slane %v6291_v4, 0 }
 0x116   :  { %v6295_v36 = vpop.f32.mrf.mxu3  ;;  %1561 = vmatpush.msrb.mxu3 %v1371_v13  ;;  %1505 = vmatpush.msrb.mxu0 %v1210_v47  ;;  %v1347_v47 = vld [vmem:[#allocation6 + $0x5d8] sm:$0xff] }
 0x117   :  { %1520 = vmatpush.msrb.mxu1 %v1378_v11  ;;  %1544 = vmatpush.msrb.mxu2 %v1219_v23  ;;  %v1203_v11 = vld [vmem:[#allocation6 + $0x158] sm:$0xff]  ;;  %v217_v23 = vadd.f32 %v6152_v53, %v6298_v8 }
 0x118   :  { %1562 = vmatpush.msrb.mxu3 %v1363_v21  ;;  %1506 = vmatpush.msrb.mxu0 %v1202_v54  ;;  %v1187_v13 = vld [vmem:[#allocation6 + $0xd8] sm:$0xff] }
 0x119   :  { %v876_v32 = vpop.f32.mrf.mxu0  ;;  %1521 = vmatpush.msrb.mxu1 %v1370_v27  ;;  %1545 = vmatpush.msrb.mxu2 %v1211_v58  ;;  %v1194_v27 = vld [vmem:[#allocation6 + $0x110] sm:$0xff]  ;;  %v1339_v53 = vld [vmem:[#allocation6 + $0x598] sm:$0xff] }
 0x11a   :  { %v896_v10 = vpop.f32.mrf.mxu1  ;;  %1563 = vmatpush.msrb.mxu3 %v1355_v7  ;;  %1507 = vmatpush.msrb.mxu0 %v1194_v27  ;;  %v1338_v58 = vld [vmem:[#allocation6 + $0x590] sm:$0xff]  ;;  %v6310_v27 = vperm.slane %v6291_v4, 3 }
 0x11b   :  { %1522 = vmatpush.msrb.mxu1 %v1362_v42  ;;  %v897_v14 = vadd.f32 %v896_v10, %v876_v32  ;;  %v817_v42 = vadd.f32 %v6286_v62, %v6284_v35  ;;  %1546 = vmatpush.msrb.mxu2 %v1203_v11  ;;  %v1186_v10 = vld [vmem:[#allocation6 + $0xd0] sm:$0xff]  ;;  %v135_v32 = vadd.f32 %v6144_v41, %v6301_v17  ;;  %v1179_v11 = vld [vmem:[#allocation6 + $0x98] sm:$0xff] }
 0x11c   :  { %1564 = vmatpush.msrb.mxu3 %v1347_v47  ;;  %1508 = vmatpush.msrb.mxu0 %v1186_v10  ;;  %v1178_v35 = vld [vmem:[#allocation6 + $0x90] sm:$0xff]  ;;  %v1323_v47 = vld [vmem:[#allocation6 + $0x518] sm:$0xff]  ;;  %v6313_v10 = vperm.slane %v6291_v4, 1 }
 0x11d   :  { %1523 = vmatpush.msrb.mxu1 %v1354_v25  ;;  %v1101_v21 = vadd.f32 %v897_v14, %v217_v23  ;;  %1547 = vmatpush.msrb.mxu2 %v1195_v59  ;;  %v1330_v62 = vld [vmem:[#allocation6 + $0x550] sm:$0xff]  ;;  %v1099_v7 = vadd.f32 %v817_v42, %v135_v32  ;;  %v1171_v59 = vld [vmem:[#allocation6 + $0x58] sm:$0xff]  ;;  %v279_v42 = vadd.f32 %v6218_v28, %v6310_v27 }
 0x11e   :  { %1565 = vmatpush.msrb.mxu3 %v1339_v53  ;;  %1509 = vmatpush.msrb.mxu0 %v1178_v35  ;;  %v1170_v41 = vld [vmem:[#allocation6 + $0x50] sm:$0xff]  ;;  %v1163_v53 = vld [vmem:[#allocation6 + $0x18] sm:$0xff] }
 0x11f   :  { %1524 = vmatpush.msrb.mxu1 %v1346_v39  ;;  %v916_v54 = vpop.f32.mrf.mxu2  ;;  %v936_v25 = vpop.f32.mrf.mxu3  ;;  %1548 = vmatpush.msrb.mxu2 %v1187_v13  ;;  %v1331_v39 = vld [vmem:[#allocation6 + $0x558] sm:$0xff]  ;;  %v1322_v14 = vld [vmem:[#allocation6 + $0x510] sm:$0xff]  ;;  %v1109_v23 = vmul.f32 0.5, %v1101_v21  ;;  %v1107_v21 = vmul.f32 0.5, %v1099_v7 }
 0x120   :  { %v937_v63 = vadd.f32 %v936_v25, %v916_v54  ;;  %1566 = vmatpush.msrb.mxu3 %v1331_v39  ;;  %1510 = vmatpush.msrb.mxu0 %v1170_v41  ;;  %v1162_v54 = vld [vmem:[#allocation6 + $0x10] sm:$0xff]  ;;  %v1315_v35 = vld [vmem:[#allocation6 + $0x4d8] sm:$0xff] }
 0x121   :  { %1525 = vmatpush.msrb.mxu1 %v1338_v58  ;;  %1549 = vmatpush.msrb.mxu2 %v1179_v11  ;;  %v857_v58 = vadd.f32 %v6295_v36, %v6293_v18  ;;  %v1314_v25 = vld [vmem:[#allocation6 + $0x4d0] sm:$0xff]  ;;  %v6322_v11 = vperm.slane %v6291_v4, 4  ;;  %v1307_v36 = vld [vmem:[#allocation6 + $0x498] sm:$0xff]  ;;  %5695 = vtanh.f32 %v1109_v23 }
 0x122   :  { %1567 = vmatpush.msrb.mxu3 %v1323_v47  ;;  %v1102_v28 = vadd.f32 %v937_v63, %v279_v42  ;;  %1511 = vmatpush.msrb.mxu0 %v1162_v54  ;;  %v1306_v18 = vld [vmem:[#allocation6 + $0x490] sm:$0xff]  ;;  %5697 = vtanh.f32 %v1107_v21  ;;  %v1291_v42 = vld [vmem:[#allocation6 + $0x418] sm:$0xff] }
 0x123   :  { %1526 = vmatpush.msrb.mxu1 %v1330_v62  ;;  %1550 = vmatpush.msrb.mxu2 %v1171_v59  ;;  %v197_v62 = vadd.f32 %v6214_v26, %v6313_v10  ;;  %v1298_v7 = vld [vmem:[#allocation6 + $0x450] sm:$0xff]  ;;  %v6325_v59 = vperm.slane %v6291_v4, 6  ;;  %v299_v63 = vadd.f32 %v6220_v29, %v6322_v11 }
 0x124   :  { %1568 = vmatpush.msrb.mxu3 %v1315_v35  ;;  %v1110_v26 = vmul.f32 0.5, %v1102_v28  ;;  %v1290_v47 = vld [vmem:[#allocation6 + $0x410] sm:$0xff] }
 0x125   :  { %1527 = vmatpush.msrb.mxu1 %v1322_v14  ;;  %1551 = vmatpush.msrb.mxu2 %v1163_v53  ;;  %v1100_v39 = vadd.f32 %v857_v58, %v197_v62  ;;  %v1299_v14 = vld [vmem:[#allocation6 + $0x458] sm:$0xff]  ;;  %v381_v21 = vadd.f32 %v6224_v34, %v6325_v59  ;;  %v6332_v62 = vperm.slane %v6291_v4, 5 }
 0x126   :  { %1569 = vmatpush.msrb.mxu3 %v1307_v36  ;;  %5699 = vtanh.f32 %v1110_v26 }
 0x127   :  { %1528 = vmatpush.msrb.mxu1 %v1314_v25  ;;  %v1108_v58 = vmul.f32 0.5, %v1100_v39  ;;  %v5696_v53 = vpop.eup %5695 }
 0x128   :  { %1570 = vmatpush.msrb.mxu3 %v1299_v14  ;;  %v5698_v29 = vpop.eup %5697  ;;  %v1121_v36 = vadd.f32 1.0, %v5696_v53 }
 0x129   :  { %1529 = vmatpush.msrb.mxu1 %v1306_v18  ;;  %5701 = vtanh.f32 %v1108_v58  ;;  %v1119_v34 = vadd.f32 1.0, %v5698_v29 }
 0x12a   :  { %1571 = vmatpush.msrb.mxu3 %v1291_v42 }
 0x12b   :  { %1530 = vmatpush.msrb.mxu1 %v1298_v7  ;;  %v6337_v7 = vperm.slane %v6291_v4, 7 }
 0x12d   :  { %1531 = vmatpush.msrb.mxu1 %v1290_v47  ;;  %v5700_v47 = vpop.eup %5699  ;;  %v443_v42 = vadd.f32 %v6282_v19, %v6337_v7 }
 0x12f   :  { %v5702_v58 = vpop.eup %5701 }
 0x132   :  { %v956_v13 = vpop.f32.mrf.mxu0  ;;  %v976_v32 = vpop.f32.mrf.mxu1 }
 0x133   :  { %v977_v41 = vadd.f32 %v976_v32, %v956_v13 }
 0x135   :  { %v1103_v13 = vadd.f32 %v977_v41, %v299_v63  ;;  %v361_v41 = vadd.f32 %v6278_v37, %v6332_v62  ;;  %v1122_v37 = vadd.f32 1.0, %v5700_v47 }
 0x137   :  { %v1111_v39 = vmul.f32 0.5, %v1103_v13  ;;  %v1125_v13 = vmul.f32 0.5, %v1119_v34 }
 0x139   :  { %v996_v23 = vpop.f32.mrf.mxu2  ;;  %v1016_v54 = vpop.f32.mrf.mxu3 }
 0x13a   :  { %v1017_v28 = vadd.f32 %v1016_v54, %v996_v23  ;;  %v1127_v23 = vmul.f32 0.5, %v1121_v36 }
 0x13c   :  { %v1104_v14 = vadd.f32 %v1017_v28, %v361_v41 }
 0x13e   :  { %v1112_v53 = vmul.f32 0.5, %v1104_v14 }
 0x154   :  { %v1036_v32 = vpop.f32.mrf.mxu0  ;;  %v1056_v25 = vpop.f32.mrf.mxu1 }
 0x155   :  { %v1057_v35 = vadd.f32 %v1056_v25, %v1036_v32 }
 0x157   :  { %v1105_v18 = vadd.f32 %v1057_v35, %v381_v21  ;;  %v1133_v21 = vmul.f32 0.0, %v1127_v23  ;;  %v1120_v35 = vadd.f32 1.0, %v5702_v58  ;;  %v1284_v23 = vld [vmem:[#allocation6 + $0x3e0] sm:$0xff] }
 0x159   :  { %5703 = vtanh.f32 %v1105_v18  ;;  %v1128_v18 = vmul.f32 0.5, %v1122_v37  ;;  %v1126_v19 = vmul.f32 0.5, %v1120_v35  ;;  %v1269_v37 = vld [vmem:[#allocation6 + $0x368] sm:$0xff]  ;;  %v1260_v35 = vld [vmem:[#allocation6 + $0x320] sm:$0xff] }
 0x15a   :  { %5705 = vtanh.f32 %v1111_v39 }
 0x15b   :  { %v1076_v63 = vpop.f32.mrf.mxu2  ;;  %v1096_v26 = vpop.f32.mrf.mxu3  ;;  %v1134_v41 = vmul.f32 0.0, %v1128_v18  ;;  %v1261_v18 = vld [vmem:[#allocation6 + $0x328] sm:$0xff] }
 0x15c   :  { %v1097_v54 = vadd.f32 %v1096_v26, %v1076_v63 }
 0x15e   :  { %v1106_v32 = vadd.f32 %v1097_v54, %v443_v42  ;;  %v1285_v54 = vld [vmem:[#allocation6 + $0x3e8] sm:$0xff] }
 0x15f   :  { %v5704_v25 = vpop.eup %5703 }
 0x160   :  { %v1135_v4 = vmul.f32 %v5704_v25, %v1125_v13  ;;  %5707 = vtanh.f32 %v1106_v32  ;;  %v5706_v29 = vpop.eup %5705  ;;  %v1276_v13 = vld [vmem:[#allocation6 + $0x3a0] sm:$0xff]  ;;  %v1277_v32 = vld [vmem:[#allocation6 + $0x3a8] sm:$0xff] }
 0x161   :  { %5709 = vtanh.f32 %v1112_v53  ;;  %v1123_v36 = vadd.f32 1.0, %v5706_v29  ;;  %v1268_v25 = vld [vmem:[#allocation6 + $0x360] sm:$0xff] }
 0x162   :  { %v6341_v28 = vadd.f32 %v1135_v4, %v1133_v21  ;;  %v1412_v29 = vld [vmem:[#allocation6 + $0x7e0] sm:$0xff] }
 0x163   :  { %v1129_v26 = vmul.f32 0.5, %v1123_v36  ;;  %v1252_v36 = vld [vmem:[#allocation6 + $0x2e0] sm:$0xff] }
 0x164   :  { %5711 = vtanh.f32 %v6341_v28 }
 0x166   :  { %v5708_v39 = vpop.eup %5707 }
 0x167   :  { %v1136_v34 = vmul.f32 %v5708_v39, %v1126_v19  ;;  %v5710_v63 = vpop.eup %5709  ;;  %v1413_v19 = vld [vmem:[#allocation6 + $0x7e8] sm:$0xff]  ;;  %v1404_v39 = vld [vmem:[#allocation6 + $0x7a0] sm:$0xff] }
 0x168   :  { %v1124_v58 = vadd.f32 1.0, %v5710_v63  ;;  %v1244_v63 = vld [vmem:[#allocation6 + $0x2a0] sm:$0xff] }
 0x169   :  { %v6344_v47 = vadd.f32 %v1136_v34, %v1134_v41  ;;  %v1253_v41 = vld [vmem:[#allocation6 + $0x2e8] sm:$0xff] }
 0x16a   :  { %v5712_v14 = vpop.eup %5711  ;;  %v1130_v53 = vmul.f32 0.5, %v1124_v58  ;;  %v1405_v34 = vld [vmem:[#allocation6 + $0x7a8] sm:$0xff]  ;;  %v1388_v58 = vld [vmem:[#allocation6 + $0x720] sm:$0xff] }
 0x16b   :  { %v6346_v42 = vmul.f32 %v5712_v14, %v1129_v26  ;;  %5713 = vtanh.f32 %v6344_v47  ;;  %v1396_v26 = vld [vmem:[#allocation6 + $0x760] sm:$0xff]  ;;  %v1245_v14 = vld [vmem:[#allocation6 + $0x2a8] sm:$0xff] }
 0x16d   :  { %1143 = vst [vmem:[#allocation8] sm:$0xff] %v6346_v42  ;;  %1432 = vmatmul.f32.vlgmr.msra.gmra.mxu0 %v6346_v42  ;;  %1472 = vmatmul.f32.vlgmr.msra.gmra.mxu2 %v6346_v42 }
 0x16e   :  { %1576 = vmatpush.msra.mxu0 %v1284_v23  ;;  %1616 = vmatpush.msra.mxu2 %v1285_v54  ;;  %v1397_v23 = vld [vmem:[#allocation6 + $0x768] sm:$0xff]  ;;  %v1236_v54 = vld [vmem:[#allocation6 + $0x260] sm:$0xff] }
 0x170   :  { %1577 = vmatpush.msra.mxu0 %v1276_v13  ;;  %1617 = vmatpush.msra.mxu2 %v1277_v32  ;;  %v1237_v13 = vld [vmem:[#allocation6 + $0x268] sm:$0xff] }
 0x171   :  { %v5714_v21 = vpop.eup %5713  ;;  %v1389_v32 = vld [vmem:[#allocation6 + $0x728] sm:$0xff] }
 0x172   :  { %v6352_v4 = vmul.f32 %v5714_v21, %v1130_v53  ;;  %1578 = vmatpush.msra.mxu0 %v1268_v25  ;;  %1618 = vmatpush.msra.mxu2 %v1269_v37  ;;  %v1228_v25 = vld [vmem:[#allocation6 + $0x220] sm:$0xff]  ;;  %v1229_v53 = vld [vmem:[#allocation6 + $0x228] sm:$0xff] }
 0x173   :  { %v1380_v37 = vld [vmem:[#allocation6 + $0x6e0] sm:$0xff]  ;;  %v1381_v21 = vld [vmem:[#allocation6 + $0x6e8] sm:$0xff] }
 0x174   :  { %1145 = vst [vmem:[#allocation8 + $0x38] sm:$0xff] %v6352_v4  ;;  %1452 = vmatmul.f32.vlgmr.msra.gmra.mxu1 %v6352_v4  ;;  %1492 = vmatmul.f32.vlgmr.msra.gmra.mxu3 %v6352_v4 }
 0x175   :  { %1579 = vmatpush.msra.mxu0 %v1260_v35  ;;  %1596 = vmatpush.msra.mxu1 %v1412_v29  ;;  %v1220_v35 = vld [vmem:[#allocation6 + $0x1e0] sm:$0xff] }
 0x176   :  { %1619 = vmatpush.msra.mxu2 %v1261_v18  ;;  %1636 = vmatpush.msra.mxu3 %v1413_v19  ;;  %v1372_v29 = vld [vmem:[#allocation6 + $0x6a0] sm:$0xff]  ;;  %v1221_v18 = vld [vmem:[#allocation6 + $0x1e8] sm:$0xff] }
 0x177   :  { %1512 = vmatmul.f32.vlgmr.msrb.gmra.mxu0 %v6346_v42  ;;  %1552 = vmatmul.f32.vlgmr.msrb.gmra.mxu2 %v6346_v42  ;;  %v1373_v19 = vld [vmem:[#allocation6 + $0x6a8] sm:$0xff] }
 0x178   :  { %1580 = vmatpush.msra.mxu0 %v1252_v36  ;;  %1597 = vmatpush.msra.mxu1 %v1404_v39  ;;  %v1212_v36 = vld [vmem:[#allocation6 + $0x1a0] sm:$0xff] }
 0x179   :  { %1620 = vmatpush.msra.mxu2 %v1253_v41  ;;  %1637 = vmatpush.msra.mxu3 %v1405_v34  ;;  %v1364_v39 = vld [vmem:[#allocation6 + $0x660] sm:$0xff]  ;;  %v1213_v41 = vld [vmem:[#allocation6 + $0x1a8] sm:$0xff] }
 0x17a   :  { %1581 = vmatpush.msra.mxu0 %v1244_v63  ;;  %1598 = vmatpush.msra.mxu1 %v1396_v26  ;;  %v1365_v34 = vld [vmem:[#allocation6 + $0x668] sm:$0xff]  ;;  %v1204_v63 = vld [vmem:[#allocation6 + $0x160] sm:$0xff] }
 0x17b   :  { %1621 = vmatpush.msra.mxu2 %v1245_v14  ;;  %1638 = vmatpush.msra.mxu3 %v1397_v23  ;;  %v1356_v26 = vld [vmem:[#allocation6 + $0x620] sm:$0xff]  ;;  %v1205_v14 = vld [vmem:[#allocation6 + $0x168] sm:$0xff] }
 0x17c   :  { %1582 = vmatpush.msra.mxu0 %v1236_v54  ;;  %1599 = vmatpush.msra.mxu1 %v1388_v58  ;;  %v1357_v23 = vld [vmem:[#allocation6 + $0x628] sm:$0xff]  ;;  %v1196_v54 = vld [vmem:[#allocation6 + $0x120] sm:$0xff] }
 0x17d   :  { %1622 = vmatpush.msra.mxu2 %v1237_v13  ;;  %1639 = vmatpush.msra.mxu3 %v1389_v32  ;;  %v1348_v58 = vld [vmem:[#allocation6 + $0x5e0] sm:$0xff]  ;;  %v1197_v13 = vld [vmem:[#allocation6 + $0x128] sm:$0xff] }
 0x17e   :  { %1532 = vmatmul.f32.vlgmr.msrb.gmra.mxu1 %v6352_v4  ;;  %1572 = vmatmul.f32.vlgmr.msrb.gmra.mxu3 %v6352_v4  ;;  %v1349_v32 = vld [vmem:[#allocation6 + $0x5e8] sm:$0xff] }
 0x17f   :  { %1583 = vmatpush.msra.mxu0 %v1228_v25  ;;  %1600 = vmatpush.msra.mxu1 %v1380_v37  ;;  %v1188_v25 = vld [vmem:[#allocation6 + $0xe0] sm:$0xff] }
 0x180   :  { %1623 = vmatpush.msra.mxu2 %v1229_v53  ;;  %1640 = vmatpush.msra.mxu3 %v1381_v21  ;;  %v1340_v37 = vld [vmem:[#allocation6 + $0x5a0] sm:$0xff]  ;;  %v1189_v53 = vld [vmem:[#allocation6 + $0xe8] sm:$0xff] }
 0x181   :  { %1584 = vmatpush.msra.mxu0 %v1220_v35  ;;  %1601 = vmatpush.msra.mxu1 %v1372_v29  ;;  %v1341_v21 = vld [vmem:[#allocation6 + $0x5a8] sm:$0xff]  ;;  %v1180_v35 = vld [vmem:[#allocation6 + $0xa0] sm:$0xff] }
 0x182   :  { %1624 = vmatpush.msra.mxu2 %v1221_v18  ;;  %1641 = vmatpush.msra.mxu3 %v1373_v19  ;;  %v1332_v29 = vld [vmem:[#allocation6 + $0x560] sm:$0xff]  ;;  %v1181_v18 = vld [vmem:[#allocation6 + $0xa8] sm:$0xff] }
 0x183   :  { %1585 = vmatpush.msra.mxu0 %v1212_v36  ;;  %1602 = vmatpush.msra.mxu1 %v1364_v39  ;;  %v1333_v19 = vld [vmem:[#allocation6 + $0x568] sm:$0xff]  ;;  %v1172_v36 = vld [vmem:[#allocation6 + $0x60] sm:$0xff] }
 0x184   :  { %1625 = vmatpush.msra.mxu2 %v1213_v41  ;;  %1642 = vmatpush.msra.mxu3 %v1365_v34  ;;  %v1324_v39 = vld [vmem:[#allocation6 + $0x520] sm:$0xff]  ;;  %v1173_v41 = vld [vmem:[#allocation6 + $0x68] sm:$0xff] }
 0x185   :  { %1586 = vmatpush.msra.mxu0 %v1204_v63  ;;  %1603 = vmatpush.msra.mxu1 %v1356_v26  ;;  %v1325_v34 = vld [vmem:[#allocation6 + $0x528] sm:$0xff]  ;;  %v1164_v63 = vld [vmem:[#allocation6 + $0x20] sm:$0xff] }
 0x186   :  { %1626 = vmatpush.msra.mxu2 %v1205_v14  ;;  %1643 = vmatpush.msra.mxu3 %v1357_v23  ;;  %v1316_v26 = vld [vmem:[#allocation6 + $0x4e0] sm:$0xff]  ;;  %v1165_v14 = vld [vmem:[#allocation6 + $0x28] sm:$0xff] }
 0x187   :  { %1587 = vmatpush.msra.mxu0 %v1196_v54  ;;  %1604 = vmatpush.msra.mxu1 %v1348_v58  ;;  %v1317_v23 = vld [vmem:[#allocation6 + $0x4e8] sm:$0xff]  ;;  %v1286_v54 = vld [vmem:[#allocation6 + $0x3f0] sm:$0xff]  ;;  %v1287_v58 = vld [vmem:[#allocation6 + $0x3f8] sm:$0xff] }
 0x188   :  { %1627 = vmatpush.msra.mxu2 %v1197_v13  ;;  %1644 = vmatpush.msra.mxu3 %v1349_v32  ;;  %v1308_v13 = vld [vmem:[#allocation6 + $0x4a0] sm:$0xff]  ;;  %v1309_v32 = vld [vmem:[#allocation6 + $0x4a8] sm:$0xff] }
 0x189   :  { %1588 = vmatpush.msra.mxu0 %v1188_v25  ;;  %1605 = vmatpush.msra.mxu1 %v1340_v37  ;;  %v1278_v25 = vld [vmem:[#allocation6 + $0x3b0] sm:$0xff]  ;;  %v1279_v37 = vld [vmem:[#allocation6 + $0x3b8] sm:$0xff] }
 0x18a   :  { %1628 = vmatpush.msra.mxu2 %v1189_v53  ;;  %1645 = vmatpush.msra.mxu3 %v1341_v21  ;;  %v1300_v53 = vld [vmem:[#allocation6 + $0x460] sm:$0xff]  ;;  %v1301_v21 = vld [vmem:[#allocation6 + $0x468] sm:$0xff] }
 0x18b   :  { %1589 = vmatpush.msra.mxu0 %v1180_v35  ;;  %1606 = vmatpush.msra.mxu1 %v1332_v29  ;;  %v1270_v35 = vld [vmem:[#allocation6 + $0x370] sm:$0xff]  ;;  %v1271_v29 = vld [vmem:[#allocation6 + $0x378] sm:$0xff] }
 0x18c   :  { %1629 = vmatpush.msra.mxu2 %v1181_v18  ;;  %1646 = vmatpush.msra.mxu3 %v1333_v19  ;;  %v1292_v18 = vld [vmem:[#allocation6 + $0x420] sm:$0xff]  ;;  %v1293_v19 = vld [vmem:[#allocation6 + $0x428] sm:$0xff] }
 0x18d   :  { %1590 = vmatpush.msra.mxu0 %v1172_v36  ;;  %1607 = vmatpush.msra.mxu1 %v1324_v39  ;;  %v1262_v36 = vld [vmem:[#allocation6 + $0x330] sm:$0xff] }
 0x18e   :  { %1630 = vmatpush.msra.mxu2 %v1173_v41  ;;  %1647 = vmatpush.msra.mxu3 %v1325_v34  ;;  %v1414_v39 = vld [vmem:[#allocation6 + $0x7f0] sm:$0xff]  ;;  %v1263_v41 = vld [vmem:[#allocation6 + $0x338] sm:$0xff] }
 0x18f   :  { %1591 = vmatpush.msra.mxu0 %v1164_v63  ;;  %1608 = vmatpush.msra.mxu1 %v1316_v26  ;;  %v1415_v34 = vld [vmem:[#allocation6 + $0x7f8] sm:$0xff]  ;;  %v1254_v63 = vld [vmem:[#allocation6 + $0x2f0] sm:$0xff] }
 0x190   :  { %1631 = vmatpush.msra.mxu2 %v1165_v14  ;;  %1648 = vmatpush.msra.mxu3 %v1317_v23  ;;  %v1406_v26 = vld [vmem:[#allocation6 + $0x7b0] sm:$0xff]  ;;  %v1255_v14 = vld [vmem:[#allocation6 + $0x2f8] sm:$0xff] }
 0x191   :  { %1592 = vmatmul.f32.vlgmr.msra.gmra.mxu0 %v6346_v42  ;;  %1632 = vmatmul.f32.vlgmr.msra.gmra.mxu2 %v6346_v42  ;;  %v1407_v23 = vld [vmem:[#allocation6 + $0x7b8] sm:$0xff] }
 0x192   :  { %1656 = vmatpush.msrb.mxu0 %v1286_v54  ;;  %1696 = vmatpush.msrb.mxu2 %v1287_v58  ;;  %v1246_v54 = vld [vmem:[#allocation6 + $0x2b0] sm:$0xff] }
 0x193   :  { %1609 = vmatpush.msra.mxu1 %v1308_v13  ;;  %1649 = vmatpush.msra.mxu3 %v1309_v32  ;;  %v1398_v58 = vld [vmem:[#allocation6 + $0x770] sm:$0xff]  ;;  %v1247_v13 = vld [vmem:[#allocation6 + $0x2b8] sm:$0xff] }
 0x194   :  { %1657 = vmatpush.msrb.mxu0 %v1278_v25  ;;  %1697 = vmatpush.msrb.mxu2 %v1279_v37  ;;  %v1399_v32 = vld [vmem:[#allocation6 + $0x778] sm:$0xff]  ;;  %v1238_v25 = vld [vmem:[#allocation6 + $0x270] sm:$0xff] }
 0x195   :  { %1610 = vmatpush.msra.mxu1 %v1300_v53  ;;  %1650 = vmatpush.msra.mxu3 %v1301_v21  ;;  %v1390_v37 = vld [vmem:[#allocation6 + $0x730] sm:$0xff]  ;;  %v1239_v53 = vld [vmem:[#allocation6 + $0x278] sm:$0xff] }
 0x196   :  { %1658 = vmatpush.msrb.mxu0 %v1270_v35  ;;  %1698 = vmatpush.msrb.mxu2 %v1271_v29  ;;  %v1391_v21 = vld [vmem:[#allocation6 + $0x738] sm:$0xff]  ;;  %v1230_v35 = vld [vmem:[#allocation6 + $0x230] sm:$0xff] }
 0x197   :  { %1611 = vmatpush.msra.mxu1 %v1292_v18  ;;  %1651 = vmatpush.msra.mxu3 %v1293_v19  ;;  %v1382_v29 = vld [vmem:[#allocation6 + $0x6f0] sm:$0xff]  ;;  %v1231_v18 = vld [vmem:[#allocation6 + $0x238] sm:$0xff] }
 0x198   :  { %1612 = vmatmul.f32.vlgmr.msra.gmra.mxu1 %v6352_v4  ;;  %1652 = vmatmul.f32.vlgmr.msra.gmra.mxu3 %v6352_v4  ;;  %v1383_v19 = vld [vmem:[#allocation6 + $0x6f8] sm:$0xff] }
 0x199   :  { %1659 = vmatpush.msrb.mxu0 %v1262_v36  ;;  %1676 = vmatpush.msrb.mxu1 %v1414_v39  ;;  %v1222_v36 = vld [vmem:[#allocation6 + $0x1f0] sm:$0xff] }
 0x19a   :  { %1699 = vmatpush.msrb.mxu2 %v1263_v41  ;;  %1716 = vmatpush.msrb.mxu3 %v1415_v34  ;;  %v1374_v39 = vld [vmem:[#allocation6 + $0x6b0] sm:$0xff]  ;;  %v1223_v41 = vld [vmem:[#allocation6 + $0x1f8] sm:$0xff] }
 0x19b   :  { %1660 = vmatpush.msrb.mxu0 %v1254_v63  ;;  %1677 = vmatpush.msrb.mxu1 %v1406_v26  ;;  %v1375_v34 = vld [vmem:[#allocation6 + $0x6b8] sm:$0xff]  ;;  %v1214_v63 = vld [vmem:[#allocation6 + $0x1b0] sm:$0xff] }
 0x19c   :  { %1700 = vmatpush.msrb.mxu2 %v1255_v14  ;;  %1717 = vmatpush.msrb.mxu3 %v1407_v23  ;;  %v1366_v26 = vld [vmem:[#allocation6 + $0x670] sm:$0xff]  ;;  %v1215_v14 = vld [vmem:[#allocation6 + $0x1b8] sm:$0xff] }
 0x19d   :  { %1661 = vmatpush.msrb.mxu0 %v1246_v54  ;;  %1678 = vmatpush.msrb.mxu1 %v1398_v58  ;;  %v1367_v23 = vld [vmem:[#allocation6 + $0x678] sm:$0xff]  ;;  %v1206_v54 = vld [vmem:[#allocation6 + $0x170] sm:$0xff] }
 0x19e   :  { %1701 = vmatpush.msrb.mxu2 %v1247_v13  ;;  %1718 = vmatpush.msrb.mxu3 %v1399_v32  ;;  %v1358_v58 = vld [vmem:[#allocation6 + $0x630] sm:$0xff]  ;;  %v1207_v13 = vld [vmem:[#allocation6 + $0x178] sm:$0xff] }
 0x19f   :  { %1662 = vmatpush.msrb.mxu0 %v1238_v25  ;;  %1679 = vmatpush.msrb.mxu1 %v1390_v37  ;;  %v1359_v32 = vld [vmem:[#allocation6 + $0x638] sm:$0xff]  ;;  %v1198_v25 = vld [vmem:[#allocation6 + $0x130] sm:$0xff] }
 0x1a0   :  { %1702 = vmatpush.msrb.mxu2 %v1239_v53  ;;  %1719 = vmatpush.msrb.mxu3 %v1391_v21  ;;  %v1350_v37 = vld [vmem:[#allocation6 + $0x5f0] sm:$0xff]  ;;  %v1199_v53 = vld [vmem:[#allocation6 + $0x138] sm:$0xff] }
 0x1a1   :  { %1663 = vmatpush.msrb.mxu0 %v1230_v35  ;;  %1680 = vmatpush.msrb.mxu1 %v1382_v29  ;;  %v1351_v21 = vld [vmem:[#allocation6 + $0x5f8] sm:$0xff]  ;;  %v1190_v35 = vld [vmem:[#allocation6 + $0xf0] sm:$0xff] }
 0x1a2   :  { %1703 = vmatpush.msrb.mxu2 %v1231_v18  ;;  %1720 = vmatpush.msrb.mxu3 %v1383_v19  ;;  %v1342_v29 = vld [vmem:[#allocation6 + $0x5b0] sm:$0xff]  ;;  %v1191_v18 = vld [vmem:[#allocation6 + $0xf8] sm:$0xff] }
 0x1a3   :  { %1664 = vmatpush.msrb.mxu0 %v1222_v36  ;;  %1681 = vmatpush.msrb.mxu1 %v1374_v39  ;;  %v1343_v19 = vld [vmem:[#allocation6 + $0x5b8] sm:$0xff]  ;;  %v1182_v36 = vld [vmem:[#allocation6 + $0xb0] sm:$0xff] }
 0x1a4   :  { %1704 = vmatpush.msrb.mxu2 %v1223_v41  ;;  %1721 = vmatpush.msrb.mxu3 %v1375_v34  ;;  %v1334_v39 = vld [vmem:[#allocation6 + $0x570] sm:$0xff]  ;;  %v1183_v41 = vld [vmem:[#allocation6 + $0xb8] sm:$0xff] }
 0x1a5   :  { %1665 = vmatpush.msrb.mxu0 %v1214_v63  ;;  %1682 = vmatpush.msrb.mxu1 %v1366_v26  ;;  %v1335_v34 = vld [vmem:[#allocation6 + $0x578] sm:$0xff]  ;;  %v1174_v63 = vld [vmem:[#allocation6 + $0x70] sm:$0xff] }
 0x1a6   :  { %1705 = vmatpush.msrb.mxu2 %v1215_v14  ;;  %1722 = vmatpush.msrb.mxu3 %v1367_v23  ;;  %v1326_v26 = vld [vmem:[#allocation6 + $0x530] sm:$0xff]  ;;  %v1175_v14 = vld [vmem:[#allocation6 + $0x78] sm:$0xff] }
 0x1a7   :  { %1666 = vmatpush.msrb.mxu0 %v1206_v54  ;;  %1683 = vmatpush.msrb.mxu1 %v1358_v58  ;;  %v1327_v23 = vld [vmem:[#allocation6 + $0x538] sm:$0xff]  ;;  %v1166_v54 = vld [vmem:[#allocation6 + $0x30] sm:$0xff] }
 0x1a8   :  { %1706 = vmatpush.msrb.mxu2 %v1207_v13  ;;  %1723 = vmatpush.msrb.mxu3 %v1359_v32  ;;  %v1318_v58 = vld [vmem:[#allocation6 + $0x4f0] sm:$0xff]  ;;  %v1167_v13 = vld [vmem:[#allocation6 + $0x38] sm:$0xff] }
 0x1a9   :  { %1667 = vmatpush.msrb.mxu0 %v1198_v25  ;;  %1684 = vmatpush.msrb.mxu1 %v1350_v37  ;;  %v1319_v32 = vld [vmem:[#allocation6 + $0x4f8] sm:$0xff]  ;;  %v1310_v25 = vld [vmem:[#allocation6 + $0x4b0] sm:$0xff] }
 0x1aa   :  { %1707 = vmatpush.msrb.mxu2 %v1199_v53  ;;  %1724 = vmatpush.msrb.mxu3 %v1351_v21  ;;  %v1311_v37 = vld [vmem:[#allocation6 + $0x4b8] sm:$0xff]  ;;  %v1302_v53 = vld [vmem:[#allocation6 + $0x470] sm:$0xff] }
 0x1ab   :  { %1668 = vmatpush.msrb.mxu0 %v1190_v35  ;;  %1685 = vmatpush.msrb.mxu1 %v1342_v29  ;;  %v1303_v21 = vld [vmem:[#allocation6 + $0x478] sm:$0xff]  ;;  %v1294_v35 = vld [vmem:[#allocation6 + $0x430] sm:$0xff] }
 0x1ac   :  { %1708 = vmatpush.msrb.mxu2 %v1191_v18  ;;  %1725 = vmatpush.msrb.mxu3 %v1343_v19  ;;  %v1295_v29 = vld [vmem:[#allocation6 + $0x438] sm:$0xff]  ;;  %v1918_v18 = vld [vmem:[#allocation6 + $0x3c0] sm:$0xff]  ;;  %v1919_v19 = vld [vmem:[#allocation6 + $0x3c8] sm:$0xff] }
 0x1ad   :  { %1669 = vmatpush.msrb.mxu0 %v1182_v36  ;;  %1686 = vmatpush.msrb.mxu1 %v1334_v39  ;;  %v1910_v36 = vld [vmem:[#allocation6 + $0x380] sm:$0xff] }
 0x1ae   :  { %1709 = vmatpush.msrb.mxu2 %v1183_v41  ;;  %1726 = vmatpush.msrb.mxu3 %v1335_v34  ;;  %v1902_v39 = vld [vmem:[#allocation6 + $0x340] sm:$0xff]  ;;  %v1903_v41 = vld [vmem:[#allocation6 + $0x348] sm:$0xff] }
 0x1af   :  { %1670 = vmatpush.msrb.mxu0 %v1174_v63  ;;  %1687 = vmatpush.msrb.mxu1 %v1326_v26  ;;  %v1894_v34 = vld [vmem:[#allocation6 + $0x300] sm:$0xff]  ;;  %v1895_v26 = vld [vmem:[#allocation6 + $0x308] sm:$0xff] }
 0x1b0   :  { %1710 = vmatpush.msrb.mxu2 %v1175_v14  ;;  %1727 = vmatpush.msrb.mxu3 %v1327_v23  ;;  %v2046_v63 = vld [vmem:[#allocation6 + $0x7c0] sm:$0xff]  ;;  %v2047_v14 = vld [vmem:[#allocation6 + $0x7c8] sm:$0xff] }
 0x1b1   :  { %1671 = vmatpush.msrb.mxu0 %v1166_v54  ;;  %1688 = vmatpush.msrb.mxu1 %v1318_v58  ;;  %v2038_v23 = vld [vmem:[#allocation6 + $0x780] sm:$0xff]  ;;  %v1887_v54 = vld [vmem:[#allocation6 + $0x2c8] sm:$0xff] }
 0x1b2   :  { %1711 = vmatpush.msrb.mxu2 %v1167_v13  ;;  %1728 = vmatpush.msrb.mxu3 %v1319_v32  ;;  %v2039_v58 = vld [vmem:[#allocation6 + $0x788] sm:$0xff]  ;;  %v1878_v13 = vld [vmem:[#allocation6 + $0x280] sm:$0xff] }
 0x1b3   :  { %1672 = vmatmul.f32.vlgmr.msrb.gmra.mxu0 %v6346_v42  ;;  %1712 = vmatmul.f32.vlgmr.msrb.gmra.mxu2 %v6346_v42  ;;  %v1911_v42 = vld [vmem:[#allocation6 + $0x388] sm:$0xff]  ;;  %v2030_v32 = vld [vmem:[#allocation6 + $0x740] sm:$0xff] }
 0x1b4   :  { %1689 = vmatpush.msrb.mxu1 %v1310_v25  ;;  %1729 = vmatpush.msrb.mxu3 %v1311_v37  ;;  %v1879_v25 = vld [vmem:[#allocation6 + $0x288] sm:$0xff] }
 0x1b5   :  { %2054 = vmatpush.msra.mxu0 %v1918_v18  ;;  %2094 = vmatpush.msra.mxu2 %v1919_v19  ;;  %v2031_v37 = vld [vmem:[#allocation6 + $0x748] sm:$0xff]  ;;  %v1862_v18 = vld [vmem:[#allocation6 + $0x200] sm:$0xff] }
 0x1b6   :  { %1690 = vmatpush.msrb.mxu1 %v1302_v53  ;;  %1730 = vmatpush.msrb.mxu3 %v1303_v21  ;;  %v1870_v53 = vld [vmem:[#allocation6 + $0x240] sm:$0xff] }
 0x1b7   :  { %2055 = vmatpush.msra.mxu0 %v1910_v36  ;;  %2095 = vmatpush.msra.mxu2 %v1911_v42  ;;  %v2022_v21 = vld [vmem:[#allocation6 + $0x700] sm:$0xff]  ;;  %v1863_v36 = vld [vmem:[#allocation6 + $0x208] sm:$0xff] }
 0x1b8   :  { %1691 = vmatpush.msrb.mxu1 %v1294_v35  ;;  %1731 = vmatpush.msrb.mxu3 %v1295_v29  ;;  %v1871_v35 = vld [vmem:[#allocation6 + $0x248] sm:$0xff]  ;;  %v2014_v19 = vld [vmem:[#allocation6 + $0x6c0] sm:$0xff] }
 0x1b9   :  { %1692 = vmatmul.f32.vlgmr.msrb.gmra.mxu1 %v6352_v4  ;;  %1732 = vmatmul.f32.vlgmr.msrb.gmra.mxu3 %v6352_v4  ;;  %v1886_v4 = vld [vmem:[#allocation6 + $0x2c0] sm:$0xff]  ;;  %v2023_v29 = vld [vmem:[#allocation6 + $0x708] sm:$0xff] }
 0x1ba   :  { %2056 = vmatpush.msra.mxu0 %v1902_v39  ;;  %2096 = vmatpush.msra.mxu2 %v1903_v41  ;;  %v2015_v42 = vld [vmem:[#allocation6 + $0x6c8] sm:$0xff]  ;;  %v1854_v39 = vld [vmem:[#allocation6 + $0x1c0] sm:$0xff] }
 0x1bb   :  { %2074 = vmatpush.msra.mxu1 %v2046_v63  ;;  %2114 = vmatpush.msra.mxu3 %v2047_v14  ;;  %v2006_v41 = vld [vmem:[#allocation6 + $0x680] sm:$0xff]  ;;  %v2007_v63 = vld [vmem:[#allocation6 + $0x688] sm:$0xff] }
 0x1bc   :  { %2057 = vmatpush.msra.mxu0 %v1894_v34  ;;  %2097 = vmatpush.msra.mxu2 %v1895_v26  ;;  %v1855_v34 = vld [vmem:[#allocation6 + $0x1c8] sm:$0xff]  ;;  %v1846_v26 = vld [vmem:[#allocation6 + $0x180] sm:$0xff] }
 0x1bd   :  { %2075 = vmatpush.msra.mxu1 %v2038_v23  ;;  %2115 = vmatpush.msra.mxu3 %v2039_v58  ;;  %v1998_v14 = vld [vmem:[#allocation6 + $0x640] sm:$0xff]  ;;  %v1999_v23 = vld [vmem:[#allocation6 + $0x648] sm:$0xff] }
 0x1be   :  { %2058 = vmatpush.msra.mxu0 %v1886_v4  ;;  %2098 = vmatpush.msra.mxu2 %v1887_v54  ;;  %v1847_v4 = vld [vmem:[#allocation6 + $0x188] sm:$0xff]  ;;  %v1838_v54 = vld [vmem:[#allocation6 + $0x140] sm:$0xff] }
 0x1bf   :  { %2076 = vmatpush.msra.mxu1 %v2030_v32  ;;  %2116 = vmatpush.msra.mxu3 %v2031_v37  ;;  %v1990_v58 = vld [vmem:[#allocation6 + $0x600] sm:$0xff]  ;;  %v1991_v32 = vld [vmem:[#allocation6 + $0x608] sm:$0xff] }
 0x1c0   :  { %2059 = vmatpush.msra.mxu0 %v1878_v13  ;;  %2099 = vmatpush.msra.mxu2 %v1879_v25  ;;  %v1839_v13 = vld [vmem:[#allocation6 + $0x148] sm:$0xff]  ;;  %v1830_v25 = vld [vmem:[#allocation6 + $0x100] sm:$0xff] }
 0x1c1   :  { %2077 = vmatpush.msra.mxu1 %v2022_v21  ;;  %2117 = vmatpush.msra.mxu3 %v2023_v29  ;;  %v1982_v37 = vld [vmem:[#allocation6 + $0x5c0] sm:$0xff]  ;;  %v1983_v21 = vld [vmem:[#allocation6 + $0x5c8] sm:$0xff] }
 0x1c2   :  { %2060 = vmatpush.msra.mxu0 %v1870_v53  ;;  %2100 = vmatpush.msra.mxu2 %v1871_v35  ;;  %v1831_v53 = vld [vmem:[#allocation6 + $0x108] sm:$0xff]  ;;  %v1822_v35 = vld [vmem:[#allocation6 + $0xc0] sm:$0xff] }
 0x1c3   :  { %2078 = vmatpush.msra.mxu1 %v2014_v19  ;;  %2118 = vmatpush.msra.mxu3 %v2015_v42  ;;  %v1974_v29 = vld [vmem:[#allocation6 + $0x580] sm:$0xff]  ;;  %v1975_v19 = vld [vmem:[#allocation6 + $0x588] sm:$0xff] }
 0x1c4   :  { %2061 = vmatpush.msra.mxu0 %v1862_v18  ;;  %2101 = vmatpush.msra.mxu2 %v1863_v36  ;;  %v1823_v18 = vld [vmem:[#allocation6 + $0xc8] sm:$0xff]  ;;  %v1814_v36 = vld [vmem:[#allocation6 + $0x80] sm:$0xff] }
 0x1c5   :  { %2079 = vmatpush.msra.mxu1 %v2006_v41  ;;  %2119 = vmatpush.msra.mxu3 %v2007_v63  ;;  %v1966_v42 = vld [vmem:[#allocation6 + $0x540] sm:$0xff]  ;;  %v1967_v41 = vld [vmem:[#allocation6 + $0x548] sm:$0xff] }
 0x1c6   :  { %2062 = vmatpush.msra.mxu0 %v1854_v39  ;;  %2102 = vmatpush.msra.mxu2 %v1855_v34  ;;  %v1815_v39 = vld [vmem:[#allocation6 + $0x88] sm:$0xff]  ;;  %v1806_v34 = vld [vmem:[#allocation6 + $0x40] sm:$0xff] }
 0x1c7   :  { %2080 = vmatpush.msra.mxu1 %v1998_v14  ;;  %2120 = vmatpush.msra.mxu3 %v1999_v23  ;;  %v1958_v63 = vld [vmem:[#allocation6 + $0x500] sm:$0xff]  ;;  %v1959_v14 = vld [vmem:[#allocation6 + $0x508] sm:$0xff] }
 0x1c8   :  { %2063 = vmatpush.msra.mxu0 %v1846_v26  ;;  %2103 = vmatpush.msra.mxu2 %v1847_v4  ;;  %v1807_v26 = vld [vmem:[#allocation6 + $0x48] sm:$0xff]  ;;  %v1798_v4 = vld [vmem:[#allocation6] sm:$0xff] }
 0x1c9   :  { %2081 = vmatpush.msra.mxu1 %v1990_v58  ;;  %2121 = vmatpush.msra.mxu3 %v1991_v32  ;;  %v1950_v23 = vld [vmem:[#allocation6 + $0x4c0] sm:$0xff]  ;;  %v1951_v58 = vld [vmem:[#allocation6 + $0x4c8] sm:$0xff]  ;;  %v1921_v32 = vld [vmem:[#allocation6 + $0x3d8] sm:$0xff] }
 0x1ca   :  { %2064 = vmatpush.msra.mxu0 %v1838_v54  ;;  %2104 = vmatpush.msra.mxu2 %v1839_v13  ;;  %v1799_v54 = vld [vmem:[#allocation6 + $0x8] sm:$0xff]  ;;  %v1920_v13 = vld [vmem:[#allocation6 + $0x3d0] sm:$0xff] }
 0x1cb   :  { %2082 = vmatpush.msra.mxu1 %v1982_v37  ;;  %2122 = vmatpush.msra.mxu3 %v1983_v21  ;;  %v1943_v37 = vld [vmem:[#allocation6 + $0x488] sm:$0xff]  ;;  %v1913_v21 = vld [vmem:[#allocation6 + $0x398] sm:$0xff] }
 0x1cc   :  { %2065 = vmatpush.msra.mxu0 %v1830_v25  ;;  %2105 = vmatpush.msra.mxu2 %v1831_v53  ;;  %v1942_v25 = vld [vmem:[#allocation6 + $0x480] sm:$0xff]  ;;  %v1912_v53 = vld [vmem:[#allocation6 + $0x390] sm:$0xff] }
 0x1cd   :  { %2083 = vmatpush.msra.mxu1 %v1974_v29  ;;  %2123 = vmatpush.msra.mxu3 %v1975_v19  ;;  %v1935_v29 = vld [vmem:[#allocation6 + $0x448] sm:$0xff]  ;;  %v1905_v19 = vld [vmem:[#allocation6 + $0x358] sm:$0xff] }
 0x1ce   :  { %2066 = vmatpush.msra.mxu0 %v1822_v35  ;;  %2106 = vmatpush.msra.mxu2 %v1823_v18  ;;  %v1934_v35 = vld [vmem:[#allocation6 + $0x440] sm:$0xff]  ;;  %v1904_v18 = vld [vmem:[#allocation6 + $0x350] sm:$0xff] }
 0x1cf   :  { %2084 = vmatpush.msra.mxu1 %v1966_v42  ;;  %2124 = vmatpush.msra.mxu3 %v1967_v41  ;;  %v1927_v42 = vld [vmem:[#allocation6 + $0x408] sm:$0xff]  ;;  %v2048_v41 = vld [vmem:[#allocation6 + $0x7d0] sm:$0xff] }
 0x1d0   :  { %2067 = vmatpush.msra.mxu0 %v1814_v36  ;;  %2107 = vmatpush.msra.mxu2 %v1815_v39  ;;  %v1926_v36 = vld [vmem:[#allocation6 + $0x400] sm:$0xff]  ;;  %v1896_v39 = vld [vmem:[#allocation6 + $0x310] sm:$0xff] }
 0x1d1   :  { %2085 = vmatpush.msra.mxu1 %v1958_v63  ;;  %2125 = vmatpush.msra.mxu3 %v1959_v14  ;;  %v2049_v63 = vld [vmem:[#allocation6 + $0x7d8] sm:$0xff]  ;;  %v2040_v14 = vld [vmem:[#allocation6 + $0x790] sm:$0xff] }
 0x1d2   :  { %2068 = vmatpush.msra.mxu0 %v1806_v34  ;;  %2108 = vmatpush.msra.mxu2 %v1807_v26  ;;  %v1897_v34 = vld [vmem:[#allocation6 + $0x318] sm:$0xff]  ;;  %v1888_v26 = vld [vmem:[#allocation6 + $0x2d0] sm:$0xff] }
 0x1d3   :  { %2086 = vmatpush.msra.mxu1 %v1950_v23  ;;  %2126 = vmatpush.msra.mxu3 %v1951_v58  ;;  %v1880_v58 = vld [vmem:[#allocation6 + $0x290] sm:$0xff] }
 0x1d4   :  { %2069 = vmatpush.msra.mxu0 %v1798_v4  ;;  %2109 = vmatpush.msra.mxu2 %v1799_v54  ;;  %v1889_v4 = vld [vmem:[#allocation6 + $0x2d8] sm:$0xff] }
 0x1d5   :  { %2087 = vmatpush.msra.mxu1 %v1942_v25  ;;  %2127 = vmatpush.msra.mxu3 %v1943_v37  ;;  %v2041_v54 = vld [vmem:[#allocation6 + $0x798] sm:$0xff] }
 0x1d6   :  { %2134 = vmatpush.msrb.mxu0 %v1920_v13  ;;  %2174 = vmatpush.msrb.mxu2 %v1921_v32  ;;  %v2032_v13 = vld [vmem:[#allocation6 + $0x750] sm:$0xff]  ;;  %v1881_v32 = vld [vmem:[#allocation6 + $0x298] sm:$0xff] }
 0x1d7   :  { %2088 = vmatpush.msra.mxu1 %v1934_v35  ;;  %2128 = vmatpush.msra.mxu3 %v1935_v29  ;;  %v2033_v37 = vld [vmem:[#allocation6 + $0x758] sm:$0xff] }
 0x1d8   :  { %2135 = vmatpush.msrb.mxu0 %v1912_v53  ;;  %2175 = vmatpush.msrb.mxu2 %v1913_v21  ;;  %v1872_v53 = vld [vmem:[#allocation6 + $0x250] sm:$0xff]  ;;  %v1873_v35 = vld [vmem:[#allocation6 + $0x258] sm:$0xff] }
 0x1d9   :  { %2089 = vmatpush.msra.mxu1 %v1926_v36  ;;  %2129 = vmatpush.msra.mxu3 %v1927_v42  ;;  %v2024_v21 = vld [vmem:[#allocation6 + $0x710] sm:$0xff]  ;;  %v2025_v29 = vld [vmem:[#allocation6 + $0x718] sm:$0xff] }
 0x1da   :  { %2136 = vmatpush.msrb.mxu0 %v1904_v18  ;;  %2176 = vmatpush.msrb.mxu2 %v1905_v19  ;;  %v1864_v18 = vld [vmem:[#allocation6 + $0x210] sm:$0xff]  ;;  %v1865_v36 = vld [vmem:[#allocation6 + $0x218] sm:$0xff] }
 0x1db   :  { %2154 = vmatpush.msrb.mxu1 %v2048_v41  ;;  %2194 = vmatpush.msrb.mxu3 %v2049_v63  ;;  %v2016_v19 = vld [vmem:[#allocation6 + $0x6d0] sm:$0xff]  ;;  %v1857_v63 = vld [vmem:[#allocation6 + $0x1d8] sm:$0xff] }
 0x1dc   :  { %2137 = vmatpush.msrb.mxu0 %v1896_v39  ;;  %2177 = vmatpush.msrb.mxu2 %v1897_v34  ;;  %v2017_v39 = vld [vmem:[#allocation6 + $0x6d8] sm:$0xff]  ;;  %v1856_v41 = vld [vmem:[#allocation6 + $0x1d0] sm:$0xff] }
 0x1dd   :  { %2155 = vmatpush.msrb.mxu1 %v2040_v14  ;;  %2195 = vmatpush.msrb.mxu3 %v2041_v54  ;;  %v2008_v34 = vld [vmem:[#allocation6 + $0x690] sm:$0xff]  ;;  %v2009_v14 = vld [vmem:[#allocation6 + $0x698] sm:$0xff] }
 0x1de   :  { %2138 = vmatpush.msrb.mxu0 %v1888_v26  ;;  %2178 = vmatpush.msrb.mxu2 %v1889_v4  ;;  %v1848_v4 = vld [vmem:[#allocation6 + $0x190] sm:$0xff] }
 0x1df   :  { %2156 = vmatpush.msrb.mxu1 %v2032_v13  ;;  %2196 = vmatpush.msrb.mxu3 %v2033_v37  ;;  %v2000_v54 = vld [vmem:[#allocation6 + $0x650] sm:$0xff] }
 0x1e0   :  { %2139 = vmatpush.msrb.mxu0 %v1880_v58  ;;  %2179 = vmatpush.msrb.mxu2 %v1881_v32  ;;  %v1849_v58 = vld [vmem:[#allocation6 + $0x198] sm:$0xff]  ;;  %v1840_v37 = vld [vmem:[#allocation6 + $0x150] sm:$0xff] }
 0x1e1   :  { %2157 = vmatpush.msrb.mxu1 %v2024_v21  ;;  %2197 = vmatpush.msrb.mxu3 %v2025_v29  ;;  %v2001_v32 = vld [vmem:[#allocation6 + $0x658] sm:$0xff] }
 0x1e2   :  { %2140 = vmatpush.msrb.mxu0 %v1872_v53  ;;  %2180 = vmatpush.msrb.mxu2 %v1873_v35  ;;  %v1992_v53 = vld [vmem:[#allocation6 + $0x610] sm:$0xff]  ;;  %v1841_v21 = vld [vmem:[#allocation6 + $0x158] sm:$0xff] }
 0x1e3   :  { %2158 = vmatpush.msrb.mxu1 %v2016_v19  ;;  %2198 = vmatpush.msrb.mxu3 %v2017_v39  ;;  %v1993_v29 = vld [vmem:[#allocation6 + $0x618] sm:$0xff]  ;;  %v1832_v19 = vld [vmem:[#allocation6 + $0x110] sm:$0xff] }
 0x1e4   :  { %2141 = vmatpush.msrb.mxu0 %v1864_v18  ;;  %2181 = vmatpush.msrb.mxu2 %v1865_v36  ;;  %v1984_v36 = vld [vmem:[#allocation6 + $0x5d0] sm:$0xff]  ;;  %v1833_v39 = vld [vmem:[#allocation6 + $0x118] sm:$0xff] }
 0x1e5   :  { %2159 = vmatpush.msrb.mxu1 %v2008_v34  ;;  %2199 = vmatpush.msrb.mxu3 %v2009_v14  ;;  %v220_v34 = vadd.f32 %v6160_v16, %v6298_v8  ;;  %v1824_v14 = vld [vmem:[#allocation6 + $0xd0] sm:$0xff]  ;;  %v1817_v16 = vld [vmem:[#allocation6 + $0x98] sm:$0xff] }
 0x1e6   :  { %2142 = vmatpush.msrb.mxu0 %v1856_v41  ;;  %2182 = vmatpush.msrb.mxu2 %v1857_v63  ;;  %v1985_v41 = vld [vmem:[#allocation6 + $0x5d8] sm:$0xff] }
 0x1e7   :  { %2160 = vmatpush.msrb.mxu1 %v2000_v54  ;;  %2200 = vmatpush.msrb.mxu3 %v2001_v32  ;;  %v1825_v54 = vld [vmem:[#allocation6 + $0xd8] sm:$0xff]  ;;  %v138_v32 = vadd.f32 %v6156_v61, %v6301_v17 }
 0x1e8   :  { %2143 = vmatpush.msrb.mxu0 %v1848_v4  ;;  %2183 = vmatpush.msrb.mxu2 %v1849_v58  ;;  %v1976_v4 = vld [vmem:[#allocation6 + $0x590] sm:$0xff]  ;;  %v1961_v61 = vld [vmem:[#allocation6 + $0x518] sm:$0xff] }
 0x1e9   :  { %2161 = vmatpush.msrb.mxu1 %v1992_v53  ;;  %2201 = vmatpush.msrb.mxu3 %v1993_v29  ;;  %v1816_v53 = vld [vmem:[#allocation6 + $0x90] sm:$0xff] }
 0x1ea   :  { %v1433_v25 = vpop.f32.mrf.mxu0  ;;  %2144 = vmatpush.msrb.mxu0 %v1840_v37  ;;  %2184 = vmatpush.msrb.mxu2 %v1841_v21  ;;  %v1968_v21 = vld [vmem:[#allocation6 + $0x550] sm:$0xff] }
 0x1eb   :  { %2162 = vmatpush.msrb.mxu1 %v1984_v36  ;;  %2202 = vmatpush.msrb.mxu3 %v1985_v41  ;;  %v1960_v36 = vld [vmem:[#allocation6 + $0x510] sm:$0xff] }
 0x1ec   :  { %2145 = vmatpush.msrb.mxu0 %v1832_v19  ;;  %2185 = vmatpush.msrb.mxu2 %v1833_v39  ;;  %v1808_v19 = vld [vmem:[#allocation6 + $0x50] sm:$0xff]  ;;  %v1809_v39 = vld [vmem:[#allocation6 + $0x58] sm:$0xff] }
 0x1ed   :  { %2163 = vmatpush.msrb.mxu1 %v1976_v4  ;;  %v1801_v4 = vld [vmem:[#allocation6 + $0x18] sm:$0xff] }
 0x1ee   :  { %2146 = vmatpush.msrb.mxu0 %v1824_v14  ;;  %2186 = vmatpush.msrb.mxu2 %v1825_v54  ;;  %v1800_v14 = vld [vmem:[#allocation6 + $0x10] sm:$0xff] }
 0x1ef   :  { %2164 = vmatpush.msrb.mxu1 %v1968_v21 }
 0x1f0   :  { %v6373_v26 = vpop.f32.mrf.mxu2  ;;  %2147 = vmatpush.msrb.mxu0 %v1816_v53  ;;  %2187 = vmatpush.msrb.mxu2 %v1817_v16  ;;  %v1936_v16 = vld [vmem:[#allocation6 + $0x450] sm:$0xff] }
 0x1f1   :  { %v6369_v23 = vpop.f32.mrf.mxu1  ;;  %2165 = vmatpush.msrb.mxu1 %v1960_v36  ;;  %v1929_v36 = vld [vmem:[#allocation6 + $0x418] sm:$0xff] }
 0x1f2   :  { %v1454_v63 = vadd.f32 %v6369_v23, %v1433_v25  ;;  %v1969_v23 = vld [vmem:[#allocation6 + $0x558] sm:$0xff]  ;;  %2148 = vmatpush.msrb.mxu0 %v1808_v19  ;;  %2188 = vmatpush.msrb.mxu2 %v1809_v39  ;;  %v1928_v19 = vld [vmem:[#allocation6 + $0x410] sm:$0xff] }
 0x1f4   :  { %v1513_v35 = vpop.f32.mrf.mxu0  ;;  %v1736_v25 = vadd.f32 %v1454_v63, %v138_v32  ;;  %v1952_v63 = vld [vmem:[#allocation6 + $0x4d0] sm:$0xff]  ;;  %v194_v32 = vadd.f32 %v6202_v15, %v6313_v10  ;;  %2149 = vmatpush.msrb.mxu0 %v1800_v14  ;;  %2189 = vmatpush.msrb.mxu2 %v1801_v4  ;;  %v302_v15 = vadd.f32 %v6228_v31, %v6322_v11 }
 0x1f5   :  { %2166 = vmatpush.msrb.mxu1 %v1952_v63  ;;  %v384_v14 = vadd.f32 %v6232_v9, %v6325_v59  ;;  %v440_v9 = vadd.f32 %v6274_v57, %v6337_v7 }
 0x1f6   :  { %v1744_v53 = vmul.f32 0.5, %v1736_v25 }
 0x1f7   :  { %v6371_v42 = vpop.f32.mrf.mxu3 }
 0x1f8   :  { %v1494_v41 = vadd.f32 %v6371_v42, %v6373_v26  ;;  %v1945_v42 = vld [vmem:[#allocation6 + $0x498] sm:$0xff] }
 0x1fa   :  { %v1737_v26 = vadd.f32 %v1494_v41, %v194_v32 }
 0x1fb   :  { %v1533_v13 = vpop.f32.mrf.mxu1 }
 0x1fc   :  { %v1534_v18 = vadd.f32 %v1533_v13, %v1513_v35  ;;  %v1977_v13 = vld [vmem:[#allocation6 + $0x598] sm:$0xff]  ;;  %v1553_v35 = vpop.f32.mrf.mxu2  ;;  %v1745_v39 = vmul.f32 0.5, %v1737_v26 }
 0x1fd   :  { %2203 = vmatpush.msrb.mxu3 %v1977_v13  ;;  %v1953_v13 = vld [vmem:[#allocation6 + $0x4d8] sm:$0xff] }
 0x1fe   :  { %v1738_v37 = vadd.f32 %v1534_v18, %v220_v34  ;;  %v276_v18 = vadd.f32 %v6210_v33, %v6310_v27  ;;  %v1944_v33 = vld [vmem:[#allocation6 + $0x490] sm:$0xff] }
 0x1ff   :  { %2204 = vmatpush.msrb.mxu3 %v1969_v23  ;;  %2167 = vmatpush.msrb.mxu1 %v1944_v33 }
 0x200   :  { %v1746_v34 = vmul.f32 0.5, %v1738_v37 }
 0x201   :  { %v1573_v58 = vpop.f32.mrf.mxu3  ;;  %2205 = vmatpush.msrb.mxu3 %v1961_v61  ;;  %2168 = vmatpush.msrb.mxu1 %v1936_v16 }
 0x202   :  { %v1574_v29 = vadd.f32 %v1573_v58, %v1553_v35  ;;  %5715 = vtanh.f32 %v1746_v34  ;;  %v1937_v35 = vld [vmem:[#allocation6 + $0x458] sm:$0xff] }
 0x203   :  { %2206 = vmatpush.msrb.mxu3 %v1953_v13  ;;  %5717 = vtanh.f32 %v1744_v53  ;;  %2169 = vmatpush.msrb.mxu1 %v1928_v19 }
 0x204   :  { %v1739_v21 = vadd.f32 %v1574_v29, %v276_v18 }
 0x205   :  { %2207 = vmatpush.msrb.mxu3 %v1945_v42 }
 0x206   :  { %v1747_v23 = vmul.f32 0.5, %v1739_v21 }
 0x207   :  { %2208 = vmatpush.msrb.mxu3 %v1937_v35 }
 0x208   :  { %v5716_v34 = vpop.eup %5715  ;;  %5719 = vtanh.f32 %v1747_v23 }
 0x209   :  { %2209 = vmatpush.msrb.mxu3 %v1929_v36  ;;  %5721 = vtanh.f32 %v1745_v39  ;;  %v1758_v13 = vadd.f32 1.0, %v5716_v34 }
 0x20b   :  { %v1764_v16 = vmul.f32 0.5, %v1758_v13 }
 0x20d   :  { %v1770_v36 = vmul.f32 %v1764_v16, %v6341_v28 }
 0x20e   :  { %v1593_v54 = vpop.f32.mrf.mxu0 }
 0x214   :  { %v1633_v25 = vpop.f32.mrf.mxu2 }
 0x215   :  { %v1613_v58 = vpop.f32.mrf.mxu1 }
 0x216   :  { %v1614_v37 = vadd.f32 %v1613_v58, %v1593_v54  ;;  %v5718_v54 = vpop.eup %5717  ;;  %v358_v58 = vadd.f32 %v6270_v22, %v6332_v62 }
 0x217   :  { %v1756_v53 = vadd.f32 1.0, %v5718_v54  ;;  %v5720_v26 = vpop.eup %5719 }
 0x218   :  { %v1740_v61 = vadd.f32 %v1614_v37, %v302_v15  ;;  %v5722_v35 = vpop.eup %5721 }
 0x219   :  { %v1762_v15 = vmul.f32 0.5, %v1756_v53  ;;  %v1757_v19 = vadd.f32 1.0, %v5722_v35  ;;  %v1922_v53 = vld [vmem:[#allocation6 + $0x3e0] sm:$0xff] }
 0x21a   :  { %v1748_v32 = vmul.f32 0.5, %v1740_v61  ;;  %v1898_v35 = vld [vmem:[#allocation6 + $0x320] sm:$0xff] }
 0x21b   :  { %v1653_v29 = vpop.f32.mrf.mxu3  ;;  %v1763_v57 = vmul.f32 0.5, %v1757_v19  ;;  %v1891_v19 = vld [vmem:[#allocation6 + $0x2e8] sm:$0xff] }
 0x21c   :  { %v1654_v4 = vadd.f32 %v1653_v29, %v1633_v25  ;;  %v1759_v25 = vadd.f32 1.0, %v5720_v26  ;;  %v1906_v26 = vld [vmem:[#allocation6 + $0x360] sm:$0xff] }
 0x21e   :  { %v1741_v21 = vadd.f32 %v1654_v4, %v358_v58 }
 0x220   :  { %v1749_v29 = vmul.f32 0.5, %v1741_v21  ;;  %v1923_v21 = vld [vmem:[#allocation6 + $0x3e8] sm:$0xff] }
 0x230   :  { %v1673_v18 = vpop.f32.mrf.mxu0 }
 0x236   :  { %v1693_v41 = vpop.f32.mrf.mxu1  ;;  %v1713_v33 = vpop.f32.mrf.mxu2 }
 0x237   :  { %v1694_v63 = vadd.f32 %v1693_v41, %v1673_v18  ;;  %v1765_v18 = vmul.f32 0.5, %v1759_v25  ;;  %v2051_v25 = vld [vmem:[#allocation6 + $0x7e8] sm:$0xff] }
 0x239   :  { %v1742_v31 = vadd.f32 %v1694_v63, %v384_v14  ;;  %v1771_v63 = vmul.f32 %v1765_v18, %v6344_v47  ;;  %v1914_v47 = vld [vmem:[#allocation6 + $0x3a0] sm:$0xff]  ;;  %v1883_v18 = vld [vmem:[#allocation6 + $0x2a8] sm:$0xff] }
 0x23b   :  { %5723 = vtanh.f32 %v1742_v31 }
 0x23c   :  { %v1733_v42 = vpop.f32.mrf.mxu3  ;;  %5725 = vtanh.f32 %v1748_v32 }
 0x23d   :  { %v1734_v37 = vadd.f32 %v1733_v42, %v1713_v33  ;;  %v1915_v33 = vld [vmem:[#allocation6 + $0x3a8] sm:$0xff] }
 0x23f   :  { %v1743_v23 = vadd.f32 %v1734_v37, %v440_v9  ;;  %v1907_v9 = vld [vmem:[#allocation6 + $0x368] sm:$0xff] }
 0x241   :  { %v5724_v22 = vpop.eup %5723  ;;  %5727 = vtanh.f32 %v1743_v23  ;;  %v2050_v23 = vld [vmem:[#allocation6 + $0x7e0] sm:$0xff] }
 0x242   :  { %v1772_v39 = vmul.f32 %v5724_v22, %v1762_v15  ;;  %v5726_v61 = vpop.eup %5725  ;;  %5729 = vtanh.f32 %v1749_v29  ;;  %v1899_v15 = vld [vmem:[#allocation6 + $0x328] sm:$0xff]  ;;  %v1890_v29 = vld [vmem:[#allocation6 + $0x2e0] sm:$0xff] }
 0x243   :  { %v1760_v14 = vadd.f32 1.0, %v5726_v61  ;;  %v2042_v22 = vld [vmem:[#allocation6 + $0x7a0] sm:$0xff] }
 0x244   :  { %v6395_v41 = vadd.f32 %v1772_v39, %v1770_v36  ;;  %v2043_v36 = vld [vmem:[#allocation6 + $0x7a8] sm:$0xff]  ;;  %v1882_v39 = vld [vmem:[#allocation6 + $0x2a0] sm:$0xff] }
 0x245   :  { %v1766_v58 = vmul.f32 0.5, %v1760_v14  ;;  %v2034_v61 = vld [vmem:[#allocation6 + $0x760] sm:$0xff] }
 0x246   :  { %5731 = vtanh.f32 %v6395_v41  ;;  %v2026_v14 = vld [vmem:[#allocation6 + $0x720] sm:$0xff] }
 0x247   :  { %v5728_v34 = vpop.eup %5727 }
 0x248   :  { %v1773_v4 = vmul.f32 %v5728_v34, %v1763_v57  ;;  %v5730_v54 = vpop.eup %5729  ;;  %v2035_v57 = vld [vmem:[#allocation6 + $0x768] sm:$0xff]  ;;  %v1874_v34 = vld [vmem:[#allocation6 + $0x260] sm:$0xff] }
 0x249   :  { %v1761_v28 = vadd.f32 1.0, %v5730_v54  ;;  %v1866_v54 = vld [vmem:[#allocation6 + $0x220] sm:$0xff] }
 0x24a   :  { %v6399_v31 = vadd.f32 %v1773_v4, %v1771_v63  ;;  %v1875_v63 = vld [vmem:[#allocation6 + $0x268] sm:$0xff] }
 0x24b   :  { %v1767_v42 = vmul.f32 0.5, %v1761_v28  ;;  %v2027_v4 = vld [vmem:[#allocation6 + $0x728] sm:$0xff] }
 0x24c   :  { %v5732_v13 = vpop.eup %5731  ;;  %5733 = vtanh.f32 %v6399_v31  ;;  %v2019_v28 = vld [vmem:[#allocation6 + $0x6e8] sm:$0xff] }
 0x24d   :  { %v6402_v32 = vmul.f32 %v5732_v13, %v1766_v58  ;;  %v2018_v58 = vld [vmem:[#allocation6 + $0x6e0] sm:$0xff]  ;;  %v1867_v13 = vld [vmem:[#allocation6 + $0x228] sm:$0xff] }
 0x24f   :  { %1781 = vst [vmem:[#allocation8 + $0x8] sm:$0xff] %v6402_v32  ;;  %2070 = vmatmul.f32.vlgmr.msra.gmra.mxu0 %v6402_v32  ;;  %2110 = vmatmul.f32.vlgmr.msra.gmra.mxu2 %v6402_v32 }
 0x250   :  { %2214 = vmatpush.msra.mxu0 %v1922_v53  ;;  %2254 = vmatpush.msra.mxu2 %v1923_v21  ;;  %v1858_v53 = vld [vmem:[#allocation6 + $0x1e0] sm:$0xff] }
 0x251   :  { %v2010_v21 = vld [vmem:[#allocation6 + $0x6a0] sm:$0xff] }
 0x252   :  { %v5734_v37 = vpop.eup %5733  ;;  %2215 = vmatpush.msra.mxu0 %v1914_v47  ;;  %2255 = vmatpush.msra.mxu2 %v1915_v33  ;;  %v1859_v47 = vld [vmem:[#allocation6 + $0x1e8] sm:$0xff] }
 0x253   :  { %v6407_v16 = vmul.f32 %v5734_v37, %v1767_v42  ;;  %v2011_v33 = vld [vmem:[#allocation6 + $0x6a8] sm:$0xff]  ;;  %v1850_v42 = vld [vmem:[#allocation6 + $0x1a0] sm:$0xff] }
 0x254   :  { %2216 = vmatpush.msra.mxu0 %v1906_v26  ;;  %2256 = vmatpush.msra.mxu2 %v1907_v9  ;;  %v2002_v26 = vld [vmem:[#allocation6 + $0x660] sm:$0xff]  ;;  %v1851_v9 = vld [vmem:[#allocation6 + $0x1a8] sm:$0xff] }
 0x255   :  { %1783 = vst [vmem:[#allocation8 + $0x30] sm:$0xff] %v6407_v16  ;;  %2090 = vmatmul.f32.vlgmr.msra.gmra.mxu1 %v6407_v16  ;;  %2130 = vmatmul.f32.vlgmr.msra.gmra.mxu3 %v6407_v16  ;;  %v2003_v37 = vld [vmem:[#allocation6 + $0x668] sm:$0xff] }
 0x256   :  { %2217 = vmatpush.msra.mxu0 %v1898_v35  ;;  %2234 = vmatpush.msra.mxu1 %v2050_v23  ;;  %v1842_v35 = vld [vmem:[#allocation6 + $0x160] sm:$0xff] }
 0x257   :  { %2257 = vmatpush.msra.mxu2 %v1899_v15  ;;  %2274 = vmatpush.msra.mxu3 %v2051_v25  ;;  %v1994_v23 = vld [vmem:[#allocation6 + $0x620] sm:$0xff]  ;;  %v1843_v15 = vld [vmem:[#allocation6 + $0x168] sm:$0xff] }
 0x258   :  { %2150 = vmatmul.f32.vlgmr.msrb.gmra.mxu0 %v6402_v32  ;;  %2190 = vmatmul.f32.vlgmr.msrb.gmra.mxu2 %v6402_v32  ;;  %v1995_v25 = vld [vmem:[#allocation6 + $0x628] sm:$0xff] }
 0x259   :  { %2218 = vmatpush.msra.mxu0 %v1890_v29  ;;  %2235 = vmatpush.msra.mxu1 %v2042_v22  ;;  %v1834_v29 = vld [vmem:[#allocation6 + $0x120] sm:$0xff] }
 0x25a   :  { %2258 = vmatpush.msra.mxu2 %v1891_v19  ;;  %2275 = vmatpush.msra.mxu3 %v2043_v36  ;;  %v1986_v22 = vld [vmem:[#allocation6 + $0x5e0] sm:$0xff]  ;;  %v1835_v19 = vld [vmem:[#allocation6 + $0x128] sm:$0xff] }
 0x25b   :  { %2219 = vmatpush.msra.mxu0 %v1882_v39  ;;  %2236 = vmatpush.msra.mxu1 %v2034_v61  ;;  %v1987_v36 = vld [vmem:[#allocation6 + $0x5e8] sm:$0xff]  ;;  %v1826_v39 = vld [vmem:[#allocation6 + $0xe0] sm:$0xff] }
 0x25c   :  { %2259 = vmatpush.msra.mxu2 %v1883_v18  ;;  %2276 = vmatpush.msra.mxu3 %v2035_v57  ;;  %v1978_v61 = vld [vmem:[#allocation6 + $0x5a0] sm:$0xff]  ;;  %v1827_v18 = vld [vmem:[#allocation6 + $0xe8] sm:$0xff] }
 0x25d   :  { %2220 = vmatpush.msra.mxu0 %v1874_v34  ;;  %2237 = vmatpush.msra.mxu1 %v2026_v14  ;;  %v1979_v57 = vld [vmem:[#allocation6 + $0x5a8] sm:$0xff]  ;;  %v1818_v34 = vld [vmem:[#allocation6 + $0xa0] sm:$0xff] }
 0x25e   :  { %2260 = vmatpush.msra.mxu2 %v1875_v63  ;;  %2277 = vmatpush.msra.mxu3 %v2027_v4  ;;  %v1970_v14 = vld [vmem:[#allocation6 + $0x560] sm:$0xff]  ;;  %v1819_v63 = vld [vmem:[#allocation6 + $0xa8] sm:$0xff] }
 0x25f   :  { %2170 = vmatmul.f32.vlgmr.msrb.gmra.mxu1 %v6407_v16  ;;  %2210 = vmatmul.f32.vlgmr.msrb.gmra.mxu3 %v6407_v16  ;;  %v1971_v4 = vld [vmem:[#allocation6 + $0x568] sm:$0xff] }
 0x260   :  { %2221 = vmatpush.msra.mxu0 %v1866_v54  ;;  %2238 = vmatpush.msra.mxu1 %v2018_v58  ;;  %v1810_v54 = vld [vmem:[#allocation6 + $0x60] sm:$0xff] }
 0x261   :  { %2261 = vmatpush.msra.mxu2 %v1867_v13  ;;  %2278 = vmatpush.msra.mxu3 %v2019_v28  ;;  %v1962_v58 = vld [vmem:[#allocation6 + $0x520] sm:$0xff]  ;;  %v1811_v13 = vld [vmem:[#allocation6 + $0x68] sm:$0xff] }
 0x262   :  { %2222 = vmatpush.msra.mxu0 %v1858_v53  ;;  %2239 = vmatpush.msra.mxu1 %v2010_v21  ;;  %v1963_v28 = vld [vmem:[#allocation6 + $0x528] sm:$0xff]  ;;  %v1802_v53 = vld [vmem:[#allocation6 + $0x20] sm:$0xff] }
 0x263   :  { %2262 = vmatpush.msra.mxu2 %v1859_v47  ;;  %2279 = vmatpush.msra.mxu3 %v2011_v33  ;;  %v1954_v21 = vld [vmem:[#allocation6 + $0x4e0] sm:$0xff]  ;;  %v1803_v47 = vld [vmem:[#allocation6 + $0x28] sm:$0xff] }
 0x264   :  { %2223 = vmatpush.msra.mxu0 %v1850_v42  ;;  %2240 = vmatpush.msra.mxu1 %v2002_v26  ;;  %v1955_v33 = vld [vmem:[#allocation6 + $0x4e8] sm:$0xff]  ;;  %v1924_v42 = vld [vmem:[#allocation6 + $0x3f0] sm:$0xff]  ;;  %v1925_v26 = vld [vmem:[#allocation6 + $0x3f8] sm:$0xff] }
 0x265   :  { %2263 = vmatpush.msra.mxu2 %v1851_v9  ;;  %2280 = vmatpush.msra.mxu3 %v2003_v37  ;;  %v1946_v9 = vld [vmem:[#allocation6 + $0x4a0] sm:$0xff]  ;;  %v1947_v37 = vld [vmem:[#allocation6 + $0x4a8] sm:$0xff] }
 0x266   :  { %2224 = vmatpush.msra.mxu0 %v1842_v35  ;;  %2241 = vmatpush.msra.mxu1 %v1994_v23  ;;  %v1916_v35 = vld [vmem:[#allocation6 + $0x3b0] sm:$0xff]  ;;  %v1917_v23 = vld [vmem:[#allocation6 + $0x3b8] sm:$0xff] }
 0x267   :  { %2264 = vmatpush.msra.mxu2 %v1843_v15  ;;  %2281 = vmatpush.msra.mxu3 %v1995_v25  ;;  %v1938_v15 = vld [vmem:[#allocation6 + $0x460] sm:$0xff]  ;;  %v1939_v25 = vld [vmem:[#allocation6 + $0x468] sm:$0xff] }
 0x268   :  { %2225 = vmatpush.msra.mxu0 %v1834_v29  ;;  %2242 = vmatpush.msra.mxu1 %v1986_v22  ;;  %v1908_v29 = vld [vmem:[#allocation6 + $0x370] sm:$0xff]  ;;  %v1909_v22 = vld [vmem:[#allocation6 + $0x378] sm:$0xff] }
 0x269   :  { %2265 = vmatpush.msra.mxu2 %v1835_v19  ;;  %2282 = vmatpush.msra.mxu3 %v1987_v36  ;;  %v1930_v19 = vld [vmem:[#allocation6 + $0x420] sm:$0xff]  ;;  %v1931_v36 = vld [vmem:[#allocation6 + $0x428] sm:$0xff] }
 0x26a   :  { %2226 = vmatpush.msra.mxu0 %v1826_v39  ;;  %2243 = vmatpush.msra.mxu1 %v1978_v61  ;;  %v1900_v39 = vld [vmem:[#allocation6 + $0x330] sm:$0xff] }
 0x26b   :  { %2266 = vmatpush.msra.mxu2 %v1827_v18  ;;  %2283 = vmatpush.msra.mxu3 %v1979_v57  ;;  %v2052_v61 = vld [vmem:[#allocation6 + $0x7f0] sm:$0xff]  ;;  %v1901_v18 = vld [vmem:[#allocation6 + $0x338] sm:$0xff] }
 0x26c   :  { %2227 = vmatpush.msra.mxu0 %v1818_v34  ;;  %2244 = vmatpush.msra.mxu1 %v1970_v14  ;;  %v2053_v57 = vld [vmem:[#allocation6 + $0x7f8] sm:$0xff]  ;;  %v1892_v34 = vld [vmem:[#allocation6 + $0x2f0] sm:$0xff] }
 0x26d   :  { %2267 = vmatpush.msra.mxu2 %v1819_v63  ;;  %2284 = vmatpush.msra.mxu3 %v1971_v4  ;;  %v2044_v14 = vld [vmem:[#allocation6 + $0x7b0] sm:$0xff]  ;;  %v1893_v63 = vld [vmem:[#allocation6 + $0x2f8] sm:$0xff] }
 0x26e   :  { %2228 = vmatpush.msra.mxu0 %v1810_v54  ;;  %2245 = vmatpush.msra.mxu1 %v1962_v58  ;;  %v2045_v4 = vld [vmem:[#allocation6 + $0x7b8] sm:$0xff]  ;;  %v1884_v54 = vld [vmem:[#allocation6 + $0x2b0] sm:$0xff] }
 0x26f   :  { %2268 = vmatpush.msra.mxu2 %v1811_v13  ;;  %2285 = vmatpush.msra.mxu3 %v1963_v28  ;;  %v2036_v58 = vld [vmem:[#allocation6 + $0x770] sm:$0xff]  ;;  %v1885_v13 = vld [vmem:[#allocation6 + $0x2b8] sm:$0xff] }
 0x270   :  { %2229 = vmatpush.msra.mxu0 %v1802_v53  ;;  %2246 = vmatpush.msra.mxu1 %v1954_v21  ;;  %v2037_v28 = vld [vmem:[#allocation6 + $0x778] sm:$0xff]  ;;  %v1876_v53 = vld [vmem:[#allocation6 + $0x270] sm:$0xff] }
 0x271   :  { %2269 = vmatpush.msra.mxu2 %v1803_v47  ;;  %2286 = vmatpush.msra.mxu3 %v1955_v33  ;;  %v2028_v21 = vld [vmem:[#allocation6 + $0x730] sm:$0xff]  ;;  %v1877_v47 = vld [vmem:[#allocation6 + $0x278] sm:$0xff] }
 0x272   :  { %2230 = vmatmul.f32.vlgmr.msra.gmra.mxu0 %v6402_v32  ;;  %2270 = vmatmul.f32.vlgmr.msra.gmra.mxu2 %v6402_v32  ;;  %v2029_v33 = vld [vmem:[#allocation6 + $0x738] sm:$0xff] }
 0x273   :  { %2294 = vmatpush.msrb.mxu0 %v1924_v42  ;;  %2334 = vmatpush.msrb.mxu2 %v1925_v26  ;;  %v1868_v42 = vld [vmem:[#allocation6 + $0x230] sm:$0xff] }
 0x274   :  { %2247 = vmatpush.msra.mxu1 %v1946_v9  ;;  %2287 = vmatpush.msra.mxu3 %v1947_v37  ;;  %v2020_v26 = vld [vmem:[#allocation6 + $0x6f0] sm:$0xff]  ;;  %v1869_v9 = vld [vmem:[#allocation6 + $0x238] sm:$0xff] }
 0x275   :  { %2295 = vmatpush.msrb.mxu0 %v1916_v35  ;;  %2335 = vmatpush.msrb.mxu2 %v1917_v23  ;;  %v2021_v37 = vld [vmem:[#allocation6 + $0x6f8] sm:$0xff]  ;;  %v1860_v35 = vld [vmem:[#allocation6 + $0x1f0] sm:$0xff] }
 0x276   :  { %2248 = vmatpush.msra.mxu1 %v1938_v15  ;;  %2288 = vmatpush.msra.mxu3 %v1939_v25  ;;  %v2012_v23 = vld [vmem:[#allocation6 + $0x6b0] sm:$0xff]  ;;  %v1861_v15 = vld [vmem:[#allocation6 + $0x1f8] sm:$0xff] }
 0x277   :  { %2296 = vmatpush.msrb.mxu0 %v1908_v29  ;;  %2336 = vmatpush.msrb.mxu2 %v1909_v22  ;;  %v2013_v25 = vld [vmem:[#allocation6 + $0x6b8] sm:$0xff]  ;;  %v1852_v29 = vld [vmem:[#allocation6 + $0x1b0] sm:$0xff] }
 0x278   :  { %2249 = vmatpush.msra.mxu1 %v1930_v19  ;;  %2289 = vmatpush.msra.mxu3 %v1931_v36  ;;  %v2004_v22 = vld [vmem:[#allocation6 + $0x670] sm:$0xff]  ;;  %v1853_v19 = vld [vmem:[#allocation6 + $0x1b8] sm:$0xff] }
 0x279   :  { %2250 = vmatmul.f32.vlgmr.msra.gmra.mxu1 %v6407_v16  ;;  %2290 = vmatmul.f32.vlgmr.msra.gmra.mxu3 %v6407_v16  ;;  %v2005_v36 = vld [vmem:[#allocation6 + $0x678] sm:$0xff] }
 0x27a   :  { %2297 = vmatpush.msrb.mxu0 %v1900_v39  ;;  %2314 = vmatpush.msrb.mxu1 %v2052_v61  ;;  %v1844_v39 = vld [vmem:[#allocation6 + $0x170] sm:$0xff] }
 0x27b   :  { %2337 = vmatpush.msrb.mxu2 %v1901_v18  ;;  %2354 = vmatpush.msrb.mxu3 %v2053_v57  ;;  %v1996_v61 = vld [vmem:[#allocation6 + $0x630] sm:$0xff]  ;;  %v1845_v18 = vld [vmem:[#allocation6 + $0x178] sm:$0xff] }
 0x27c   :  { %2298 = vmatpush.msrb.mxu0 %v1892_v34  ;;  %2315 = vmatpush.msrb.mxu1 %v2044_v14  ;;  %v1997_v57 = vld [vmem:[#allocation6 + $0x638] sm:$0xff]  ;;  %v1836_v34 = vld [vmem:[#allocation6 + $0x130] sm:$0xff] }
 0x27d   :  { %2338 = vmatpush.msrb.mxu2 %v1893_v63  ;;  %2355 = vmatpush.msrb.mxu3 %v2045_v4  ;;  %v1988_v14 = vld [vmem:[#allocation6 + $0x5f0] sm:$0xff]  ;;  %v1837_v63 = vld [vmem:[#allocation6 + $0x138] sm:$0xff] }
 0x27e   :  { %2299 = vmatpush.msrb.mxu0 %v1884_v54  ;;  %2316 = vmatpush.msrb.mxu1 %v2036_v58  ;;  %v1989_v4 = vld [vmem:[#allocation6 + $0x5f8] sm:$0xff]  ;;  %v1828_v54 = vld [vmem:[#allocation6 + $0xf0] sm:$0xff] }
 0x27f   :  { %2339 = vmatpush.msrb.mxu2 %v1885_v13  ;;  %2356 = vmatpush.msrb.mxu3 %v2037_v28  ;;  %v1980_v58 = vld [vmem:[#allocation6 + $0x5b0] sm:$0xff]  ;;  %v1829_v13 = vld [vmem:[#allocation6 + $0xf8] sm:$0xff] }
 0x280   :  { %2300 = vmatpush.msrb.mxu0 %v1876_v53  ;;  %2317 = vmatpush.msrb.mxu1 %v2028_v21  ;;  %v1981_v28 = vld [vmem:[#allocation6 + $0x5b8] sm:$0xff]  ;;  %v1820_v53 = vld [vmem:[#allocation6 + $0xb0] sm:$0xff] }
 0x281   :  { %2340 = vmatpush.msrb.mxu2 %v1877_v47  ;;  %2357 = vmatpush.msrb.mxu3 %v2029_v33  ;;  %v1972_v21 = vld [vmem:[#allocation6 + $0x570] sm:$0xff]  ;;  %v1821_v47 = vld [vmem:[#allocation6 + $0xb8] sm:$0xff] }
 0x282   :  { %2301 = vmatpush.msrb.mxu0 %v1868_v42  ;;  %2318 = vmatpush.msrb.mxu1 %v2020_v26  ;;  %v1973_v33 = vld [vmem:[#allocation6 + $0x578] sm:$0xff]  ;;  %v1812_v42 = vld [vmem:[#allocation6 + $0x70] sm:$0xff] }
 0x283   :  { %2341 = vmatpush.msrb.mxu2 %v1869_v9  ;;  %2358 = vmatpush.msrb.mxu3 %v2021_v37  ;;  %v1964_v26 = vld [vmem:[#allocation6 + $0x530] sm:$0xff]  ;;  %v1813_v9 = vld [vmem:[#allocation6 + $0x78] sm:$0xff] }
 0x284   :  { %2302 = vmatpush.msrb.mxu0 %v1860_v35  ;;  %2319 = vmatpush.msrb.mxu1 %v2012_v23  ;;  %v1965_v37 = vld [vmem:[#allocation6 + $0x538] sm:$0xff]  ;;  %v1804_v35 = vld [vmem:[#allocation6 + $0x30] sm:$0xff] }
 0x285   :  { %2342 = vmatpush.msrb.mxu2 %v1861_v15  ;;  %2359 = vmatpush.msrb.mxu3 %v2013_v25  ;;  %v1956_v23 = vld [vmem:[#allocation6 + $0x4f0] sm:$0xff]  ;;  %v1805_v15 = vld [vmem:[#allocation6 + $0x38] sm:$0xff] }
 0x286   :  { %2303 = vmatpush.msrb.mxu0 %v1852_v29  ;;  %2320 = vmatpush.msrb.mxu1 %v2004_v22  ;;  %v1957_v25 = vld [vmem:[#allocation6 + $0x4f8] sm:$0xff]  ;;  %v1948_v29 = vld [vmem:[#allocation6 + $0x4b0] sm:$0xff] }
 0x287   :  { %2343 = vmatpush.msrb.mxu2 %v1853_v19  ;;  %2360 = vmatpush.msrb.mxu3 %v2005_v36  ;;  %v1949_v22 = vld [vmem:[#allocation6 + $0x4b8] sm:$0xff]  ;;  %v1940_v19 = vld [vmem:[#allocation6 + $0x470] sm:$0xff] }
 0x288   :  { %2304 = vmatpush.msrb.mxu0 %v1844_v39  ;;  %2321 = vmatpush.msrb.mxu1 %v1996_v61  ;;  %v1941_v36 = vld [vmem:[#allocation6 + $0x478] sm:$0xff]  ;;  %v1932_v39 = vld [vmem:[#allocation6 + $0x430] sm:$0xff] }
 0x289   :  { %2344 = vmatpush.msrb.mxu2 %v1845_v18  ;;  %2361 = vmatpush.msrb.mxu3 %v1997_v57  ;;  %v1933_v61 = vld [vmem:[#allocation6 + $0x438] sm:$0xff]  ;;  %v2556_v18 = vld [vmem:[#allocation6 + $0x3c0] sm:$0xff]  ;;  %v2557_v57 = vld [vmem:[#allocation6 + $0x3c8] sm:$0xff] }
 0x28a   :  { %2305 = vmatpush.msrb.mxu0 %v1836_v34  ;;  %2322 = vmatpush.msrb.mxu1 %v1988_v14  ;;  %v2548_v34 = vld [vmem:[#allocation6 + $0x380] sm:$0xff] }
 0x28b   :  { %2345 = vmatpush.msrb.mxu2 %v1837_v63  ;;  %2362 = vmatpush.msrb.mxu3 %v1989_v4  ;;  %v2540_v14 = vld [vmem:[#allocation6 + $0x340] sm:$0xff]  ;;  %v2541_v63 = vld [vmem:[#allocation6 + $0x348] sm:$0xff] }
 0x28c   :  { %2306 = vmatpush.msrb.mxu0 %v1828_v54  ;;  %2323 = vmatpush.msrb.mxu1 %v1980_v58  ;;  %v2532_v4 = vld [vmem:[#allocation6 + $0x300] sm:$0xff]  ;;  %v2533_v58 = vld [vmem:[#allocation6 + $0x308] sm:$0xff] }
 0x28d   :  { %2346 = vmatpush.msrb.mxu2 %v1829_v13  ;;  %2363 = vmatpush.msrb.mxu3 %v1981_v28  ;;  %v2684_v54 = vld [vmem:[#allocation6 + $0x7c0] sm:$0xff]  ;;  %v2685_v13 = vld [vmem:[#allocation6 + $0x7c8] sm:$0xff] }
 0x28e   :  { %2307 = vmatpush.msrb.mxu0 %v1820_v53  ;;  %2324 = vmatpush.msrb.mxu1 %v1972_v21  ;;  %v2676_v28 = vld [vmem:[#allocation6 + $0x780] sm:$0xff]  ;;  %v2525_v53 = vld [vmem:[#allocation6 + $0x2c8] sm:$0xff] }
 0x28f   :  { %2347 = vmatpush.msrb.mxu2 %v1821_v47  ;;  %2364 = vmatpush.msrb.mxu3 %v1973_v33  ;;  %v2677_v21 = vld [vmem:[#allocation6 + $0x788] sm:$0xff]  ;;  %v2516_v47 = vld [vmem:[#allocation6 + $0x280] sm:$0xff] }
 0x290   :  { %2308 = vmatpush.msrb.mxu0 %v1812_v42  ;;  %2325 = vmatpush.msrb.mxu1 %v1964_v26  ;;  %v2668_v33 = vld [vmem:[#allocation6 + $0x740] sm:$0xff]  ;;  %v2517_v42 = vld [vmem:[#allocation6 + $0x288] sm:$0xff] }
 0x291   :  { %2348 = vmatpush.msrb.mxu2 %v1813_v9  ;;  %2365 = vmatpush.msrb.mxu3 %v1965_v37  ;;  %v2669_v26 = vld [vmem:[#allocation6 + $0x748] sm:$0xff]  ;;  %v2508_v9 = vld [vmem:[#allocation6 + $0x240] sm:$0xff] }
 0x292   :  { %2309 = vmatpush.msrb.mxu0 %v1804_v35  ;;  %2326 = vmatpush.msrb.mxu1 %v1956_v23  ;;  %v2660_v37 = vld [vmem:[#allocation6 + $0x700] sm:$0xff]  ;;  %v2509_v35 = vld [vmem:[#allocation6 + $0x248] sm:$0xff] }
 0x293   :  { %2349 = vmatpush.msrb.mxu2 %v1805_v15  ;;  %2366 = vmatpush.msrb.mxu3 %v1957_v25  ;;  %v2661_v23 = vld [vmem:[#allocation6 + $0x708] sm:$0xff]  ;;  %v2500_v15 = vld [vmem:[#allocation6 + $0x200] sm:$0xff] }
 0x294   :  { %2310 = vmatmul.f32.vlgmr.msrb.gmra.mxu0 %v6402_v32  ;;  %2350 = vmatmul.f32.vlgmr.msrb.gmra.mxu2 %v6402_v32  ;;  %v2549_v32 = vld [vmem:[#allocation6 + $0x388] sm:$0xff]  ;;  %v2652_v25 = vld [vmem:[#allocation6 + $0x6c0] sm:$0xff] }
 0x295   :  { %2327 = vmatpush.msrb.mxu1 %v1948_v29  ;;  %2367 = vmatpush.msrb.mxu3 %v1949_v22  ;;  %v2501_v29 = vld [vmem:[#allocation6 + $0x208] sm:$0xff] }
 0x296   :  { %2692 = vmatpush.msra.mxu0 %v2556_v18  ;;  %2732 = vmatpush.msra.mxu2 %v2557_v57  ;;  %v2653_v22 = vld [vmem:[#allocation6 + $0x6c8] sm:$0xff]  ;;  %v2484_v18 = vld [vmem:[#allocation6 + $0x180] sm:$0xff] }
 0x297   :  { %2328 = vmatpush.msrb.mxu1 %v1940_v19  ;;  %2368 = vmatpush.msrb.mxu3 %v1941_v36  ;;  %v2492_v19 = vld [vmem:[#allocation6 + $0x1c0] sm:$0xff] }
 0x298   :  { %2693 = vmatpush.msra.mxu0 %v2548_v34  ;;  %2733 = vmatpush.msra.mxu2 %v2549_v32  ;;  %v2644_v36 = vld [vmem:[#allocation6 + $0x680] sm:$0xff]  ;;  %v2485_v34 = vld [vmem:[#allocation6 + $0x188] sm:$0xff] }
 0x299   :  { %2329 = vmatpush.msrb.mxu1 %v1932_v39  ;;  %2369 = vmatpush.msrb.mxu3 %v1933_v61  ;;  %v2493_v39 = vld [vmem:[#allocation6 + $0x1c8] sm:$0xff]  ;;  %v2636_v57 = vld [vmem:[#allocation6 + $0x640] sm:$0xff] }
 0x29a   :  { %2330 = vmatmul.f32.vlgmr.msrb.gmra.mxu1 %v6407_v16  ;;  %2370 = vmatmul.f32.vlgmr.msrb.gmra.mxu3 %v6407_v16  ;;  %v2524_v16 = vld [vmem:[#allocation6 + $0x2c0] sm:$0xff]  ;;  %v2645_v61 = vld [vmem:[#allocation6 + $0x688] sm:$0xff] }
 0x29b   :  { %2694 = vmatpush.msra.mxu0 %v2540_v14  ;;  %2734 = vmatpush.msra.mxu2 %v2541_v63  ;;  %v2637_v32 = vld [vmem:[#allocation6 + $0x648] sm:$0xff]  ;;  %v2476_v14 = vld [vmem:[#allocation6 + $0x140] sm:$0xff] }
 0x29c   :  { %2712 = vmatpush.msra.mxu1 %v2684_v54  ;;  %2752 = vmatpush.msra.mxu3 %v2685_v13  ;;  %v2628_v63 = vld [vmem:[#allocation6 + $0x600] sm:$0xff]  ;;  %v2629_v54 = vld [vmem:[#allocation6 + $0x608] sm:$0xff] }
 0x29d   :  { %2695 = vmatpush.msra.mxu0 %v2532_v4  ;;  %2735 = vmatpush.msra.mxu2 %v2533_v58  ;;  %v2477_v4 = vld [vmem:[#allocation6 + $0x148] sm:$0xff]  ;;  %v2468_v58 = vld [vmem:[#allocation6 + $0x100] sm:$0xff] }
 0x29e   :  { %2713 = vmatpush.msra.mxu1 %v2676_v28  ;;  %2753 = vmatpush.msra.mxu3 %v2677_v21  ;;  %v2620_v13 = vld [vmem:[#allocation6 + $0x5c0] sm:$0xff]  ;;  %v2621_v28 = vld [vmem:[#allocation6 + $0x5c8] sm:$0xff] }
 0x29f   :  { %2696 = vmatpush.msra.mxu0 %v2524_v16  ;;  %2736 = vmatpush.msra.mxu2 %v2525_v53  ;;  %v2469_v16 = vld [vmem:[#allocation6 + $0x108] sm:$0xff]  ;;  %v2460_v53 = vld [vmem:[#allocation6 + $0xc0] sm:$0xff] }
 0x2a0   :  { %2714 = vmatpush.msra.mxu1 %v2668_v33  ;;  %2754 = vmatpush.msra.mxu3 %v2669_v26  ;;  %v2612_v21 = vld [vmem:[#allocation6 + $0x580] sm:$0xff]  ;;  %v2613_v33 = vld [vmem:[#allocation6 + $0x588] sm:$0xff] }
 0x2a1   :  { %2697 = vmatpush.msra.mxu0 %v2516_v47  ;;  %2737 = vmatpush.msra.mxu2 %v2517_v42  ;;  %v2461_v47 = vld [vmem:[#allocation6 + $0xc8] sm:$0xff]  ;;  %v2452_v42 = vld [vmem:[#allocation6 + $0x80] sm:$0xff] }
 0x2a2   :  { %2715 = vmatpush.msra.mxu1 %v2660_v37  ;;  %2755 = vmatpush.msra.mxu3 %v2661_v23  ;;  %v2604_v26 = vld [vmem:[#allocation6 + $0x540] sm:$0xff]  ;;  %v2605_v37 = vld [vmem:[#allocation6 + $0x548] sm:$0xff] }
 0x2a3   :  { %2698 = vmatpush.msra.mxu0 %v2508_v9  ;;  %2738 = vmatpush.msra.mxu2 %v2509_v35  ;;  %v2453_v9 = vld [vmem:[#allocation6 + $0x88] sm:$0xff]  ;;  %v2444_v35 = vld [vmem:[#allocation6 + $0x40] sm:$0xff] }
 0x2a4   :  { %2716 = vmatpush.msra.mxu1 %v2652_v25  ;;  %2756 = vmatpush.msra.mxu3 %v2653_v22  ;;  %v2596_v23 = vld [vmem:[#allocation6 + $0x500] sm:$0xff]  ;;  %v2597_v25 = vld [vmem:[#allocation6 + $0x508] sm:$0xff] }
 0x2a5   :  { %2699 = vmatpush.msra.mxu0 %v2500_v15  ;;  %2739 = vmatpush.msra.mxu2 %v2501_v29  ;;  %v2445_v15 = vld [vmem:[#allocation6 + $0x48] sm:$0xff]  ;;  %v2436_v29 = vld [vmem:[#allocation6] sm:$0xff] }
 0x2a6   :  { %2717 = vmatpush.msra.mxu1 %v2644_v36  ;;  %2757 = vmatpush.msra.mxu3 %v2645_v61  ;;  %v2588_v22 = vld [vmem:[#allocation6 + $0x4c0] sm:$0xff]  ;;  %v2589_v36 = vld [vmem:[#allocation6 + $0x4c8] sm:$0xff]  ;;  %v2559_v61 = vld [vmem:[#allocation6 + $0x3d8] sm:$0xff] }
 0x2a7   :  { %2700 = vmatpush.msra.mxu0 %v2492_v19  ;;  %2740 = vmatpush.msra.mxu2 %v2493_v39  ;;  %v2437_v19 = vld [vmem:[#allocation6 + $0x8] sm:$0xff]  ;;  %v2558_v39 = vld [vmem:[#allocation6 + $0x3d0] sm:$0xff] }
 0x2a8   :  { %2718 = vmatpush.msra.mxu1 %v2636_v57  ;;  %2758 = vmatpush.msra.mxu3 %v2637_v32  ;;  %v2581_v57 = vld [vmem:[#allocation6 + $0x488] sm:$0xff]  ;;  %v2551_v32 = vld [vmem:[#allocation6 + $0x398] sm:$0xff] }
 0x2a9   :  { %2701 = vmatpush.msra.mxu0 %v2484_v18  ;;  %2741 = vmatpush.msra.mxu2 %v2485_v34  ;;  %v2580_v18 = vld [vmem:[#allocation6 + $0x480] sm:$0xff]  ;;  %v2550_v34 = vld [vmem:[#allocation6 + $0x390] sm:$0xff] }
 0x2aa   :  { %2719 = vmatpush.msra.mxu1 %v2628_v63  ;;  %2759 = vmatpush.msra.mxu3 %v2629_v54  ;;  %v2573_v63 = vld [vmem:[#allocation6 + $0x448] sm:$0xff]  ;;  %v2543_v54 = vld [vmem:[#allocation6 + $0x358] sm:$0xff] }
 0x2ab   :  { %2702 = vmatpush.msra.mxu0 %v2476_v14  ;;  %2742 = vmatpush.msra.mxu2 %v2477_v4  ;;  %v2572_v14 = vld [vmem:[#allocation6 + $0x440] sm:$0xff]  ;;  %v2542_v4 = vld [vmem:[#allocation6 + $0x350] sm:$0xff] }
 0x2ac   :  { %2720 = vmatpush.msra.mxu1 %v2620_v13  ;;  %2760 = vmatpush.msra.mxu3 %v2621_v28  ;;  %v2565_v13 = vld [vmem:[#allocation6 + $0x408] sm:$0xff]  ;;  %v2686_v28 = vld [vmem:[#allocation6 + $0x7d0] sm:$0xff] }
 0x2ad   :  { %2703 = vmatpush.msra.mxu0 %v2468_v58  ;;  %2743 = vmatpush.msra.mxu2 %v2469_v16  ;;  %v2564_v58 = vld [vmem:[#allocation6 + $0x400] sm:$0xff]  ;;  %v2534_v16 = vld [vmem:[#allocation6 + $0x310] sm:$0xff] }
 0x2ae   :  { %2721 = vmatpush.msra.mxu1 %v2612_v21  ;;  %2761 = vmatpush.msra.mxu3 %v2613_v33  ;;  %v2687_v21 = vld [vmem:[#allocation6 + $0x7d8] sm:$0xff]  ;;  %v2678_v33 = vld [vmem:[#allocation6 + $0x790] sm:$0xff] }
 0x2af   :  { %2704 = vmatpush.msra.mxu0 %v2460_v53  ;;  %2744 = vmatpush.msra.mxu2 %v2461_v47  ;;  %v2535_v53 = vld [vmem:[#allocation6 + $0x318] sm:$0xff]  ;;  %v2526_v47 = vld [vmem:[#allocation6 + $0x2d0] sm:$0xff] }
 0x2b0   :  { %2722 = vmatpush.msra.mxu1 %v2604_v26  ;;  %2762 = vmatpush.msra.mxu3 %v2605_v37  ;;  %v2518_v37 = vld [vmem:[#allocation6 + $0x290] sm:$0xff] }
 0x2b1   :  { %2705 = vmatpush.msra.mxu0 %v2452_v42  ;;  %2745 = vmatpush.msra.mxu2 %v2453_v9  ;;  %v2527_v42 = vld [vmem:[#allocation6 + $0x2d8] sm:$0xff] }
 0x2b2   :  { %2723 = vmatpush.msra.mxu1 %v2596_v23  ;;  %2763 = vmatpush.msra.mxu3 %v2597_v25  ;;  %v2679_v9 = vld [vmem:[#allocation6 + $0x798] sm:$0xff] }
 0x2b3   :  { %2706 = vmatpush.msra.mxu0 %v2444_v35  ;;  %2746 = vmatpush.msra.mxu2 %v2445_v15  ;;  %v2670_v35 = vld [vmem:[#allocation6 + $0x750] sm:$0xff]  ;;  %v2519_v23 = vld [vmem:[#allocation6 + $0x298] sm:$0xff] }
 0x2b4   :  { %2724 = vmatpush.msra.mxu1 %v2588_v22  ;;  %2764 = vmatpush.msra.mxu3 %v2589_v36  ;;  %v2671_v25 = vld [vmem:[#allocation6 + $0x758] sm:$0xff]  ;;  %v2662_v22 = vld [vmem:[#allocation6 + $0x710] sm:$0xff] }
 0x2b5   :  { %2707 = vmatpush.msra.mxu0 %v2436_v29  ;;  %2747 = vmatpush.msra.mxu2 %v2437_v19  ;;  %v2510_v29 = vld [vmem:[#allocation6 + $0x250] sm:$0xff]  ;;  %v2511_v19 = vld [vmem:[#allocation6 + $0x258] sm:$0xff] }
 0x2b6   :  { %2725 = vmatpush.msra.mxu1 %v2580_v18  ;;  %2765 = vmatpush.msra.mxu3 %v2581_v57  ;;  %v2663_v36 = vld [vmem:[#allocation6 + $0x718] sm:$0xff] }
 0x2b7   :  { %2772 = vmatpush.msrb.mxu0 %v2558_v39  ;;  %2812 = vmatpush.msrb.mxu2 %v2559_v61  ;;  %v2502_v39 = vld [vmem:[#allocation6 + $0x210] sm:$0xff]  ;;  %v2503_v18 = vld [vmem:[#allocation6 + $0x218] sm:$0xff] }
 0x2b8   :  { %2726 = vmatpush.msra.mxu1 %v2572_v14  ;;  %2766 = vmatpush.msra.mxu3 %v2573_v63  ;;  %v2654_v61 = vld [vmem:[#allocation6 + $0x6d0] sm:$0xff]  ;;  %v2495_v63 = vld [vmem:[#allocation6 + $0x1d8] sm:$0xff] }
 0x2b9   :  { %2773 = vmatpush.msrb.mxu0 %v2550_v34  ;;  %2813 = vmatpush.msrb.mxu2 %v2551_v32  ;;  %v2655_v34 = vld [vmem:[#allocation6 + $0x6d8] sm:$0xff]  ;;  %v2494_v32 = vld [vmem:[#allocation6 + $0x1d0] sm:$0xff] }
 0x2ba   :  { %2727 = vmatpush.msra.mxu1 %v2564_v58  ;;  %2767 = vmatpush.msra.mxu3 %v2565_v13  ;;  %v2646_v14 = vld [vmem:[#allocation6 + $0x690] sm:$0xff] }
 0x2bb   :  { %2774 = vmatpush.msrb.mxu0 %v2542_v4  ;;  %2814 = vmatpush.msrb.mxu2 %v2543_v54  ;;  %v2647_v54 = vld [vmem:[#allocation6 + $0x698] sm:$0xff]  ;;  %v2486_v58 = vld [vmem:[#allocation6 + $0x190] sm:$0xff] }
 0x2bc   :  { %2792 = vmatpush.msrb.mxu1 %v2686_v28  ;;  %2832 = vmatpush.msrb.mxu3 %v2687_v21  ;;  %v2638_v13 = vld [vmem:[#allocation6 + $0x650] sm:$0xff] }
 0x2bd   :  { %2775 = vmatpush.msrb.mxu0 %v2534_v16  ;;  %2815 = vmatpush.msrb.mxu2 %v2535_v53  ;;  %v2487_v16 = vld [vmem:[#allocation6 + $0x198] sm:$0xff]  ;;  %v2478_v21 = vld [vmem:[#allocation6 + $0x150] sm:$0xff] }
 0x2be   :  { %2793 = vmatpush.msrb.mxu1 %v2678_v33  ;;  %2833 = vmatpush.msrb.mxu3 %v2679_v9  ;;  %v2639_v53 = vld [vmem:[#allocation6 + $0x658] sm:$0xff] }
 0x2bf   :  { %2776 = vmatpush.msrb.mxu0 %v2526_v47  ;;  %2816 = vmatpush.msrb.mxu2 %v2527_v42  ;;  %v2630_v47 = vld [vmem:[#allocation6 + $0x610] sm:$0xff]  ;;  %v2479_v33 = vld [vmem:[#allocation6 + $0x158] sm:$0xff] }
 0x2c0   :  { %2794 = vmatpush.msrb.mxu1 %v2670_v35  ;;  %2834 = vmatpush.msrb.mxu3 %v2671_v25  ;;  %v2631_v9 = vld [vmem:[#allocation6 + $0x618] sm:$0xff]  ;;  %v2470_v35 = vld [vmem:[#allocation6 + $0x110] sm:$0xff] }
 0x2c1   :  { %2777 = vmatpush.msrb.mxu0 %v2518_v37  ;;  %2817 = vmatpush.msrb.mxu2 %v2519_v23  ;;  %v2622_v23 = vld [vmem:[#allocation6 + $0x5d0] sm:$0xff]  ;;  %v2471_v25 = vld [vmem:[#allocation6 + $0x118] sm:$0xff] }
 0x2c2   :  { %2795 = vmatpush.msrb.mxu1 %v2662_v22  ;;  %2835 = vmatpush.msrb.mxu3 %v2663_v36  ;;  %v223_v22 = vadd.f32 %v6168_v38, %v6298_v8  ;;  %v2462_v36 = vld [vmem:[#allocation6 + $0xd0] sm:$0xff]  ;;  %v2455_v38 = vld [vmem:[#allocation6 + $0x98] sm:$0xff] }
 0x2c3   :  { %2778 = vmatpush.msrb.mxu0 %v2510_v29  ;;  %2818 = vmatpush.msrb.mxu2 %v2511_v19  ;;  %v2623_v29 = vld [vmem:[#allocation6 + $0x5d8] sm:$0xff] }
 0x2c4   :  { %2796 = vmatpush.msrb.mxu1 %v2654_v61  ;;  %2836 = vmatpush.msrb.mxu3 %v2655_v34  ;;  %v2463_v61 = vld [vmem:[#allocation6 + $0xd8] sm:$0xff] }
 0x2c5   :  { %2779 = vmatpush.msrb.mxu0 %v2502_v39  ;;  %2819 = vmatpush.msrb.mxu2 %v2503_v18  ;;  %v2614_v39 = vld [vmem:[#allocation6 + $0x590] sm:$0xff]  ;;  %v2615_v34 = vld [vmem:[#allocation6 + $0x598] sm:$0xff] }
 0x2c6   :  { %2797 = vmatpush.msrb.mxu1 %v2646_v14  ;;  %2837 = vmatpush.msrb.mxu3 %v2647_v54  ;;  %v2606_v54 = vld [vmem:[#allocation6 + $0x550] sm:$0xff] }
 0x2c7   :  { %2780 = vmatpush.msrb.mxu0 %v2494_v32  ;;  %2820 = vmatpush.msrb.mxu2 %v2495_v63  ;;  %v141_v32 = vadd.f32 %v6164_v24, %v6301_v17  ;;  %v2454_v63 = vld [vmem:[#allocation6 + $0x90] sm:$0xff]  ;;  %v2599_v24 = vld [vmem:[#allocation6 + $0x518] sm:$0xff] }
 0x2c8   :  { %2798 = vmatpush.msrb.mxu1 %v2638_v13  ;;  %2838 = vmatpush.msrb.mxu3 %v2639_v53  ;;  %v2447_v53 = vld [vmem:[#allocation6 + $0x58] sm:$0xff] }
 0x2c9   :  { %2781 = vmatpush.msrb.mxu0 %v2486_v58  ;;  %2821 = vmatpush.msrb.mxu2 %v2487_v16  ;;  %v2446_v16 = vld [vmem:[#allocation6 + $0x50] sm:$0xff] }
 0x2ca   :  { %2799 = vmatpush.msrb.mxu1 %v2630_v47  ;;  %2839 = vmatpush.msrb.mxu3 %v2631_v9  ;;  %v2590_v9 = vld [vmem:[#allocation6 + $0x4d0] sm:$0xff] }
 0x2cb   :  { %2782 = vmatpush.msrb.mxu0 %v2478_v21  ;;  %2822 = vmatpush.msrb.mxu2 %v2479_v33  ;;  %v273_v21 = vadd.f32 %v6198_v2, %v6310_v27  ;;  %v2582_v2 = vld [vmem:[#allocation6 + $0x490] sm:$0xff] }
 0x2cc   :  { %v2071_v15 = vpop.f32.mrf.mxu0  ;;  %2800 = vmatpush.msrb.mxu1 %v2622_v23  ;;  %2840 = vmatpush.msrb.mxu3 %v2623_v29  ;;  %v191_v29 = vadd.f32 %v6194_v40, %v6313_v10  ;;  %v305_v40 = vadd.f32 %v6236_v43, %v6322_v11 }
 0x2cd   :  { %2783 = vmatpush.msrb.mxu0 %v2470_v35  ;;  %2823 = vmatpush.msrb.mxu2 %v2471_v25  ;;  %v2591_v25 = vld [vmem:[#allocation6 + $0x4d8] sm:$0xff] }
 0x2ce   :  { %2801 = vmatpush.msrb.mxu1 %v2614_v39  ;;  %2841 = vmatpush.msrb.mxu3 %v2615_v34  ;;  %v2574_v39 = vld [vmem:[#allocation6 + $0x450] sm:$0xff] }
 0x2cf   :  { %2784 = vmatpush.msrb.mxu0 %v2462_v36  ;;  %2824 = vmatpush.msrb.mxu2 %v2463_v61  ;;  %v2575_v61 = vld [vmem:[#allocation6 + $0x458] sm:$0xff] }
 0x2d0   :  { %2802 = vmatpush.msrb.mxu1 %v2606_v54 }
 0x2d1   :  { %2785 = vmatpush.msrb.mxu0 %v2454_v63  ;;  %2825 = vmatpush.msrb.mxu2 %v2455_v38  ;;  %v2567_v63 = vld [vmem:[#allocation6 + $0x418] sm:$0xff] }
 0x2d2   :  { %v6424_v26 = vpop.f32.mrf.mxu1  ;;  %v6428_v4 = vpop.f32.mrf.mxu2 }
 0x2d3   :  { %v2092_v19 = vadd.f32 %v6424_v26, %v2071_v15  ;;  %v2607_v26 = vld [vmem:[#allocation6 + $0x558] sm:$0xff]  ;;  %2786 = vmatpush.msrb.mxu0 %v2446_v16  ;;  %2826 = vmatpush.msrb.mxu2 %v2447_v53 }
 0x2d4   :  { %2842 = vmatpush.msrb.mxu3 %v2607_v26 }
 0x2d5   :  { %v2151_v42 = vpop.f32.mrf.mxu0  ;;  %v2374_v15 = vadd.f32 %v2092_v19, %v141_v32 }
 0x2d6   :  { %2843 = vmatpush.msrb.mxu3 %v2599_v24  ;;  %v355_v24 = vadd.f32 %v6262_v60, %v6332_v62 }
 0x2d8   :  { %v6426_v57 = vpop.f32.mrf.mxu3  ;;  %2844 = vmatpush.msrb.mxu3 %v2591_v25 }
 0x2d9   :  { %v2132_v47 = vadd.f32 %v6426_v57, %v6428_v4  ;;  %v2583_v57 = vld [vmem:[#allocation6 + $0x498] sm:$0xff] }
 0x2da   :  { %2845 = vmatpush.msrb.mxu3 %v2583_v57 }
 0x2db   :  { %v2191_v58 = vpop.f32.mrf.mxu2  ;;  %v2375_v4 = vadd.f32 %v2132_v47, %v191_v29 }
 0x2dc   :  { %v2171_v28 = vpop.f32.mrf.mxu1  ;;  %2846 = vmatpush.msrb.mxu3 %v2575_v61 }
 0x2dd   :  { %v2172_v37 = vadd.f32 %v2171_v28, %v2151_v42  ;;  %v2598_v28 = vld [vmem:[#allocation6 + $0x510] sm:$0xff]  ;;  %v2383_v54 = vmul.f32 0.5, %v2375_v4 }
 0x2de   :  { %2803 = vmatpush.msrb.mxu1 %v2598_v28  ;;  %v2438_v42 = vld [vmem:[#allocation6 + $0x10] sm:$0xff]  ;;  %2847 = vmatpush.msrb.mxu3 %v2567_v63 }
 0x2df   :  { %v2376_v14 = vadd.f32 %v2172_v37, %v223_v22  ;;  %v2439_v37 = vld [vmem:[#allocation6 + $0x18] sm:$0xff]  ;;  %v2382_v22 = vmul.f32 0.5, %v2374_v15  ;;  %2787 = vmatpush.msrb.mxu0 %v2438_v42 }
 0x2e0   :  { %2804 = vmatpush.msrb.mxu1 %v2590_v9  ;;  %2827 = vmatpush.msrb.mxu2 %v2439_v37 }
 0x2e1   :  { %v2384_v33 = vmul.f32 0.5, %v2376_v14  ;;  %v2566_v14 = vld [vmem:[#allocation6 + $0x410] sm:$0xff] }
 0x2e2   :  { %v2211_v18 = vpop.f32.mrf.mxu3  ;;  %2805 = vmatpush.msrb.mxu1 %v2582_v2 }
 0x2e3   :  { %v2212_v13 = vadd.f32 %v2211_v18, %v2191_v58  ;;  %5735 = vtanh.f32 %v2384_v33 }
 0x2e4   :  { %5737 = vtanh.f32 %v2382_v22  ;;  %2806 = vmatpush.msrb.mxu1 %v2574_v39 }
 0x2e5   :  { %v2377_v19 = vadd.f32 %v2212_v13, %v273_v21  ;;  %v387_v13 = vadd.f32 %v6240_v48, %v6325_v59  ;;  %v437_v48 = vadd.f32 %v6266_v3, %v6337_v7 }
 0x2e6   :  { %2807 = vmatpush.msrb.mxu1 %v2566_v14 }
 0x2e7   :  { %v2385_v18 = vmul.f32 0.5, %v2377_v19 }
 0x2e9   :  { %v5736_v15 = vpop.eup %5735  ;;  %5739 = vtanh.f32 %v2385_v18 }
 0x2ea   :  { %v5738_v53 = vpop.eup %5737  ;;  %5741 = vtanh.f32 %v2383_v54  ;;  %v2396_v21 = vadd.f32 1.0, %v5736_v15 }
 0x2eb   :  { %v2394_v33 = vadd.f32 1.0, %v5738_v53 }
 0x2ec   :  { %v2402_v25 = vmul.f32 0.5, %v2396_v21 }
 0x2ed   :  { %v2400_v19 = vmul.f32 0.5, %v2394_v33  ;;  %v2536_v33 = vld [vmem:[#allocation6 + $0x320] sm:$0xff] }
 0x2ef   :  { %v2231_v35 = vpop.f32.mrf.mxu0 }
 0x2f5   :  { %v2271_v34 = vpop.f32.mrf.mxu2 }
 0x2f6   :  { %v2251_v23 = vpop.f32.mrf.mxu1 }
 0x2f7   :  { %v2252_v36 = vadd.f32 %v2251_v23, %v2231_v35  ;;  %v5740_v35 = vpop.eup %5739 }
 0x2f8   :  { %v5742_v29 = vpop.eup %5741  ;;  %v2397_v2 = vadd.f32 1.0, %v5740_v35  ;;  %v2528_v35 = vld [vmem:[#allocation6 + $0x2e0] sm:$0xff] }
 0x2f9   :  { %v2378_v38 = vadd.f32 %v2252_v36, %v305_v40  ;;  %v2395_v4 = vadd.f32 1.0, %v5742_v29  ;;  %v2408_v36 = vmul.f32 %v2402_v25, %v6395_v41  ;;  %v2681_v25 = vld [vmem:[#allocation6 + $0x7a8] sm:$0xff]  ;;  %v2520_v29 = vld [vmem:[#allocation6 + $0x2a0] sm:$0xff] }
 0x2fa   :  { %v2403_v18 = vmul.f32 0.5, %v2397_v2  ;;  %v2673_v2 = vld [vmem:[#allocation6 + $0x768] sm:$0xff] }
 0x2fb   :  { %v2386_v47 = vmul.f32 0.5, %v2378_v38  ;;  %v2401_v3 = vmul.f32 0.5, %v2395_v4  ;;  %v2513_v4 = vld [vmem:[#allocation6 + $0x268] sm:$0xff] }
 0x2fc   :  { %v2291_v32 = vpop.f32.mrf.mxu3  ;;  %v2409_v14 = vmul.f32 %v2403_v18, %v6399_v31  ;;  %v2552_v31 = vld [vmem:[#allocation6 + $0x3a0] sm:$0xff]  ;;  %v2505_v18 = vld [vmem:[#allocation6 + $0x228] sm:$0xff] }
 0x2fd   :  { %v2292_v28 = vadd.f32 %v2291_v32, %v2271_v34 }
 0x2ff   :  { %v2379_v42 = vadd.f32 %v2292_v28, %v355_v24  ;;  %v2553_v28 = vld [vmem:[#allocation6 + $0x3a8] sm:$0xff] }
 0x300   :  { %v2545_v24 = vld [vmem:[#allocation6 + $0x368] sm:$0xff] }
 0x301   :  { %v2387_v57 = vmul.f32 0.5, %v2379_v42  ;;  %v2688_v42 = vld [vmem:[#allocation6 + $0x7e0] sm:$0xff] }
 0x311   :  { %v2311_v58 = vpop.f32.mrf.mxu0 }
 0x317   :  { %v2331_v26 = vpop.f32.mrf.mxu1  ;;  %v2351_v9 = vpop.f32.mrf.mxu2 }
 0x318   :  { %v2332_v16 = vadd.f32 %v2331_v26, %v2311_v58 }
 0x31a   :  { %v2380_v43 = vadd.f32 %v2332_v16, %v387_v13  ;;  %v2560_v13 = vld [vmem:[#allocation6 + $0x3e0] sm:$0xff]  ;;  %v2561_v16 = vld [vmem:[#allocation6 + $0x3e8] sm:$0xff] }
 0x31c   :  { %5743 = vtanh.f32 %v2380_v43  ;;  %v2544_v43 = vld [vmem:[#allocation6 + $0x360] sm:$0xff] }
 0x31d   :  { %v2371_v37 = vpop.f32.mrf.mxu3  ;;  %5745 = vtanh.f32 %v2386_v47 }
 0x31e   :  { %v2372_v23 = vadd.f32 %v2371_v37, %v2351_v9  ;;  %v2537_v9 = vld [vmem:[#allocation6 + $0x328] sm:$0xff] }
 0x31f   :  { %v2689_v37 = vld [vmem:[#allocation6 + $0x7e8] sm:$0xff] }
 0x320   :  { %v2381_v22 = vadd.f32 %v2372_v23, %v437_v48  ;;  %v2680_v48 = vld [vmem:[#allocation6 + $0x7a0] sm:$0xff]  ;;  %v2529_v23 = vld [vmem:[#allocation6 + $0x2e8] sm:$0xff] }
 0x322   :  { %v5744_v60 = vpop.eup %5743  ;;  %5747 = vtanh.f32 %v2381_v22  ;;  %v2672_v22 = vld [vmem:[#allocation6 + $0x760] sm:$0xff] }
 0x323   :  { %v2410_v39 = vmul.f32 %v5744_v60, %v2400_v19  ;;  %v5746_v61 = vpop.eup %5745  ;;  %5749 = vtanh.f32 %v2387_v57  ;;  %v2521_v19 = vld [vmem:[#allocation6 + $0x2a8] sm:$0xff]  ;;  %v2512_v57 = vld [vmem:[#allocation6 + $0x260] sm:$0xff] }
 0x324   :  { %v2398_v32 = vadd.f32 1.0, %v5746_v61  ;;  %v2664_v60 = vld [vmem:[#allocation6 + $0x720] sm:$0xff] }
 0x325   :  { %v6450_v40 = vadd.f32 %v2410_v39, %v2408_v36  ;;  %v2665_v36 = vld [vmem:[#allocation6 + $0x728] sm:$0xff]  ;;  %v2504_v39 = vld [vmem:[#allocation6 + $0x220] sm:$0xff] }
 0x326   :  { %v2404_v58 = vmul.f32 0.5, %v2398_v32  ;;  %v2656_v61 = vld [vmem:[#allocation6 + $0x6e0] sm:$0xff] }
 0x327   :  { %5751 = vtanh.f32 %v6450_v40  ;;  %v2648_v32 = vld [vmem:[#allocation6 + $0x6a0] sm:$0xff] }
 0x328   :  { %v5748_v34 = vpop.eup %5747 }
 0x329   :  { %v2411_v63 = vmul.f32 %v5748_v34, %v2401_v3  ;;  %v5750_v54 = vpop.eup %5749  ;;  %v2657_v3 = vld [vmem:[#allocation6 + $0x6e8] sm:$0xff]  ;;  %v2496_v34 = vld [vmem:[#allocation6 + $0x1e0] sm:$0xff] }
 0x32a   :  { %v2399_v41 = vadd.f32 1.0, %v5750_v54  ;;  %v2488_v54 = vld [vmem:[#allocation6 + $0x1a0] sm:$0xff] }
 0x32b   :  { %v6454_v38 = vadd.f32 %v2411_v63, %v2409_v14  ;;  %v2497_v14 = vld [vmem:[#allocation6 + $0x1e8] sm:$0xff] }
 0x32c   :  { %v2405_v53 = vmul.f32 0.5, %v2399_v41  ;;  %v2649_v63 = vld [vmem:[#allocation6 + $0x6a8] sm:$0xff] }
 0x32d   :  { %v5752_v26 = vpop.eup %5751  ;;  %5753 = vtanh.f32 %v6454_v38  ;;  %v2641_v41 = vld [vmem:[#allocation6 + $0x668] sm:$0xff] }
 0x32e   :  { %v6457_v15 = vmul.f32 %v5752_v26, %v2404_v58  ;;  %v2640_v58 = vld [vmem:[#allocation6 + $0x660] sm:$0xff]  ;;  %v2489_v26 = vld [vmem:[#allocation6 + $0x1a8] sm:$0xff] }
 0x330   :  { %2419 = vst [vmem:[#allocation8 + $0x10] sm:$0xff] %v6457_v15  ;;  %2708 = vmatmul.f32.vlgmr.msra.gmra.mxu0 %v6457_v15  ;;  %2748 = vmatmul.f32.vlgmr.msra.gmra.mxu2 %v6457_v15 }
 0x331   :  { %2852 = vmatpush.msra.mxu0 %v2560_v13  ;;  %2892 = vmatpush.msra.mxu2 %v2561_v16  ;;  %v2480_v13 = vld [vmem:[#allocation6 + $0x160] sm:$0xff] }
 0x332   :  { %v2632_v16 = vld [vmem:[#allocation6 + $0x620] sm:$0xff] }
 0x333   :  { %v5754_v21 = vpop.eup %5753  ;;  %2853 = vmatpush.msra.mxu0 %v2552_v31  ;;  %2893 = vmatpush.msra.mxu2 %v2553_v28  ;;  %v2481_v31 = vld [vmem:[#allocation6 + $0x168] sm:$0xff] }
 0x334   :  { %v6462_v47 = vmul.f32 %v5754_v21, %v2405_v53  ;;  %v2633_v28 = vld [vmem:[#allocation6 + $0x628] sm:$0xff]  ;;  %v2472_v53 = vld [vmem:[#allocation6 + $0x120] sm:$0xff] }
 0x335   :  { %2854 = vmatpush.msra.mxu0 %v2544_v43  ;;  %2894 = vmatpush.msra.mxu2 %v2545_v24  ;;  %v2624_v43 = vld [vmem:[#allocation6 + $0x5e0] sm:$0xff]  ;;  %v2473_v24 = vld [vmem:[#allocation6 + $0x128] sm:$0xff] }
 0x336   :  { %2421 = vst [vmem:[#allocation8 + $0x28] sm:$0xff] %v6462_v47  ;;  %2728 = vmatmul.f32.vlgmr.msra.gmra.mxu1 %v6462_v47  ;;  %2768 = vmatmul.f32.vlgmr.msra.gmra.mxu3 %v6462_v47  ;;  %v2625_v21 = vld [vmem:[#allocation6 + $0x5e8] sm:$0xff] }
 0x337   :  { %2855 = vmatpush.msra.mxu0 %v2536_v33  ;;  %2872 = vmatpush.msra.mxu1 %v2688_v42  ;;  %v2464_v33 = vld [vmem:[#allocation6 + $0xe0] sm:$0xff] }
 0x338   :  { %2895 = vmatpush.msra.mxu2 %v2537_v9  ;;  %2912 = vmatpush.msra.mxu3 %v2689_v37  ;;  %v2616_v42 = vld [vmem:[#allocation6 + $0x5a0] sm:$0xff]  ;;  %v2465_v9 = vld [vmem:[#allocation6 + $0xe8] sm:$0xff] }
 0x339   :  { %2788 = vmatmul.f32.vlgmr.msrb.gmra.mxu0 %v6457_v15  ;;  %2828 = vmatmul.f32.vlgmr.msrb.gmra.mxu2 %v6457_v15  ;;  %v2617_v37 = vld [vmem:[#allocation6 + $0x5a8] sm:$0xff] }
 0x33a   :  { %2856 = vmatpush.msra.mxu0 %v2528_v35  ;;  %2873 = vmatpush.msra.mxu1 %v2680_v48  ;;  %v2456_v35 = vld [vmem:[#allocation6 + $0xa0] sm:$0xff] }
 0x33b   :  { %2896 = vmatpush.msra.mxu2 %v2529_v23  ;;  %2913 = vmatpush.msra.mxu3 %v2681_v25  ;;  %v2608_v48 = vld [vmem:[#allocation6 + $0x560] sm:$0xff]  ;;  %v2457_v23 = vld [vmem:[#allocation6 + $0xa8] sm:$0xff] }
 0x33c   :  { %2857 = vmatpush.msra.mxu0 %v2520_v29  ;;  %2874 = vmatpush.msra.mxu1 %v2672_v22  ;;  %v2609_v25 = vld [vmem:[#allocation6 + $0x568] sm:$0xff]  ;;  %v2448_v29 = vld [vmem:[#allocation6 + $0x60] sm:$0xff] }
 0x33d   :  { %2897 = vmatpush.msra.mxu2 %v2521_v19  ;;  %2914 = vmatpush.msra.mxu3 %v2673_v2  ;;  %v2600_v22 = vld [vmem:[#allocation6 + $0x520] sm:$0xff]  ;;  %v2449_v19 = vld [vmem:[#allocation6 + $0x68] sm:$0xff] }
 0x33e   :  { %2858 = vmatpush.msra.mxu0 %v2512_v57  ;;  %2875 = vmatpush.msra.mxu1 %v2664_v60  ;;  %v2601_v2 = vld [vmem:[#allocation6 + $0x528] sm:$0xff]  ;;  %v2440_v57 = vld [vmem:[#allocation6 + $0x20] sm:$0xff] }
 0x33f   :  { %2898 = vmatpush.msra.mxu2 %v2513_v4  ;;  %2915 = vmatpush.msra.mxu3 %v2665_v36  ;;  %v2592_v60 = vld [vmem:[#allocation6 + $0x4e0] sm:$0xff]  ;;  %v2441_v4 = vld [vmem:[#allocation6 + $0x28] sm:$0xff] }
 0x340   :  { %2808 = vmatmul.f32.vlgmr.msrb.gmra.mxu1 %v6462_v47  ;;  %2848 = vmatmul.f32.vlgmr.msrb.gmra.mxu3 %v6462_v47  ;;  %v2593_v36 = vld [vmem:[#allocation6 + $0x4e8] sm:$0xff] }
 0x341   :  { %2859 = vmatpush.msra.mxu0 %v2504_v39  ;;  %2876 = vmatpush.msra.mxu1 %v2656_v61  ;;  %v2562_v39 = vld [vmem:[#allocation6 + $0x3f0] sm:$0xff]  ;;  %v2563_v61 = vld [vmem:[#allocation6 + $0x3f8] sm:$0xff] }
 0x342   :  { %2899 = vmatpush.msra.mxu2 %v2505_v18  ;;  %2916 = vmatpush.msra.mxu3 %v2657_v3  ;;  %v2584_v18 = vld [vmem:[#allocation6 + $0x4a0] sm:$0xff]  ;;  %v2585_v3 = vld [vmem:[#allocation6 + $0x4a8] sm:$0xff] }
 0x343   :  { %2860 = vmatpush.msra.mxu0 %v2496_v34  ;;  %2877 = vmatpush.msra.mxu1 %v2648_v32  ;;  %v2554_v34 = vld [vmem:[#allocation6 + $0x3b0] sm:$0xff]  ;;  %v2555_v32 = vld [vmem:[#allocation6 + $0x3b8] sm:$0xff] }
 0x344   :  { %2900 = vmatpush.msra.mxu2 %v2497_v14  ;;  %2917 = vmatpush.msra.mxu3 %v2649_v63  ;;  %v2576_v14 = vld [vmem:[#allocation6 + $0x460] sm:$0xff]  ;;  %v2577_v63 = vld [vmem:[#allocation6 + $0x468] sm:$0xff] }
 0x345   :  { %2861 = vmatpush.msra.mxu0 %v2488_v54  ;;  %2878 = vmatpush.msra.mxu1 %v2640_v58  ;;  %v2546_v54 = vld [vmem:[#allocation6 + $0x370] sm:$0xff]  ;;  %v2547_v58 = vld [vmem:[#allocation6 + $0x378] sm:$0xff] }
 0x346   :  { %2901 = vmatpush.msra.mxu2 %v2489_v26  ;;  %2918 = vmatpush.msra.mxu3 %v2641_v41  ;;  %v2568_v26 = vld [vmem:[#allocation6 + $0x420] sm:$0xff]  ;;  %v2569_v41 = vld [vmem:[#allocation6 + $0x428] sm:$0xff] }
 0x347   :  { %2862 = vmatpush.msra.mxu0 %v2480_v13  ;;  %2879 = vmatpush.msra.mxu1 %v2632_v16  ;;  %v2538_v13 = vld [vmem:[#allocation6 + $0x330] sm:$0xff] }
 0x348   :  { %2902 = vmatpush.msra.mxu2 %v2481_v31  ;;  %2919 = vmatpush.msra.mxu3 %v2633_v28  ;;  %v2690_v16 = vld [vmem:[#allocation6 + $0x7f0] sm:$0xff]  ;;  %v2539_v31 = vld [vmem:[#allocation6 + $0x338] sm:$0xff] }
 0x349   :  { %2863 = vmatpush.msra.mxu0 %v2472_v53  ;;  %2880 = vmatpush.msra.mxu1 %v2624_v43  ;;  %v2691_v28 = vld [vmem:[#allocation6 + $0x7f8] sm:$0xff]  ;;  %v2530_v53 = vld [vmem:[#allocation6 + $0x2f0] sm:$0xff] }
 0x34a   :  { %2903 = vmatpush.msra.mxu2 %v2473_v24  ;;  %2920 = vmatpush.msra.mxu3 %v2625_v21  ;;  %v2682_v43 = vld [vmem:[#allocation6 + $0x7b0] sm:$0xff]  ;;  %v2531_v24 = vld [vmem:[#allocation6 + $0x2f8] sm:$0xff] }
 0x34b   :  { %2864 = vmatpush.msra.mxu0 %v2464_v33  ;;  %2881 = vmatpush.msra.mxu1 %v2616_v42  ;;  %v2683_v21 = vld [vmem:[#allocation6 + $0x7b8] sm:$0xff]  ;;  %v2522_v33 = vld [vmem:[#allocation6 + $0x2b0] sm:$0xff] }
 0x34c   :  { %2904 = vmatpush.msra.mxu2 %v2465_v9  ;;  %2921 = vmatpush.msra.mxu3 %v2617_v37  ;;  %v2674_v42 = vld [vmem:[#allocation6 + $0x770] sm:$0xff]  ;;  %v2523_v9 = vld [vmem:[#allocation6 + $0x2b8] sm:$0xff] }
 0x34d   :  { %2865 = vmatpush.msra.mxu0 %v2456_v35  ;;  %2882 = vmatpush.msra.mxu1 %v2608_v48  ;;  %v2675_v37 = vld [vmem:[#allocation6 + $0x778] sm:$0xff]  ;;  %v2514_v35 = vld [vmem:[#allocation6 + $0x270] sm:$0xff] }
 0x34e   :  { %2905 = vmatpush.msra.mxu2 %v2457_v23  ;;  %2922 = vmatpush.msra.mxu3 %v2609_v25  ;;  %v2666_v48 = vld [vmem:[#allocation6 + $0x730] sm:$0xff]  ;;  %v2515_v23 = vld [vmem:[#allocation6 + $0x278] sm:$0xff] }
 0x34f   :  { %2866 = vmatpush.msra.mxu0 %v2448_v29  ;;  %2883 = vmatpush.msra.mxu1 %v2600_v22  ;;  %v2667_v25 = vld [vmem:[#allocation6 + $0x738] sm:$0xff]  ;;  %v2506_v29 = vld [vmem:[#allocation6 + $0x230] sm:$0xff] }
 0x350   :  { %2906 = vmatpush.msra.mxu2 %v2449_v19  ;;  %2923 = vmatpush.msra.mxu3 %v2601_v2  ;;  %v2658_v22 = vld [vmem:[#allocation6 + $0x6f0] sm:$0xff]  ;;  %v2507_v19 = vld [vmem:[#allocation6 + $0x238] sm:$0xff] }
 0x351   :  { %2867 = vmatpush.msra.mxu0 %v2440_v57  ;;  %2884 = vmatpush.msra.mxu1 %v2592_v60  ;;  %v2659_v2 = vld [vmem:[#allocation6 + $0x6f8] sm:$0xff]  ;;  %v2498_v57 = vld [vmem:[#allocation6 + $0x1f0] sm:$0xff] }
 0x352   :  { %2907 = vmatpush.msra.mxu2 %v2441_v4  ;;  %2924 = vmatpush.msra.mxu3 %v2593_v36  ;;  %v2650_v60 = vld [vmem:[#allocation6 + $0x6b0] sm:$0xff]  ;;  %v2499_v4 = vld [vmem:[#allocation6 + $0x1f8] sm:$0xff] }
 0x353   :  { %2868 = vmatmul.f32.vlgmr.msra.gmra.mxu0 %v6457_v15  ;;  %2908 = vmatmul.f32.vlgmr.msra.gmra.mxu2 %v6457_v15  ;;  %v2651_v36 = vld [vmem:[#allocation6 + $0x6b8] sm:$0xff] }
 0x354   :  { %2932 = vmatpush.msrb.mxu0 %v2562_v39  ;;  %2972 = vmatpush.msrb.mxu2 %v2563_v61  ;;  %v2490_v39 = vld [vmem:[#allocation6 + $0x1b0] sm:$0xff] }
 0x355   :  { %2885 = vmatpush.msra.mxu1 %v2584_v18  ;;  %2925 = vmatpush.msra.mxu3 %v2585_v3  ;;  %v2642_v61 = vld [vmem:[#allocation6 + $0x670] sm:$0xff]  ;;  %v2491_v18 = vld [vmem:[#allocation6 + $0x1b8] sm:$0xff] }
 0x356   :  { %2933 = vmatpush.msrb.mxu0 %v2554_v34  ;;  %2973 = vmatpush.msrb.mxu2 %v2555_v32  ;;  %v2643_v3 = vld [vmem:[#allocation6 + $0x678] sm:$0xff]  ;;  %v2482_v34 = vld [vmem:[#allocation6 + $0x170] sm:$0xff] }
 0x357   :  { %2886 = vmatpush.msra.mxu1 %v2576_v14  ;;  %2926 = vmatpush.msra.mxu3 %v2577_v63  ;;  %v2634_v32 = vld [vmem:[#allocation6 + $0x630] sm:$0xff]  ;;  %v2483_v14 = vld [vmem:[#allocation6 + $0x178] sm:$0xff] }
 0x358   :  { %2934 = vmatpush.msrb.mxu0 %v2546_v54  ;;  %2974 = vmatpush.msrb.mxu2 %v2547_v58  ;;  %v2635_v63 = vld [vmem:[#allocation6 + $0x638] sm:$0xff]  ;;  %v2474_v54 = vld [vmem:[#allocation6 + $0x130] sm:$0xff] }
 0x359   :  { %2887 = vmatpush.msra.mxu1 %v2568_v26  ;;  %2927 = vmatpush.msra.mxu3 %v2569_v41  ;;  %v2626_v58 = vld [vmem:[#allocation6 + $0x5f0] sm:$0xff]  ;;  %v2475_v26 = vld [vmem:[#allocation6 + $0x138] sm:$0xff] }
 0x35a   :  { %2888 = vmatmul.f32.vlgmr.msra.gmra.mxu1 %v6462_v47  ;;  %2928 = vmatmul.f32.vlgmr.msra.gmra.mxu3 %v6462_v47  ;;  %v2627_v41 = vld [vmem:[#allocation6 + $0x5f8] sm:$0xff] }
 0x35b   :  { %2935 = vmatpush.msrb.mxu0 %v2538_v13  ;;  %2952 = vmatpush.msrb.mxu1 %v2690_v16  ;;  %v2466_v13 = vld [vmem:[#allocation6 + $0xf0] sm:$0xff] }
 0x35c   :  { %2975 = vmatpush.msrb.mxu2 %v2539_v31  ;;  %2992 = vmatpush.msrb.mxu3 %v2691_v28  ;;  %v2618_v16 = vld [vmem:[#allocation6 + $0x5b0] sm:$0xff]  ;;  %v2467_v31 = vld [vmem:[#allocation6 + $0xf8] sm:$0xff] }
 0x35d   :  { %2936 = vmatpush.msrb.mxu0 %v2530_v53  ;;  %2953 = vmatpush.msrb.mxu1 %v2682_v43  ;;  %v2619_v28 = vld [vmem:[#allocation6 + $0x5b8] sm:$0xff]  ;;  %v2458_v53 = vld [vmem:[#allocation6 + $0xb0] sm:$0xff] }
 0x35e   :  { %2976 = vmatpush.msrb.mxu2 %v2531_v24  ;;  %2993 = vmatpush.msrb.mxu3 %v2683_v21  ;;  %v2610_v43 = vld [vmem:[#allocation6 + $0x570] sm:$0xff]  ;;  %v2459_v24 = vld [vmem:[#allocation6 + $0xb8] sm:$0xff] }
 0x35f   :  { %2937 = vmatpush.msrb.mxu0 %v2522_v33  ;;  %2954 = vmatpush.msrb.mxu1 %v2674_v42  ;;  %v2611_v21 = vld [vmem:[#allocation6 + $0x578] sm:$0xff]  ;;  %v2450_v33 = vld [vmem:[#allocation6 + $0x70] sm:$0xff] }
 0x360   :  { %2977 = vmatpush.msrb.mxu2 %v2523_v9  ;;  %2994 = vmatpush.msrb.mxu3 %v2675_v37  ;;  %v2602_v42 = vld [vmem:[#allocation6 + $0x530] sm:$0xff]  ;;  %v2451_v9 = vld [vmem:[#allocation6 + $0x78] sm:$0xff] }
 0x361   :  { %2938 = vmatpush.msrb.mxu0 %v2514_v35  ;;  %2955 = vmatpush.msrb.mxu1 %v2666_v48  ;;  %v2603_v37 = vld [vmem:[#allocation6 + $0x538] sm:$0xff]  ;;  %v2442_v35 = vld [vmem:[#allocation6 + $0x30] sm:$0xff] }
 0x362   :  { %2978 = vmatpush.msrb.mxu2 %v2515_v23  ;;  %2995 = vmatpush.msrb.mxu3 %v2667_v25  ;;  %v2594_v48 = vld [vmem:[#allocation6 + $0x4f0] sm:$0xff]  ;;  %v2443_v23 = vld [vmem:[#allocation6 + $0x38] sm:$0xff] }
 0x363   :  { %2939 = vmatpush.msrb.mxu0 %v2506_v29  ;;  %2956 = vmatpush.msrb.mxu1 %v2658_v22  ;;  %v2595_v25 = vld [vmem:[#allocation6 + $0x4f8] sm:$0xff]  ;;  %v2586_v29 = vld [vmem:[#allocation6 + $0x4b0] sm:$0xff] }
 0x364   :  { %2979 = vmatpush.msrb.mxu2 %v2507_v19  ;;  %2996 = vmatpush.msrb.mxu3 %v2659_v2  ;;  %v2587_v22 = vld [vmem:[#allocation6 + $0x4b8] sm:$0xff]  ;;  %v2578_v19 = vld [vmem:[#allocation6 + $0x470] sm:$0xff] }
 0x365   :  { %2940 = vmatpush.msrb.mxu0 %v2498_v57  ;;  %2957 = vmatpush.msrb.mxu1 %v2650_v60  ;;  %v2579_v2 = vld [vmem:[#allocation6 + $0x478] sm:$0xff]  ;;  %v2570_v57 = vld [vmem:[#allocation6 + $0x430] sm:$0xff] }
 0x366   :  { %2980 = vmatpush.msrb.mxu2 %v2499_v4  ;;  %2997 = vmatpush.msrb.mxu3 %v2651_v36  ;;  %v2571_v60 = vld [vmem:[#allocation6 + $0x438] sm:$0xff]  ;;  %v3188_v4 = vld [vmem:[#allocation6 + $0x3c0] sm:$0xff]  ;;  %v3189_v36 = vld [vmem:[#allocation6 + $0x3c8] sm:$0xff] }
 0x367   :  { %2941 = vmatpush.msrb.mxu0 %v2490_v39  ;;  %2958 = vmatpush.msrb.mxu1 %v2642_v61  ;;  %v3180_v39 = vld [vmem:[#allocation6 + $0x380] sm:$0xff] }
 0x368   :  { %2981 = vmatpush.msrb.mxu2 %v2491_v18  ;;  %2998 = vmatpush.msrb.mxu3 %v2643_v3  ;;  %v3172_v61 = vld [vmem:[#allocation6 + $0x340] sm:$0xff]  ;;  %v3173_v18 = vld [vmem:[#allocation6 + $0x348] sm:$0xff] }
 0x369   :  { %2942 = vmatpush.msrb.mxu0 %v2482_v34  ;;  %2959 = vmatpush.msrb.mxu1 %v2634_v32  ;;  %v3164_v3 = vld [vmem:[#allocation6 + $0x300] sm:$0xff]  ;;  %v3165_v32 = vld [vmem:[#allocation6 + $0x308] sm:$0xff] }
 0x36a   :  { %2982 = vmatpush.msrb.mxu2 %v2483_v14  ;;  %2999 = vmatpush.msrb.mxu3 %v2635_v63  ;;  %v3316_v34 = vld [vmem:[#allocation6 + $0x7c0] sm:$0xff]  ;;  %v3317_v14 = vld [vmem:[#allocation6 + $0x7c8] sm:$0xff] }
 0x36b   :  { %2943 = vmatpush.msrb.mxu0 %v2474_v54  ;;  %2960 = vmatpush.msrb.mxu1 %v2626_v58  ;;  %v3308_v63 = vld [vmem:[#allocation6 + $0x780] sm:$0xff]  ;;  %v3157_v54 = vld [vmem:[#allocation6 + $0x2c8] sm:$0xff] }
 0x36c   :  { %2983 = vmatpush.msrb.mxu2 %v2475_v26  ;;  %3000 = vmatpush.msrb.mxu3 %v2627_v41  ;;  %v3309_v58 = vld [vmem:[#allocation6 + $0x788] sm:$0xff]  ;;  %v3148_v26 = vld [vmem:[#allocation6 + $0x280] sm:$0xff] }
 0x36d   :  { %2944 = vmatpush.msrb.mxu0 %v2466_v13  ;;  %2961 = vmatpush.msrb.mxu1 %v2618_v16  ;;  %v3300_v41 = vld [vmem:[#allocation6 + $0x740] sm:$0xff]  ;;  %v3149_v13 = vld [vmem:[#allocation6 + $0x288] sm:$0xff] }
 0x36e   :  { %2984 = vmatpush.msrb.mxu2 %v2467_v31  ;;  %3001 = vmatpush.msrb.mxu3 %v2619_v28  ;;  %v3301_v16 = vld [vmem:[#allocation6 + $0x748] sm:$0xff]  ;;  %v3140_v31 = vld [vmem:[#allocation6 + $0x240] sm:$0xff] }
 0x36f   :  { %2945 = vmatpush.msrb.mxu0 %v2458_v53  ;;  %2962 = vmatpush.msrb.mxu1 %v2610_v43  ;;  %v3292_v28 = vld [vmem:[#allocation6 + $0x700] sm:$0xff]  ;;  %v3141_v53 = vld [vmem:[#allocation6 + $0x248] sm:$0xff] }
 0x370   :  { %2985 = vmatpush.msrb.mxu2 %v2459_v24  ;;  %3002 = vmatpush.msrb.mxu3 %v2611_v21  ;;  %v3293_v43 = vld [vmem:[#allocation6 + $0x708] sm:$0xff]  ;;  %v3132_v24 = vld [vmem:[#allocation6 + $0x200] sm:$0xff] }
 0x371   :  { %2946 = vmatpush.msrb.mxu0 %v2450_v33  ;;  %2963 = vmatpush.msrb.mxu1 %v2602_v42  ;;  %v3284_v21 = vld [vmem:[#allocation6 + $0x6c0] sm:$0xff]  ;;  %v3133_v33 = vld [vmem:[#allocation6 + $0x208] sm:$0xff] }
 0x372   :  { %2986 = vmatpush.msrb.mxu2 %v2451_v9  ;;  %3003 = vmatpush.msrb.mxu3 %v2603_v37  ;;  %v3285_v42 = vld [vmem:[#allocation6 + $0x6c8] sm:$0xff]  ;;  %v3124_v9 = vld [vmem:[#allocation6 + $0x1c0] sm:$0xff] }
 0x373   :  { %2947 = vmatpush.msrb.mxu0 %v2442_v35  ;;  %2964 = vmatpush.msrb.mxu1 %v2594_v48  ;;  %v3276_v37 = vld [vmem:[#allocation6 + $0x680] sm:$0xff]  ;;  %v3125_v35 = vld [vmem:[#allocation6 + $0x1c8] sm:$0xff] }
 0x374   :  { %2987 = vmatpush.msrb.mxu2 %v2443_v23  ;;  %3004 = vmatpush.msrb.mxu3 %v2595_v25  ;;  %v3277_v48 = vld [vmem:[#allocation6 + $0x688] sm:$0xff]  ;;  %v3116_v23 = vld [vmem:[#allocation6 + $0x180] sm:$0xff] }
 0x375   :  { %2948 = vmatmul.f32.vlgmr.msrb.gmra.mxu0 %v6457_v15  ;;  %2988 = vmatmul.f32.vlgmr.msrb.gmra.mxu2 %v6457_v15  ;;  %v3181_v15 = vld [vmem:[#allocation6 + $0x388] sm:$0xff]  ;;  %v3268_v25 = vld [vmem:[#allocation6 + $0x640] sm:$0xff] }
 0x376   :  { %2965 = vmatpush.msrb.mxu1 %v2586_v29  ;;  %3005 = vmatpush.msrb.mxu3 %v2587_v22  ;;  %v3117_v29 = vld [vmem:[#allocation6 + $0x188] sm:$0xff] }
 0x377   :  { %3324 = vmatpush.msra.mxu0 %v3188_v4  ;;  %3364 = vmatpush.msra.mxu2 %v3189_v36  ;;  %v3269_v22 = vld [vmem:[#allocation6 + $0x648] sm:$0xff]  ;;  %v3100_v4 = vld [vmem:[#allocation6 + $0x100] sm:$0xff] }
 0x378   :  { %2966 = vmatpush.msrb.mxu1 %v2578_v19  ;;  %3006 = vmatpush.msrb.mxu3 %v2579_v2  ;;  %v3108_v19 = vld [vmem:[#allocation6 + $0x140] sm:$0xff] }
 0x379   :  { %3325 = vmatpush.msra.mxu0 %v3180_v39  ;;  %3365 = vmatpush.msra.mxu2 %v3181_v15  ;;  %v3260_v2 = vld [vmem:[#allocation6 + $0x600] sm:$0xff]  ;;  %v3101_v39 = vld [vmem:[#allocation6 + $0x108] sm:$0xff] }
 0x37a   :  { %2967 = vmatpush.msrb.mxu1 %v2570_v57  ;;  %3007 = vmatpush.msrb.mxu3 %v2571_v60  ;;  %v3109_v57 = vld [vmem:[#allocation6 + $0x148] sm:$0xff]  ;;  %v3252_v36 = vld [vmem:[#allocation6 + $0x5c0] sm:$0xff] }
 0x37b   :  { %2968 = vmatmul.f32.vlgmr.msrb.gmra.mxu1 %v6462_v47  ;;  %3008 = vmatmul.f32.vlgmr.msrb.gmra.mxu3 %v6462_v47  ;;  %v3156_v47 = vld [vmem:[#allocation6 + $0x2c0] sm:$0xff]  ;;  %v3261_v60 = vld [vmem:[#allocation6 + $0x608] sm:$0xff] }
 0x37c   :  { %3326 = vmatpush.msra.mxu0 %v3172_v61  ;;  %3366 = vmatpush.msra.mxu2 %v3173_v18  ;;  %v3253_v15 = vld [vmem:[#allocation6 + $0x5c8] sm:$0xff]  ;;  %v3092_v61 = vld [vmem:[#allocation6 + $0xc0] sm:$0xff] }
 0x37d   :  { %3344 = vmatpush.msra.mxu1 %v3316_v34  ;;  %3384 = vmatpush.msra.mxu3 %v3317_v14  ;;  %v3244_v18 = vld [vmem:[#allocation6 + $0x580] sm:$0xff]  ;;  %v3245_v34 = vld [vmem:[#allocation6 + $0x588] sm:$0xff] }
 0x37e   :  { %3327 = vmatpush.msra.mxu0 %v3164_v3  ;;  %3367 = vmatpush.msra.mxu2 %v3165_v32  ;;  %v3093_v3 = vld [vmem:[#allocation6 + $0xc8] sm:$0xff]  ;;  %v3084_v32 = vld [vmem:[#allocation6 + $0x80] sm:$0xff] }
 0x37f   :  { %3345 = vmatpush.msra.mxu1 %v3308_v63  ;;  %3385 = vmatpush.msra.mxu3 %v3309_v58  ;;  %v3236_v14 = vld [vmem:[#allocation6 + $0x540] sm:$0xff]  ;;  %v3237_v63 = vld [vmem:[#allocation6 + $0x548] sm:$0xff] }
 0x380   :  { %3328 = vmatpush.msra.mxu0 %v3156_v47  ;;  %3368 = vmatpush.msra.mxu2 %v3157_v54  ;;  %v3085_v47 = vld [vmem:[#allocation6 + $0x88] sm:$0xff]  ;;  %v3076_v54 = vld [vmem:[#allocation6 + $0x40] sm:$0xff] }
 0x381   :  { %3346 = vmatpush.msra.mxu1 %v3300_v41  ;;  %3386 = vmatpush.msra.mxu3 %v3301_v16  ;;  %v3228_v58 = vld [vmem:[#allocation6 + $0x500] sm:$0xff]  ;;  %v3229_v41 = vld [vmem:[#allocation6 + $0x508] sm:$0xff] }
 0x382   :  { %3329 = vmatpush.msra.mxu0 %v3148_v26  ;;  %3369 = vmatpush.msra.mxu2 %v3149_v13  ;;  %v3077_v26 = vld [vmem:[#allocation6 + $0x48] sm:$0xff]  ;;  %v3068_v13 = vld [vmem:[#allocation6] sm:$0xff] }
 0x383   :  { %3347 = vmatpush.msra.mxu1 %v3292_v28  ;;  %3387 = vmatpush.msra.mxu3 %v3293_v43  ;;  %v3220_v16 = vld [vmem:[#allocation6 + $0x4c0] sm:$0xff]  ;;  %v3221_v28 = vld [vmem:[#allocation6 + $0x4c8] sm:$0xff]  ;;  %v3191_v43 = vld [vmem:[#allocation6 + $0x3d8] sm:$0xff] }
 0x384   :  { %3330 = vmatpush.msra.mxu0 %v3140_v31  ;;  %3370 = vmatpush.msra.mxu2 %v3141_v53  ;;  %v3069_v31 = vld [vmem:[#allocation6 + $0x8] sm:$0xff]  ;;  %v3190_v53 = vld [vmem:[#allocation6 + $0x3d0] sm:$0xff] }
 0x385   :  { %3348 = vmatpush.msra.mxu1 %v3284_v21  ;;  %3388 = vmatpush.msra.mxu3 %v3285_v42  ;;  %v3213_v21 = vld [vmem:[#allocation6 + $0x488] sm:$0xff]  ;;  %v3183_v42 = vld [vmem:[#allocation6 + $0x398] sm:$0xff] }
 0x386   :  { %3331 = vmatpush.msra.mxu0 %v3132_v24  ;;  %3371 = vmatpush.msra.mxu2 %v3133_v33  ;;  %v3212_v24 = vld [vmem:[#allocation6 + $0x480] sm:$0xff]  ;;  %v3182_v33 = vld [vmem:[#allocation6 + $0x390] sm:$0xff] }
 0x387   :  { %3349 = vmatpush.msra.mxu1 %v3276_v37  ;;  %3389 = vmatpush.msra.mxu3 %v3277_v48  ;;  %v3205_v37 = vld [vmem:[#allocation6 + $0x448] sm:$0xff]  ;;  %v3175_v48 = vld [vmem:[#allocation6 + $0x358] sm:$0xff] }
 0x388   :  { %3332 = vmatpush.msra.mxu0 %v3124_v9  ;;  %3372 = vmatpush.msra.mxu2 %v3125_v35  ;;  %v3204_v9 = vld [vmem:[#allocation6 + $0x440] sm:$0xff]  ;;  %v3174_v35 = vld [vmem:[#allocation6 + $0x350] sm:$0xff] }
 0x389   :  { %3350 = vmatpush.msra.mxu1 %v3268_v25  ;;  %3390 = vmatpush.msra.mxu3 %v3269_v22  ;;  %v3197_v25 = vld [vmem:[#allocation6 + $0x408] sm:$0xff]  ;;  %v3318_v22 = vld [vmem:[#allocation6 + $0x7d0] sm:$0xff] }
 0x38a   :  { %3333 = vmatpush.msra.mxu0 %v3116_v23  ;;  %3373 = vmatpush.msra.mxu2 %v3117_v29  ;;  %v3196_v23 = vld [vmem:[#allocation6 + $0x400] sm:$0xff]  ;;  %v3166_v29 = vld [vmem:[#allocation6 + $0x310] sm:$0xff] }
 0x38b   :  { %3351 = vmatpush.msra.mxu1 %v3260_v2  ;;  %3391 = vmatpush.msra.mxu3 %v3261_v60  ;;  %v3319_v2 = vld [vmem:[#allocation6 + $0x7d8] sm:$0xff]  ;;  %v3310_v60 = vld [vmem:[#allocation6 + $0x790] sm:$0xff] }
 0x38c   :  { %3334 = vmatpush.msra.mxu0 %v3108_v19  ;;  %3374 = vmatpush.msra.mxu2 %v3109_v57  ;;  %v3167_v19 = vld [vmem:[#allocation6 + $0x318] sm:$0xff]  ;;  %v3158_v57 = vld [vmem:[#allocation6 + $0x2d0] sm:$0xff] }
 0x38d   :  { %3352 = vmatpush.msra.mxu1 %v3252_v36  ;;  %3392 = vmatpush.msra.mxu3 %v3253_v15  ;;  %v3150_v15 = vld [vmem:[#allocation6 + $0x290] sm:$0xff] }
 0x38e   :  { %3335 = vmatpush.msra.mxu0 %v3100_v4  ;;  %3375 = vmatpush.msra.mxu2 %v3101_v39  ;;  %v3159_v4 = vld [vmem:[#allocation6 + $0x2d8] sm:$0xff] }
 0x38f   :  { %3353 = vmatpush.msra.mxu1 %v3244_v18  ;;  %3393 = vmatpush.msra.mxu3 %v3245_v34  ;;  %v3311_v39 = vld [vmem:[#allocation6 + $0x798] sm:$0xff] }
 0x390   :  { %3336 = vmatpush.msra.mxu0 %v3092_v61  ;;  %3376 = vmatpush.msra.mxu2 %v3093_v3  ;;  %v3302_v61 = vld [vmem:[#allocation6 + $0x750] sm:$0xff]  ;;  %v3151_v18 = vld [vmem:[#allocation6 + $0x298] sm:$0xff] }
 0x391   :  { %3354 = vmatpush.msra.mxu1 %v3236_v14  ;;  %3394 = vmatpush.msra.mxu3 %v3237_v63  ;;  %v3303_v34 = vld [vmem:[#allocation6 + $0x758] sm:$0xff]  ;;  %v3294_v14 = vld [vmem:[#allocation6 + $0x710] sm:$0xff] }
 0x392   :  { %3337 = vmatpush.msra.mxu0 %v3084_v32  ;;  %3377 = vmatpush.msra.mxu2 %v3085_v47  ;;  %v3142_v32 = vld [vmem:[#allocation6 + $0x250] sm:$0xff]  ;;  %v3143_v47 = vld [vmem:[#allocation6 + $0x258] sm:$0xff] }
 0x393   :  { %3355 = vmatpush.msra.mxu1 %v3228_v58  ;;  %3395 = vmatpush.msra.mxu3 %v3229_v41  ;;  %v3295_v63 = vld [vmem:[#allocation6 + $0x718] sm:$0xff]  ;;  %v3286_v58 = vld [vmem:[#allocation6 + $0x6d0] sm:$0xff] }
 0x394   :  { %3338 = vmatpush.msra.mxu0 %v3076_v54  ;;  %3378 = vmatpush.msra.mxu2 %v3077_v26  ;;  %v3134_v54 = vld [vmem:[#allocation6 + $0x210] sm:$0xff]  ;;  %v3135_v26 = vld [vmem:[#allocation6 + $0x218] sm:$0xff] }
 0x395   :  { %3356 = vmatpush.msra.mxu1 %v3220_v16  ;;  %3396 = vmatpush.msra.mxu3 %v3221_v28  ;;  %v3126_v16 = vld [vmem:[#allocation6 + $0x1d0] sm:$0xff]  ;;  %v3127_v28 = vld [vmem:[#allocation6 + $0x1d8] sm:$0xff] }
 0x396   :  { %3339 = vmatpush.msra.mxu0 %v3068_v13  ;;  %3379 = vmatpush.msra.mxu2 %v3069_v31  ;;  %v3287_v13 = vld [vmem:[#allocation6 + $0x6d8] sm:$0xff]  ;;  %v3278_v31 = vld [vmem:[#allocation6 + $0x690] sm:$0xff] }
 0x397   :  { %3357 = vmatpush.msra.mxu1 %v3212_v24  ;;  %3397 = vmatpush.msra.mxu3 %v3213_v21  ;;  %v3118_v24 = vld [vmem:[#allocation6 + $0x190] sm:$0xff] }
 0x398   :  { %3404 = vmatpush.msrb.mxu0 %v3190_v53  ;;  %3444 = vmatpush.msrb.mxu2 %v3191_v43  ;;  %v3279_v43 = vld [vmem:[#allocation6 + $0x698] sm:$0xff]  ;;  %v3270_v21 = vld [vmem:[#allocation6 + $0x650] sm:$0xff] }
 0x399   :  { %3358 = vmatpush.msra.mxu1 %v3204_v9  ;;  %3398 = vmatpush.msra.mxu3 %v3205_v37  ;;  %v3271_v9 = vld [vmem:[#allocation6 + $0x658] sm:$0xff]  ;;  %v3110_v37 = vld [vmem:[#allocation6 + $0x150] sm:$0xff] }
 0x39a   :  { %3405 = vmatpush.msrb.mxu0 %v3182_v33  ;;  %3445 = vmatpush.msrb.mxu2 %v3183_v42  ;;  %v3119_v33 = vld [vmem:[#allocation6 + $0x198] sm:$0xff] }
 0x39b   :  { %3359 = vmatpush.msra.mxu1 %v3196_v23  ;;  %3399 = vmatpush.msra.mxu3 %v3197_v25  ;;  %v3263_v25 = vld [vmem:[#allocation6 + $0x618] sm:$0xff] }
 0x39c   :  { %3406 = vmatpush.msrb.mxu0 %v3174_v35  ;;  %3446 = vmatpush.msrb.mxu2 %v3175_v48  ;;  %v3262_v35 = vld [vmem:[#allocation6 + $0x610] sm:$0xff]  ;;  %v3111_v48 = vld [vmem:[#allocation6 + $0x158] sm:$0xff] }
 0x39d   :  { %3424 = vmatpush.msrb.mxu1 %v3318_v22  ;;  %3464 = vmatpush.msrb.mxu3 %v3319_v2  ;;  %v3102_v22 = vld [vmem:[#allocation6 + $0x110] sm:$0xff]  ;;  %v3103_v2 = vld [vmem:[#allocation6 + $0x118] sm:$0xff] }
 0x39e   :  { %3407 = vmatpush.msrb.mxu0 %v3166_v29  ;;  %3447 = vmatpush.msrb.mxu2 %v3167_v19  ;;  %v3254_v19 = vld [vmem:[#allocation6 + $0x5d0] sm:$0xff] }
 0x39f   :  { %3425 = vmatpush.msrb.mxu1 %v3310_v60  ;;  %3465 = vmatpush.msrb.mxu3 %v3311_v39  ;;  %v226_v60 = vadd.f32 %v6180_v0, %v6298_v8  ;;  %v3094_v39 = vld [vmem:[#allocation6 + $0xd0] sm:$0xff]  ;;  %v3087_v0 = vld [vmem:[#allocation6 + $0x98] sm:$0xff] }
 0x3a0   :  { %3408 = vmatpush.msrb.mxu0 %v3158_v57  ;;  %3448 = vmatpush.msrb.mxu2 %v3159_v4  ;;  %v3255_v57 = vld [vmem:[#allocation6 + $0x5d8] sm:$0xff] }
 0x3a1   :  { %3426 = vmatpush.msrb.mxu1 %v3302_v61  ;;  %3466 = vmatpush.msrb.mxu3 %v3303_v34  ;;  %v3095_v61 = vld [vmem:[#allocation6 + $0xd8] sm:$0xff] }
 0x3a2   :  { %3409 = vmatpush.msrb.mxu0 %v3150_v15  ;;  %3449 = vmatpush.msrb.mxu2 %v3151_v18  ;;  %v3246_v15 = vld [vmem:[#allocation6 + $0x590] sm:$0xff]  ;;  %v3247_v34 = vld [vmem:[#allocation6 + $0x598] sm:$0xff] }
 0x3a3   :  { %3427 = vmatpush.msrb.mxu1 %v3294_v14  ;;  %3467 = vmatpush.msrb.mxu3 %v3295_v63  ;;  %v3238_v63 = vld [vmem:[#allocation6 + $0x550] sm:$0xff] }
 0x3a4   :  { %3410 = vmatpush.msrb.mxu0 %v3142_v32  ;;  %3450 = vmatpush.msrb.mxu2 %v3143_v47  ;;  %v144_v32 = vadd.f32 %v6172_v44, %v6301_v17  ;;  %v3086_v47 = vld [vmem:[#allocation6 + $0x90] sm:$0xff]  ;;  %v3231_v44 = vld [vmem:[#allocation6 + $0x518] sm:$0xff] }
 0x3a5   :  { %3428 = vmatpush.msrb.mxu1 %v3286_v58  ;;  %3468 = vmatpush.msrb.mxu3 %v3287_v13  ;;  %v3230_v13 = vld [vmem:[#allocation6 + $0x510] sm:$0xff] }
 0x3a6   :  { %3411 = vmatpush.msrb.mxu0 %v3134_v54  ;;  %3451 = vmatpush.msrb.mxu2 %v3135_v26  ;;  %v3078_v26 = vld [vmem:[#allocation6 + $0x50] sm:$0xff] }
 0x3a7   :  { %3429 = vmatpush.msrb.mxu1 %v3278_v31  ;;  %3469 = vmatpush.msrb.mxu3 %v3279_v43  ;;  %v270_v31 = vadd.f32 %v6190_v30, %v6310_v27  ;;  %v3214_v30 = vld [vmem:[#allocation6 + $0x490] sm:$0xff] }
 0x3a8   :  { %3412 = vmatpush.msrb.mxu0 %v3126_v16  ;;  %3452 = vmatpush.msrb.mxu2 %v3127_v28  ;;  %v3079_v16 = vld [vmem:[#allocation6 + $0x58] sm:$0xff] }
 0x3a9   :  { %3430 = vmatpush.msrb.mxu1 %v3270_v21  ;;  %3470 = vmatpush.msrb.mxu3 %v3271_v9  ;;  %v3222_v21 = vld [vmem:[#allocation6 + $0x4d0] sm:$0xff] }
 0x3aa   :  { %3413 = vmatpush.msrb.mxu0 %v3118_v24  ;;  %3453 = vmatpush.msrb.mxu2 %v3119_v33  ;;  %v3070_v24 = vld [vmem:[#allocation6 + $0x10] sm:$0xff]  ;;  %v3071_v33 = vld [vmem:[#allocation6 + $0x18] sm:$0xff] }
 0x3ab   :  { %3431 = vmatpush.msrb.mxu1 %v3262_v35  ;;  %3471 = vmatpush.msrb.mxu3 %v3263_v25  ;;  %v188_v35 = vadd.f32 %v6186_v12, %v6313_v10  ;;  %v308_v12 = vadd.f32 %v6244_v49, %v6322_v11 }
 0x3ac   :  { %3414 = vmatpush.msrb.mxu0 %v3110_v37  ;;  %3454 = vmatpush.msrb.mxu2 %v3111_v48  ;;  %v3223_v37 = vld [vmem:[#allocation6 + $0x4d8] sm:$0xff] }
 0x3ad   :  { %v2709_v3 = vpop.f32.mrf.mxu0  ;;  %3432 = vmatpush.msrb.mxu1 %v3254_v19  ;;  %3472 = vmatpush.msrb.mxu3 %v3255_v57 }
 0x3ae   :  { %3415 = vmatpush.msrb.mxu0 %v3102_v22  ;;  %3455 = vmatpush.msrb.mxu2 %v3103_v2  ;;  %v3207_v22 = vld [vmem:[#allocation6 + $0x458] sm:$0xff] }
 0x3af   :  { %3433 = vmatpush.msrb.mxu1 %v3246_v15  ;;  %3473 = vmatpush.msrb.mxu3 %v3247_v34 }
 0x3b0   :  { %3416 = vmatpush.msrb.mxu0 %v3094_v39  ;;  %3456 = vmatpush.msrb.mxu2 %v3095_v61 }
 0x3b1   :  { %3434 = vmatpush.msrb.mxu1 %v3238_v63 }
 0x3b2   :  { %3417 = vmatpush.msrb.mxu0 %v3086_v47  ;;  %3457 = vmatpush.msrb.mxu2 %v3087_v0  ;;  %v352_v0 = vadd.f32 %v6254_v56, %v6332_v62 }
 0x3b3   :  { %v6479_v36 = vpop.f32.mrf.mxu1  ;;  %v6483_v53 = vpop.f32.mrf.mxu2  ;;  %3435 = vmatpush.msrb.mxu1 %v3230_v13 }
 0x3b4   :  { %v2730_v4 = vadd.f32 %v6479_v36, %v2709_v3  ;;  %v3239_v36 = vld [vmem:[#allocation6 + $0x558] sm:$0xff]  ;;  %3418 = vmatpush.msrb.mxu0 %v3078_v26  ;;  %3458 = vmatpush.msrb.mxu2 %v3079_v16 }
 0x3b5   :  { %3474 = vmatpush.msrb.mxu3 %v3239_v36  ;;  %3436 = vmatpush.msrb.mxu1 %v3222_v21 }
 0x3b6   :  { %v2789_v23 = vpop.f32.mrf.mxu0  ;;  %v3012_v3 = vadd.f32 %v2730_v4, %v144_v32  ;;  %3419 = vmatpush.msrb.mxu0 %v3070_v24  ;;  %3459 = vmatpush.msrb.mxu2 %v3071_v33  ;;  %v3199_v4 = vld [vmem:[#allocation6 + $0x418] sm:$0xff]  ;;  %v390_v32 = vadd.f32 %v6248_v51, %v6325_v59  ;;  %v434_v51 = vadd.f32 %v6258_v6, %v6337_v7 }
 0x3b7   :  { %3475 = vmatpush.msrb.mxu3 %v3231_v44  ;;  %3437 = vmatpush.msrb.mxu1 %v3214_v30 }
 0x3b8   :  { %v3020_v48 = vmul.f32 0.5, %v3012_v3 }
 0x3b9   :  { %v6481_v41 = vpop.f32.mrf.mxu3  ;;  %3476 = vmatpush.msrb.mxu3 %v3223_v37 }
 0x3ba   :  { %v2770_v28 = vadd.f32 %v6481_v41, %v6483_v53  ;;  %v3215_v41 = vld [vmem:[#allocation6 + $0x498] sm:$0xff] }
 0x3bb   :  { %3477 = vmatpush.msrb.mxu3 %v3215_v41 }
 0x3bc   :  { %v2829_v54 = vpop.f32.mrf.mxu2  ;;  %v3013_v53 = vadd.f32 %v2770_v28, %v188_v35 }
 0x3bd   :  { %v2809_v42 = vpop.f32.mrf.mxu1  ;;  %3478 = vmatpush.msrb.mxu3 %v3207_v22 }
 0x3be   :  { %v2810_v29 = vadd.f32 %v2809_v42, %v2789_v23  ;;  %v3021_v39 = vmul.f32 0.5, %v3013_v53 }
 0x3bf   :  { %3479 = vmatpush.msrb.mxu3 %v3199_v4  ;;  %v3185_v4 = vld [vmem:[#allocation6 + $0x3a8] sm:$0xff] }
 0x3c0   :  { %v3014_v14 = vadd.f32 %v2810_v29, %v226_v60  ;;  %v3206_v29 = vld [vmem:[#allocation6 + $0x450] sm:$0xff] }
 0x3c1   :  { %3438 = vmatpush.msrb.mxu1 %v3206_v29  ;;  %v3198_v60 = vld [vmem:[#allocation6 + $0x410] sm:$0xff] }
 0x3c2   :  { %v3022_v43 = vmul.f32 0.5, %v3014_v14 }
 0x3c3   :  { %v2849_v18 = vpop.f32.mrf.mxu3  ;;  %3439 = vmatpush.msrb.mxu1 %v3198_v60  ;;  %v3193_v60 = vld [vmem:[#allocation6 + $0x3e8] sm:$0xff] }
 0x3c4   :  { %v2850_v58 = vadd.f32 %v2849_v18, %v2829_v54  ;;  %5755 = vtanh.f32 %v3022_v43 }
 0x3c5   :  { %5757 = vtanh.f32 %v3020_v48 }
 0x3c6   :  { %v3015_v23 = vadd.f32 %v2850_v58, %v270_v31 }
 0x3c8   :  { %v3023_v19 = vmul.f32 0.5, %v3015_v23 }
 0x3ca   :  { %v5756_v34 = vpop.eup %5755  ;;  %5759 = vtanh.f32 %v3023_v19 }
 0x3cb   :  { %v5758_v63 = vpop.eup %5757  ;;  %5761 = vtanh.f32 %v3021_v39  ;;  %v3034_v54 = vadd.f32 1.0, %v5756_v34 }
 0x3cc   :  { %v3032_v3 = vadd.f32 1.0, %v5758_v63  ;;  %v3321_v63 = vld [vmem:[#allocation6 + $0x7e8] sm:$0xff] }
 0x3cd   :  { %v3040_v31 = vmul.f32 0.5, %v3034_v54  ;;  %v3161_v54 = vld [vmem:[#allocation6 + $0x2e8] sm:$0xff] }
 0x3ce   :  { %v3038_v24 = vmul.f32 0.5, %v3032_v3  ;;  %v3152_v3 = vld [vmem:[#allocation6 + $0x2a0] sm:$0xff] }
 0x3d0   :  { %v2869_v42 = vpop.f32.mrf.mxu0  ;;  %v5760_v16 = vpop.eup %5759 }
 0x3d1   :  { %v5762_v28 = vpop.eup %5761  ;;  %v3035_v21 = vadd.f32 1.0, %v5760_v16  ;;  %v3144_v16 = vld [vmem:[#allocation6 + $0x260] sm:$0xff] }
 0x3d3   :  { %v3041_v48 = vmul.f32 0.5, %v3035_v21  ;;  %v3289_v21 = vld [vmem:[#allocation6 + $0x6e8] sm:$0xff] }
 0x3d5   :  { %v3047_v53 = vmul.f32 %v3041_v48, %v6454_v38  ;;  %v3184_v38 = vld [vmem:[#allocation6 + $0x3a0] sm:$0xff]  ;;  %v3121_v48 = vld [vmem:[#allocation6 + $0x1a8] sm:$0xff] }
 0x3d6   :  { %v2909_v2 = vpop.f32.mrf.mxu2 }
 0x3d7   :  { %v2889_v9 = vpop.f32.mrf.mxu1 }
 0x3d8   :  { %v2890_v25 = vadd.f32 %v2889_v9, %v2869_v42  ;;  %v3033_v42 = vadd.f32 1.0, %v5762_v28  ;;  %v3046_v9 = vmul.f32 %v3040_v31, %v6450_v40  ;;  %v3297_v31 = vld [vmem:[#allocation6 + $0x728] sm:$0xff]  ;;  %v3136_v28 = vld [vmem:[#allocation6 + $0x220] sm:$0xff] }
 0x3da   :  { %v3016_v15 = vadd.f32 %v2890_v25, %v308_v12  ;;  %v3039_v6 = vmul.f32 0.5, %v3033_v42  ;;  %v3129_v42 = vld [vmem:[#allocation6 + $0x1e8] sm:$0xff] }
 0x3dc   :  { %v3024_v36 = vmul.f32 0.5, %v3016_v15  ;;  %v3176_v15 = vld [vmem:[#allocation6 + $0x360] sm:$0xff] }
 0x3dd   :  { %v2929_v57 = vpop.f32.mrf.mxu3 }
 0x3de   :  { %v2930_v47 = vadd.f32 %v2929_v57, %v2909_v2  ;;  %v3192_v57 = vld [vmem:[#allocation6 + $0x3e0] sm:$0xff] }
 0x3e0   :  { %v3017_v58 = vadd.f32 %v2930_v47, %v352_v0  ;;  %v3169_v47 = vld [vmem:[#allocation6 + $0x328] sm:$0xff]  ;;  %v3312_v0 = vld [vmem:[#allocation6 + $0x7a0] sm:$0xff] }
 0x3e2   :  { %v3025_v33 = vmul.f32 0.5, %v3017_v58  ;;  %v3304_v58 = vld [vmem:[#allocation6 + $0x760] sm:$0xff] }
 0x3f2   :  { %v2949_v61 = vpop.f32.mrf.mxu0 }
 0x3f8   :  { %v2969_v18 = vpop.f32.mrf.mxu1  ;;  %v2989_v26 = vpop.f32.mrf.mxu2 }
 0x3f9   :  { %v2970_v14 = vadd.f32 %v2969_v18, %v2949_v61  ;;  %v3177_v61 = vld [vmem:[#allocation6 + $0x368] sm:$0xff] }
 0x3fb   :  { %v3018_v49 = vadd.f32 %v2970_v14, %v390_v32  ;;  %v3168_v32 = vld [vmem:[#allocation6 + $0x320] sm:$0xff] }
 0x3fc   :  { %v3320_v14 = vld [vmem:[#allocation6 + $0x7e0] sm:$0xff] }
 0x3fd   :  { %5763 = vtanh.f32 %v3018_v49  ;;  %v3160_v49 = vld [vmem:[#allocation6 + $0x2e0] sm:$0xff] }
 0x3fe   :  { %v3009_v13 = vpop.f32.mrf.mxu3  ;;  %5765 = vtanh.f32 %v3024_v36  ;;  %v3313_v36 = vld [vmem:[#allocation6 + $0x7a8] sm:$0xff] }
 0x3ff   :  { %v3010_v44 = vadd.f32 %v3009_v13, %v2989_v26  ;;  %v3153_v26 = vld [vmem:[#allocation6 + $0x2a8] sm:$0xff] }
 0x400   :  { %v3305_v13 = vld [vmem:[#allocation6 + $0x768] sm:$0xff] }
 0x401   :  { %v3019_v43 = vadd.f32 %v3010_v44, %v434_v51  ;;  %v3296_v51 = vld [vmem:[#allocation6 + $0x720] sm:$0xff]  ;;  %v3145_v44 = vld [vmem:[#allocation6 + $0x268] sm:$0xff] }
 0x403   :  { %v5764_v56 = vpop.eup %5763  ;;  %5767 = vtanh.f32 %v3019_v43  ;;  %v3288_v43 = vld [vmem:[#allocation6 + $0x6e0] sm:$0xff] }
 0x404   :  { %v3048_v37 = vmul.f32 %v5764_v56, %v3038_v24  ;;  %v5766_v35 = vpop.eup %5765  ;;  %5769 = vtanh.f32 %v3025_v33  ;;  %v3137_v24 = vld [vmem:[#allocation6 + $0x228] sm:$0xff]  ;;  %v3128_v33 = vld [vmem:[#allocation6 + $0x1e0] sm:$0xff] }
 0x405   :  { %v3036_v41 = vadd.f32 1.0, %v5766_v35  ;;  %v3280_v56 = vld [vmem:[#allocation6 + $0x6a0] sm:$0xff] }
 0x406   :  { %v6505_v23 = vadd.f32 %v3048_v37, %v3046_v9  ;;  %v3281_v9 = vld [vmem:[#allocation6 + $0x6a8] sm:$0xff]  ;;  %v3120_v37 = vld [vmem:[#allocation6 + $0x1a0] sm:$0xff] }
 0x407   :  { %v3042_v19 = vmul.f32 0.5, %v3036_v41  ;;  %v3272_v35 = vld [vmem:[#allocation6 + $0x660] sm:$0xff] }
 0x408   :  { %5771 = vtanh.f32 %v6505_v23  ;;  %v3264_v41 = vld [vmem:[#allocation6 + $0x620] sm:$0xff] }
 0x409   :  { %v5768_v30 = vpop.eup %5767 }
 0x40a   :  { %v3049_v25 = vmul.f32 %v5768_v30, %v3039_v6  ;;  %v5770_v29 = vpop.eup %5769  ;;  %v3273_v6 = vld [vmem:[#allocation6 + $0x668] sm:$0xff]  ;;  %v3112_v30 = vld [vmem:[#allocation6 + $0x160] sm:$0xff] }
 0x40b   :  { %v3037_v40 = vadd.f32 1.0, %v5770_v29  ;;  %v3104_v29 = vld [vmem:[#allocation6 + $0x120] sm:$0xff] }
 0x40c   :  { %v6509_v22 = vadd.f32 %v3049_v25, %v3047_v53  ;;  %v3113_v53 = vld [vmem:[#allocation6 + $0x168] sm:$0xff] }
 0x40d   :  { %v3043_v39 = vmul.f32 0.5, %v3037_v40  ;;  %v3265_v25 = vld [vmem:[#allocation6 + $0x628] sm:$0xff] }
 0x40e   :  { %v5772_v12 = vpop.eup %5771  ;;  %5773 = vtanh.f32 %v6509_v22  ;;  %v3257_v40 = vld [vmem:[#allocation6 + $0x5e8] sm:$0xff] }
 0x40f   :  { %v6512_v2 = vmul.f32 %v5772_v12, %v3042_v19  ;;  %v3256_v19 = vld [vmem:[#allocation6 + $0x5e0] sm:$0xff]  ;;  %v3105_v12 = vld [vmem:[#allocation6 + $0x128] sm:$0xff] }
 0x411   :  { %3057 = vst [vmem:[#allocation8 + $0x18] sm:$0xff] %v6512_v2  ;;  %3340 = vmatmul.f32.vlgmr.msra.gmra.mxu0 %v6512_v2  ;;  %3380 = vmatmul.f32.vlgmr.msra.gmra.mxu2 %v6512_v2 }
 0x412   :  { %3484 = vmatpush.msra.mxu0 %v3192_v57  ;;  %3524 = vmatpush.msra.mxu2 %v3193_v60  ;;  %v3096_v57 = vld [vmem:[#allocation6 + $0xe0] sm:$0xff] }
 0x413   :  { %v3248_v60 = vld [vmem:[#allocation6 + $0x5a0] sm:$0xff] }
 0x414   :  { %v5774_v18 = vpop.eup %5773  ;;  %3485 = vmatpush.msra.mxu0 %v3184_v38  ;;  %3525 = vmatpush.msra.mxu2 %v3185_v4  ;;  %v3097_v38 = vld [vmem:[#allocation6 + $0xe8] sm:$0xff] }
 0x415   :  { %v6517_v34 = vmul.f32 %v5774_v18, %v3043_v39  ;;  %v3249_v4 = vld [vmem:[#allocation6 + $0x5a8] sm:$0xff]  ;;  %v3088_v39 = vld [vmem:[#allocation6 + $0xa0] sm:$0xff] }
 0x416   :  { %3486 = vmatpush.msra.mxu0 %v3176_v15  ;;  %3526 = vmatpush.msra.mxu2 %v3177_v61  ;;  %v3240_v15 = vld [vmem:[#allocation6 + $0x560] sm:$0xff]  ;;  %v3089_v61 = vld [vmem:[#allocation6 + $0xa8] sm:$0xff] }
 0x417   :  { %3059 = vst [vmem:[#allocation8 + $0x20] sm:$0xff] %v6517_v34  ;;  %3360 = vmatmul.f32.vlgmr.msra.gmra.mxu1 %v6517_v34  ;;  %3400 = vmatmul.f32.vlgmr.msra.gmra.mxu3 %v6517_v34  ;;  %v3241_v18 = vld [vmem:[#allocation6 + $0x568] sm:$0xff] }
 0x418   :  { %3487 = vmatpush.msra.mxu0 %v3168_v32  ;;  %3504 = vmatpush.msra.mxu1 %v3320_v14  ;;  %v3080_v32 = vld [vmem:[#allocation6 + $0x60] sm:$0xff] }
 0x419   :  { %3527 = vmatpush.msra.mxu2 %v3169_v47  ;;  %3544 = vmatpush.msra.mxu3 %v3321_v63  ;;  %v3232_v14 = vld [vmem:[#allocation6 + $0x520] sm:$0xff]  ;;  %v3081_v47 = vld [vmem:[#allocation6 + $0x68] sm:$0xff] }
 0x41a   :  { %3420 = vmatmul.f32.vlgmr.msrb.gmra.mxu0 %v6512_v2  ;;  %3460 = vmatmul.f32.vlgmr.msrb.gmra.mxu2 %v6512_v2  ;;  %v3233_v63 = vld [vmem:[#allocation6 + $0x528] sm:$0xff] }
 0x41b   :  { %3488 = vmatpush.msra.mxu0 %v3160_v49  ;;  %3505 = vmatpush.msra.mxu1 %v3312_v0  ;;  %v3072_v49 = vld [vmem:[#allocation6 + $0x20] sm:$0xff] }
 0x41c   :  { %3528 = vmatpush.msra.mxu2 %v3161_v54  ;;  %3545 = vmatpush.msra.mxu3 %v3313_v36  ;;  %v3224_v0 = vld [vmem:[#allocation6 + $0x4e0] sm:$0xff]  ;;  %v3073_v54 = vld [vmem:[#allocation6 + $0x28] sm:$0xff] }
 0x41d   :  { %3489 = vmatpush.msra.mxu0 %v3152_v3  ;;  %3506 = vmatpush.msra.mxu1 %v3304_v58  ;;  %v3225_v36 = vld [vmem:[#allocation6 + $0x4e8] sm:$0xff]  ;;  %v3194_v3 = vld [vmem:[#allocation6 + $0x3f0] sm:$0xff]  ;;  %v3195_v58 = vld [vmem:[#allocation6 + $0x3f8] sm:$0xff] }
 0x41e   :  { %3529 = vmatpush.msra.mxu2 %v3153_v26  ;;  %3546 = vmatpush.msra.mxu3 %v3305_v13  ;;  %v3216_v26 = vld [vmem:[#allocation6 + $0x4a0] sm:$0xff]  ;;  %v3217_v13 = vld [vmem:[#allocation6 + $0x4a8] sm:$0xff] }
 0x41f   :  { %3490 = vmatpush.msra.mxu0 %v3144_v16  ;;  %3507 = vmatpush.msra.mxu1 %v3296_v51  ;;  %v3186_v16 = vld [vmem:[#allocation6 + $0x3b0] sm:$0xff]  ;;  %v3187_v51 = vld [vmem:[#allocation6 + $0x3b8] sm:$0xff] }
 0x420   :  { %3530 = vmatpush.msra.mxu2 %v3145_v44  ;;  %3547 = vmatpush.msra.mxu3 %v3297_v31  ;;  %v3208_v44 = vld [vmem:[#allocation6 + $0x460] sm:$0xff]  ;;  %v3209_v31 = vld [vmem:[#allocation6 + $0x468] sm:$0xff] }
 0x421   :  { %3440 = vmatmul.f32.vlgmr.msrb.gmra.mxu1 %v6517_v34  ;;  %3480 = vmatmul.f32.vlgmr.msrb.gmra.mxu3 %v6517_v34 }
 0x422   :  { %3491 = vmatpush.msra.mxu0 %v3136_v28  ;;  %3508 = vmatpush.msra.mxu1 %v3288_v43  ;;  %v3178_v28 = vld [vmem:[#allocation6 + $0x370] sm:$0xff]  ;;  %v3179_v43 = vld [vmem:[#allocation6 + $0x378] sm:$0xff] }
 0x423   :  { %3531 = vmatpush.msra.mxu2 %v3137_v24  ;;  %3548 = vmatpush.msra.mxu3 %v3289_v21  ;;  %v3200_v24 = vld [vmem:[#allocation6 + $0x420] sm:$0xff]  ;;  %v3201_v21 = vld [vmem:[#allocation6 + $0x428] sm:$0xff] }
 0x424   :  { %3492 = vmatpush.msra.mxu0 %v3128_v33  ;;  %3509 = vmatpush.msra.mxu1 %v3280_v56  ;;  %v3170_v33 = vld [vmem:[#allocation6 + $0x330] sm:$0xff] }
 0x425   :  { %3532 = vmatpush.msra.mxu2 %v3129_v42  ;;  %3549 = vmatpush.msra.mxu3 %v3281_v9  ;;  %v3322_v56 = vld [vmem:[#allocation6 + $0x7f0] sm:$0xff]  ;;  %v3171_v42 = vld [vmem:[#allocation6 + $0x338] sm:$0xff] }
 0x426   :  { %3493 = vmatpush.msra.mxu0 %v3120_v37  ;;  %3510 = vmatpush.msra.mxu1 %v3272_v35  ;;  %v3323_v9 = vld [vmem:[#allocation6 + $0x7f8] sm:$0xff]  ;;  %v3162_v37 = vld [vmem:[#allocation6 + $0x2f0] sm:$0xff] }
 0x427   :  { %3533 = vmatpush.msra.mxu2 %v3121_v48  ;;  %3550 = vmatpush.msra.mxu3 %v3273_v6  ;;  %v3314_v35 = vld [vmem:[#allocation6 + $0x7b0] sm:$0xff]  ;;  %v3163_v48 = vld [vmem:[#allocation6 + $0x2f8] sm:$0xff] }
 0x428   :  { %3494 = vmatpush.msra.mxu0 %v3112_v30  ;;  %3511 = vmatpush.msra.mxu1 %v3264_v41  ;;  %v3315_v6 = vld [vmem:[#allocation6 + $0x7b8] sm:$0xff]  ;;  %v3154_v30 = vld [vmem:[#allocation6 + $0x2b0] sm:$0xff] }
 0x429   :  { %3534 = vmatpush.msra.mxu2 %v3113_v53  ;;  %3551 = vmatpush.msra.mxu3 %v3265_v25  ;;  %v3306_v41 = vld [vmem:[#allocation6 + $0x770] sm:$0xff]  ;;  %v3155_v53 = vld [vmem:[#allocation6 + $0x2b8] sm:$0xff] }
 0x42a   :  { %3495 = vmatpush.msra.mxu0 %v3104_v29  ;;  %3512 = vmatpush.msra.mxu1 %v3256_v19  ;;  %v3307_v25 = vld [vmem:[#allocation6 + $0x778] sm:$0xff]  ;;  %v3146_v29 = vld [vmem:[#allocation6 + $0x270] sm:$0xff] }
 0x42b   :  { %3535 = vmatpush.msra.mxu2 %v3105_v12  ;;  %3552 = vmatpush.msra.mxu3 %v3257_v40  ;;  %v3298_v19 = vld [vmem:[#allocation6 + $0x730] sm:$0xff]  ;;  %v3147_v12 = vld [vmem:[#allocation6 + $0x278] sm:$0xff] }
 0x42c   :  { %3496 = vmatpush.msra.mxu0 %v3096_v57  ;;  %3513 = vmatpush.msra.mxu1 %v3248_v60  ;;  %v3299_v40 = vld [vmem:[#allocation6 + $0x738] sm:$0xff]  ;;  %v3138_v57 = vld [vmem:[#allocation6 + $0x230] sm:$0xff] }
 0x42d   :  { %3536 = vmatpush.msra.mxu2 %v3097_v38  ;;  %3553 = vmatpush.msra.mxu3 %v3249_v4  ;;  %v3290_v60 = vld [vmem:[#allocation6 + $0x6f0] sm:$0xff]  ;;  %v3139_v38 = vld [vmem:[#allocation6 + $0x238] sm:$0xff] }
 0x42e   :  { %3497 = vmatpush.msra.mxu0 %v3088_v39  ;;  %3514 = vmatpush.msra.mxu1 %v3240_v15  ;;  %v3291_v4 = vld [vmem:[#allocation6 + $0x6f8] sm:$0xff]  ;;  %v3130_v39 = vld [vmem:[#allocation6 + $0x1f0] sm:$0xff] }
 0x42f   :  { %3537 = vmatpush.msra.mxu2 %v3089_v61  ;;  %3554 = vmatpush.msra.mxu3 %v3241_v18  ;;  %v3282_v15 = vld [vmem:[#allocation6 + $0x6b0] sm:$0xff]  ;;  %v3131_v61 = vld [vmem:[#allocation6 + $0x1f8] sm:$0xff] }
 0x430   :  { %3498 = vmatpush.msra.mxu0 %v3080_v32  ;;  %3515 = vmatpush.msra.mxu1 %v3232_v14  ;;  %v3283_v18 = vld [vmem:[#allocation6 + $0x6b8] sm:$0xff]  ;;  %v3122_v32 = vld [vmem:[#allocation6 + $0x1b0] sm:$0xff] }
 0x431   :  { %3538 = vmatpush.msra.mxu2 %v3081_v47  ;;  %3555 = vmatpush.msra.mxu3 %v3233_v63  ;;  %v3274_v14 = vld [vmem:[#allocation6 + $0x670] sm:$0xff]  ;;  %v3123_v47 = vld [vmem:[#allocation6 + $0x1b8] sm:$0xff] }
 0x432   :  { %3499 = vmatpush.msra.mxu0 %v3072_v49  ;;  %3516 = vmatpush.msra.mxu1 %v3224_v0  ;;  %v3275_v63 = vld [vmem:[#allocation6 + $0x678] sm:$0xff]  ;;  %v3114_v49 = vld [vmem:[#allocation6 + $0x170] sm:$0xff] }
 0x433   :  { %3539 = vmatpush.msra.mxu2 %v3073_v54  ;;  %3556 = vmatpush.msra.mxu3 %v3225_v36  ;;  %v3266_v0 = vld [vmem:[#allocation6 + $0x630] sm:$0xff]  ;;  %v3115_v54 = vld [vmem:[#allocation6 + $0x178] sm:$0xff] }
 0x434   :  { %3500 = vmatmul.f32.vlgmr.msra.gmra.mxu0 %v6512_v2  ;;  %3540 = vmatmul.f32.vlgmr.msra.gmra.mxu2 %v6512_v2  ;;  %v3267_v36 = vld [vmem:[#allocation6 + $0x638] sm:$0xff] }
 0x435   :  { %3564 = vmatpush.msrb.mxu0 %v3194_v3  ;;  %3604 = vmatpush.msrb.mxu2 %v3195_v58  ;;  %v3106_v3 = vld [vmem:[#allocation6 + $0x130] sm:$0xff] }
 0x436   :  { %3517 = vmatpush.msra.mxu1 %v3216_v26  ;;  %3557 = vmatpush.msra.mxu3 %v3217_v13  ;;  %v3258_v58 = vld [vmem:[#allocation6 + $0x5f0] sm:$0xff]  ;;  %v3107_v26 = vld [vmem:[#allocation6 + $0x138] sm:$0xff] }
 0x437   :  { %3565 = vmatpush.msrb.mxu0 %v3186_v16  ;;  %3605 = vmatpush.msrb.mxu2 %v3187_v51  ;;  %v3259_v13 = vld [vmem:[#allocation6 + $0x5f8] sm:$0xff]  ;;  %v3098_v16 = vld [vmem:[#allocation6 + $0xf0] sm:$0xff] }
 0x438   :  { %3518 = vmatpush.msra.mxu1 %v3208_v44  ;;  %3558 = vmatpush.msra.mxu3 %v3209_v31  ;;  %v3250_v51 = vld [vmem:[#allocation6 + $0x5b0] sm:$0xff]  ;;  %v3099_v44 = vld [vmem:[#allocation6 + $0xf8] sm:$0xff] }
 0x439   :  { %3566 = vmatpush.msrb.mxu0 %v3178_v28  ;;  %3606 = vmatpush.msrb.mxu2 %v3179_v43  ;;  %v3251_v31 = vld [vmem:[#allocation6 + $0x5b8] sm:$0xff]  ;;  %v3090_v28 = vld [vmem:[#allocation6 + $0xb0] sm:$0xff] }
 0x43a   :  { %3519 = vmatpush.msra.mxu1 %v3200_v24  ;;  %3559 = vmatpush.msra.mxu3 %v3201_v21  ;;  %v3242_v43 = vld [vmem:[#allocation6 + $0x570] sm:$0xff]  ;;  %v3091_v24 = vld [vmem:[#allocation6 + $0xb8] sm:$0xff] }
 0x43b   :  { %3520 = vmatmul.f32.vlgmr.msra.gmra.mxu1 %v6517_v34  ;;  %3560 = vmatmul.f32.vlgmr.msra.gmra.mxu3 %v6517_v34  ;;  %v3243_v21 = vld [vmem:[#allocation6 + $0x578] sm:$0xff] }
 0x43c   :  { %3567 = vmatpush.msrb.mxu0 %v3170_v33  ;;  %3584 = vmatpush.msrb.mxu1 %v3322_v56  ;;  %v3082_v33 = vld [vmem:[#allocation6 + $0x70] sm:$0xff] }
 0x43d   :  { %3607 = vmatpush.msrb.mxu2 %v3171_v42  ;;  %3624 = vmatpush.msrb.mxu3 %v3323_v9  ;;  %v3234_v56 = vld [vmem:[#allocation6 + $0x530] sm:$0xff]  ;;  %v3083_v42 = vld [vmem:[#allocation6 + $0x78] sm:$0xff] }
 0x43e   :  { %3568 = vmatpush.msrb.mxu0 %v3162_v37  ;;  %3585 = vmatpush.msrb.mxu1 %v3314_v35  ;;  %v3235_v9 = vld [vmem:[#allocation6 + $0x538] sm:$0xff]  ;;  %v3074_v37 = vld [vmem:[#allocation6 + $0x30] sm:$0xff] }
 0x43f   :  { %3608 = vmatpush.msrb.mxu2 %v3163_v48  ;;  %3625 = vmatpush.msrb.mxu3 %v3315_v6  ;;  %v3226_v35 = vld [vmem:[#allocation6 + $0x4f0] sm:$0xff]  ;;  %v3075_v48 = vld [vmem:[#allocation6 + $0x38] sm:$0xff] }
 0x440   :  { %3569 = vmatpush.msrb.mxu0 %v3154_v30  ;;  %3586 = vmatpush.msrb.mxu1 %v3306_v41  ;;  %v3227_v6 = vld [vmem:[#allocation6 + $0x4f8] sm:$0xff]  ;;  %v3218_v30 = vld [vmem:[#allocation6 + $0x4b0] sm:$0xff] }
 0x441   :  { %3609 = vmatpush.msrb.mxu2 %v3155_v53  ;;  %3626 = vmatpush.msrb.mxu3 %v3307_v25  ;;  %v3219_v41 = vld [vmem:[#allocation6 + $0x4b8] sm:$0xff]  ;;  %v3210_v53 = vld [vmem:[#allocation6 + $0x470] sm:$0xff] }
 0x442   :  { %3570 = vmatpush.msrb.mxu0 %v3146_v29  ;;  %3587 = vmatpush.msrb.mxu1 %v3298_v19  ;;  %v3211_v25 = vld [vmem:[#allocation6 + $0x478] sm:$0xff]  ;;  %v3202_v29 = vld [vmem:[#allocation6 + $0x430] sm:$0xff] }
 0x443   :  { %3610 = vmatpush.msrb.mxu2 %v3147_v12  ;;  %3627 = vmatpush.msrb.mxu3 %v3299_v40  ;;  %v3203_v19 = vld [vmem:[#allocation6 + $0x438] sm:$0xff]  ;;  %v3822_v12 = vld [vmem:[#allocation6 + $0x3c0] sm:$0xff]  ;;  %v3823_v40 = vld [vmem:[#allocation6 + $0x3c8] sm:$0xff] }
 0x444   :  { %3571 = vmatpush.msrb.mxu0 %v3138_v57  ;;  %3588 = vmatpush.msrb.mxu1 %v3290_v60  ;;  %v3814_v57 = vld [vmem:[#allocation6 + $0x380] sm:$0xff] }
 0x445   :  { %3611 = vmatpush.msrb.mxu2 %v3139_v38  ;;  %3628 = vmatpush.msrb.mxu3 %v3291_v4  ;;  %v3806_v60 = vld [vmem:[#allocation6 + $0x340] sm:$0xff]  ;;  %v3807_v38 = vld [vmem:[#allocation6 + $0x348] sm:$0xff] }
 0x446   :  { %3572 = vmatpush.msrb.mxu0 %v3130_v39  ;;  %3589 = vmatpush.msrb.mxu1 %v3282_v15  ;;  %v3798_v4 = vld [vmem:[#allocation6 + $0x300] sm:$0xff]  ;;  %v3799_v15 = vld [vmem:[#allocation6 + $0x308] sm:$0xff] }
 0x447   :  { %3612 = vmatpush.msrb.mxu2 %v3131_v61  ;;  %3629 = vmatpush.msrb.mxu3 %v3283_v18  ;;  %v3950_v39 = vld [vmem:[#allocation6 + $0x7c0] sm:$0xff]  ;;  %v3951_v61 = vld [vmem:[#allocation6 + $0x7c8] sm:$0xff] }
 0x448   :  { %3573 = vmatpush.msrb.mxu0 %v3122_v32  ;;  %3590 = vmatpush.msrb.mxu1 %v3274_v14  ;;  %v3942_v18 = vld [vmem:[#allocation6 + $0x780] sm:$0xff]  ;;  %v3791_v32 = vld [vmem:[#allocation6 + $0x2c8] sm:$0xff] }
 0x449   :  { %3613 = vmatpush.msrb.mxu2 %v3123_v47  ;;  %3630 = vmatpush.msrb.mxu3 %v3275_v63  ;;  %v3943_v14 = vld [vmem:[#allocation6 + $0x788] sm:$0xff]  ;;  %v3782_v47 = vld [vmem:[#allocation6 + $0x280] sm:$0xff] }
 0x44a   :  { %3574 = vmatpush.msrb.mxu0 %v3114_v49  ;;  %3591 = vmatpush.msrb.mxu1 %v3266_v0  ;;  %v3934_v63 = vld [vmem:[#allocation6 + $0x740] sm:$0xff]  ;;  %v3783_v49 = vld [vmem:[#allocation6 + $0x288] sm:$0xff] }
 0x44b   :  { %3614 = vmatpush.msrb.mxu2 %v3115_v54  ;;  %3631 = vmatpush.msrb.mxu3 %v3267_v36  ;;  %v3935_v0 = vld [vmem:[#allocation6 + $0x748] sm:$0xff]  ;;  %v3774_v54 = vld [vmem:[#allocation6 + $0x240] sm:$0xff] }
 0x44c   :  { %3575 = vmatpush.msrb.mxu0 %v3106_v3  ;;  %3592 = vmatpush.msrb.mxu1 %v3258_v58  ;;  %v3926_v36 = vld [vmem:[#allocation6 + $0x700] sm:$0xff]  ;;  %v3775_v3 = vld [vmem:[#allocation6 + $0x248] sm:$0xff] }
 0x44d   :  { %3615 = vmatpush.msrb.mxu2 %v3107_v26  ;;  %3632 = vmatpush.msrb.mxu3 %v3259_v13  ;;  %v3927_v58 = vld [vmem:[#allocation6 + $0x708] sm:$0xff]  ;;  %v3766_v26 = vld [vmem:[#allocation6 + $0x200] sm:$0xff] }
 0x44e   :  { %3576 = vmatpush.msrb.mxu0 %v3098_v16  ;;  %3593 = vmatpush.msrb.mxu1 %v3250_v51  ;;  %v3918_v13 = vld [vmem:[#allocation6 + $0x6c0] sm:$0xff]  ;;  %v3767_v16 = vld [vmem:[#allocation6 + $0x208] sm:$0xff] }
 0x44f   :  { %3616 = vmatpush.msrb.mxu2 %v3099_v44  ;;  %3633 = vmatpush.msrb.mxu3 %v3251_v31  ;;  %v3919_v51 = vld [vmem:[#allocation6 + $0x6c8] sm:$0xff]  ;;  %v3758_v44 = vld [vmem:[#allocation6 + $0x1c0] sm:$0xff] }
 0x450   :  { %3577 = vmatpush.msrb.mxu0 %v3090_v28  ;;  %3594 = vmatpush.msrb.mxu1 %v3242_v43  ;;  %v3910_v31 = vld [vmem:[#allocation6 + $0x680] sm:$0xff]  ;;  %v3759_v28 = vld [vmem:[#allocation6 + $0x1c8] sm:$0xff] }
 0x451   :  { %3617 = vmatpush.msrb.mxu2 %v3091_v24  ;;  %3634 = vmatpush.msrb.mxu3 %v3243_v21  ;;  %v3911_v43 = vld [vmem:[#allocation6 + $0x688] sm:$0xff]  ;;  %v3750_v24 = vld [vmem:[#allocation6 + $0x180] sm:$0xff] }
 0x452   :  { %3578 = vmatpush.msrb.mxu0 %v3082_v33  ;;  %3595 = vmatpush.msrb.mxu1 %v3234_v56  ;;  %v3902_v21 = vld [vmem:[#allocation6 + $0x640] sm:$0xff]  ;;  %v3751_v33 = vld [vmem:[#allocation6 + $0x188] sm:$0xff] }
 0x453   :  { %3618 = vmatpush.msrb.mxu2 %v3083_v42  ;;  %3635 = vmatpush.msrb.mxu3 %v3235_v9  ;;  %v3903_v56 = vld [vmem:[#allocation6 + $0x648] sm:$0xff]  ;;  %v3742_v42 = vld [vmem:[#allocation6 + $0x140] sm:$0xff] }
 0x454   :  { %3579 = vmatpush.msrb.mxu0 %v3074_v37  ;;  %3596 = vmatpush.msrb.mxu1 %v3226_v35  ;;  %v3894_v9 = vld [vmem:[#allocation6 + $0x600] sm:$0xff]  ;;  %v3743_v37 = vld [vmem:[#allocation6 + $0x148] sm:$0xff] }
 0x455   :  { %3619 = vmatpush.msrb.mxu2 %v3075_v48  ;;  %3636 = vmatpush.msrb.mxu3 %v3227_v6  ;;  %v3895_v35 = vld [vmem:[#allocation6 + $0x608] sm:$0xff]  ;;  %v3734_v48 = vld [vmem:[#allocation6 + $0x100] sm:$0xff] }
 0x456   :  { %3580 = vmatmul.f32.vlgmr.msrb.gmra.mxu0 %v6512_v2  ;;  %3620 = vmatmul.f32.vlgmr.msrb.gmra.mxu2 %v6512_v2  ;;  %v3815_v2 = vld [vmem:[#allocation6 + $0x388] sm:$0xff]  ;;  %v3886_v6 = vld [vmem:[#allocation6 + $0x5c0] sm:$0xff] }
 0x457   :  { %3597 = vmatpush.msrb.mxu1 %v3218_v30  ;;  %3637 = vmatpush.msrb.mxu3 %v3219_v41  ;;  %v3735_v30 = vld [vmem:[#allocation6 + $0x108] sm:$0xff] }
 0x458   :  { %3958 = vmatpush.msra.mxu0 %v3822_v12  ;;  %3998 = vmatpush.msra.mxu2 %v3823_v40  ;;  %v3887_v41 = vld [vmem:[#allocation6 + $0x5c8] sm:$0xff]  ;;  %v3718_v12 = vld [vmem:[#allocation6 + $0x80] sm:$0xff] }
 0x459   :  { %3598 = vmatpush.msrb.mxu1 %v3210_v53  ;;  %3638 = vmatpush.msrb.mxu3 %v3211_v25  ;;  %v3726_v53 = vld [vmem:[#allocation6 + $0xc0] sm:$0xff] }
 0x45a   :  { %3959 = vmatpush.msra.mxu0 %v3814_v57  ;;  %3999 = vmatpush.msra.mxu2 %v3815_v2  ;;  %v3878_v25 = vld [vmem:[#allocation6 + $0x580] sm:$0xff]  ;;  %v3719_v57 = vld [vmem:[#allocation6 + $0x88] sm:$0xff] }
 0x45b   :  { %3599 = vmatpush.msrb.mxu1 %v3202_v29  ;;  %3639 = vmatpush.msrb.mxu3 %v3203_v19  ;;  %v3727_v29 = vld [vmem:[#allocation6 + $0xc8] sm:$0xff]  ;;  %v3870_v40 = vld [vmem:[#allocation6 + $0x540] sm:$0xff] }
 0x45c   :  { %3600 = vmatmul.f32.vlgmr.msrb.gmra.mxu1 %v6517_v34  ;;  %3640 = vmatmul.f32.vlgmr.msrb.gmra.mxu3 %v6517_v34  ;;  %v3790_v34 = vld [vmem:[#allocation6 + $0x2c0] sm:$0xff]  ;;  %v3879_v19 = vld [vmem:[#allocation6 + $0x588] sm:$0xff] }
 0x45d   :  { %3960 = vmatpush.msra.mxu0 %v3806_v60  ;;  %4000 = vmatpush.msra.mxu2 %v3807_v38  ;;  %v3871_v2 = vld [vmem:[#allocation6 + $0x548] sm:$0xff]  ;;  %v3710_v60 = vld [vmem:[#allocation6 + $0x40] sm:$0xff] }
 0x45e   :  { %3978 = vmatpush.msra.mxu1 %v3950_v39  ;;  %4018 = vmatpush.msra.mxu3 %v3951_v61  ;;  %v3862_v38 = vld [vmem:[#allocation6 + $0x500] sm:$0xff]  ;;  %v3863_v39 = vld [vmem:[#allocation6 + $0x508] sm:$0xff] }
 0x45f   :  { %3961 = vmatpush.msra.mxu0 %v3798_v4  ;;  %4001 = vmatpush.msra.mxu2 %v3799_v15  ;;  %v3711_v4 = vld [vmem:[#allocation6 + $0x48] sm:$0xff]  ;;  %v3702_v15 = vld [vmem:[#allocation6] sm:$0xff] }
 0x460   :  { %3979 = vmatpush.msra.mxu1 %v3942_v18  ;;  %4019 = vmatpush.msra.mxu3 %v3943_v14  ;;  %v3854_v61 = vld [vmem:[#allocation6 + $0x4c0] sm:$0xff]  ;;  %v3855_v18 = vld [vmem:[#allocation6 + $0x4c8] sm:$0xff]  ;;  %v3825_v14 = vld [vmem:[#allocation6 + $0x3d8] sm:$0xff] }
 0x461   :  { %3962 = vmatpush.msra.mxu0 %v3790_v34  ;;  %4002 = vmatpush.msra.mxu2 %v3791_v32  ;;  %v3703_v34 = vld [vmem:[#allocation6 + $0x8] sm:$0xff]  ;;  %v3824_v32 = vld [vmem:[#allocation6 + $0x3d0] sm:$0xff] }
 0x462   :  { %3980 = vmatpush.msra.mxu1 %v3934_v63  ;;  %4020 = vmatpush.msra.mxu3 %v3935_v0  ;;  %v3847_v63 = vld [vmem:[#allocation6 + $0x488] sm:$0xff]  ;;  %v3817_v0 = vld [vmem:[#allocation6 + $0x398] sm:$0xff] }
 0x463   :  { %3963 = vmatpush.msra.mxu0 %v3782_v47  ;;  %4003 = vmatpush.msra.mxu2 %v3783_v49  ;;  %v3846_v47 = vld [vmem:[#allocation6 + $0x480] sm:$0xff]  ;;  %v3816_v49 = vld [vmem:[#allocation6 + $0x390] sm:$0xff] }
 0x464   :  { %3981 = vmatpush.msra.mxu1 %v3926_v36  ;;  %4021 = vmatpush.msra.mxu3 %v3927_v58  ;;  %v3839_v36 = vld [vmem:[#allocation6 + $0x448] sm:$0xff]  ;;  %v3809_v58 = vld [vmem:[#allocation6 + $0x358] sm:$0xff] }
 0x465   :  { %3964 = vmatpush.msra.mxu0 %v3774_v54  ;;  %4004 = vmatpush.msra.mxu2 %v3775_v3  ;;  %v3838_v54 = vld [vmem:[#allocation6 + $0x440] sm:$0xff]  ;;  %v3808_v3 = vld [vmem:[#allocation6 + $0x350] sm:$0xff] }
 0x466   :  { %3982 = vmatpush.msra.mxu1 %v3918_v13  ;;  %4022 = vmatpush.msra.mxu3 %v3919_v51  ;;  %v3831_v13 = vld [vmem:[#allocation6 + $0x408] sm:$0xff]  ;;  %v3952_v51 = vld [vmem:[#allocation6 + $0x7d0] sm:$0xff] }
 0x467   :  { %3965 = vmatpush.msra.mxu0 %v3766_v26  ;;  %4005 = vmatpush.msra.mxu2 %v3767_v16  ;;  %v3830_v26 = vld [vmem:[#allocation6 + $0x400] sm:$0xff]  ;;  %v3800_v16 = vld [vmem:[#allocation6 + $0x310] sm:$0xff] }
 0x468   :  { %3983 = vmatpush.msra.mxu1 %v3910_v31  ;;  %4023 = vmatpush.msra.mxu3 %v3911_v43  ;;  %v3953_v31 = vld [vmem:[#allocation6 + $0x7d8] sm:$0xff]  ;;  %v3944_v43 = vld [vmem:[#allocation6 + $0x790] sm:$0xff] }
 0x469   :  { %3966 = vmatpush.msra.mxu0 %v3758_v44  ;;  %4006 = vmatpush.msra.mxu2 %v3759_v28  ;;  %v3801_v44 = vld [vmem:[#allocation6 + $0x318] sm:$0xff]  ;;  %v3792_v28 = vld [vmem:[#allocation6 + $0x2d0] sm:$0xff] }
 0x46a   :  { %3984 = vmatpush.msra.mxu1 %v3902_v21  ;;  %4024 = vmatpush.msra.mxu3 %v3903_v56  ;;  %v3784_v56 = vld [vmem:[#allocation6 + $0x290] sm:$0xff] }
 0x46b   :  { %3967 = vmatpush.msra.mxu0 %v3750_v24  ;;  %4007 = vmatpush.msra.mxu2 %v3751_v33  ;;  %v3793_v24 = vld [vmem:[#allocation6 + $0x2d8] sm:$0xff] }
 0x46c   :  { %3985 = vmatpush.msra.mxu1 %v3894_v9  ;;  %4025 = vmatpush.msra.mxu3 %v3895_v35  ;;  %v3945_v33 = vld [vmem:[#allocation6 + $0x798] sm:$0xff] }
 0x46d   :  { %3968 = vmatpush.msra.mxu0 %v3742_v42  ;;  %4008 = vmatpush.msra.mxu2 %v3743_v37  ;;  %v3936_v42 = vld [vmem:[#allocation6 + $0x750] sm:$0xff]  ;;  %v3785_v9 = vld [vmem:[#allocation6 + $0x298] sm:$0xff] }
 0x46e   :  { %3986 = vmatpush.msra.mxu1 %v3886_v6  ;;  %4026 = vmatpush.msra.mxu3 %v3887_v41  ;;  %v3937_v35 = vld [vmem:[#allocation6 + $0x758] sm:$0xff]  ;;  %v3928_v6 = vld [vmem:[#allocation6 + $0x710] sm:$0xff] }
 0x46f   :  { %3969 = vmatpush.msra.mxu0 %v3734_v48  ;;  %4009 = vmatpush.msra.mxu2 %v3735_v30  ;;  %v3776_v48 = vld [vmem:[#allocation6 + $0x250] sm:$0xff]  ;;  %v3777_v30 = vld [vmem:[#allocation6 + $0x258] sm:$0xff] }
 0x470   :  { %3987 = vmatpush.msra.mxu1 %v3878_v25  ;;  %4027 = vmatpush.msra.mxu3 %v3879_v19  ;;  %v3929_v41 = vld [vmem:[#allocation6 + $0x718] sm:$0xff]  ;;  %v3920_v25 = vld [vmem:[#allocation6 + $0x6d0] sm:$0xff] }
 0x471   :  { %3970 = vmatpush.msra.mxu0 %v3726_v53  ;;  %4010 = vmatpush.msra.mxu2 %v3727_v29  ;;  %v3768_v53 = vld [vmem:[#allocation6 + $0x210] sm:$0xff]  ;;  %v3769_v29 = vld [vmem:[#allocation6 + $0x218] sm:$0xff] }
 0x472   :  { %3988 = vmatpush.msra.mxu1 %v3870_v40  ;;  %4028 = vmatpush.msra.mxu3 %v3871_v2  ;;  %v3760_v40 = vld [vmem:[#allocation6 + $0x1d0] sm:$0xff]  ;;  %v3761_v2 = vld [vmem:[#allocation6 + $0x1d8] sm:$0xff] }
 0x473   :  { %3971 = vmatpush.msra.mxu0 %v3718_v12  ;;  %4011 = vmatpush.msra.mxu2 %v3719_v57  ;;  %v3921_v12 = vld [vmem:[#allocation6 + $0x6d8] sm:$0xff]  ;;  %v3912_v57 = vld [vmem:[#allocation6 + $0x690] sm:$0xff] }
 0x474   :  { %3989 = vmatpush.msra.mxu1 %v3862_v38  ;;  %4029 = vmatpush.msra.mxu3 %v3863_v39  ;;  %v3913_v38 = vld [vmem:[#allocation6 + $0x698] sm:$0xff]  ;;  %v3904_v39 = vld [vmem:[#allocation6 + $0x650] sm:$0xff] }
 0x475   :  { %3972 = vmatpush.msra.mxu0 %v3710_v60  ;;  %4012 = vmatpush.msra.mxu2 %v3711_v4  ;;  %v3752_v4 = vld [vmem:[#allocation6 + $0x190] sm:$0xff] }
 0x476   :  { %3990 = vmatpush.msra.mxu1 %v3854_v61  ;;  %4030 = vmatpush.msra.mxu3 %v3855_v18  ;;  %v3744_v18 = vld [vmem:[#allocation6 + $0x150] sm:$0xff] }
 0x477   :  { %3973 = vmatpush.msra.mxu0 %v3702_v15  ;;  %4013 = vmatpush.msra.mxu2 %v3703_v34  ;;  %v3753_v15 = vld [vmem:[#allocation6 + $0x198] sm:$0xff] }
 0x478   :  { %3991 = vmatpush.msra.mxu1 %v3846_v47  ;;  %4031 = vmatpush.msra.mxu3 %v3847_v63  ;;  %v3905_v34 = vld [vmem:[#allocation6 + $0x658] sm:$0xff] }
 0x479   :  { %4038 = vmatpush.msrb.mxu0 %v3824_v32  ;;  %4078 = vmatpush.msrb.mxu2 %v3825_v14  ;;  %v3896_v32 = vld [vmem:[#allocation6 + $0x610] sm:$0xff]  ;;  %v3745_v14 = vld [vmem:[#allocation6 + $0x158] sm:$0xff] }
 0x47a   :  { %3992 = vmatpush.msra.mxu1 %v3838_v54  ;;  %4032 = vmatpush.msra.mxu3 %v3839_v36  ;;  %v3897_v63 = vld [vmem:[#allocation6 + $0x618] sm:$0xff]  ;;  %v3888_v54 = vld [vmem:[#allocation6 + $0x5d0] sm:$0xff] }
 0x47b   :  { %4039 = vmatpush.msrb.mxu0 %v3816_v49  ;;  %4079 = vmatpush.msrb.mxu2 %v3817_v0  ;;  %v3736_v0 = vld [vmem:[#allocation6 + $0x110] sm:$0xff]  ;;  %v3737_v36 = vld [vmem:[#allocation6 + $0x118] sm:$0xff] }
 0x47c   :  { %3993 = vmatpush.msra.mxu1 %v3830_v26  ;;  %4033 = vmatpush.msra.mxu3 %v3831_v13  ;;  %v3728_v13 = vld [vmem:[#allocation6 + $0xd0] sm:$0xff] }
 0x47d   :  { %4040 = vmatpush.msrb.mxu0 %v3808_v3  ;;  %4080 = vmatpush.msrb.mxu2 %v3809_v58  ;;  %v3889_v3 = vld [vmem:[#allocation6 + $0x5d8] sm:$0xff]  ;;  %v229_v58 = vadd.f32 %v6188_v46, %v6298_v8 }
 0x47e   :  { %4058 = vmatpush.msrb.mxu1 %v3952_v51  ;;  %4098 = vmatpush.msrb.mxu3 %v3953_v31  ;;  %v3729_v51 = vld [vmem:[#allocation6 + $0xd8] sm:$0xff] }
 0x47f   :  { %4041 = vmatpush.msrb.mxu0 %v3800_v16  ;;  %4081 = vmatpush.msrb.mxu2 %v3801_v44  ;;  %v3880_v16 = vld [vmem:[#allocation6 + $0x590] sm:$0xff]  ;;  %v3881_v31 = vld [vmem:[#allocation6 + $0x598] sm:$0xff] }
 0x480   :  { %4059 = vmatpush.msrb.mxu1 %v3944_v43  ;;  %4099 = vmatpush.msrb.mxu3 %v3945_v33  ;;  %v3872_v33 = vld [vmem:[#allocation6 + $0x550] sm:$0xff]  ;;  %v3721_v46 = vld [vmem:[#allocation6 + $0x98] sm:$0xff] }
 0x481   :  { %4042 = vmatpush.msrb.mxu0 %v3792_v28  ;;  %4082 = vmatpush.msrb.mxu2 %v3793_v24  ;;  %v147_v28 = vadd.f32 %v6184_v20, %v6301_v17  ;;  %v3720_v24 = vld [vmem:[#allocation6 + $0x90] sm:$0xff]  ;;  %v3865_v20 = vld [vmem:[#allocation6 + $0x518] sm:$0xff] }
 0x482   :  { %4060 = vmatpush.msrb.mxu1 %v3936_v42  ;;  %4100 = vmatpush.msrb.mxu3 %v3937_v35  ;;  %v3864_v35 = vld [vmem:[#allocation6 + $0x510] sm:$0xff] }
 0x483   :  { %4043 = vmatpush.msrb.mxu0 %v3784_v56  ;;  %4083 = vmatpush.msrb.mxu2 %v3785_v9 }
 0x484   :  { %4061 = vmatpush.msrb.mxu1 %v3928_v6  ;;  %4101 = vmatpush.msrb.mxu3 %v3929_v41  ;;  %v267_v6 = vadd.f32 %v6182_v1, %v6310_v27  ;;  %v3848_v1 = vld [vmem:[#allocation6 + $0x490] sm:$0xff] }
 0x485   :  { %4044 = vmatpush.msrb.mxu0 %v3776_v48  ;;  %4084 = vmatpush.msrb.mxu2 %v3777_v30  ;;  %v3713_v48 = vld [vmem:[#allocation6 + $0x58] sm:$0xff] }
 0x486   :  { %4062 = vmatpush.msrb.mxu1 %v3920_v25  ;;  %4102 = vmatpush.msrb.mxu3 %v3921_v12  ;;  %v3856_v25 = vld [vmem:[#allocation6 + $0x4d0] sm:$0xff] }
 0x487   :  { %4045 = vmatpush.msrb.mxu0 %v3768_v53  ;;  %4085 = vmatpush.msrb.mxu2 %v3769_v29  ;;  %v3704_v53 = vld [vmem:[#allocation6 + $0x10] sm:$0xff]  ;;  %v3705_v29 = vld [vmem:[#allocation6 + $0x18] sm:$0xff] }
 0x488   :  { %4063 = vmatpush.msrb.mxu1 %v3912_v57  ;;  %4103 = vmatpush.msrb.mxu3 %v3913_v38  ;;  %v3857_v57 = vld [vmem:[#allocation6 + $0x4d8] sm:$0xff] }
 0x489   :  { %4046 = vmatpush.msrb.mxu0 %v3760_v40  ;;  %4086 = vmatpush.msrb.mxu2 %v3761_v2  ;;  %v185_v2 = vadd.f32 %v6174_v45, %v6313_v10  ;;  %v311_v45 = vadd.f32 %v6252_v55, %v6322_v11 }
 0x48a   :  { %4064 = vmatpush.msrb.mxu1 %v3904_v39  ;;  %4104 = vmatpush.msrb.mxu3 %v3905_v34 }
 0x48b   :  { %4047 = vmatpush.msrb.mxu0 %v3752_v4  ;;  %4087 = vmatpush.msrb.mxu2 %v3753_v15  ;;  %v3840_v15 = vld [vmem:[#allocation6 + $0x450] sm:$0xff] }
 0x48c   :  { %4065 = vmatpush.msrb.mxu1 %v3896_v32  ;;  %4105 = vmatpush.msrb.mxu3 %v3897_v63 }
 0x48d   :  { %4048 = vmatpush.msrb.mxu0 %v3744_v18  ;;  %4088 = vmatpush.msrb.mxu2 %v3745_v14  ;;  %v3832_v14 = vld [vmem:[#allocation6 + $0x410] sm:$0xff] }
 0x48e   :  { %v3341_v37 = vpop.f32.mrf.mxu0  ;;  %4066 = vmatpush.msrb.mxu1 %v3888_v54  ;;  %4106 = vmatpush.msrb.mxu3 %v3889_v3  ;;  %v393_v3 = vadd.f32 %v6256_v5, %v6325_v59  ;;  %v431_v5 = vadd.f32 %v6250_v52, %v6337_v7 }
 0x48f   :  { %4049 = vmatpush.msrb.mxu0 %v3736_v0  ;;  %4089 = vmatpush.msrb.mxu2 %v3737_v36 }
 0x490   :  { %4067 = vmatpush.msrb.mxu1 %v3880_v16  ;;  %4107 = vmatpush.msrb.mxu3 %v3881_v31  ;;  %v349_v16 = vadd.f32 %v6246_v50, %v6332_v62 }
 0x491   :  { %4050 = vmatpush.msrb.mxu0 %v3728_v13  ;;  %4090 = vmatpush.msrb.mxu2 %v3729_v51 }
 0x492   :  { %4068 = vmatpush.msrb.mxu1 %v3872_v33 }
 0x493   :  { %4051 = vmatpush.msrb.mxu0 %v3720_v24  ;;  %4091 = vmatpush.msrb.mxu2 %v3721_v46 }
 0x494   :  { %v6534_v21 = vpop.f32.mrf.mxu1  ;;  %v6538_v60 = vpop.f32.mrf.mxu2  ;;  %4069 = vmatpush.msrb.mxu1 %v3864_v35 }
 0x495   :  { %v3362_v26 = vadd.f32 %v6534_v21, %v3341_v37  ;;  %v3873_v21 = vld [vmem:[#allocation6 + $0x558] sm:$0xff]  ;;  %v3712_v37 = vld [vmem:[#allocation6 + $0x50] sm:$0xff]  ;;  %4092 = vmatpush.msrb.mxu2 %v3713_v48 }
 0x496   :  { %4108 = vmatpush.msrb.mxu3 %v3873_v21  ;;  %4052 = vmatpush.msrb.mxu0 %v3712_v37 }
 0x497   :  { %v3421_v47 = vpop.f32.mrf.mxu0  ;;  %v3644_v42 = vadd.f32 %v3362_v26, %v147_v28  ;;  %4070 = vmatpush.msrb.mxu1 %v3856_v25  ;;  %4093 = vmatpush.msrb.mxu2 %v3705_v29 }
 0x498   :  { %4109 = vmatpush.msrb.mxu3 %v3865_v20  ;;  %4053 = vmatpush.msrb.mxu0 %v3704_v53 }
 0x499   :  { %v3652_v38 = vmul.f32 0.5, %v3644_v42  ;;  %4071 = vmatpush.msrb.mxu1 %v3848_v1 }
 0x49a   :  { %v6536_v19 = vpop.f32.mrf.mxu3  ;;  %4110 = vmatpush.msrb.mxu3 %v3857_v57 }
 0x49b   :  { %v3402_v30 = vadd.f32 %v6536_v19, %v6538_v60  ;;  %v3849_v19 = vld [vmem:[#allocation6 + $0x498] sm:$0xff]  ;;  %4072 = vmatpush.msrb.mxu1 %v3840_v15  ;;  %v3818_v15 = vld [vmem:[#allocation6 + $0x3a0] sm:$0xff] }
 0x49c   :  { %4111 = vmatpush.msrb.mxu3 %v3849_v19  ;;  %v3826_v19 = vld [vmem:[#allocation6 + $0x3e0] sm:$0xff] }
 0x49d   :  { %v3461_v56 = vpop.f32.mrf.mxu2  ;;  %v3645_v60 = vadd.f32 %v3402_v30, %v185_v2  ;;  %4073 = vmatpush.msrb.mxu1 %v3832_v14 }
 0x49e   :  { %v3441_v61 = vpop.f32.mrf.mxu1 }
 0x49f   :  { %v3442_v49 = vadd.f32 %v3441_v61, %v3421_v47  ;;  %v3841_v61 = vld [vmem:[#allocation6 + $0x458] sm:$0xff]  ;;  %v3653_v63 = vmul.f32 0.5, %v3645_v60  ;;  %v3827_v60 = vld [vmem:[#allocation6 + $0x3e8] sm:$0xff] }
 0x4a0   :  { %4112 = vmatpush.msrb.mxu3 %v3841_v61  ;;  %v3833_v47 = vld [vmem:[#allocation6 + $0x418] sm:$0xff] }
 0x4a1   :  { %v3646_v43 = vadd.f32 %v3442_v49, %v229_v58 }
 0x4a2   :  { %4113 = vmatpush.msrb.mxu3 %v3833_v47  ;;  %v3802_v47 = vld [vmem:[#allocation6 + $0x320] sm:$0xff] }
 0x4a3   :  { %v3654_v41 = vmul.f32 0.5, %v3646_v43 }
 0x4a4   :  { %v3481_v44 = vpop.f32.mrf.mxu3 }
 0x4a5   :  { %v3482_v9 = vadd.f32 %v3481_v44, %v3461_v56  ;;  %5775 = vtanh.f32 %v3654_v41 }
 0x4a6   :  { %5777 = vtanh.f32 %v3652_v38 }
 0x4a7   :  { %v3647_v4 = vadd.f32 %v3482_v9, %v267_v6 }
 0x4a9   :  { %v3655_v34 = vmul.f32 0.5, %v3647_v4 }
 0x4ab   :  { %v5776_v36 = vpop.eup %5775  ;;  %5779 = vtanh.f32 %v3655_v34 }
 0x4ac   :  { %v5778_v13 = vpop.eup %5777  ;;  %5781 = vtanh.f32 %v3653_v63  ;;  %v3666_v51 = vadd.f32 1.0, %v5776_v36  ;;  %v3954_v63 = vld [vmem:[#allocation6 + $0x7e0] sm:$0xff] }
 0x4ad   :  { %v3664_v31 = vadd.f32 1.0, %v5778_v13  ;;  %v3947_v13 = vld [vmem:[#allocation6 + $0x7a8] sm:$0xff] }
 0x4ae   :  { %v3672_v56 = vmul.f32 0.5, %v3666_v51  ;;  %v3787_v51 = vld [vmem:[#allocation6 + $0x2a8] sm:$0xff] }
 0x4af   :  { %v3670_v9 = vmul.f32 0.5, %v3664_v31  ;;  %v3778_v31 = vld [vmem:[#allocation6 + $0x260] sm:$0xff] }
 0x4b0   :  { %v3678_v20 = vmul.f32 %v3672_v56, %v6505_v23  ;;  %v3923_v56 = vld [vmem:[#allocation6 + $0x6e8] sm:$0xff] }
 0x4b1   :  { %v3501_v12 = vpop.f32.mrf.mxu0  ;;  %v5780_v33 = vpop.eup %5779 }
 0x4b2   :  { %v5782_v21 = vpop.eup %5781  ;;  %v3667_v37 = vadd.f32 1.0, %v5780_v33  ;;  %v3770_v33 = vld [vmem:[#allocation6 + $0x220] sm:$0xff] }
 0x4b3   :  { %v3665_v48 = vadd.f32 1.0, %v5782_v21  ;;  %v3762_v21 = vld [vmem:[#allocation6 + $0x1e0] sm:$0xff] }
 0x4b4   :  { %v3673_v41 = vmul.f32 0.5, %v3667_v37  ;;  %v3915_v37 = vld [vmem:[#allocation6 + $0x6a8] sm:$0xff] }
 0x4b5   :  { %v3671_v52 = vmul.f32 0.5, %v3665_v48  ;;  %v3755_v48 = vld [vmem:[#allocation6 + $0x1a8] sm:$0xff] }
 0x4b7   :  { %v3541_v18 = vpop.f32.mrf.mxu2 }
 0x4b8   :  { %v3521_v40 = vpop.f32.mrf.mxu1 }
 0x4b9   :  { %v3522_v39 = vadd.f32 %v3521_v40, %v3501_v12  ;;  %v3679_v12 = vmul.f32 %v3673_v41, %v6509_v22  ;;  %v3819_v22 = vld [vmem:[#allocation6 + $0x3a8] sm:$0xff] }
 0x4ba   :  { %v3747_v41 = vld [vmem:[#allocation6 + $0x168] sm:$0xff] }
 0x4bb   :  { %v3648_v49 = vadd.f32 %v3522_v39, %v311_v45  ;;  %v3688_v39 = vld [vmem:[#allocation8 + $0x20] sm:$0xff] }
 0x4bc   :  { %v3810_v45 = vld [vmem:[#allocation6 + $0x360] sm:$0xff] }
 0x4bd   :  { %v3656_v44 = vmul.f32 0.5, %v3648_v49  ;;  %v3803_v49 = vld [vmem:[#allocation6 + $0x328] sm:$0xff] }
 0x4be   :  { %v3561_v32 = vpop.f32.mrf.mxu3 }
 0x4bf   :  { %v3562_v26 = vadd.f32 %v3561_v32, %v3541_v18  ;;  %v3811_v18 = vld [vmem:[#allocation6 + $0x368] sm:$0xff] }
 0x4c1   :  { %v3649_v28 = vadd.f32 %v3562_v26, %v349_v16  ;;  %v3795_v26 = vld [vmem:[#allocation6 + $0x2e8] sm:$0xff]  ;;  %v3938_v16 = vld [vmem:[#allocation6 + $0x760] sm:$0xff] }
 0x4c3   :  { %v3657_v35 = vmul.f32 0.5, %v3649_v28  ;;  %v3930_v28 = vld [vmem:[#allocation6 + $0x720] sm:$0xff] }
 0x4d3   :  { %v3581_v0 = vpop.f32.mrf.mxu0 }
 0x4d9   :  { %v3601_v54 = vpop.f32.mrf.mxu1  ;;  %v3621_v43 = vpop.f32.mrf.mxu2 }
 0x4da   :  { %v3602_v58 = vadd.f32 %v3601_v54, %v3581_v0  ;;  %v3955_v0 = vld [vmem:[#allocation6 + $0x7e8] sm:$0xff]  ;;  %v3691_v54 = vld [vmem:[#allocation8 + $0x18] sm:$0xff] }
 0x4dc   :  { %v3650_v55 = vadd.f32 %v3602_v58, %v393_v3  ;;  %v3794_v3 = vld [vmem:[#allocation6 + $0x2e0] sm:$0xff] }
 0x4dd   :  { %v3946_v58 = vld [vmem:[#allocation6 + $0x7a0] sm:$0xff] }
 0x4de   :  { %5783 = vtanh.f32 %v3650_v55  ;;  %v3786_v55 = vld [vmem:[#allocation6 + $0x2a0] sm:$0xff] }
 0x4df   :  { %v3641_v24 = vpop.f32.mrf.mxu3  ;;  %5785 = vtanh.f32 %v3656_v44  ;;  %v3939_v44 = vld [vmem:[#allocation6 + $0x768] sm:$0xff] }
 0x4e0   :  { %v3642_v46 = vadd.f32 %v3641_v24, %v3621_v43  ;;  %v3779_v43 = vld [vmem:[#allocation6 + $0x268] sm:$0xff] }
 0x4e1   :  { %v3931_v24 = vld [vmem:[#allocation6 + $0x728] sm:$0xff] }
 0x4e2   :  { %v3651_v42 = vadd.f32 %v3642_v46, %v431_v5  ;;  %v3922_v5 = vld [vmem:[#allocation6 + $0x6e0] sm:$0xff]  ;;  %v3771_v46 = vld [vmem:[#allocation6 + $0x228] sm:$0xff] }
 0x4e4   :  { %v5784_v50 = vpop.eup %5783  ;;  %5787 = vtanh.f32 %v3651_v42  ;;  %v3914_v42 = vld [vmem:[#allocation6 + $0x6a0] sm:$0xff] }
 0x4e5   :  { %v3680_v6 = vmul.f32 %v5784_v50, %v3670_v9  ;;  %v5786_v30 = vpop.eup %5785  ;;  %5789 = vtanh.f32 %v3657_v35  ;;  %v3763_v9 = vld [vmem:[#allocation6 + $0x1e8] sm:$0xff]  ;;  %v3754_v35 = vld [vmem:[#allocation6 + $0x1a0] sm:$0xff] }
 0x4e6   :  { %v3668_v29 = vadd.f32 1.0, %v5786_v30  ;;  %v3906_v50 = vld [vmem:[#allocation6 + $0x660] sm:$0xff] }
 0x4e7   :  { %v6560_v53 = vadd.f32 %v3680_v6, %v3678_v20  ;;  %v3907_v20 = vld [vmem:[#allocation6 + $0x668] sm:$0xff]  ;;  %v3746_v6 = vld [vmem:[#allocation6 + $0x160] sm:$0xff] }
 0x4e8   :  { %v3674_v38 = vmul.f32 0.5, %v3668_v29  ;;  %v3898_v30 = vld [vmem:[#allocation6 + $0x620] sm:$0xff] }
 0x4e9   :  { %5791 = vtanh.f32 %v6560_v53  ;;  %v3890_v29 = vld [vmem:[#allocation6 + $0x5e0] sm:$0xff] }
 0x4ea   :  { %v5788_v25 = vpop.eup %5787 }
 0x4eb   :  { %v3681_v40 = vmul.f32 %v5788_v25, %v3671_v52  ;;  %v5790_v57 = vpop.eup %5789  ;;  %v3899_v52 = vld [vmem:[#allocation6 + $0x628] sm:$0xff]  ;;  %v3738_v25 = vld [vmem:[#allocation6 + $0x120] sm:$0xff] }
 0x4ec   :  { %v3669_v23 = vadd.f32 1.0, %v5790_v57  ;;  %v3730_v57 = vld [vmem:[#allocation6 + $0xe0] sm:$0xff] }
 0x4ed   :  { %v6564_v2 = vadd.f32 %v3681_v40, %v3679_v12  ;;  %v3739_v12 = vld [vmem:[#allocation6 + $0x128] sm:$0xff] }
 0x4ee   :  { %v3675_v34 = vmul.f32 0.5, %v3669_v23  ;;  %v3891_v40 = vld [vmem:[#allocation6 + $0x5e8] sm:$0xff] }
 0x4ef   :  { %v5792_v4 = vpop.eup %5791  ;;  %5793 = vtanh.f32 %v6564_v2  ;;  %v3883_v23 = vld [vmem:[#allocation6 + $0x5a8] sm:$0xff] }
 0x4f0   :  { %v6567_v1 = vmul.f32 %v5792_v4, %v3674_v38  ;;  %v3882_v38 = vld [vmem:[#allocation6 + $0x5a0] sm:$0xff]  ;;  %v3731_v4 = vld [vmem:[#allocation6 + $0xe8] sm:$0xff] }
 0x4f2   :  { %3974 = vmatmul.f32.vlgmr.msra.gmra.mxu0 %v6567_v1  ;;  %4014 = vmatmul.f32.vlgmr.msra.gmra.mxu2 %v6567_v1  ;;  %v3689_v61 = vadd.f32 %v3688_v39, %v6567_v1  ;;  %v3723_v39 = vld [vmem:[#allocation6 + $0xa8] sm:$0xff] }
 0x4f3   :  { %4118 = vmatpush.msra.mxu0 %v3826_v19  ;;  %4158 = vmatpush.msra.mxu2 %v3827_v60  ;;  %v3722_v19 = vld [vmem:[#allocation6 + $0xa0] sm:$0xff] }
 0x4f4   :  { %3690 = vst [vmem:[#allocation8 + $0x20] sm:$0xff] %v3689_v61  ;;  %v3874_v60 = vld [vmem:[#allocation6 + $0x560] sm:$0xff] }
 0x4f5   :  { %v5794_v32 = vpop.eup %5793  ;;  %4119 = vmatpush.msra.mxu0 %v3818_v15  ;;  %4159 = vmatpush.msra.mxu2 %v3819_v22  ;;  %v3875_v15 = vld [vmem:[#allocation6 + $0x568] sm:$0xff]  ;;  %v3714_v22 = vld [vmem:[#allocation6 + $0x60] sm:$0xff] }
 0x4f6   :  { %v6572_v14 = vmul.f32 %v5794_v32, %v3675_v34  ;;  %v3866_v61 = vld [vmem:[#allocation6 + $0x520] sm:$0xff]  ;;  %v3715_v34 = vld [vmem:[#allocation6 + $0x68] sm:$0xff] }
 0x4f7   :  { %4120 = vmatpush.msra.mxu0 %v3810_v45  ;;  %4160 = vmatpush.msra.mxu2 %v3811_v18  ;;  %v3867_v45 = vld [vmem:[#allocation6 + $0x528] sm:$0xff]  ;;  %v3706_v18 = vld [vmem:[#allocation6 + $0x20] sm:$0xff] }
 0x4f8   :  { %3994 = vmatmul.f32.vlgmr.msra.gmra.mxu1 %v6572_v14  ;;  %4034 = vmatmul.f32.vlgmr.msra.gmra.mxu3 %v6572_v14  ;;  %v3692_v36 = vadd.f32 %v3691_v54, %v6572_v14  ;;  %v3858_v32 = vld [vmem:[#allocation6 + $0x4e0] sm:$0xff] }
 0x4f9   :  { %4121 = vmatpush.msra.mxu0 %v3802_v47  ;;  %4138 = vmatpush.msra.mxu1 %v3954_v63  ;;  %v3707_v47 = vld [vmem:[#allocation6 + $0x28] sm:$0xff]  ;;  %v3850_v54 = vld [vmem:[#allocation6 + $0x4a0] sm:$0xff] }
 0x4fa   :  { %4161 = vmatpush.msra.mxu2 %v3803_v49  ;;  %4178 = vmatpush.msra.mxu3 %v3955_v0  ;;  %3693 = vst [vmem:[#allocation8 + $0x18] sm:$0xff] %v3692_v36  ;;  %v3859_v63 = vld [vmem:[#allocation6 + $0x4e8] sm:$0xff]  ;;  %v3828_v49 = vld [vmem:[#allocation6 + $0x3f0] sm:$0xff]  ;;  %v3829_v0 = vld [vmem:[#allocation6 + $0x3f8] sm:$0xff] }
 0x4fb   :  { %4054 = vmatmul.f32.vlgmr.msrb.gmra.mxu0 %v6567_v1  ;;  %4094 = vmatmul.f32.vlgmr.msrb.gmra.mxu2 %v6567_v1  ;;  %v3851_v36 = vld [vmem:[#allocation6 + $0x4a8] sm:$0xff] }
 0x4fc   :  { %4122 = vmatpush.msra.mxu0 %v3794_v3  ;;  %4139 = vmatpush.msra.mxu1 %v3946_v58  ;;  %v3820_v3 = vld [vmem:[#allocation6 + $0x3b0] sm:$0xff]  ;;  %v3821_v58 = vld [vmem:[#allocation6 + $0x3b8] sm:$0xff] }
 0x4fd   :  { %4162 = vmatpush.msra.mxu2 %v3795_v26  ;;  %4179 = vmatpush.msra.mxu3 %v3947_v13  ;;  %v3842_v26 = vld [vmem:[#allocation6 + $0x460] sm:$0xff]  ;;  %v3843_v13 = vld [vmem:[#allocation6 + $0x468] sm:$0xff] }
 0x4fe   :  { %4123 = vmatpush.msra.mxu0 %v3786_v55  ;;  %4140 = vmatpush.msra.mxu1 %v3938_v16  ;;  %v3812_v55 = vld [vmem:[#allocation6 + $0x370] sm:$0xff]  ;;  %v3813_v16 = vld [vmem:[#allocation6 + $0x378] sm:$0xff] }
 0x4ff   :  { %4163 = vmatpush.msra.mxu2 %v3787_v51  ;;  %4180 = vmatpush.msra.mxu3 %v3939_v44  ;;  %v3834_v51 = vld [vmem:[#allocation6 + $0x420] sm:$0xff]  ;;  %v3835_v44 = vld [vmem:[#allocation6 + $0x428] sm:$0xff] }
 0x500   :  { %4124 = vmatpush.msra.mxu0 %v3778_v31  ;;  %4141 = vmatpush.msra.mxu1 %v3930_v28  ;;  %v3804_v31 = vld [vmem:[#allocation6 + $0x330] sm:$0xff] }
 0x501   :  { %4164 = vmatpush.msra.mxu2 %v3779_v43  ;;  %4181 = vmatpush.msra.mxu3 %v3931_v24  ;;  %v3956_v28 = vld [vmem:[#allocation6 + $0x7f0] sm:$0xff]  ;;  %v3805_v43 = vld [vmem:[#allocation6 + $0x338] sm:$0xff] }
 0x502   :  { %4074 = vmatmul.f32.vlgmr.msrb.gmra.mxu1 %v6572_v14  ;;  %4114 = vmatmul.f32.vlgmr.msrb.gmra.mxu3 %v6572_v14  ;;  %v3957_v24 = vld [vmem:[#allocation6 + $0x7f8] sm:$0xff] }
 0x503   :  { %4125 = vmatpush.msra.mxu0 %v3770_v33  ;;  %4142 = vmatpush.msra.mxu1 %v3922_v5  ;;  %v3796_v33 = vld [vmem:[#allocation6 + $0x2f0] sm:$0xff] }
 0x504   :  { %4165 = vmatpush.msra.mxu2 %v3771_v46  ;;  %4182 = vmatpush.msra.mxu3 %v3923_v56  ;;  %v3948_v5 = vld [vmem:[#allocation6 + $0x7b0] sm:$0xff]  ;;  %v3797_v46 = vld [vmem:[#allocation6 + $0x2f8] sm:$0xff] }
 0x505   :  { %4126 = vmatpush.msra.mxu0 %v3762_v21  ;;  %4143 = vmatpush.msra.mxu1 %v3914_v42  ;;  %v3949_v56 = vld [vmem:[#allocation6 + $0x7b8] sm:$0xff]  ;;  %v3788_v21 = vld [vmem:[#allocation6 + $0x2b0] sm:$0xff] }
 0x506   :  { %4166 = vmatpush.msra.mxu2 %v3763_v9  ;;  %4183 = vmatpush.msra.mxu3 %v3915_v37  ;;  %v3940_v42 = vld [vmem:[#allocation6 + $0x770] sm:$0xff]  ;;  %v3789_v9 = vld [vmem:[#allocation6 + $0x2b8] sm:$0xff] }
 0x507   :  { %4127 = vmatpush.msra.mxu0 %v3754_v35  ;;  %4144 = vmatpush.msra.mxu1 %v3906_v50  ;;  %v3941_v37 = vld [vmem:[#allocation6 + $0x778] sm:$0xff]  ;;  %v3780_v35 = vld [vmem:[#allocation6 + $0x270] sm:$0xff] }
 0x508   :  { %4167 = vmatpush.msra.mxu2 %v3755_v48  ;;  %4184 = vmatpush.msra.mxu3 %v3907_v20  ;;  %v3932_v50 = vld [vmem:[#allocation6 + $0x730] sm:$0xff]  ;;  %v3781_v48 = vld [vmem:[#allocation6 + $0x278] sm:$0xff] }
 0x509   :  { %4128 = vmatpush.msra.mxu0 %v3746_v6  ;;  %4145 = vmatpush.msra.mxu1 %v3898_v30  ;;  %v3933_v20 = vld [vmem:[#allocation6 + $0x738] sm:$0xff]  ;;  %v3772_v6 = vld [vmem:[#allocation6 + $0x230] sm:$0xff] }
 0x50a   :  { %4168 = vmatpush.msra.mxu2 %v3747_v41  ;;  %4185 = vmatpush.msra.mxu3 %v3899_v52  ;;  %v3924_v30 = vld [vmem:[#allocation6 + $0x6f0] sm:$0xff]  ;;  %v3773_v41 = vld [vmem:[#allocation6 + $0x238] sm:$0xff] }
 0x50b   :  { %4129 = vmatpush.msra.mxu0 %v3738_v25  ;;  %4146 = vmatpush.msra.mxu1 %v3890_v29  ;;  %v3925_v52 = vld [vmem:[#allocation6 + $0x6f8] sm:$0xff]  ;;  %v3764_v25 = vld [vmem:[#allocation6 + $0x1f0] sm:$0xff] }
 0x50c   :  { %4169 = vmatpush.msra.mxu2 %v3739_v12  ;;  %4186 = vmatpush.msra.mxu3 %v3891_v40  ;;  %v3916_v29 = vld [vmem:[#allocation6 + $0x6b0] sm:$0xff]  ;;  %v3765_v12 = vld [vmem:[#allocation6 + $0x1f8] sm:$0xff] }
 0x50d   :  { %4130 = vmatpush.msra.mxu0 %v3730_v57  ;;  %4147 = vmatpush.msra.mxu1 %v3882_v38  ;;  %v3917_v40 = vld [vmem:[#allocation6 + $0x6b8] sm:$0xff]  ;;  %v3756_v57 = vld [vmem:[#allocation6 + $0x1b0] sm:$0xff] }
 0x50e   :  { %4170 = vmatpush.msra.mxu2 %v3731_v4  ;;  %4187 = vmatpush.msra.mxu3 %v3883_v23  ;;  %v3908_v38 = vld [vmem:[#allocation6 + $0x670] sm:$0xff]  ;;  %v3757_v4 = vld [vmem:[#allocation6 + $0x1b8] sm:$0xff] }
 0x50f   :  { %4131 = vmatpush.msra.mxu0 %v3722_v19  ;;  %4148 = vmatpush.msra.mxu1 %v3874_v60  ;;  %v3909_v23 = vld [vmem:[#allocation6 + $0x678] sm:$0xff]  ;;  %v3748_v19 = vld [vmem:[#allocation6 + $0x170] sm:$0xff] }
 0x510   :  { %4171 = vmatpush.msra.mxu2 %v3723_v39  ;;  %4188 = vmatpush.msra.mxu3 %v3875_v15  ;;  %v3900_v60 = vld [vmem:[#allocation6 + $0x630] sm:$0xff]  ;;  %v3749_v39 = vld [vmem:[#allocation6 + $0x178] sm:$0xff] }
 0x511   :  { %4132 = vmatpush.msra.mxu0 %v3714_v22  ;;  %4149 = vmatpush.msra.mxu1 %v3866_v61  ;;  %v3901_v15 = vld [vmem:[#allocation6 + $0x638] sm:$0xff]  ;;  %v3740_v22 = vld [vmem:[#allocation6 + $0x130] sm:$0xff] }
 0x512   :  { %4172 = vmatpush.msra.mxu2 %v3715_v34  ;;  %4189 = vmatpush.msra.mxu3 %v3867_v45  ;;  %v3892_v61 = vld [vmem:[#allocation6 + $0x5f0] sm:$0xff]  ;;  %v3741_v34 = vld [vmem:[#allocation6 + $0x138] sm:$0xff] }
 0x513   :  { %4133 = vmatpush.msra.mxu0 %v3706_v18  ;;  %4150 = vmatpush.msra.mxu1 %v3858_v32  ;;  %v3893_v45 = vld [vmem:[#allocation6 + $0x5f8] sm:$0xff]  ;;  %v3732_v18 = vld [vmem:[#allocation6 + $0xf0] sm:$0xff] }
 0x514   :  { %4173 = vmatpush.msra.mxu2 %v3707_v47  ;;  %4190 = vmatpush.msra.mxu3 %v3859_v63  ;;  %v3884_v32 = vld [vmem:[#allocation6 + $0x5b0] sm:$0xff]  ;;  %v3733_v47 = vld [vmem:[#allocation6 + $0xf8] sm:$0xff] }
 0x515   :  { %4134 = vmatmul.f32.vlgmr.msra.gmra.mxu0 %v6567_v1  ;;  %4174 = vmatmul.f32.vlgmr.msra.gmra.mxu2 %v6567_v1  ;;  %v3885_v63 = vld [vmem:[#allocation6 + $0x5b8] sm:$0xff] }
 0x516   :  { %4198 = vmatpush.msrb.mxu0 %v3828_v49  ;;  %4238 = vmatpush.msrb.mxu2 %v3829_v0  ;;  %v3724_v49 = vld [vmem:[#allocation6 + $0xb0] sm:$0xff] }
 0x517   :  { %4151 = vmatpush.msra.mxu1 %v3850_v54  ;;  %4191 = vmatpush.msra.mxu3 %v3851_v36  ;;  %v3876_v0 = vld [vmem:[#allocation6 + $0x570] sm:$0xff]  ;;  %v3725_v54 = vld [vmem:[#allocation6 + $0xb8] sm:$0xff] }
 0x518   :  { %4199 = vmatpush.msrb.mxu0 %v3820_v3  ;;  %4239 = vmatpush.msrb.mxu2 %v3821_v58  ;;  %v3877_v36 = vld [vmem:[#allocation6 + $0x578] sm:$0xff]  ;;  %v3716_v3 = vld [vmem:[#allocation6 + $0x70] sm:$0xff] }
 0x519   :  { %4152 = vmatpush.msra.mxu1 %v3842_v26  ;;  %4192 = vmatpush.msra.mxu3 %v3843_v13  ;;  %v3868_v58 = vld [vmem:[#allocation6 + $0x530] sm:$0xff]  ;;  %v3717_v26 = vld [vmem:[#allocation6 + $0x78] sm:$0xff] }
 0x51a   :  { %4200 = vmatpush.msrb.mxu0 %v3812_v55  ;;  %4240 = vmatpush.msrb.mxu2 %v3813_v16  ;;  %v3869_v13 = vld [vmem:[#allocation6 + $0x538] sm:$0xff]  ;;  %v3708_v55 = vld [vmem:[#allocation6 + $0x30] sm:$0xff] }
 0x51b   :  { %4153 = vmatpush.msra.mxu1 %v3834_v51  ;;  %4193 = vmatpush.msra.mxu3 %v3835_v44  ;;  %v3860_v16 = vld [vmem:[#allocation6 + $0x4f0] sm:$0xff]  ;;  %v3709_v51 = vld [vmem:[#allocation6 + $0x38] sm:$0xff] }
 0x51c   :  { %4154 = vmatmul.f32.vlgmr.msra.gmra.mxu1 %v6572_v14  ;;  %4194 = vmatmul.f32.vlgmr.msra.gmra.mxu3 %v6572_v14  ;;  %v3861_v44 = vld [vmem:[#allocation6 + $0x4f8] sm:$0xff] }
 0x51d   :  { %4201 = vmatpush.msrb.mxu0 %v3804_v31  ;;  %4218 = vmatpush.msrb.mxu1 %v3956_v28  ;;  %v3852_v31 = vld [vmem:[#allocation6 + $0x4b0] sm:$0xff]  ;;  %v3853_v28 = vld [vmem:[#allocation6 + $0x4b8] sm:$0xff] }
 0x51e   :  { %4241 = vmatpush.msrb.mxu2 %v3805_v43  ;;  %4258 = vmatpush.msrb.mxu3 %v3957_v24  ;;  %v3844_v43 = vld [vmem:[#allocation6 + $0x470] sm:$0xff]  ;;  %v3845_v24 = vld [vmem:[#allocation6 + $0x478] sm:$0xff] }
 0x51f   :  { %4202 = vmatpush.msrb.mxu0 %v3796_v33  ;;  %4219 = vmatpush.msrb.mxu1 %v3948_v5  ;;  %v3836_v33 = vld [vmem:[#allocation6 + $0x430] sm:$0xff]  ;;  %v3837_v5 = vld [vmem:[#allocation6 + $0x438] sm:$0xff] }
 0x520   :  { %4242 = vmatpush.msrb.mxu2 %v3797_v46  ;;  %4259 = vmatpush.msrb.mxu3 %v3949_v56  ;;  %v4456_v46 = vld [vmem:[#allocation6 + $0x3c0] sm:$0xff]  ;;  %v4457_v56 = vld [vmem:[#allocation6 + $0x3c8] sm:$0xff] }
 0x521   :  { %4203 = vmatpush.msrb.mxu0 %v3788_v21  ;;  %4220 = vmatpush.msrb.mxu1 %v3940_v42  ;;  %v4448_v21 = vld [vmem:[#allocation6 + $0x380] sm:$0xff] }
 0x522   :  { %4243 = vmatpush.msrb.mxu2 %v3789_v9  ;;  %4260 = vmatpush.msrb.mxu3 %v3941_v37  ;;  %v4440_v42 = vld [vmem:[#allocation6 + $0x340] sm:$0xff]  ;;  %v4441_v9 = vld [vmem:[#allocation6 + $0x348] sm:$0xff] }
 0x523   :  { %4204 = vmatpush.msrb.mxu0 %v3780_v35  ;;  %4221 = vmatpush.msrb.mxu1 %v3932_v50  ;;  %v4432_v37 = vld [vmem:[#allocation6 + $0x300] sm:$0xff]  ;;  %v4433_v50 = vld [vmem:[#allocation6 + $0x308] sm:$0xff] }
 0x524   :  { %4244 = vmatpush.msrb.mxu2 %v3781_v48  ;;  %4261 = vmatpush.msrb.mxu3 %v3933_v20  ;;  %v4584_v35 = vld [vmem:[#allocation6 + $0x7c0] sm:$0xff]  ;;  %v4585_v48 = vld [vmem:[#allocation6 + $0x7c8] sm:$0xff] }
 0x525   :  { %4205 = vmatpush.msrb.mxu0 %v3772_v6  ;;  %4222 = vmatpush.msrb.mxu1 %v3924_v30  ;;  %v4576_v20 = vld [vmem:[#allocation6 + $0x780] sm:$0xff]  ;;  %v4425_v6 = vld [vmem:[#allocation6 + $0x2c8] sm:$0xff] }
 0x526   :  { %4245 = vmatpush.msrb.mxu2 %v3773_v41  ;;  %4262 = vmatpush.msrb.mxu3 %v3925_v52  ;;  %v4577_v30 = vld [vmem:[#allocation6 + $0x788] sm:$0xff]  ;;  %v4416_v41 = vld [vmem:[#allocation6 + $0x280] sm:$0xff] }
 0x527   :  { %4206 = vmatpush.msrb.mxu0 %v3764_v25  ;;  %4223 = vmatpush.msrb.mxu1 %v3916_v29  ;;  %v4568_v52 = vld [vmem:[#allocation6 + $0x740] sm:$0xff]  ;;  %v4417_v25 = vld [vmem:[#allocation6 + $0x288] sm:$0xff] }
 0x528   :  { %4246 = vmatpush.msrb.mxu2 %v3765_v12  ;;  %4263 = vmatpush.msrb.mxu3 %v3917_v40  ;;  %v4569_v29 = vld [vmem:[#allocation6 + $0x748] sm:$0xff]  ;;  %v4408_v12 = vld [vmem:[#allocation6 + $0x240] sm:$0xff] }
 0x529   :  { %4207 = vmatpush.msrb.mxu0 %v3756_v57  ;;  %4224 = vmatpush.msrb.mxu1 %v3908_v38  ;;  %v4560_v40 = vld [vmem:[#allocation6 + $0x700] sm:$0xff]  ;;  %v4409_v57 = vld [vmem:[#allocation6 + $0x248] sm:$0xff] }
 0x52a   :  { %4247 = vmatpush.msrb.mxu2 %v3757_v4  ;;  %4264 = vmatpush.msrb.mxu3 %v3909_v23  ;;  %v4561_v38 = vld [vmem:[#allocation6 + $0x708] sm:$0xff]  ;;  %v4400_v4 = vld [vmem:[#allocation6 + $0x200] sm:$0xff] }
 0x52b   :  { %4208 = vmatpush.msrb.mxu0 %v3748_v19  ;;  %4225 = vmatpush.msrb.mxu1 %v3900_v60  ;;  %v4552_v23 = vld [vmem:[#allocation6 + $0x6c0] sm:$0xff]  ;;  %v4401_v19 = vld [vmem:[#allocation6 + $0x208] sm:$0xff] }
 0x52c   :  { %4248 = vmatpush.msrb.mxu2 %v3749_v39  ;;  %4265 = vmatpush.msrb.mxu3 %v3901_v15  ;;  %v4553_v60 = vld [vmem:[#allocation6 + $0x6c8] sm:$0xff]  ;;  %v4392_v39 = vld [vmem:[#allocation6 + $0x1c0] sm:$0xff] }
 0x52d   :  { %4209 = vmatpush.msrb.mxu0 %v3740_v22  ;;  %4226 = vmatpush.msrb.mxu1 %v3892_v61  ;;  %v4544_v15 = vld [vmem:[#allocation6 + $0x680] sm:$0xff]  ;;  %v4393_v22 = vld [vmem:[#allocation6 + $0x1c8] sm:$0xff] }
 0x52e   :  { %4249 = vmatpush.msrb.mxu2 %v3741_v34  ;;  %4266 = vmatpush.msrb.mxu3 %v3893_v45  ;;  %v4545_v61 = vld [vmem:[#allocation6 + $0x688] sm:$0xff]  ;;  %v4384_v34 = vld [vmem:[#allocation6 + $0x180] sm:$0xff] }
 0x52f   :  { %4210 = vmatpush.msrb.mxu0 %v3732_v18  ;;  %4227 = vmatpush.msrb.mxu1 %v3884_v32  ;;  %v4536_v45 = vld [vmem:[#allocation6 + $0x640] sm:$0xff]  ;;  %v4385_v18 = vld [vmem:[#allocation6 + $0x188] sm:$0xff] }
 0x530   :  { %4250 = vmatpush.msrb.mxu2 %v3733_v47  ;;  %4267 = vmatpush.msrb.mxu3 %v3885_v63  ;;  %v4537_v32 = vld [vmem:[#allocation6 + $0x648] sm:$0xff]  ;;  %v4376_v47 = vld [vmem:[#allocation6 + $0x140] sm:$0xff] }
 0x531   :  { %4211 = vmatpush.msrb.mxu0 %v3724_v49  ;;  %4228 = vmatpush.msrb.mxu1 %v3876_v0  ;;  %v4528_v63 = vld [vmem:[#allocation6 + $0x600] sm:$0xff]  ;;  %v4377_v49 = vld [vmem:[#allocation6 + $0x148] sm:$0xff] }
 0x532   :  { %4251 = vmatpush.msrb.mxu2 %v3725_v54  ;;  %4268 = vmatpush.msrb.mxu3 %v3877_v36  ;;  %v4529_v0 = vld [vmem:[#allocation6 + $0x608] sm:$0xff]  ;;  %v4368_v54 = vld [vmem:[#allocation6 + $0x100] sm:$0xff] }
 0x533   :  { %4212 = vmatpush.msrb.mxu0 %v3716_v3  ;;  %4229 = vmatpush.msrb.mxu1 %v3868_v58  ;;  %v4520_v36 = vld [vmem:[#allocation6 + $0x5c0] sm:$0xff]  ;;  %v4369_v3 = vld [vmem:[#allocation6 + $0x108] sm:$0xff] }
 0x534   :  { %4252 = vmatpush.msrb.mxu2 %v3717_v26  ;;  %4269 = vmatpush.msrb.mxu3 %v3869_v13  ;;  %v4521_v58 = vld [vmem:[#allocation6 + $0x5c8] sm:$0xff]  ;;  %v4360_v26 = vld [vmem:[#allocation6 + $0xc0] sm:$0xff] }
 0x535   :  { %4213 = vmatpush.msrb.mxu0 %v3708_v55  ;;  %4230 = vmatpush.msrb.mxu1 %v3860_v16  ;;  %v4512_v13 = vld [vmem:[#allocation6 + $0x580] sm:$0xff]  ;;  %v4361_v55 = vld [vmem:[#allocation6 + $0xc8] sm:$0xff] }
 0x536   :  { %4253 = vmatpush.msrb.mxu2 %v3709_v51  ;;  %4270 = vmatpush.msrb.mxu3 %v3861_v44  ;;  %v4513_v16 = vld [vmem:[#allocation6 + $0x588] sm:$0xff]  ;;  %v4352_v51 = vld [vmem:[#allocation6 + $0x80] sm:$0xff] }
 0x537   :  { %4214 = vmatmul.f32.vlgmr.msrb.gmra.mxu0 %v6567_v1  ;;  %4254 = vmatmul.f32.vlgmr.msrb.gmra.mxu2 %v6567_v1  ;;  %v4449_v1 = vld [vmem:[#allocation6 + $0x388] sm:$0xff]  ;;  %v4504_v44 = vld [vmem:[#allocation6 + $0x540] sm:$0xff] }
 0x538   :  { %4231 = vmatpush.msrb.mxu1 %v3852_v31  ;;  %4271 = vmatpush.msrb.mxu3 %v3853_v28  ;;  %v4353_v31 = vld [vmem:[#allocation6 + $0x88] sm:$0xff] }
 0x539   :  { %4592 = vmatpush.msra.mxu0 %v4456_v46  ;;  %4632 = vmatpush.msra.mxu2 %v4457_v56  ;;  %v4505_v28 = vld [vmem:[#allocation6 + $0x548] sm:$0xff]  ;;  %v4336_v46 = vld [vmem:[#allocation6] sm:$0xff] }
 0x53a   :  { %4232 = vmatpush.msrb.mxu1 %v3844_v43  ;;  %4272 = vmatpush.msrb.mxu3 %v3845_v24  ;;  %v4344_v43 = vld [vmem:[#allocation6 + $0x40] sm:$0xff] }
 0x53b   :  { %4593 = vmatpush.msra.mxu0 %v4448_v21  ;;  %4633 = vmatpush.msra.mxu2 %v4449_v1  ;;  %v4496_v24 = vld [vmem:[#allocation6 + $0x500] sm:$0xff]  ;;  %v4337_v21 = vld [vmem:[#allocation6 + $0x8] sm:$0xff] }
 0x53c   :  { %4233 = vmatpush.msrb.mxu1 %v3836_v33  ;;  %4273 = vmatpush.msrb.mxu3 %v3837_v5  ;;  %v4345_v33 = vld [vmem:[#allocation6 + $0x48] sm:$0xff]  ;;  %v4488_v56 = vld [vmem:[#allocation6 + $0x4c0] sm:$0xff] }
 0x53d   :  { %4234 = vmatmul.f32.vlgmr.msrb.gmra.mxu1 %v6572_v14  ;;  %4274 = vmatmul.f32.vlgmr.msrb.gmra.mxu3 %v6572_v14  ;;  %v4424_v14 = vld [vmem:[#allocation6 + $0x2c0] sm:$0xff]  ;;  %v4497_v5 = vld [vmem:[#allocation6 + $0x508] sm:$0xff] }
 0x53e   :  { %4594 = vmatpush.msra.mxu0 %v4440_v42  ;;  %4634 = vmatpush.msra.mxu2 %v4441_v9  ;;  %v4489_v1 = vld [vmem:[#allocation6 + $0x4c8] sm:$0xff]  ;;  %v4458_v42 = vld [vmem:[#allocation6 + $0x3d0] sm:$0xff]  ;;  %v4459_v9 = vld [vmem:[#allocation6 + $0x3d8] sm:$0xff] }
 0x53f   :  { %4612 = vmatpush.msra.mxu1 %v4584_v35  ;;  %4652 = vmatpush.msra.mxu3 %v4585_v48  ;;  %v4481_v35 = vld [vmem:[#allocation6 + $0x488] sm:$0xff]  ;;  %v4451_v48 = vld [vmem:[#allocation6 + $0x398] sm:$0xff] }
 0x540   :  { %4595 = vmatpush.msra.mxu0 %v4432_v37  ;;  %4635 = vmatpush.msra.mxu2 %v4433_v50  ;;  %v4480_v37 = vld [vmem:[#allocation6 + $0x480] sm:$0xff]  ;;  %v4450_v50 = vld [vmem:[#allocation6 + $0x390] sm:$0xff] }
 0x541   :  { %4613 = vmatpush.msra.mxu1 %v4576_v20  ;;  %4653 = vmatpush.msra.mxu3 %v4577_v30  ;;  %v4473_v20 = vld [vmem:[#allocation6 + $0x448] sm:$0xff]  ;;  %v4443_v30 = vld [vmem:[#allocation6 + $0x358] sm:$0xff] }
 0x542   :  { %4596 = vmatpush.msra.mxu0 %v4424_v14  ;;  %4636 = vmatpush.msra.mxu2 %v4425_v6  ;;  %v4472_v14 = vld [vmem:[#allocation6 + $0x440] sm:$0xff]  ;;  %v4442_v6 = vld [vmem:[#allocation6 + $0x350] sm:$0xff] }
 0x543   :  { %4614 = vmatpush.msra.mxu1 %v4568_v52  ;;  %4654 = vmatpush.msra.mxu3 %v4569_v29  ;;  %v4465_v52 = vld [vmem:[#allocation6 + $0x408] sm:$0xff]  ;;  %v4586_v29 = vld [vmem:[#allocation6 + $0x7d0] sm:$0xff] }
 0x544   :  { %4597 = vmatpush.msra.mxu0 %v4416_v41  ;;  %4637 = vmatpush.msra.mxu2 %v4417_v25  ;;  %v4464_v41 = vld [vmem:[#allocation6 + $0x400] sm:$0xff]  ;;  %v4434_v25 = vld [vmem:[#allocation6 + $0x310] sm:$0xff] }
 0x545   :  { %4615 = vmatpush.msra.mxu1 %v4560_v40  ;;  %4655 = vmatpush.msra.mxu3 %v4561_v38  ;;  %v4587_v40 = vld [vmem:[#allocation6 + $0x7d8] sm:$0xff]  ;;  %v4578_v38 = vld [vmem:[#allocation6 + $0x790] sm:$0xff] }
 0x546   :  { %4598 = vmatpush.msra.mxu0 %v4408_v12  ;;  %4638 = vmatpush.msra.mxu2 %v4409_v57  ;;  %v4435_v12 = vld [vmem:[#allocation6 + $0x318] sm:$0xff]  ;;  %v4426_v57 = vld [vmem:[#allocation6 + $0x2d0] sm:$0xff] }
 0x547   :  { %4616 = vmatpush.msra.mxu1 %v4552_v23  ;;  %4656 = vmatpush.msra.mxu3 %v4553_v60  ;;  %v4418_v60 = vld [vmem:[#allocation6 + $0x290] sm:$0xff] }
 0x548   :  { %4599 = vmatpush.msra.mxu0 %v4400_v4  ;;  %4639 = vmatpush.msra.mxu2 %v4401_v19  ;;  %v4427_v4 = vld [vmem:[#allocation6 + $0x2d8] sm:$0xff] }
 0x549   :  { %4617 = vmatpush.msra.mxu1 %v4544_v15  ;;  %4657 = vmatpush.msra.mxu3 %v4545_v61  ;;  %v4579_v19 = vld [vmem:[#allocation6 + $0x798] sm:$0xff] }
 0x54a   :  { %4600 = vmatpush.msra.mxu0 %v4392_v39  ;;  %4640 = vmatpush.msra.mxu2 %v4393_v22  ;;  %v4570_v39 = vld [vmem:[#allocation6 + $0x750] sm:$0xff]  ;;  %v4419_v15 = vld [vmem:[#allocation6 + $0x298] sm:$0xff] }
 0x54b   :  { %4618 = vmatpush.msra.mxu1 %v4536_v45  ;;  %4658 = vmatpush.msra.mxu3 %v4537_v32  ;;  %v4571_v61 = vld [vmem:[#allocation6 + $0x758] sm:$0xff]  ;;  %v4562_v45 = vld [vmem:[#allocation6 + $0x710] sm:$0xff] }
 0x54c   :  { %4601 = vmatpush.msra.mxu0 %v4384_v34  ;;  %4641 = vmatpush.msra.mxu2 %v4385_v18  ;;  %v4410_v34 = vld [vmem:[#allocation6 + $0x250] sm:$0xff]  ;;  %v4411_v18 = vld [vmem:[#allocation6 + $0x258] sm:$0xff] }
 0x54d   :  { %4619 = vmatpush.msra.mxu1 %v4528_v63  ;;  %4659 = vmatpush.msra.mxu3 %v4529_v0  ;;  %v4563_v32 = vld [vmem:[#allocation6 + $0x718] sm:$0xff]  ;;  %v4554_v63 = vld [vmem:[#allocation6 + $0x6d0] sm:$0xff] }
 0x54e   :  { %4602 = vmatpush.msra.mxu0 %v4376_v47  ;;  %4642 = vmatpush.msra.mxu2 %v4377_v49  ;;  %v4402_v47 = vld [vmem:[#allocation6 + $0x210] sm:$0xff]  ;;  %v4403_v49 = vld [vmem:[#allocation6 + $0x218] sm:$0xff] }
 0x54f   :  { %4620 = vmatpush.msra.mxu1 %v4520_v36  ;;  %4660 = vmatpush.msra.mxu3 %v4521_v58  ;;  %v4394_v36 = vld [vmem:[#allocation6 + $0x1d0] sm:$0xff]  ;;  %v4395_v58 = vld [vmem:[#allocation6 + $0x1d8] sm:$0xff] }
 0x550   :  { %4603 = vmatpush.msra.mxu0 %v4368_v54  ;;  %4643 = vmatpush.msra.mxu2 %v4369_v3  ;;  %v4555_v54 = vld [vmem:[#allocation6 + $0x6d8] sm:$0xff]  ;;  %v4546_v3 = vld [vmem:[#allocation6 + $0x690] sm:$0xff] }
 0x551   :  { %4621 = vmatpush.msra.mxu1 %v4512_v13  ;;  %4661 = vmatpush.msra.mxu3 %v4513_v16  ;;  %v4547_v13 = vld [vmem:[#allocation6 + $0x698] sm:$0xff]  ;;  %v4538_v16 = vld [vmem:[#allocation6 + $0x650] sm:$0xff] }
 0x552   :  { %4604 = vmatpush.msra.mxu0 %v4360_v26  ;;  %4644 = vmatpush.msra.mxu2 %v4361_v55  ;;  %v4386_v55 = vld [vmem:[#allocation6 + $0x190] sm:$0xff] }
 0x553   :  { %4622 = vmatpush.msra.mxu1 %v4504_v44  ;;  %4662 = vmatpush.msra.mxu3 %v4505_v28  ;;  %v4378_v28 = vld [vmem:[#allocation6 + $0x150] sm:$0xff] }
 0x554   :  { %4605 = vmatpush.msra.mxu0 %v4352_v51  ;;  %4645 = vmatpush.msra.mxu2 %v4353_v31  ;;  %v4387_v51 = vld [vmem:[#allocation6 + $0x198] sm:$0xff] }
 0x555   :  { %4623 = vmatpush.msra.mxu1 %v4496_v24  ;;  %4663 = vmatpush.msra.mxu3 %v4497_v5  ;;  %v4539_v31 = vld [vmem:[#allocation6 + $0x658] sm:$0xff] }
 0x556   :  { %4606 = vmatpush.msra.mxu0 %v4344_v43  ;;  %4646 = vmatpush.msra.mxu2 %v4345_v33  ;;  %v4530_v43 = vld [vmem:[#allocation6 + $0x610] sm:$0xff]  ;;  %v4379_v24 = vld [vmem:[#allocation6 + $0x158] sm:$0xff] }
 0x557   :  { %4624 = vmatpush.msra.mxu1 %v4488_v56  ;;  %4664 = vmatpush.msra.mxu3 %v4489_v1  ;;  %v4531_v5 = vld [vmem:[#allocation6 + $0x618] sm:$0xff]  ;;  %v4370_v56 = vld [vmem:[#allocation6 + $0x110] sm:$0xff] }
 0x558   :  { %4607 = vmatpush.msra.mxu0 %v4336_v46  ;;  %4647 = vmatpush.msra.mxu2 %v4337_v21  ;;  %v4522_v21 = vld [vmem:[#allocation6 + $0x5d0] sm:$0xff]  ;;  %v4371_v1 = vld [vmem:[#allocation6 + $0x118] sm:$0xff] }
 0x559   :  { %4625 = vmatpush.msra.mxu1 %v4480_v37  ;;  %4665 = vmatpush.msra.mxu3 %v4481_v35 }
 0x55a   :  { %4672 = vmatpush.msrb.mxu0 %v4458_v42  ;;  %4712 = vmatpush.msrb.mxu2 %v4459_v9  ;;  %v4523_v42 = vld [vmem:[#allocation6 + $0x5d8] sm:$0xff] }
 0x55b   :  { %4626 = vmatpush.msra.mxu1 %v4472_v14  ;;  %4666 = vmatpush.msra.mxu3 %v4473_v20  ;;  %v6749_v9 = vld [vmem:[#allocation19_spill] sm:$0xff] }
 0x55c   :  { %4673 = vmatpush.msrb.mxu0 %v4450_v50  ;;  %4713 = vmatpush.msrb.mxu2 %v4451_v48  ;;  %v232_v37 = vadd.f32 %v6749_v9, %v6298_v8  ;;  %v4362_v50 = vld [vmem:[#allocation6 + $0xd0] sm:$0xff]  ;;  %v4363_v14 = vld [vmem:[#allocation6 + $0xd8] sm:$0xff] }
 0x55d   :  { %4627 = vmatpush.msra.mxu1 %v4464_v41  ;;  %4667 = vmatpush.msra.mxu3 %v4465_v52  ;;  %v4514_v48 = vld [vmem:[#allocation6 + $0x590] sm:$0xff]  ;;  %v6754_v9 = vld [vmem:[#allocation31_spill] sm:$0xff] }
 0x55e   :  { %4674 = vmatpush.msrb.mxu0 %v4442_v6  ;;  %4714 = vmatpush.msrb.mxu2 %v4443_v30  ;;  %v4515_v6 = vld [vmem:[#allocation6 + $0x598] sm:$0xff]  ;;  %v6750_v30 = vld [vmem:[#allocation18_spill] sm:$0xff] }
 0x55f   :  { %4692 = vmatpush.msrb.mxu1 %v4586_v29  ;;  %4732 = vmatpush.msrb.mxu3 %v4587_v40  ;;  %v150_v41 = vadd.f32 %v6750_v30, %v6301_v17  ;;  %v4506_v29 = vld [vmem:[#allocation6 + $0x550] sm:$0xff] }
 0x560   :  { %4675 = vmatpush.msrb.mxu0 %v4434_v25  ;;  %4715 = vmatpush.msrb.mxu2 %v4435_v12  ;;  %v4354_v25 = vld [vmem:[#allocation6 + $0x90] sm:$0xff]  ;;  %v4355_v12 = vld [vmem:[#allocation6 + $0x98] sm:$0xff] }
 0x561   :  { %4693 = vmatpush.msrb.mxu1 %v4578_v38  ;;  %4733 = vmatpush.msrb.mxu3 %v4579_v19  ;;  %v4498_v19 = vld [vmem:[#allocation6 + $0x510] sm:$0xff] }
 0x562   :  { %4676 = vmatpush.msrb.mxu0 %v4426_v57  ;;  %4716 = vmatpush.msrb.mxu2 %v4427_v4  ;;  %v4507_v57 = vld [vmem:[#allocation6 + $0x558] sm:$0xff] }
 0x563   :  { %4694 = vmatpush.msrb.mxu1 %v4570_v39  ;;  %4734 = vmatpush.msrb.mxu3 %v4571_v61  ;;  %v4499_v39 = vld [vmem:[#allocation6 + $0x518] sm:$0xff] }
 0x564   :  { %4677 = vmatpush.msrb.mxu0 %v4418_v60  ;;  %4717 = vmatpush.msrb.mxu2 %v4419_v15  ;;  %v4347_v60 = vld [vmem:[#allocation6 + $0x58] sm:$0xff]  ;;  %v6751_v15 = vld [vmem:[#allocation17_spill] sm:$0xff] }
 0x565   :  { %4695 = vmatpush.msrb.mxu1 %v4562_v45  ;;  %4735 = vmatpush.msrb.mxu3 %v4563_v32  ;;  %v4338_v45 = vld [vmem:[#allocation6 + $0x10] sm:$0xff]  ;;  %v4339_v32 = vld [vmem:[#allocation6 + $0x18] sm:$0xff] }
 0x566   :  { %4678 = vmatpush.msrb.mxu0 %v4410_v34  ;;  %4718 = vmatpush.msrb.mxu2 %v4411_v18  ;;  %v4490_v18 = vld [vmem:[#allocation6 + $0x4d0] sm:$0xff] }
 0x567   :  { %4696 = vmatpush.msrb.mxu1 %v4554_v63  ;;  %4736 = vmatpush.msrb.mxu3 %v4555_v54  ;;  %v6752_v54 = vld [vmem:[#allocation16_spill] sm:$0xff] }
 0x568   :  { %4679 = vmatpush.msrb.mxu0 %v4402_v47  ;;  %4719 = vmatpush.msrb.mxu2 %v4403_v49  ;;  %v4491_v49 = vld [vmem:[#allocation6 + $0x4d8] sm:$0xff] }
 0x569   :  { %4697 = vmatpush.msrb.mxu1 %v4546_v3  ;;  %4737 = vmatpush.msrb.mxu3 %v4547_v13 }
 0x56a   :  { %4680 = vmatpush.msrb.mxu0 %v4394_v36  ;;  %4720 = vmatpush.msrb.mxu2 %v4395_v58  ;;  %v182_v36 = vadd.f32 %v6752_v54, %v6313_v10 }
 0x56b   :  { %4698 = vmatpush.msrb.mxu1 %v4538_v16  ;;  %4738 = vmatpush.msrb.mxu3 %v4539_v31  ;;  %v4474_v16 = vld [vmem:[#allocation6 + $0x450] sm:$0xff] }
 0x56c   :  { %4681 = vmatpush.msrb.mxu0 %v4386_v55  ;;  %4721 = vmatpush.msrb.mxu2 %v4387_v51  ;;  %v4475_v51 = vld [vmem:[#allocation6 + $0x458] sm:$0xff]  ;;  %v6753_v31 = vld [vmem:[#allocation30_spill] sm:$0xff] }
 0x56d   :  { %4699 = vmatpush.msrb.mxu1 %v4530_v43  ;;  %4739 = vmatpush.msrb.mxu3 %v4531_v5  ;;  %v4467_v5 = vld [vmem:[#allocation6 + $0x418] sm:$0xff] }
 0x56e   :  { %4682 = vmatpush.msrb.mxu0 %v4378_v28  ;;  %4722 = vmatpush.msrb.mxu2 %v4379_v24  ;;  %v314_v28 = vadd.f32 %v6753_v31, %v6322_v11  ;;  %v4322_v31 = vld [vmem:[#allocation8 + $0x28] sm:$0xff] }
 0x56f   :  { %v3975_v22 = vpop.f32.mrf.mxu0  ;;  %4700 = vmatpush.msrb.mxu1 %v4522_v21  ;;  %4740 = vmatpush.msrb.mxu3 %v4523_v42 }
 0x570   :  { %4683 = vmatpush.msrb.mxu0 %v4370_v56  ;;  %4723 = vmatpush.msrb.mxu2 %v4371_v1 }
 0x571   :  { %4701 = vmatpush.msrb.mxu1 %v4514_v48  ;;  %4741 = vmatpush.msrb.mxu3 %v4515_v6 }
 0x572   :  { %4684 = vmatpush.msrb.mxu0 %v4362_v50  ;;  %4724 = vmatpush.msrb.mxu2 %v4363_v14 }
 0x573   :  { %4702 = vmatpush.msrb.mxu1 %v4506_v29  ;;  %4742 = vmatpush.msrb.mxu3 %v4507_v57  ;;  %v6756_v57 = vld [vmem:[#allocation29_spill] sm:$0xff] }
 0x574   :  { %4685 = vmatpush.msrb.mxu0 %v4354_v25  ;;  %4725 = vmatpush.msrb.mxu2 %v4355_v12 }
 0x575   :  { %v6589_v23 = vpop.f32.mrf.mxu1  ;;  %v6593_v26 = vpop.f32.mrf.mxu2  ;;  %4703 = vmatpush.msrb.mxu1 %v4498_v19  ;;  %4743 = vmatpush.msrb.mxu3 %v4499_v39 }
 0x576   :  { %v3996_v35 = vadd.f32 %v6589_v23, %v3975_v22  ;;  %v4346_v23 = vld [vmem:[#allocation6 + $0x50] sm:$0xff]  ;;  %v264_v22 = vadd.f32 %v6751_v15, %v6310_v27  ;;  %4726 = vmatpush.msrb.mxu2 %v4347_v60 }
 0x577   :  { %4686 = vmatpush.msrb.mxu0 %v4346_v23  ;;  %4704 = vmatpush.msrb.mxu1 %v4490_v18 }
 0x578   :  { %v4055_v33 = vpop.f32.mrf.mxu0  ;;  %v4278_v38 = vadd.f32 %v3996_v35, %v150_v41  ;;  %4727 = vmatpush.msrb.mxu2 %v4339_v32  ;;  %4744 = vmatpush.msrb.mxu3 %v4491_v49 }
 0x579   :  { %4687 = vmatpush.msrb.mxu0 %v4338_v45 }
 0x57a   :  { %v4286_v3 = vmul.f32 0.5, %v4278_v38  ;;  %v428_v38 = vadd.f32 %v6756_v57, %v6337_v7  ;;  %v4404_v57 = vld [vmem:[#allocation6 + $0x220] sm:$0xff] }
 0x57b   :  { %v6591_v0 = vpop.f32.mrf.mxu3 }
 0x57c   :  { %v4036_v61 = vadd.f32 %v6591_v0, %v6593_v26  ;;  %v4482_v0 = vld [vmem:[#allocation6 + $0x490] sm:$0xff]  ;;  %v4483_v26 = vld [vmem:[#allocation6 + $0x498] sm:$0xff] }
 0x57d   :  { %4705 = vmatpush.msrb.mxu1 %v4482_v0  ;;  %4745 = vmatpush.msrb.mxu3 %v4483_v26 }
 0x57e   :  { %v4095_v40 = vpop.f32.mrf.mxu2  ;;  %v4279_v13 = vadd.f32 %v4036_v61, %v182_v36 }
 0x57f   :  { %v4075_v44 = vpop.f32.mrf.mxu1  ;;  %4706 = vmatpush.msrb.mxu1 %v4474_v16  ;;  %4746 = vmatpush.msrb.mxu3 %v4475_v51  ;;  %v4460_v51 = vld [vmem:[#allocation6 + $0x3e0] sm:$0xff] }
 0x580   :  { %v4076_v46 = vadd.f32 %v4075_v44, %v4055_v33  ;;  %v4466_v33 = vld [vmem:[#allocation6 + $0x410] sm:$0xff] }
 0x581   :  { %4707 = vmatpush.msrb.mxu1 %v4466_v33  ;;  %4747 = vmatpush.msrb.mxu3 %v4467_v5  ;;  %v4444_v33 = vld [vmem:[#allocation6 + $0x360] sm:$0xff]  ;;  %v4445_v5 = vld [vmem:[#allocation6 + $0x368] sm:$0xff] }
 0x582   :  { %v4280_v52 = vadd.f32 %v4076_v46, %v232_v37  ;;  %v4287_v46 = vmul.f32 0.5, %v4279_v13  ;;  %v396_v37 = vadd.f32 %v6754_v9, %v6325_v59  ;;  %v4589_v9 = vld [vmem:[#allocation6 + $0x7e8] sm:$0xff] }
 0x584   :  { %v4288_v34 = vmul.f32 0.5, %v4280_v52 }
 0x585   :  { %v4115_v20 = vpop.f32.mrf.mxu3 }
 0x586   :  { %v4116_v4 = vadd.f32 %v4115_v20, %v4095_v40  ;;  %5795 = vtanh.f32 %v4288_v34  ;;  %v6755_v20 = vld [vmem:[#allocation28_spill] sm:$0xff] }
 0x587   :  { %5797 = vtanh.f32 %v4286_v3  ;;  %v346_v6 = vadd.f32 %v6755_v20, %v6332_v62  ;;  %v4581_v20 = vld [vmem:[#allocation6 + $0x7a8] sm:$0xff] }
 0x588   :  { %v4281_v58 = vadd.f32 %v4116_v4, %v264_v22 }
 0x58a   :  { %v4289_v44 = vmul.f32 0.5, %v4281_v58 }
 0x58c   :  { %v5796_v42 = vpop.eup %5795  ;;  %5799 = vtanh.f32 %v4289_v44  ;;  %v4461_v44 = vld [vmem:[#allocation6 + $0x3e8] sm:$0xff] }
 0x58d   :  { %v5798_v48 = vpop.eup %5797  ;;  %5801 = vtanh.f32 %v4287_v46  ;;  %v4300_v30 = vadd.f32 1.0, %v5796_v42  ;;  %v4437_v42 = vld [vmem:[#allocation6 + $0x328] sm:$0xff] }
 0x58e   :  { %v4298_v52 = vadd.f32 1.0, %v5798_v48  ;;  %v4580_v48 = vld [vmem:[#allocation6 + $0x7a0] sm:$0xff] }
 0x58f   :  { %v4306_v23 = vmul.f32 0.5, %v4300_v30  ;;  %v4572_v30 = vld [vmem:[#allocation6 + $0x760] sm:$0xff] }
 0x590   :  { %v4304_v39 = vmul.f32 0.5, %v4298_v52  ;;  %v4573_v52 = vld [vmem:[#allocation6 + $0x768] sm:$0xff] }
 0x591   :  { %v4312_v45 = vmul.f32 %v4306_v23, %v6560_v53  ;;  %v4557_v23 = vld [vmem:[#allocation6 + $0x6e8] sm:$0xff] }
 0x592   :  { %v4135_v47 = vpop.f32.mrf.mxu0  ;;  %v5800_v40 = vpop.eup %5799 }
 0x593   :  { %v5802_v19 = vpop.eup %5801  ;;  %v4301_v15 = vadd.f32 1.0, %v5800_v40  ;;  %v4565_v40 = vld [vmem:[#allocation6 + $0x728] sm:$0xff] }
 0x594   :  { %v4299_v34 = vadd.f32 1.0, %v5802_v19  ;;  %v4396_v19 = vld [vmem:[#allocation6 + $0x1e0] sm:$0xff] }
 0x596   :  { %v4305_v49 = vmul.f32 0.5, %v4299_v34  ;;  %v4389_v34 = vld [vmem:[#allocation6 + $0x1a8] sm:$0xff] }
 0x598   :  { %v4175_v43 = vpop.f32.mrf.mxu2 }
 0x599   :  { %v4155_v63 = vpop.f32.mrf.mxu1 }
 0x59a   :  { %v4156_v55 = vadd.f32 %v4155_v63, %v4135_v47  ;;  %v4307_v47 = vmul.f32 0.5, %v4301_v15  ;;  %v4549_v15 = vld [vmem:[#allocation6 + $0x6a8] sm:$0xff] }
 0x59c   :  { %v4282_v56 = vadd.f32 %v4156_v55, %v314_v28  ;;  %v4313_v3 = vmul.f32 %v4307_v47, %v6564_v2  ;;  %v4452_v28 = vld [vmem:[#allocation6 + $0x3a0] sm:$0xff]  ;;  %v4453_v2 = vld [vmem:[#allocation6 + $0x3a8] sm:$0xff] }
 0x59d   :  { %v4381_v47 = vld [vmem:[#allocation6 + $0x168] sm:$0xff] }
 0x59e   :  { %v4290_v41 = vmul.f32 0.5, %v4282_v56 }
 0x59f   :  { %v4195_v24 = vpop.f32.mrf.mxu3 }
 0x5a0   :  { %v4196_v50 = vadd.f32 %v4195_v24, %v4175_v43 }
 0x5a2   :  { %v4283_v25 = vadd.f32 %v4196_v50, %v346_v6  ;;  %v4428_v50 = vld [vmem:[#allocation6 + $0x2e0] sm:$0xff] }
 0x5a3   :  { %v4420_v6 = vld [vmem:[#allocation6 + $0x2a0] sm:$0xff] }
 0x5a4   :  { %v4291_v22 = vmul.f32 0.5, %v4283_v25  ;;  %v4412_v25 = vld [vmem:[#allocation6 + $0x260] sm:$0xff] }
 0x5b4   :  { %v4215_v21 = vpop.f32.mrf.mxu0 }
 0x5ba   :  { %v4235_v1 = vpop.f32.mrf.mxu1  ;;  %v4255_v29 = vpop.f32.mrf.mxu2 }
 0x5bb   :  { %v4236_v35 = vadd.f32 %v4235_v1, %v4215_v21  ;;  %v4436_v21 = vld [vmem:[#allocation6 + $0x320] sm:$0xff] }
 0x5bc   :  { %v4588_v1 = vld [vmem:[#allocation6 + $0x7e0] sm:$0xff] }
 0x5bd   :  { %v4284_v14 = vadd.f32 %v4236_v35, %v396_v37  ;;  %v4325_v37 = vld [vmem:[#allocation8 + $0x10] sm:$0xff] }
 0x5bf   :  { %5803 = vtanh.f32 %v4284_v14  ;;  %v4429_v14 = vld [vmem:[#allocation6 + $0x2e8] sm:$0xff] }
 0x5c0   :  { %v4275_v12 = vpop.f32.mrf.mxu3  ;;  %5805 = vtanh.f32 %v4290_v41  ;;  %v4421_v41 = vld [vmem:[#allocation6 + $0x2a8] sm:$0xff] }
 0x5c1   :  { %v4276_v4 = vadd.f32 %v4275_v12, %v4255_v29  ;;  %v4564_v29 = vld [vmem:[#allocation6 + $0x720] sm:$0xff]  ;;  %v4413_v12 = vld [vmem:[#allocation6 + $0x268] sm:$0xff] }
 0x5c3   :  { %v4285_v60 = vadd.f32 %v4276_v4, %v428_v38  ;;  %v4556_v38 = vld [vmem:[#allocation6 + $0x6e0] sm:$0xff]  ;;  %v4405_v4 = vld [vmem:[#allocation6 + $0x228] sm:$0xff] }
 0x5c5   :  { %v5804_v61 = vpop.eup %5803  ;;  %5807 = vtanh.f32 %v4285_v60  ;;  %v4548_v60 = vld [vmem:[#allocation6 + $0x6a0] sm:$0xff] }
 0x5c6   :  { %v4314_v18 = vmul.f32 %v5804_v61, %v4304_v39  ;;  %v5806_v32 = vpop.eup %5805  ;;  %5809 = vtanh.f32 %v4291_v22  ;;  %v4397_v39 = vld [vmem:[#allocation6 + $0x1e8] sm:$0xff]  ;;  %v4388_v22 = vld [vmem:[#allocation6 + $0x1a0] sm:$0xff] }
 0x5c7   :  { %v4302_v36 = vadd.f32 1.0, %v5806_v32  ;;  %v4540_v61 = vld [vmem:[#allocation6 + $0x660] sm:$0xff] }
 0x5c8   :  { %v6615_v63 = vadd.f32 %v4314_v18, %v4312_v45  ;;  %v4541_v45 = vld [vmem:[#allocation6 + $0x668] sm:$0xff]  ;;  %v4380_v18 = vld [vmem:[#allocation6 + $0x160] sm:$0xff] }
 0x5c9   :  { %v4308_v13 = vmul.f32 0.5, %v4302_v36  ;;  %v4532_v32 = vld [vmem:[#allocation6 + $0x620] sm:$0xff] }
 0x5ca   :  { %5811 = vtanh.f32 %v6615_v63  ;;  %v4524_v36 = vld [vmem:[#allocation6 + $0x5e0] sm:$0xff] }
 0x5cb   :  { %v5808_v54 = vpop.eup %5807 }
 0x5cc   :  { %v4315_v58 = vmul.f32 %v5808_v54, %v4305_v49  ;;  %v5810_v0 = vpop.eup %5809  ;;  %v4533_v49 = vld [vmem:[#allocation6 + $0x628] sm:$0xff]  ;;  %v4372_v54 = vld [vmem:[#allocation6 + $0x120] sm:$0xff] }
 0x5cd   :  { %v4303_v53 = vadd.f32 1.0, %v5810_v0  ;;  %v4364_v0 = vld [vmem:[#allocation6 + $0xe0] sm:$0xff] }
 0x5ce   :  { %v6619_v26 = vadd.f32 %v4315_v58, %v4313_v3  ;;  %v4373_v3 = vld [vmem:[#allocation6 + $0x128] sm:$0xff] }
 0x5cf   :  { %v4309_v24 = vmul.f32 0.5, %v4303_v53  ;;  %v4525_v58 = vld [vmem:[#allocation6 + $0x5e8] sm:$0xff] }
 0x5d0   :  { %v5812_v55 = vpop.eup %5811  ;;  %5813 = vtanh.f32 %v6619_v26  ;;  %v4517_v53 = vld [vmem:[#allocation6 + $0x5a8] sm:$0xff] }
 0x5d1   :  { %v6622_v16 = vmul.f32 %v5812_v55, %v4308_v13  ;;  %v4516_v13 = vld [vmem:[#allocation6 + $0x5a0] sm:$0xff]  ;;  %v4365_v55 = vld [vmem:[#allocation6 + $0xe8] sm:$0xff] }
 0x5d3   :  { %4608 = vmatmul.f32.vlgmr.msra.gmra.mxu0 %v6622_v16  ;;  %4648 = vmatmul.f32.vlgmr.msra.gmra.mxu2 %v6622_v16  ;;  %v4323_v43 = vadd.f32 %v4322_v31, %v6622_v16  ;;  %v4357_v31 = vld [vmem:[#allocation6 + $0xa8] sm:$0xff] }
 0x5d4   :  { %4752 = vmatpush.msra.mxu0 %v4460_v51  ;;  %4792 = vmatpush.msra.mxu2 %v4461_v44  ;;  %v4356_v51 = vld [vmem:[#allocation6 + $0xa0] sm:$0xff] }
 0x5d5   :  { %4324 = vst [vmem:[#allocation8 + $0x28] sm:$0xff] %v4323_v43  ;;  %v4508_v44 = vld [vmem:[#allocation6 + $0x560] sm:$0xff] }
 0x5d6   :  { %v5814_v46 = vpop.eup %5813  ;;  %4753 = vmatpush.msra.mxu0 %v4452_v28  ;;  %4793 = vmatpush.msra.mxu2 %v4453_v2  ;;  %v4509_v28 = vld [vmem:[#allocation6 + $0x568] sm:$0xff]  ;;  %v4348_v2 = vld [vmem:[#allocation6 + $0x60] sm:$0xff] }
 0x5d7   :  { %v6627_v56 = vmul.f32 %v5814_v46, %v4309_v24  ;;  %v4500_v43 = vld [vmem:[#allocation6 + $0x520] sm:$0xff]  ;;  %v4349_v24 = vld [vmem:[#allocation6 + $0x68] sm:$0xff] }
 0x5d8   :  { %4754 = vmatpush.msra.mxu0 %v4444_v33  ;;  %4794 = vmatpush.msra.mxu2 %v4445_v5  ;;  %v4501_v33 = vld [vmem:[#allocation6 + $0x528] sm:$0xff]  ;;  %v4340_v5 = vld [vmem:[#allocation6 + $0x20] sm:$0xff] }
 0x5d9   :  { %4628 = vmatmul.f32.vlgmr.msra.gmra.mxu1 %v6627_v56  ;;  %4668 = vmatmul.f32.vlgmr.msra.gmra.mxu3 %v6627_v56  ;;  %v4326_v35 = vadd.f32 %v4325_v37, %v6627_v56  ;;  %v4492_v46 = vld [vmem:[#allocation6 + $0x4e0] sm:$0xff] }
 0x5da   :  { %4755 = vmatpush.msra.mxu0 %v4436_v21  ;;  %4772 = vmatpush.msra.mxu1 %v4588_v1  ;;  %v4341_v21 = vld [vmem:[#allocation6 + $0x28] sm:$0xff]  ;;  %v4484_v37 = vld [vmem:[#allocation6 + $0x4a0] sm:$0xff] }
 0x5db   :  { %4795 = vmatpush.msra.mxu2 %v4437_v42  ;;  %4812 = vmatpush.msra.mxu3 %v4589_v9  ;;  %4327 = vst [vmem:[#allocation8 + $0x10] sm:$0xff] %v4326_v35  ;;  %v4493_v1 = vld [vmem:[#allocation6 + $0x4e8] sm:$0xff]  ;;  %v4462_v42 = vld [vmem:[#allocation6 + $0x3f0] sm:$0xff]  ;;  %v4463_v9 = vld [vmem:[#allocation6 + $0x3f8] sm:$0xff] }
 0x5dc   :  { %4688 = vmatmul.f32.vlgmr.msrb.gmra.mxu0 %v6622_v16  ;;  %4728 = vmatmul.f32.vlgmr.msrb.gmra.mxu2 %v6622_v16  ;;  %v4485_v35 = vld [vmem:[#allocation6 + $0x4a8] sm:$0xff] }
 0x5dd   :  { %4756 = vmatpush.msra.mxu0 %v4428_v50  ;;  %4773 = vmatpush.msra.mxu1 %v4580_v48  ;;  %v4454_v50 = vld [vmem:[#allocation6 + $0x3b0] sm:$0xff]  ;;  %v4455_v48 = vld [vmem:[#allocation6 + $0x3b8] sm:$0xff] }
 0x5de   :  { %4796 = vmatpush.msra.mxu2 %v4429_v14  ;;  %4813 = vmatpush.msra.mxu3 %v4581_v20  ;;  %v4476_v14 = vld [vmem:[#allocation6 + $0x460] sm:$0xff]  ;;  %v4477_v20 = vld [vmem:[#allocation6 + $0x468] sm:$0xff] }
 0x5df   :  { %4757 = vmatpush.msra.mxu0 %v4420_v6  ;;  %4774 = vmatpush.msra.mxu1 %v4572_v30  ;;  %v4446_v6 = vld [vmem:[#allocation6 + $0x370] sm:$0xff]  ;;  %v4447_v30 = vld [vmem:[#allocation6 + $0x378] sm:$0xff] }
 0x5e0   :  { %4797 = vmatpush.msra.mxu2 %v4421_v41  ;;  %4814 = vmatpush.msra.mxu3 %v4573_v52  ;;  %v4468_v41 = vld [vmem:[#allocation6 + $0x420] sm:$0xff]  ;;  %v4469_v52 = vld [vmem:[#allocation6 + $0x428] sm:$0xff] }
 0x5e1   :  { %4758 = vmatpush.msra.mxu0 %v4412_v25  ;;  %4775 = vmatpush.msra.mxu1 %v4564_v29  ;;  %v4438_v25 = vld [vmem:[#allocation6 + $0x330] sm:$0xff] }
 0x5e2   :  { %4798 = vmatpush.msra.mxu2 %v4413_v12  ;;  %4815 = vmatpush.msra.mxu3 %v4565_v40  ;;  %v4590_v29 = vld [vmem:[#allocation6 + $0x7f0] sm:$0xff]  ;;  %v4439_v12 = vld [vmem:[#allocation6 + $0x338] sm:$0xff] }
 0x5e3   :  { %4708 = vmatmul.f32.vlgmr.msrb.gmra.mxu1 %v6627_v56  ;;  %4748 = vmatmul.f32.vlgmr.msrb.gmra.mxu3 %v6627_v56  ;;  %v4591_v40 = vld [vmem:[#allocation6 + $0x7f8] sm:$0xff] }
 0x5e4   :  { %4759 = vmatpush.msra.mxu0 %v4404_v57  ;;  %4776 = vmatpush.msra.mxu1 %v4556_v38  ;;  %v4430_v57 = vld [vmem:[#allocation6 + $0x2f0] sm:$0xff] }
 0x5e5   :  { %4799 = vmatpush.msra.mxu2 %v4405_v4  ;;  %4816 = vmatpush.msra.mxu3 %v4557_v23  ;;  %v4582_v38 = vld [vmem:[#allocation6 + $0x7b0] sm:$0xff]  ;;  %v4431_v4 = vld [vmem:[#allocation6 + $0x2f8] sm:$0xff] }
 0x5e6   :  { %4760 = vmatpush.msra.mxu0 %v4396_v19  ;;  %4777 = vmatpush.msra.mxu1 %v4548_v60  ;;  %v4583_v23 = vld [vmem:[#allocation6 + $0x7b8] sm:$0xff]  ;;  %v4422_v19 = vld [vmem:[#allocation6 + $0x2b0] sm:$0xff] }
 0x5e7   :  { %4800 = vmatpush.msra.mxu2 %v4397_v39  ;;  %4817 = vmatpush.msra.mxu3 %v4549_v15  ;;  %v4574_v60 = vld [vmem:[#allocation6 + $0x770] sm:$0xff]  ;;  %v4423_v39 = vld [vmem:[#allocation6 + $0x2b8] sm:$0xff] }
 0x5e8   :  { %4761 = vmatpush.msra.mxu0 %v4388_v22  ;;  %4778 = vmatpush.msra.mxu1 %v4540_v61  ;;  %v4575_v15 = vld [vmem:[#allocation6 + $0x778] sm:$0xff]  ;;  %v4414_v22 = vld [vmem:[#allocation6 + $0x270] sm:$0xff] }
 0x5e9   :  { %4801 = vmatpush.msra.mxu2 %v4389_v34  ;;  %4818 = vmatpush.msra.mxu3 %v4541_v45  ;;  %v4566_v61 = vld [vmem:[#allocation6 + $0x730] sm:$0xff]  ;;  %v4415_v34 = vld [vmem:[#allocation6 + $0x278] sm:$0xff] }
 0x5ea   :  { %4762 = vmatpush.msra.mxu0 %v4380_v18  ;;  %4779 = vmatpush.msra.mxu1 %v4532_v32  ;;  %v4567_v45 = vld [vmem:[#allocation6 + $0x738] sm:$0xff]  ;;  %v4406_v18 = vld [vmem:[#allocation6 + $0x230] sm:$0xff] }
 0x5eb   :  { %4802 = vmatpush.msra.mxu2 %v4381_v47  ;;  %4819 = vmatpush.msra.mxu3 %v4533_v49  ;;  %v4558_v32 = vld [vmem:[#allocation6 + $0x6f0] sm:$0xff]  ;;  %v4407_v47 = vld [vmem:[#allocation6 + $0x238] sm:$0xff] }
 0x5ec   :  { %4763 = vmatpush.msra.mxu0 %v4372_v54  ;;  %4780 = vmatpush.msra.mxu1 %v4524_v36  ;;  %v4559_v49 = vld [vmem:[#allocation6 + $0x6f8] sm:$0xff]  ;;  %v4398_v54 = vld [vmem:[#allocation6 + $0x1f0] sm:$0xff] }
 0x5ed   :  { %4803 = vmatpush.msra.mxu2 %v4373_v3  ;;  %4820 = vmatpush.msra.mxu3 %v4525_v58  ;;  %v4550_v36 = vld [vmem:[#allocation6 + $0x6b0] sm:$0xff]  ;;  %v4399_v3 = vld [vmem:[#allocation6 + $0x1f8] sm:$0xff] }
 0x5ee   :  { %4764 = vmatpush.msra.mxu0 %v4364_v0  ;;  %4781 = vmatpush.msra.mxu1 %v4516_v13  ;;  %v4551_v58 = vld [vmem:[#allocation6 + $0x6b8] sm:$0xff]  ;;  %v4390_v0 = vld [vmem:[#allocation6 + $0x1b0] sm:$0xff] }
 0x5ef   :  { %4804 = vmatpush.msra.mxu2 %v4365_v55  ;;  %4821 = vmatpush.msra.mxu3 %v4517_v53  ;;  %v4542_v13 = vld [vmem:[#allocation6 + $0x670] sm:$0xff]  ;;  %v4391_v55 = vld [vmem:[#allocation6 + $0x1b8] sm:$0xff] }
 0x5f0   :  { %4765 = vmatpush.msra.mxu0 %v4356_v51  ;;  %4782 = vmatpush.msra.mxu1 %v4508_v44  ;;  %v4543_v53 = vld [vmem:[#allocation6 + $0x678] sm:$0xff]  ;;  %v4382_v51 = vld [vmem:[#allocation6 + $0x170] sm:$0xff] }
 0x5f1   :  { %4805 = vmatpush.msra.mxu2 %v4357_v31  ;;  %4822 = vmatpush.msra.mxu3 %v4509_v28  ;;  %v4534_v44 = vld [vmem:[#allocation6 + $0x630] sm:$0xff]  ;;  %v4383_v31 = vld [vmem:[#allocation6 + $0x178] sm:$0xff] }
 0x5f2   :  { %4766 = vmatpush.msra.mxu0 %v4348_v2  ;;  %4783 = vmatpush.msra.mxu1 %v4500_v43  ;;  %v4535_v28 = vld [vmem:[#allocation6 + $0x638] sm:$0xff]  ;;  %v4374_v2 = vld [vmem:[#allocation6 + $0x130] sm:$0xff] }
 0x5f3   :  { %4806 = vmatpush.msra.mxu2 %v4349_v24  ;;  %4823 = vmatpush.msra.mxu3 %v4501_v33  ;;  %v4526_v43 = vld [vmem:[#allocation6 + $0x5f0] sm:$0xff]  ;;  %v4375_v24 = vld [vmem:[#allocation6 + $0x138] sm:$0xff] }
 0x5f4   :  { %4767 = vmatpush.msra.mxu0 %v4340_v5  ;;  %4784 = vmatpush.msra.mxu1 %v4492_v46  ;;  %v4527_v33 = vld [vmem:[#allocation6 + $0x5f8] sm:$0xff]  ;;  %v4366_v5 = vld [vmem:[#allocation6 + $0xf0] sm:$0xff] }
 0x5f5   :  { %4807 = vmatpush.msra.mxu2 %v4341_v21  ;;  %4824 = vmatpush.msra.mxu3 %v4493_v1  ;;  %v4518_v46 = vld [vmem:[#allocation6 + $0x5b0] sm:$0xff]  ;;  %v4367_v21 = vld [vmem:[#allocation6 + $0xf8] sm:$0xff] }
 0x5f6   :  { %4768 = vmatmul.f32.vlgmr.msra.gmra.mxu0 %v6622_v16  ;;  %4808 = vmatmul.f32.vlgmr.msra.gmra.mxu2 %v6622_v16  ;;  %v4519_v1 = vld [vmem:[#allocation6 + $0x5b8] sm:$0xff] }
 0x5f7   :  { %4832 = vmatpush.msrb.mxu0 %v4462_v42  ;;  %4872 = vmatpush.msrb.mxu2 %v4463_v9  ;;  %v4358_v42 = vld [vmem:[#allocation6 + $0xb0] sm:$0xff] }
 0x5f8   :  { %4785 = vmatpush.msra.mxu1 %v4484_v37  ;;  %4825 = vmatpush.msra.mxu3 %v4485_v35  ;;  %v4510_v9 = vld [vmem:[#allocation6 + $0x570] sm:$0xff]  ;;  %v4359_v37 = vld [vmem:[#allocation6 + $0xb8] sm:$0xff] }
 0x5f9   :  { %4833 = vmatpush.msrb.mxu0 %v4454_v50  ;;  %4873 = vmatpush.msrb.mxu2 %v4455_v48  ;;  %v4511_v35 = vld [vmem:[#allocation6 + $0x578] sm:$0xff]  ;;  %v4350_v50 = vld [vmem:[#allocation6 + $0x70] sm:$0xff] }
 0x5fa   :  { %4786 = vmatpush.msra.mxu1 %v4476_v14  ;;  %4826 = vmatpush.msra.mxu3 %v4477_v20  ;;  %v4502_v48 = vld [vmem:[#allocation6 + $0x530] sm:$0xff]  ;;  %v4351_v14 = vld [vmem:[#allocation6 + $0x78] sm:$0xff] }
 0x5fb   :  { %4834 = vmatpush.msrb.mxu0 %v4446_v6  ;;  %4874 = vmatpush.msrb.mxu2 %v4447_v30  ;;  %v4503_v20 = vld [vmem:[#allocation6 + $0x538] sm:$0xff]  ;;  %v4342_v6 = vld [vmem:[#allocation6 + $0x30] sm:$0xff] }
 0x5fc   :  { %4787 = vmatpush.msra.mxu1 %v4468_v41  ;;  %4827 = vmatpush.msra.mxu3 %v4469_v52  ;;  %v4494_v30 = vld [vmem:[#allocation6 + $0x4f0] sm:$0xff]  ;;  %v4343_v41 = vld [vmem:[#allocation6 + $0x38] sm:$0xff] }
 0x5fd   :  { %4788 = vmatmul.f32.vlgmr.msra.gmra.mxu1 %v6627_v56  ;;  %4828 = vmatmul.f32.vlgmr.msra.gmra.mxu3 %v6627_v56  ;;  %v4495_v52 = vld [vmem:[#allocation6 + $0x4f8] sm:$0xff] }
 0x5fe   :  { %4835 = vmatpush.msrb.mxu0 %v4438_v25  ;;  %4852 = vmatpush.msrb.mxu1 %v4590_v29  ;;  %v4486_v25 = vld [vmem:[#allocation6 + $0x4b0] sm:$0xff]  ;;  %v4487_v29 = vld [vmem:[#allocation6 + $0x4b8] sm:$0xff] }
 0x5ff   :  { %4875 = vmatpush.msrb.mxu2 %v4439_v12  ;;  %4892 = vmatpush.msrb.mxu3 %v4591_v40  ;;  %v4478_v12 = vld [vmem:[#allocation6 + $0x470] sm:$0xff]  ;;  %v4479_v40 = vld [vmem:[#allocation6 + $0x478] sm:$0xff] }
 0x600   :  { %4836 = vmatpush.msrb.mxu0 %v4430_v57  ;;  %4853 = vmatpush.msrb.mxu1 %v4582_v38  ;;  %v4470_v57 = vld [vmem:[#allocation6 + $0x430] sm:$0xff]  ;;  %v4471_v38 = vld [vmem:[#allocation6 + $0x438] sm:$0xff] }
 0x601   :  { %4876 = vmatpush.msrb.mxu2 %v4431_v4  ;;  %4893 = vmatpush.msrb.mxu3 %v4583_v23  ;;  %v5090_v4 = vld [vmem:[#allocation6 + $0x3c0] sm:$0xff]  ;;  %v5091_v23 = vld [vmem:[#allocation6 + $0x3c8] sm:$0xff] }
 0x602   :  { %4837 = vmatpush.msrb.mxu0 %v4422_v19  ;;  %4854 = vmatpush.msrb.mxu1 %v4574_v60  ;;  %v5082_v19 = vld [vmem:[#allocation6 + $0x380] sm:$0xff] }
 0x603   :  { %4877 = vmatpush.msrb.mxu2 %v4423_v39  ;;  %4894 = vmatpush.msrb.mxu3 %v4575_v15  ;;  %v5074_v60 = vld [vmem:[#allocation6 + $0x340] sm:$0xff]  ;;  %v5075_v39 = vld [vmem:[#allocation6 + $0x348] sm:$0xff] }
 0x604   :  { %4838 = vmatpush.msrb.mxu0 %v4414_v22  ;;  %4855 = vmatpush.msrb.mxu1 %v4566_v61  ;;  %v5066_v15 = vld [vmem:[#allocation6 + $0x300] sm:$0xff]  ;;  %v5067_v61 = vld [vmem:[#allocation6 + $0x308] sm:$0xff] }
 0x605   :  { %4878 = vmatpush.msrb.mxu2 %v4415_v34  ;;  %4895 = vmatpush.msrb.mxu3 %v4567_v45  ;;  %v5218_v22 = vld [vmem:[#allocation6 + $0x7c0] sm:$0xff]  ;;  %v5219_v34 = vld [vmem:[#allocation6 + $0x7c8] sm:$0xff] }
 0x606   :  { %4839 = vmatpush.msrb.mxu0 %v4406_v18  ;;  %4856 = vmatpush.msrb.mxu1 %v4558_v32  ;;  %v5210_v45 = vld [vmem:[#allocation6 + $0x780] sm:$0xff]  ;;  %v5059_v18 = vld [vmem:[#allocation6 + $0x2c8] sm:$0xff] }
 0x607   :  { %4879 = vmatpush.msrb.mxu2 %v4407_v47  ;;  %4896 = vmatpush.msrb.mxu3 %v4559_v49  ;;  %v5211_v32 = vld [vmem:[#allocation6 + $0x788] sm:$0xff]  ;;  %v5050_v47 = vld [vmem:[#allocation6 + $0x280] sm:$0xff] }
 0x608   :  { %4840 = vmatpush.msrb.mxu0 %v4398_v54  ;;  %4857 = vmatpush.msrb.mxu1 %v4550_v36  ;;  %v5202_v49 = vld [vmem:[#allocation6 + $0x740] sm:$0xff]  ;;  %v5051_v54 = vld [vmem:[#allocation6 + $0x288] sm:$0xff] }
 0x609   :  { %4880 = vmatpush.msrb.mxu2 %v4399_v3  ;;  %4897 = vmatpush.msrb.mxu3 %v4551_v58  ;;  %v5203_v36 = vld [vmem:[#allocation6 + $0x748] sm:$0xff]  ;;  %v5042_v3 = vld [vmem:[#allocation6 + $0x240] sm:$0xff] }
 0x60a   :  { %4841 = vmatpush.msrb.mxu0 %v4390_v0  ;;  %4858 = vmatpush.msrb.mxu1 %v4542_v13  ;;  %v5194_v58 = vld [vmem:[#allocation6 + $0x700] sm:$0xff]  ;;  %v5043_v0 = vld [vmem:[#allocation6 + $0x248] sm:$0xff] }
 0x60b   :  { %4881 = vmatpush.msrb.mxu2 %v4391_v55  ;;  %4898 = vmatpush.msrb.mxu3 %v4543_v53  ;;  %v5195_v13 = vld [vmem:[#allocation6 + $0x708] sm:$0xff]  ;;  %v5034_v55 = vld [vmem:[#allocation6 + $0x200] sm:$0xff] }
 0x60c   :  { %4842 = vmatpush.msrb.mxu0 %v4382_v51  ;;  %4859 = vmatpush.msrb.mxu1 %v4534_v44  ;;  %v5186_v53 = vld [vmem:[#allocation6 + $0x6c0] sm:$0xff]  ;;  %v5035_v51 = vld [vmem:[#allocation6 + $0x208] sm:$0xff] }
 0x60d   :  { %4882 = vmatpush.msrb.mxu2 %v4383_v31  ;;  %4899 = vmatpush.msrb.mxu3 %v4535_v28  ;;  %v5187_v44 = vld [vmem:[#allocation6 + $0x6c8] sm:$0xff]  ;;  %v5026_v31 = vld [vmem:[#allocation6 + $0x1c0] sm:$0xff] }
 0x60e   :  { %4843 = vmatpush.msrb.mxu0 %v4374_v2  ;;  %4860 = vmatpush.msrb.mxu1 %v4526_v43  ;;  %v5178_v28 = vld [vmem:[#allocation6 + $0x680] sm:$0xff]  ;;  %v5027_v2 = vld [vmem:[#allocation6 + $0x1c8] sm:$0xff] }
 0x60f   :  { %4883 = vmatpush.msrb.mxu2 %v4375_v24  ;;  %4900 = vmatpush.msrb.mxu3 %v4527_v33  ;;  %v5179_v43 = vld [vmem:[#allocation6 + $0x688] sm:$0xff]  ;;  %v5018_v24 = vld [vmem:[#allocation6 + $0x180] sm:$0xff] }
 0x610   :  { %4844 = vmatpush.msrb.mxu0 %v4366_v5  ;;  %4861 = vmatpush.msrb.mxu1 %v4518_v46  ;;  %v5170_v33 = vld [vmem:[#allocation6 + $0x640] sm:$0xff]  ;;  %v5019_v5 = vld [vmem:[#allocation6 + $0x188] sm:$0xff] }
 0x611   :  { %4884 = vmatpush.msrb.mxu2 %v4367_v21  ;;  %4901 = vmatpush.msrb.mxu3 %v4519_v1  ;;  %v5171_v46 = vld [vmem:[#allocation6 + $0x648] sm:$0xff]  ;;  %v5010_v21 = vld [vmem:[#allocation6 + $0x140] sm:$0xff] }
 0x612   :  { %4845 = vmatpush.msrb.mxu0 %v4358_v42  ;;  %4862 = vmatpush.msrb.mxu1 %v4510_v9  ;;  %v5162_v1 = vld [vmem:[#allocation6 + $0x600] sm:$0xff]  ;;  %v5011_v42 = vld [vmem:[#allocation6 + $0x148] sm:$0xff] }
 0x613   :  { %4885 = vmatpush.msrb.mxu2 %v4359_v37  ;;  %4902 = vmatpush.msrb.mxu3 %v4511_v35  ;;  %v5163_v9 = vld [vmem:[#allocation6 + $0x608] sm:$0xff]  ;;  %v5002_v37 = vld [vmem:[#allocation6 + $0x100] sm:$0xff] }
 0x614   :  { %4846 = vmatpush.msrb.mxu0 %v4350_v50  ;;  %4863 = vmatpush.msrb.mxu1 %v4502_v48  ;;  %v5154_v35 = vld [vmem:[#allocation6 + $0x5c0] sm:$0xff]  ;;  %v5003_v50 = vld [vmem:[#allocation6 + $0x108] sm:$0xff] }
 0x615   :  { %4886 = vmatpush.msrb.mxu2 %v4351_v14  ;;  %4903 = vmatpush.msrb.mxu3 %v4503_v20  ;;  %v5155_v48 = vld [vmem:[#allocation6 + $0x5c8] sm:$0xff]  ;;  %v4994_v14 = vld [vmem:[#allocation6 + $0xc0] sm:$0xff] }
 0x616   :  { %4847 = vmatpush.msrb.mxu0 %v4342_v6  ;;  %4864 = vmatpush.msrb.mxu1 %v4494_v30  ;;  %v5146_v20 = vld [vmem:[#allocation6 + $0x580] sm:$0xff]  ;;  %v4995_v6 = vld [vmem:[#allocation6 + $0xc8] sm:$0xff] }
 0x617   :  { %4887 = vmatpush.msrb.mxu2 %v4343_v41  ;;  %4904 = vmatpush.msrb.mxu3 %v4495_v52  ;;  %v5147_v30 = vld [vmem:[#allocation6 + $0x588] sm:$0xff]  ;;  %v4986_v41 = vld [vmem:[#allocation6 + $0x80] sm:$0xff] }
 0x618   :  { %4848 = vmatmul.f32.vlgmr.msrb.gmra.mxu0 %v6622_v16  ;;  %4888 = vmatmul.f32.vlgmr.msrb.gmra.mxu2 %v6622_v16  ;;  %v5083_v16 = vld [vmem:[#allocation6 + $0x388] sm:$0xff]  ;;  %v5138_v52 = vld [vmem:[#allocation6 + $0x540] sm:$0xff] }
 0x619   :  { %4865 = vmatpush.msrb.mxu1 %v4486_v25  ;;  %4905 = vmatpush.msrb.mxu3 %v4487_v29  ;;  %v4987_v25 = vld [vmem:[#allocation6 + $0x88] sm:$0xff] }
 0x61a   :  { %5226 = vmatpush.msra.mxu0 %v5090_v4  ;;  %5266 = vmatpush.msra.mxu2 %v5091_v23  ;;  %v5139_v29 = vld [vmem:[#allocation6 + $0x548] sm:$0xff]  ;;  %v4970_v4 = vld [vmem:[#allocation6] sm:$0xff] }
 0x61b   :  { %4866 = vmatpush.msrb.mxu1 %v4478_v12  ;;  %4906 = vmatpush.msrb.mxu3 %v4479_v40  ;;  %v4978_v12 = vld [vmem:[#allocation6 + $0x40] sm:$0xff] }
 0x61c   :  { %5227 = vmatpush.msra.mxu0 %v5082_v19  ;;  %5267 = vmatpush.msra.mxu2 %v5083_v16  ;;  %v5130_v40 = vld [vmem:[#allocation6 + $0x500] sm:$0xff]  ;;  %v4971_v19 = vld [vmem:[#allocation6 + $0x8] sm:$0xff] }
 0x61d   :  { %4867 = vmatpush.msrb.mxu1 %v4470_v57  ;;  %4907 = vmatpush.msrb.mxu3 %v4471_v38  ;;  %v4979_v57 = vld [vmem:[#allocation6 + $0x48] sm:$0xff]  ;;  %v5122_v23 = vld [vmem:[#allocation6 + $0x4c0] sm:$0xff] }
 0x61e   :  { %4868 = vmatmul.f32.vlgmr.msrb.gmra.mxu1 %v6627_v56  ;;  %4908 = vmatmul.f32.vlgmr.msrb.gmra.mxu3 %v6627_v56  ;;  %v5058_v56 = vld [vmem:[#allocation6 + $0x2c0] sm:$0xff]  ;;  %v5131_v38 = vld [vmem:[#allocation6 + $0x508] sm:$0xff] }
 0x61f   :  { %5228 = vmatpush.msra.mxu0 %v5074_v60  ;;  %5268 = vmatpush.msra.mxu2 %v5075_v39  ;;  %v5123_v16 = vld [vmem:[#allocation6 + $0x4c8] sm:$0xff]  ;;  %v5092_v60 = vld [vmem:[#allocation6 + $0x3d0] sm:$0xff]  ;;  %v5093_v39 = vld [vmem:[#allocation6 + $0x3d8] sm:$0xff] }
 0x620   :  { %5246 = vmatpush.msra.mxu1 %v5218_v22  ;;  %5286 = vmatpush.msra.mxu3 %v5219_v34  ;;  %v5115_v22 = vld [vmem:[#allocation6 + $0x488] sm:$0xff]  ;;  %v5085_v34 = vld [vmem:[#allocation6 + $0x398] sm:$0xff] }
 0x621   :  { %5229 = vmatpush.msra.mxu0 %v5066_v15  ;;  %5269 = vmatpush.msra.mxu2 %v5067_v61  ;;  %v5114_v15 = vld [vmem:[#allocation6 + $0x480] sm:$0xff]  ;;  %v5084_v61 = vld [vmem:[#allocation6 + $0x390] sm:$0xff] }
 0x622   :  { %5247 = vmatpush.msra.mxu1 %v5210_v45  ;;  %5287 = vmatpush.msra.mxu3 %v5211_v32  ;;  %v5107_v45 = vld [vmem:[#allocation6 + $0x448] sm:$0xff]  ;;  %v5077_v32 = vld [vmem:[#allocation6 + $0x358] sm:$0xff] }
 0x623   :  { %5230 = vmatpush.msra.mxu0 %v5058_v56  ;;  %5270 = vmatpush.msra.mxu2 %v5059_v18  ;;  %v5106_v56 = vld [vmem:[#allocation6 + $0x440] sm:$0xff]  ;;  %v5076_v18 = vld [vmem:[#allocation6 + $0x350] sm:$0xff] }
 0x624   :  { %5248 = vmatpush.msra.mxu1 %v5202_v49  ;;  %5288 = vmatpush.msra.mxu3 %v5203_v36  ;;  %v5099_v49 = vld [vmem:[#allocation6 + $0x408] sm:$0xff]  ;;  %v5220_v36 = vld [vmem:[#allocation6 + $0x7d0] sm:$0xff] }
 0x625   :  { %5231 = vmatpush.msra.mxu0 %v5050_v47  ;;  %5271 = vmatpush.msra.mxu2 %v5051_v54  ;;  %v5098_v47 = vld [vmem:[#allocation6 + $0x400] sm:$0xff]  ;;  %v5068_v54 = vld [vmem:[#allocation6 + $0x310] sm:$0xff] }
 0x626   :  { %5249 = vmatpush.msra.mxu1 %v5194_v58  ;;  %5289 = vmatpush.msra.mxu3 %v5195_v13  ;;  %v5221_v58 = vld [vmem:[#allocation6 + $0x7d8] sm:$0xff]  ;;  %v5212_v13 = vld [vmem:[#allocation6 + $0x790] sm:$0xff] }
 0x627   :  { %5232 = vmatpush.msra.mxu0 %v5042_v3  ;;  %5272 = vmatpush.msra.mxu2 %v5043_v0  ;;  %v5069_v3 = vld [vmem:[#allocation6 + $0x318] sm:$0xff]  ;;  %v5060_v0 = vld [vmem:[#allocation6 + $0x2d0] sm:$0xff] }
 0x628   :  { %5250 = vmatpush.msra.mxu1 %v5186_v53  ;;  %5290 = vmatpush.msra.mxu3 %v5187_v44  ;;  %v5052_v44 = vld [vmem:[#allocation6 + $0x290] sm:$0xff] }
 0x629   :  { %5233 = vmatpush.msra.mxu0 %v5034_v55  ;;  %5273 = vmatpush.msra.mxu2 %v5035_v51  ;;  %v5061_v55 = vld [vmem:[#allocation6 + $0x2d8] sm:$0xff] }
 0x62a   :  { %5251 = vmatpush.msra.mxu1 %v5178_v28  ;;  %5291 = vmatpush.msra.mxu3 %v5179_v43  ;;  %v5213_v51 = vld [vmem:[#allocation6 + $0x798] sm:$0xff] }
 0x62b   :  { %5234 = vmatpush.msra.mxu0 %v5026_v31  ;;  %5274 = vmatpush.msra.mxu2 %v5027_v2  ;;  %v5204_v31 = vld [vmem:[#allocation6 + $0x750] sm:$0xff]  ;;  %v5053_v28 = vld [vmem:[#allocation6 + $0x298] sm:$0xff] }
 0x62c   :  { %5252 = vmatpush.msra.mxu1 %v5170_v33  ;;  %5292 = vmatpush.msra.mxu3 %v5171_v46  ;;  %v5205_v43 = vld [vmem:[#allocation6 + $0x758] sm:$0xff]  ;;  %v5196_v33 = vld [vmem:[#allocation6 + $0x710] sm:$0xff] }
 0x62d   :  { %5235 = vmatpush.msra.mxu0 %v5018_v24  ;;  %5275 = vmatpush.msra.mxu2 %v5019_v5  ;;  %v5044_v24 = vld [vmem:[#allocation6 + $0x250] sm:$0xff]  ;;  %v5045_v5 = vld [vmem:[#allocation6 + $0x258] sm:$0xff] }
 0x62e   :  { %5253 = vmatpush.msra.mxu1 %v5162_v1  ;;  %5293 = vmatpush.msra.mxu3 %v5163_v9  ;;  %v5197_v46 = vld [vmem:[#allocation6 + $0x718] sm:$0xff]  ;;  %v5188_v1 = vld [vmem:[#allocation6 + $0x6d0] sm:$0xff] }
 0x62f   :  { %5236 = vmatpush.msra.mxu0 %v5010_v21  ;;  %5276 = vmatpush.msra.mxu2 %v5011_v42  ;;  %v5036_v21 = vld [vmem:[#allocation6 + $0x210] sm:$0xff]  ;;  %v5037_v42 = vld [vmem:[#allocation6 + $0x218] sm:$0xff] }
 0x630   :  { %5254 = vmatpush.msra.mxu1 %v5154_v35  ;;  %5294 = vmatpush.msra.mxu3 %v5155_v48  ;;  %v5028_v35 = vld [vmem:[#allocation6 + $0x1d0] sm:$0xff]  ;;  %v5029_v48 = vld [vmem:[#allocation6 + $0x1d8] sm:$0xff] }
 0x631   :  { %5237 = vmatpush.msra.mxu0 %v5002_v37  ;;  %5277 = vmatpush.msra.mxu2 %v5003_v50  ;;  %v5189_v37 = vld [vmem:[#allocation6 + $0x6d8] sm:$0xff]  ;;  %v5180_v50 = vld [vmem:[#allocation6 + $0x690] sm:$0xff] }
 0x632   :  { %5255 = vmatpush.msra.mxu1 %v5146_v20  ;;  %5295 = vmatpush.msra.mxu3 %v5147_v30  ;;  %v5181_v20 = vld [vmem:[#allocation6 + $0x698] sm:$0xff]  ;;  %v5172_v30 = vld [vmem:[#allocation6 + $0x650] sm:$0xff] }
 0x633   :  { %5238 = vmatpush.msra.mxu0 %v4994_v14  ;;  %5278 = vmatpush.msra.mxu2 %v4995_v6  ;;  %v5020_v6 = vld [vmem:[#allocation6 + $0x190] sm:$0xff] }
 0x634   :  { %5256 = vmatpush.msra.mxu1 %v5138_v52  ;;  %5296 = vmatpush.msra.mxu3 %v5139_v29  ;;  %v5012_v29 = vld [vmem:[#allocation6 + $0x150] sm:$0xff] }
 0x635   :  { %5239 = vmatpush.msra.mxu0 %v4986_v41  ;;  %5279 = vmatpush.msra.mxu2 %v4987_v25  ;;  %v5021_v41 = vld [vmem:[#allocation6 + $0x198] sm:$0xff] }
 0x636   :  { %5257 = vmatpush.msra.mxu1 %v5130_v40  ;;  %5297 = vmatpush.msra.mxu3 %v5131_v38  ;;  %v5173_v25 = vld [vmem:[#allocation6 + $0x658] sm:$0xff] }
 0x637   :  { %5240 = vmatpush.msra.mxu0 %v4978_v12  ;;  %5280 = vmatpush.msra.mxu2 %v4979_v57  ;;  %v5164_v12 = vld [vmem:[#allocation6 + $0x610] sm:$0xff]  ;;  %v5013_v40 = vld [vmem:[#allocation6 + $0x158] sm:$0xff] }
 0x638   :  { %5258 = vmatpush.msra.mxu1 %v5122_v23  ;;  %5298 = vmatpush.msra.mxu3 %v5123_v16  ;;  %v5165_v38 = vld [vmem:[#allocation6 + $0x618] sm:$0xff]  ;;  %v5004_v23 = vld [vmem:[#allocation6 + $0x110] sm:$0xff] }
 0x639   :  { %5241 = vmatpush.msra.mxu0 %v4970_v4  ;;  %5281 = vmatpush.msra.mxu2 %v4971_v19  ;;  %v5156_v19 = vld [vmem:[#allocation6 + $0x5d0] sm:$0xff]  ;;  %v5005_v16 = vld [vmem:[#allocation6 + $0x118] sm:$0xff] }
 0x63a   :  { %5259 = vmatpush.msra.mxu1 %v5114_v15  ;;  %5299 = vmatpush.msra.mxu3 %v5115_v22 }
 0x63b   :  { %5306 = vmatpush.msrb.mxu0 %v5092_v60  ;;  %5346 = vmatpush.msrb.mxu2 %v5093_v39  ;;  %v5157_v60 = vld [vmem:[#allocation6 + $0x5d8] sm:$0xff]  ;;  %v6757_v39 = vld [vmem:[#allocation21_spill] sm:$0xff] }
 0x63c   :  { %5260 = vmatpush.msra.mxu1 %v5106_v56  ;;  %5300 = vmatpush.msra.mxu3 %v5107_v45  ;;  %v235_v15 = vadd.f32 %v6757_v39, %v6298_v8  ;;  %v4997_v56 = vld [vmem:[#allocation6 + $0xd8] sm:$0xff]  ;;  %v6762_v39 = vld [vmem:[#allocation33_spill] sm:$0xff] }
 0x63d   :  { %5307 = vmatpush.msrb.mxu0 %v5084_v61  ;;  %5347 = vmatpush.msrb.mxu2 %v5085_v34  ;;  %v4996_v61 = vld [vmem:[#allocation6 + $0xd0] sm:$0xff] }
 0x63e   :  { %5261 = vmatpush.msra.mxu1 %v5098_v47  ;;  %5301 = vmatpush.msra.mxu3 %v5099_v49  ;;  %v5148_v34 = vld [vmem:[#allocation6 + $0x590] sm:$0xff] }
 0x63f   :  { %5308 = vmatpush.msrb.mxu0 %v5076_v18  ;;  %5348 = vmatpush.msrb.mxu2 %v5077_v32  ;;  %v5149_v18 = vld [vmem:[#allocation6 + $0x598] sm:$0xff]  ;;  %v6758_v32 = vld [vmem:[#allocation20_spill] sm:$0xff] }
 0x640   :  { %5326 = vmatpush.msrb.mxu1 %v5220_v36  ;;  %5366 = vmatpush.msrb.mxu3 %v5221_v58  ;;  %v153_v47 = vadd.f32 %v6758_v32, %v6301_v17  ;;  %v5140_v36 = vld [vmem:[#allocation6 + $0x550] sm:$0xff] }
 0x641   :  { %5309 = vmatpush.msrb.mxu0 %v5068_v54  ;;  %5349 = vmatpush.msrb.mxu2 %v5069_v3  ;;  %v4988_v54 = vld [vmem:[#allocation6 + $0x90] sm:$0xff]  ;;  %v4989_v3 = vld [vmem:[#allocation6 + $0x98] sm:$0xff] }
 0x642   :  { %5327 = vmatpush.msrb.mxu1 %v5212_v13  ;;  %5367 = vmatpush.msrb.mxu3 %v5213_v51  ;;  %v5132_v51 = vld [vmem:[#allocation6 + $0x510] sm:$0xff] }
 0x643   :  { %5310 = vmatpush.msrb.mxu0 %v5060_v0  ;;  %5350 = vmatpush.msrb.mxu2 %v5061_v55  ;;  %v5141_v0 = vld [vmem:[#allocation6 + $0x558] sm:$0xff] }
 0x644   :  { %5328 = vmatpush.msrb.mxu1 %v5204_v31  ;;  %5368 = vmatpush.msrb.mxu3 %v5205_v43  ;;  %v5133_v31 = vld [vmem:[#allocation6 + $0x518] sm:$0xff] }
 0x645   :  { %5311 = vmatpush.msrb.mxu0 %v5052_v44  ;;  %5351 = vmatpush.msrb.mxu2 %v5053_v28  ;;  %v4981_v44 = vld [vmem:[#allocation6 + $0x58] sm:$0xff] }
 0x646   :  { %5329 = vmatpush.msrb.mxu1 %v5196_v33  ;;  %5369 = vmatpush.msrb.mxu3 %v5197_v46  ;;  %v6759_v28 = vld [vmem:[#allocation15_spill] sm:$0xff]  ;;  %v4972_v33 = vld [vmem:[#allocation6 + $0x10] sm:$0xff] }
 0x647   :  { %5312 = vmatpush.msrb.mxu0 %v5044_v24  ;;  %5352 = vmatpush.msrb.mxu2 %v5045_v5  ;;  %v5124_v5 = vld [vmem:[#allocation6 + $0x4d0] sm:$0xff]  ;;  %v4973_v46 = vld [vmem:[#allocation6 + $0x18] sm:$0xff] }
 0x648   :  { %5330 = vmatpush.msrb.mxu1 %v5188_v1  ;;  %5370 = vmatpush.msrb.mxu3 %v5189_v37  ;;  %v6760_v37 = vld [vmem:[#allocation14_spill] sm:$0xff] }
 0x649   :  { %5313 = vmatpush.msrb.mxu0 %v5036_v21  ;;  %5353 = vmatpush.msrb.mxu2 %v5037_v42  ;;  %v5125_v42 = vld [vmem:[#allocation6 + $0x4d8] sm:$0xff] }
 0x64a   :  { %5331 = vmatpush.msrb.mxu1 %v5180_v50  ;;  %5371 = vmatpush.msrb.mxu3 %v5181_v20 }
 0x64b   :  { %5314 = vmatpush.msrb.mxu0 %v5028_v35  ;;  %5354 = vmatpush.msrb.mxu2 %v5029_v48  ;;  %v179_v35 = vadd.f32 %v6760_v37, %v6313_v10 }
 0x64c   :  { %5332 = vmatpush.msrb.mxu1 %v5172_v30  ;;  %5372 = vmatpush.msrb.mxu3 %v5173_v25  ;;  %v5108_v30 = vld [vmem:[#allocation6 + $0x450] sm:$0xff]  ;;  %v6761_v25 = vld [vmem:[#allocation32_spill] sm:$0xff] }
 0x64d   :  { %5315 = vmatpush.msrb.mxu0 %v5020_v6  ;;  %5355 = vmatpush.msrb.mxu2 %v5021_v41  ;;  %v5109_v41 = vld [vmem:[#allocation6 + $0x458] sm:$0xff] }
 0x64e   :  { %5333 = vmatpush.msrb.mxu1 %v5164_v12  ;;  %5373 = vmatpush.msrb.mxu3 %v5165_v38  ;;  %v5101_v38 = vld [vmem:[#allocation6 + $0x418] sm:$0xff] }
 0x64f   :  { %5316 = vmatpush.msrb.mxu0 %v5012_v29  ;;  %5356 = vmatpush.msrb.mxu2 %v5013_v40  ;;  %v317_v29 = vadd.f32 %v6761_v25, %v6322_v11  ;;  %v4956_v25 = vld [vmem:[#allocation8 + $0x30] sm:$0xff] }
 0x650   :  { %v4609_v2 = vpop.f32.mrf.mxu0  ;;  %5334 = vmatpush.msrb.mxu1 %v5156_v19  ;;  %5374 = vmatpush.msrb.mxu3 %v5157_v60 }
 0x651   :  { %5317 = vmatpush.msrb.mxu0 %v5004_v23  ;;  %5357 = vmatpush.msrb.mxu2 %v5005_v16 }
 0x652   :  { %5335 = vmatpush.msrb.mxu1 %v5148_v34  ;;  %5375 = vmatpush.msrb.mxu3 %v5149_v18 }
 0x653   :  { %5318 = vmatpush.msrb.mxu0 %v4996_v61  ;;  %5358 = vmatpush.msrb.mxu2 %v4997_v56 }
 0x654   :  { %5336 = vmatpush.msrb.mxu1 %v5140_v36  ;;  %5376 = vmatpush.msrb.mxu3 %v5141_v0  ;;  %v6764_v0 = vld [vmem:[#allocation27_spill] sm:$0xff] }
 0x655   :  { %5319 = vmatpush.msrb.mxu0 %v4988_v54  ;;  %5359 = vmatpush.msrb.mxu2 %v4989_v3 }
 0x656   :  { %v6644_v53 = vpop.f32.mrf.mxu1  ;;  %v6648_v14 = vpop.f32.mrf.mxu2  ;;  %5337 = vmatpush.msrb.mxu1 %v5132_v51  ;;  %5377 = vmatpush.msrb.mxu3 %v5133_v31 }
 0x657   :  { %v4630_v22 = vadd.f32 %v6644_v53, %v4609_v2  ;;  %v4980_v53 = vld [vmem:[#allocation6 + $0x50] sm:$0xff]  ;;  %v261_v2 = vadd.f32 %v6759_v28, %v6310_v27  ;;  %5360 = vmatpush.msrb.mxu2 %v4981_v44 }
 0x658   :  { %5320 = vmatpush.msrb.mxu0 %v4980_v53  ;;  %5338 = vmatpush.msrb.mxu1 %v5124_v5 }
 0x659   :  { %v4689_v57 = vpop.f32.mrf.mxu0  ;;  %v4912_v13 = vadd.f32 %v4630_v22, %v153_v47  ;;  %5361 = vmatpush.msrb.mxu2 %v4973_v46  ;;  %5378 = vmatpush.msrb.mxu3 %v5125_v42 }
 0x65a   :  { %5321 = vmatpush.msrb.mxu0 %v4972_v33 }
 0x65b   :  { %v4920_v50 = vmul.f32 0.5, %v4912_v13  ;;  %v425_v13 = vadd.f32 %v6764_v0, %v6337_v7  ;;  %v5038_v0 = vld [vmem:[#allocation6 + $0x220] sm:$0xff] }
 0x65c   :  { %v6646_v9 = vpop.f32.mrf.mxu3 }
 0x65d   :  { %v4670_v43 = vadd.f32 %v6646_v9, %v6648_v14  ;;  %v5116_v9 = vld [vmem:[#allocation6 + $0x490] sm:$0xff]  ;;  %v5117_v14 = vld [vmem:[#allocation6 + $0x498] sm:$0xff] }
 0x65e   :  { %5339 = vmatpush.msrb.mxu1 %v5116_v9  ;;  %5379 = vmatpush.msrb.mxu3 %v5117_v14 }
 0x65f   :  { %v4729_v58 = vpop.f32.mrf.mxu2  ;;  %v4913_v20 = vadd.f32 %v4670_v43, %v179_v35 }
 0x660   :  { %v4709_v52 = vpop.f32.mrf.mxu1  ;;  %5340 = vmatpush.msrb.mxu1 %v5108_v30  ;;  %5380 = vmatpush.msrb.mxu3 %v5109_v41  ;;  %v5094_v41 = vld [vmem:[#allocation6 + $0x3e0] sm:$0xff] }
 0x661   :  { %v4710_v4 = vadd.f32 %v4709_v52, %v4689_v57  ;;  %v5100_v57 = vld [vmem:[#allocation6 + $0x410] sm:$0xff] }
 0x662   :  { %5341 = vmatpush.msrb.mxu1 %v5100_v57  ;;  %5381 = vmatpush.msrb.mxu3 %v5101_v38  ;;  %v5078_v57 = vld [vmem:[#allocation6 + $0x360] sm:$0xff]  ;;  %v5079_v38 = vld [vmem:[#allocation6 + $0x368] sm:$0xff] }
 0x663   :  { %v4914_v49 = vadd.f32 %v4710_v4, %v235_v15  ;;  %v4921_v4 = vmul.f32 0.5, %v4913_v20  ;;  %v399_v15 = vadd.f32 %v6762_v39, %v6325_v59  ;;  %v5223_v39 = vld [vmem:[#allocation6 + $0x7e8] sm:$0xff] }
 0x665   :  { %v4922_v24 = vmul.f32 0.5, %v4914_v49 }
 0x666   :  { %v4749_v45 = vpop.f32.mrf.mxu3 }
 0x667   :  { %v4750_v55 = vadd.f32 %v4749_v45, %v4729_v58  ;;  %5815 = vtanh.f32 %v4922_v24  ;;  %v6763_v45 = vld [vmem:[#allocation26_spill] sm:$0xff] }
 0x668   :  { %5817 = vtanh.f32 %v4920_v50  ;;  %v343_v18 = vadd.f32 %v6763_v45, %v6332_v62  ;;  %v5215_v45 = vld [vmem:[#allocation6 + $0x7a8] sm:$0xff] }
 0x669   :  { %v4915_v48 = vadd.f32 %v4750_v55, %v261_v2 }
 0x66b   :  { %v4923_v52 = vmul.f32 0.5, %v4915_v48 }
 0x66d   :  { %v5816_v60 = vpop.eup %5815  ;;  %5819 = vtanh.f32 %v4923_v52  ;;  %v5095_v52 = vld [vmem:[#allocation6 + $0x3e8] sm:$0xff] }
 0x66e   :  { %v5818_v34 = vpop.eup %5817  ;;  %5821 = vtanh.f32 %v4921_v4  ;;  %v4934_v32 = vadd.f32 1.0, %v5816_v60  ;;  %v5071_v60 = vld [vmem:[#allocation6 + $0x328] sm:$0xff] }
 0x66f   :  { %v4932_v49 = vadd.f32 1.0, %v5818_v34  ;;  %v5214_v34 = vld [vmem:[#allocation6 + $0x7a0] sm:$0xff] }
 0x670   :  { %v4940_v53 = vmul.f32 0.5, %v4934_v32  ;;  %v5206_v32 = vld [vmem:[#allocation6 + $0x760] sm:$0xff] }
 0x671   :  { %v4938_v31 = vmul.f32 0.5, %v4932_v49  ;;  %v5207_v49 = vld [vmem:[#allocation6 + $0x768] sm:$0xff] }
 0x672   :  { %v4946_v33 = vmul.f32 %v4940_v53, %v6615_v63  ;;  %v5191_v53 = vld [vmem:[#allocation6 + $0x6e8] sm:$0xff] }
 0x673   :  { %v4769_v21 = vpop.f32.mrf.mxu0  ;;  %v5820_v58 = vpop.eup %5819 }
 0x674   :  { %v5822_v51 = vpop.eup %5821  ;;  %v4935_v28 = vadd.f32 1.0, %v5820_v58  ;;  %v5199_v58 = vld [vmem:[#allocation6 + $0x728] sm:$0xff] }
 0x675   :  { %v4933_v24 = vadd.f32 1.0, %v5822_v51  ;;  %v5030_v51 = vld [vmem:[#allocation6 + $0x1e0] sm:$0xff] }
 0x677   :  { %v4939_v42 = vmul.f32 0.5, %v4933_v24  ;;  %v5023_v24 = vld [vmem:[#allocation6 + $0x1a8] sm:$0xff] }
 0x679   :  { %v4809_v12 = vpop.f32.mrf.mxu2 }
 0x67a   :  { %v4789_v1 = vpop.f32.mrf.mxu1 }
 0x67b   :  { %v4790_v6 = vadd.f32 %v4789_v1, %v4769_v21  ;;  %v4941_v21 = vmul.f32 0.5, %v4935_v28  ;;  %v5183_v28 = vld [vmem:[#allocation6 + $0x6a8] sm:$0xff] }
 0x67d   :  { %v4916_v23 = vadd.f32 %v4790_v6, %v317_v29  ;;  %v4947_v50 = vmul.f32 %v4941_v21, %v6619_v26  ;;  %v5086_v29 = vld [vmem:[#allocation6 + $0x3a0] sm:$0xff]  ;;  %v5087_v26 = vld [vmem:[#allocation6 + $0x3a8] sm:$0xff] }
 0x67e   :  { %v5015_v21 = vld [vmem:[#allocation6 + $0x168] sm:$0xff] }
 0x67f   :  { %v4924_v47 = vmul.f32 0.5, %v4916_v23 }
 0x680   :  { %v4829_v40 = vpop.f32.mrf.mxu3 }
 0x681   :  { %v4830_v61 = vadd.f32 %v4829_v40, %v4809_v12 }
 0x683   :  { %v4917_v54 = vadd.f32 %v4830_v61, %v343_v18  ;;  %v5062_v61 = vld [vmem:[#allocation6 + $0x2e0] sm:$0xff] }
 0x684   :  { %v5054_v18 = vld [vmem:[#allocation6 + $0x2a0] sm:$0xff] }
 0x685   :  { %v4925_v2 = vmul.f32 0.5, %v4917_v54  ;;  %v5046_v54 = vld [vmem:[#allocation6 + $0x260] sm:$0xff] }
 0x695   :  { %v4849_v19 = vpop.f32.mrf.mxu0 }
 0x69b   :  { %v4869_v16 = vpop.f32.mrf.mxu1  ;;  %v4889_v36 = vpop.f32.mrf.mxu2 }
 0x69c   :  { %v4870_v22 = vadd.f32 %v4869_v16, %v4849_v19  ;;  %v5070_v19 = vld [vmem:[#allocation6 + $0x320] sm:$0xff] }
 0x69d   :  { %v5222_v16 = vld [vmem:[#allocation6 + $0x7e0] sm:$0xff] }
 0x69e   :  { %v4918_v56 = vadd.f32 %v4870_v22, %v399_v15  ;;  %v4959_v15 = vld [vmem:[#allocation8 + $0x8] sm:$0xff] }
 0x6a0   :  { %5823 = vtanh.f32 %v4918_v56  ;;  %v5063_v56 = vld [vmem:[#allocation6 + $0x2e8] sm:$0xff] }
 0x6a1   :  { %v4909_v3 = vpop.f32.mrf.mxu3  ;;  %5825 = vtanh.f32 %v4924_v47  ;;  %v5055_v47 = vld [vmem:[#allocation6 + $0x2a8] sm:$0xff] }
 0x6a2   :  { %v4910_v55 = vadd.f32 %v4909_v3, %v4889_v36  ;;  %v5198_v36 = vld [vmem:[#allocation6 + $0x720] sm:$0xff]  ;;  %v5047_v3 = vld [vmem:[#allocation6 + $0x268] sm:$0xff] }
 0x6a4   :  { %v4919_v44 = vadd.f32 %v4910_v55, %v425_v13  ;;  %v5190_v13 = vld [vmem:[#allocation6 + $0x6e0] sm:$0xff]  ;;  %v5039_v55 = vld [vmem:[#allocation6 + $0x228] sm:$0xff] }
 0x6a6   :  { %v5824_v43 = vpop.eup %5823  ;;  %5827 = vtanh.f32 %v4919_v44  ;;  %v5182_v44 = vld [vmem:[#allocation6 + $0x6a0] sm:$0xff] }
 0x6a7   :  { %v4948_v5 = vmul.f32 %v5824_v43, %v4938_v31  ;;  %v5826_v46 = vpop.eup %5825  ;;  %5829 = vtanh.f32 %v4925_v2  ;;  %v5031_v31 = vld [vmem:[#allocation6 + $0x1e8] sm:$0xff]  ;;  %v5022_v2 = vld [vmem:[#allocation6 + $0x1a0] sm:$0xff] }
 0x6a8   :  { %v4936_v35 = vadd.f32 1.0, %v5826_v46  ;;  %v5174_v43 = vld [vmem:[#allocation6 + $0x660] sm:$0xff] }
 0x6a9   :  { %v6670_v1 = vadd.f32 %v4948_v5, %v4946_v33  ;;  %v5175_v33 = vld [vmem:[#allocation6 + $0x668] sm:$0xff]  ;;  %v5014_v5 = vld [vmem:[#allocation6 + $0x160] sm:$0xff] }
 0x6aa   :  { %v4942_v20 = vmul.f32 0.5, %v4936_v35  ;;  %v5166_v46 = vld [vmem:[#allocation6 + $0x620] sm:$0xff] }
 0x6ab   :  { %5831 = vtanh.f32 %v6670_v1  ;;  %v5158_v35 = vld [vmem:[#allocation6 + $0x5e0] sm:$0xff] }
 0x6ac   :  { %v5828_v37 = vpop.eup %5827 }
 0x6ad   :  { %v4949_v48 = vmul.f32 %v5828_v37, %v4939_v42  ;;  %v5830_v9 = vpop.eup %5829  ;;  %v5167_v42 = vld [vmem:[#allocation6 + $0x628] sm:$0xff]  ;;  %v5006_v37 = vld [vmem:[#allocation6 + $0x120] sm:$0xff] }
 0x6ae   :  { %v4937_v63 = vadd.f32 1.0, %v5830_v9  ;;  %v4998_v9 = vld [vmem:[#allocation6 + $0xe0] sm:$0xff] }
 0x6af   :  { %v6674_v14 = vadd.f32 %v4949_v48, %v4947_v50  ;;  %v5007_v50 = vld [vmem:[#allocation6 + $0x128] sm:$0xff] }
 0x6b0   :  { %v4943_v40 = vmul.f32 0.5, %v4937_v63  ;;  %v5159_v48 = vld [vmem:[#allocation6 + $0x5e8] sm:$0xff] }
 0x6b1   :  { %v5832_v6 = vpop.eup %5831  ;;  %5833 = vtanh.f32 %v6674_v14  ;;  %v5151_v63 = vld [vmem:[#allocation6 + $0x5a8] sm:$0xff] }
 0x6b2   :  { %v6677_v30 = vmul.f32 %v5832_v6, %v4942_v20  ;;  %v5150_v20 = vld [vmem:[#allocation6 + $0x5a0] sm:$0xff]  ;;  %v4999_v6 = vld [vmem:[#allocation6 + $0xe8] sm:$0xff] }
 0x6b4   :  { %5242 = vmatmul.f32.vlgmr.msra.gmra.mxu0 %v6677_v30  ;;  %5282 = vmatmul.f32.vlgmr.msra.gmra.mxu2 %v6677_v30  ;;  %v4957_v12 = vadd.f32 %v4956_v25, %v6677_v30  ;;  %v4991_v25 = vld [vmem:[#allocation6 + $0xa8] sm:$0xff] }
 0x6b5   :  { %5386 = vmatpush.msra.mxu0 %v5094_v41  ;;  %5426 = vmatpush.msra.mxu2 %v5095_v52  ;;  %v4990_v41 = vld [vmem:[#allocation6 + $0xa0] sm:$0xff] }
 0x6b6   :  { %4958 = vst [vmem:[#allocation8 + $0x30] sm:$0xff] %v4957_v12  ;;  %v5142_v52 = vld [vmem:[#allocation6 + $0x560] sm:$0xff] }
 0x6b7   :  { %v5834_v4 = vpop.eup %5833  ;;  %5387 = vmatpush.msra.mxu0 %v5086_v29  ;;  %5427 = vmatpush.msra.mxu2 %v5087_v26  ;;  %v5143_v29 = vld [vmem:[#allocation6 + $0x568] sm:$0xff]  ;;  %v4982_v26 = vld [vmem:[#allocation6 + $0x60] sm:$0xff] }
 0x6b8   :  { %v6682_v23 = vmul.f32 %v5834_v4, %v4943_v40  ;;  %v5134_v12 = vld [vmem:[#allocation6 + $0x520] sm:$0xff]  ;;  %v4983_v40 = vld [vmem:[#allocation6 + $0x68] sm:$0xff] }
 0x6b9   :  { %5388 = vmatpush.msra.mxu0 %v5078_v57  ;;  %5428 = vmatpush.msra.mxu2 %v5079_v38  ;;  %v5135_v57 = vld [vmem:[#allocation6 + $0x528] sm:$0xff]  ;;  %v4974_v38 = vld [vmem:[#allocation6 + $0x20] sm:$0xff] }
 0x6ba   :  { %5262 = vmatmul.f32.vlgmr.msra.gmra.mxu1 %v6682_v23  ;;  %5302 = vmatmul.f32.vlgmr.msra.gmra.mxu3 %v6682_v23  ;;  %v4960_v22 = vadd.f32 %v4959_v15, %v6682_v23  ;;  %v5126_v4 = vld [vmem:[#allocation6 + $0x4e0] sm:$0xff] }
 0x6bb   :  { %5389 = vmatpush.msra.mxu0 %v5070_v19  ;;  %5406 = vmatpush.msra.mxu1 %v5222_v16  ;;  %v4975_v19 = vld [vmem:[#allocation6 + $0x28] sm:$0xff]  ;;  %v5118_v15 = vld [vmem:[#allocation6 + $0x4a0] sm:$0xff] }
 0x6bc   :  { %5429 = vmatpush.msra.mxu2 %v5071_v60  ;;  %5446 = vmatpush.msra.mxu3 %v5223_v39  ;;  %4961 = vst [vmem:[#allocation8 + $0x8] sm:$0xff] %v4960_v22  ;;  %v5127_v16 = vld [vmem:[#allocation6 + $0x4e8] sm:$0xff]  ;;  %v5096_v60 = vld [vmem:[#allocation6 + $0x3f0] sm:$0xff]  ;;  %v5097_v39 = vld [vmem:[#allocation6 + $0x3f8] sm:$0xff] }
 0x6bd   :  { %5322 = vmatmul.f32.vlgmr.msrb.gmra.mxu0 %v6677_v30  ;;  %5362 = vmatmul.f32.vlgmr.msrb.gmra.mxu2 %v6677_v30  ;;  %v5119_v22 = vld [vmem:[#allocation6 + $0x4a8] sm:$0xff] }
 0x6be   :  { %5390 = vmatpush.msra.mxu0 %v5062_v61  ;;  %5407 = vmatpush.msra.mxu1 %v5214_v34  ;;  %v5088_v61 = vld [vmem:[#allocation6 + $0x3b0] sm:$0xff]  ;;  %v5089_v34 = vld [vmem:[#allocation6 + $0x3b8] sm:$0xff] }
 0x6bf   :  { %5430 = vmatpush.msra.mxu2 %v5063_v56  ;;  %5447 = vmatpush.msra.mxu3 %v5215_v45  ;;  %v5110_v56 = vld [vmem:[#allocation6 + $0x460] sm:$0xff]  ;;  %v5111_v45 = vld [vmem:[#allocation6 + $0x468] sm:$0xff] }
 0x6c0   :  { %5391 = vmatpush.msra.mxu0 %v5054_v18  ;;  %5408 = vmatpush.msra.mxu1 %v5206_v32  ;;  %v5080_v18 = vld [vmem:[#allocation6 + $0x370] sm:$0xff]  ;;  %v5081_v32 = vld [vmem:[#allocation6 + $0x378] sm:$0xff] }
 0x6c1   :  { %5431 = vmatpush.msra.mxu2 %v5055_v47  ;;  %5448 = vmatpush.msra.mxu3 %v5207_v49  ;;  %v5102_v47 = vld [vmem:[#allocation6 + $0x420] sm:$0xff]  ;;  %v5103_v49 = vld [vmem:[#allocation6 + $0x428] sm:$0xff] }
 0x6c2   :  { %5392 = vmatpush.msra.mxu0 %v5046_v54  ;;  %5409 = vmatpush.msra.mxu1 %v5198_v36  ;;  %v5072_v54 = vld [vmem:[#allocation6 + $0x330] sm:$0xff] }
 0x6c3   :  { %5432 = vmatpush.msra.mxu2 %v5047_v3  ;;  %5449 = vmatpush.msra.mxu3 %v5199_v58  ;;  %v5224_v36 = vld [vmem:[#allocation6 + $0x7f0] sm:$0xff]  ;;  %v5073_v3 = vld [vmem:[#allocation6 + $0x338] sm:$0xff] }
 0x6c4   :  { %5342 = vmatmul.f32.vlgmr.msrb.gmra.mxu1 %v6682_v23  ;;  %5382 = vmatmul.f32.vlgmr.msrb.gmra.mxu3 %v6682_v23  ;;  %v5225_v58 = vld [vmem:[#allocation6 + $0x7f8] sm:$0xff] }
 0x6c5   :  { %5393 = vmatpush.msra.mxu0 %v5038_v0  ;;  %5410 = vmatpush.msra.mxu1 %v5190_v13  ;;  %v5064_v0 = vld [vmem:[#allocation6 + $0x2f0] sm:$0xff] }
 0x6c6   :  { %5433 = vmatpush.msra.mxu2 %v5039_v55  ;;  %5450 = vmatpush.msra.mxu3 %v5191_v53  ;;  %v5216_v13 = vld [vmem:[#allocation6 + $0x7b0] sm:$0xff]  ;;  %v5065_v55 = vld [vmem:[#allocation6 + $0x2f8] sm:$0xff] }
 0x6c7   :  { %5394 = vmatpush.msra.mxu0 %v5030_v51  ;;  %5411 = vmatpush.msra.mxu1 %v5182_v44  ;;  %v5217_v53 = vld [vmem:[#allocation6 + $0x7b8] sm:$0xff]  ;;  %v5056_v51 = vld [vmem:[#allocation6 + $0x2b0] sm:$0xff] }
 0x6c8   :  { %5434 = vmatpush.msra.mxu2 %v5031_v31  ;;  %5451 = vmatpush.msra.mxu3 %v5183_v28  ;;  %v5208_v44 = vld [vmem:[#allocation6 + $0x770] sm:$0xff]  ;;  %v5057_v31 = vld [vmem:[#allocation6 + $0x2b8] sm:$0xff] }
 0x6c9   :  { %5395 = vmatpush.msra.mxu0 %v5022_v2  ;;  %5412 = vmatpush.msra.mxu1 %v5174_v43  ;;  %v5209_v28 = vld [vmem:[#allocation6 + $0x778] sm:$0xff]  ;;  %v5048_v2 = vld [vmem:[#allocation6 + $0x270] sm:$0xff] }
 0x6ca   :  { %5435 = vmatpush.msra.mxu2 %v5023_v24  ;;  %5452 = vmatpush.msra.mxu3 %v5175_v33  ;;  %v5200_v43 = vld [vmem:[#allocation6 + $0x730] sm:$0xff]  ;;  %v5049_v24 = vld [vmem:[#allocation6 + $0x278] sm:$0xff] }
 0x6cb   :  { %5396 = vmatpush.msra.mxu0 %v5014_v5  ;;  %5413 = vmatpush.msra.mxu1 %v5166_v46  ;;  %v5201_v33 = vld [vmem:[#allocation6 + $0x738] sm:$0xff]  ;;  %v5040_v5 = vld [vmem:[#allocation6 + $0x230] sm:$0xff] }
 0x6cc   :  { %5436 = vmatpush.msra.mxu2 %v5015_v21  ;;  %5453 = vmatpush.msra.mxu3 %v5167_v42  ;;  %v5192_v46 = vld [vmem:[#allocation6 + $0x6f0] sm:$0xff]  ;;  %v5041_v21 = vld [vmem:[#allocation6 + $0x238] sm:$0xff] }
 0x6cd   :  { %5397 = vmatpush.msra.mxu0 %v5006_v37  ;;  %5414 = vmatpush.msra.mxu1 %v5158_v35  ;;  %v5193_v42 = vld [vmem:[#allocation6 + $0x6f8] sm:$0xff]  ;;  %v5032_v37 = vld [vmem:[#allocation6 + $0x1f0] sm:$0xff] }
 0x6ce   :  { %5437 = vmatpush.msra.mxu2 %v5007_v50  ;;  %5454 = vmatpush.msra.mxu3 %v5159_v48  ;;  %v5184_v35 = vld [vmem:[#allocation6 + $0x6b0] sm:$0xff]  ;;  %v5033_v50 = vld [vmem:[#allocation6 + $0x1f8] sm:$0xff] }
 0x6cf   :  { %5398 = vmatpush.msra.mxu0 %v4998_v9  ;;  %5415 = vmatpush.msra.mxu1 %v5150_v20  ;;  %v5185_v48 = vld [vmem:[#allocation6 + $0x6b8] sm:$0xff]  ;;  %v5024_v9 = vld [vmem:[#allocation6 + $0x1b0] sm:$0xff] }
 0x6d0   :  { %5438 = vmatpush.msra.mxu2 %v4999_v6  ;;  %5455 = vmatpush.msra.mxu3 %v5151_v63  ;;  %v5176_v20 = vld [vmem:[#allocation6 + $0x670] sm:$0xff]  ;;  %v5025_v6 = vld [vmem:[#allocation6 + $0x1b8] sm:$0xff] }
 0x6d1   :  { %5399 = vmatpush.msra.mxu0 %v4990_v41  ;;  %5416 = vmatpush.msra.mxu1 %v5142_v52  ;;  %v5177_v63 = vld [vmem:[#allocation6 + $0x678] sm:$0xff]  ;;  %v5016_v41 = vld [vmem:[#allocation6 + $0x170] sm:$0xff] }
 0x6d2   :  { %5439 = vmatpush.msra.mxu2 %v4991_v25  ;;  %5456 = vmatpush.msra.mxu3 %v5143_v29  ;;  %v5168_v52 = vld [vmem:[#allocation6 + $0x630] sm:$0xff]  ;;  %v5017_v25 = vld [vmem:[#allocation6 + $0x178] sm:$0xff] }
 0x6d3   :  { %5400 = vmatpush.msra.mxu0 %v4982_v26  ;;  %5417 = vmatpush.msra.mxu1 %v5134_v12  ;;  %v5169_v29 = vld [vmem:[#allocation6 + $0x638] sm:$0xff]  ;;  %v5008_v26 = vld [vmem:[#allocation6 + $0x130] sm:$0xff] }
 0x6d4   :  { %5440 = vmatpush.msra.mxu2 %v4983_v40  ;;  %5457 = vmatpush.msra.mxu3 %v5135_v57  ;;  %v5160_v12 = vld [vmem:[#allocation6 + $0x5f0] sm:$0xff]  ;;  %v5009_v40 = vld [vmem:[#allocation6 + $0x138] sm:$0xff] }
 0x6d5   :  { %5401 = vmatpush.msra.mxu0 %v4974_v38  ;;  %5418 = vmatpush.msra.mxu1 %v5126_v4  ;;  %v5161_v57 = vld [vmem:[#allocation6 + $0x5f8] sm:$0xff]  ;;  %v5000_v38 = vld [vmem:[#allocation6 + $0xf0] sm:$0xff] }
 0x6d6   :  { %5441 = vmatpush.msra.mxu2 %v4975_v19  ;;  %5458 = vmatpush.msra.mxu3 %v5127_v16  ;;  %v5152_v4 = vld [vmem:[#allocation6 + $0x5b0] sm:$0xff]  ;;  %v5001_v19 = vld [vmem:[#allocation6 + $0xf8] sm:$0xff] }
 0x6d7   :  { %5402 = vmatmul.f32.vlgmr.msra.gmra.mxu0 %v6677_v30  ;;  %5442 = vmatmul.f32.vlgmr.msra.gmra.mxu2 %v6677_v30  ;;  %v5153_v16 = vld [vmem:[#allocation6 + $0x5b8] sm:$0xff] }
 0x6d8   :  { %5466 = vmatpush.msrb.mxu0 %v5096_v60  ;;  %5506 = vmatpush.msrb.mxu2 %v5097_v39  ;;  %v4992_v60 = vld [vmem:[#allocation6 + $0xb0] sm:$0xff] }
 0x6d9   :  { %5419 = vmatpush.msra.mxu1 %v5118_v15  ;;  %5459 = vmatpush.msra.mxu3 %v5119_v22  ;;  %v5144_v39 = vld [vmem:[#allocation6 + $0x570] sm:$0xff]  ;;  %v4993_v15 = vld [vmem:[#allocation6 + $0xb8] sm:$0xff] }
 0x6da   :  { %5467 = vmatpush.msrb.mxu0 %v5088_v61  ;;  %5507 = vmatpush.msrb.mxu2 %v5089_v34  ;;  %v5145_v22 = vld [vmem:[#allocation6 + $0x578] sm:$0xff]  ;;  %v4984_v61 = vld [vmem:[#allocation6 + $0x70] sm:$0xff] }
 0x6db   :  { %5420 = vmatpush.msra.mxu1 %v5110_v56  ;;  %5460 = vmatpush.msra.mxu3 %v5111_v45  ;;  %v5136_v34 = vld [vmem:[#allocation6 + $0x530] sm:$0xff]  ;;  %v4985_v56 = vld [vmem:[#allocation6 + $0x78] sm:$0xff] }
 0x6dc   :  { %5468 = vmatpush.msrb.mxu0 %v5080_v18  ;;  %5508 = vmatpush.msrb.mxu2 %v5081_v32  ;;  %v5137_v45 = vld [vmem:[#allocation6 + $0x538] sm:$0xff]  ;;  %v4976_v18 = vld [vmem:[#allocation6 + $0x30] sm:$0xff] }
 0x6dd   :  { %5421 = vmatpush.msra.mxu1 %v5102_v47  ;;  %5461 = vmatpush.msra.mxu3 %v5103_v49  ;;  %v5128_v32 = vld [vmem:[#allocation6 + $0x4f0] sm:$0xff]  ;;  %v4977_v47 = vld [vmem:[#allocation6 + $0x38] sm:$0xff] }
 0x6de   :  { %5422 = vmatmul.f32.vlgmr.msra.gmra.mxu1 %v6682_v23  ;;  %5462 = vmatmul.f32.vlgmr.msra.gmra.mxu3 %v6682_v23  ;;  %v5129_v49 = vld [vmem:[#allocation6 + $0x4f8] sm:$0xff] }
 0x6df   :  { %5469 = vmatpush.msrb.mxu0 %v5072_v54  ;;  %5486 = vmatpush.msrb.mxu1 %v5224_v36  ;;  %v5120_v54 = vld [vmem:[#allocation6 + $0x4b0] sm:$0xff]  ;;  %v5121_v36 = vld [vmem:[#allocation6 + $0x4b8] sm:$0xff] }
 0x6e0   :  { %5509 = vmatpush.msrb.mxu2 %v5073_v3  ;;  %5526 = vmatpush.msrb.mxu3 %v5225_v58  ;;  %v5112_v3 = vld [vmem:[#allocation6 + $0x470] sm:$0xff]  ;;  %v5113_v58 = vld [vmem:[#allocation6 + $0x478] sm:$0xff] }
 0x6e1   :  { %5470 = vmatpush.msrb.mxu0 %v5064_v0  ;;  %5487 = vmatpush.msrb.mxu1 %v5216_v13  ;;  %v5104_v0 = vld [vmem:[#allocation6 + $0x430] sm:$0xff]  ;;  %v5105_v13 = vld [vmem:[#allocation6 + $0x438] sm:$0xff] }
 0x6e2   :  { %5510 = vmatpush.msrb.mxu2 %v5065_v55  ;;  %5527 = vmatpush.msrb.mxu3 %v5217_v53 }
 0x6e3   :  { %5471 = vmatpush.msrb.mxu0 %v5056_v51  ;;  %5488 = vmatpush.msrb.mxu1 %v5208_v44 }
 0x6e4   :  { %5511 = vmatpush.msrb.mxu2 %v5057_v31  ;;  %5528 = vmatpush.msrb.mxu3 %v5209_v28 }
 0x6e5   :  { %5472 = vmatpush.msrb.mxu0 %v5048_v2  ;;  %5489 = vmatpush.msrb.mxu1 %v5200_v43  ;;  %v6765_v2 = vld [vmem:[#allocation23_spill] sm:$0xff] }
 0x6e6   :  { %5512 = vmatpush.msrb.mxu2 %v5049_v24  ;;  %5529 = vmatpush.msrb.mxu3 %v5201_v33  ;;  %v238_v43 = vadd.f32 %v6765_v2, %v6298_v8 }
 0x6e7   :  { %5473 = vmatpush.msrb.mxu0 %v5040_v5  ;;  %5490 = vmatpush.msrb.mxu1 %v5192_v46  ;;  %v6766_v5 = vld [vmem:[#allocation22_spill] sm:$0xff] }
 0x6e8   :  { %5513 = vmatpush.msrb.mxu2 %v5041_v21  ;;  %5530 = vmatpush.msrb.mxu3 %v5193_v42  ;;  %v156_v46 = vadd.f32 %v6766_v5, %v6301_v17 }
 0x6e9   :  { %5474 = vmatpush.msrb.mxu0 %v5032_v37  ;;  %5491 = vmatpush.msrb.mxu1 %v5184_v35 }
 0x6ea   :  { %5514 = vmatpush.msrb.mxu2 %v5033_v50  ;;  %5531 = vmatpush.msrb.mxu3 %v5185_v48 }
 0x6eb   :  { %5475 = vmatpush.msrb.mxu0 %v5024_v9  ;;  %5492 = vmatpush.msrb.mxu1 %v5176_v20 }
 0x6ec   :  { %5515 = vmatpush.msrb.mxu2 %v5025_v6  ;;  %5532 = vmatpush.msrb.mxu3 %v5177_v63  ;;  %v6768_v63 = vld [vmem:[#allocation12_spill] sm:$0xff] }
 0x6ed   :  { %5476 = vmatpush.msrb.mxu0 %v5016_v41  ;;  %5493 = vmatpush.msrb.mxu1 %v5168_v52  ;;  %v176_v41 = vadd.f32 %v6768_v63, %v6313_v10 }
 0x6ee   :  { %5516 = vmatpush.msrb.mxu2 %v5017_v25  ;;  %5533 = vmatpush.msrb.mxu3 %v5169_v29 }
 0x6ef   :  { %5477 = vmatpush.msrb.mxu0 %v5008_v26  ;;  %5494 = vmatpush.msrb.mxu1 %v5160_v12  ;;  %v6769_v26 = vld [vmem:[#allocation34_spill] sm:$0xff] }
 0x6f0   :  { %5517 = vmatpush.msrb.mxu2 %v5009_v40  ;;  %5534 = vmatpush.msrb.mxu3 %v5161_v57  ;;  %v320_v12 = vadd.f32 %v6769_v26, %v6322_v11 }
 0x6f1   :  { %5478 = vmatpush.msrb.mxu0 %v5000_v38  ;;  %5495 = vmatpush.msrb.mxu1 %v5152_v4 }
 0x6f2   :  { %5518 = vmatpush.msrb.mxu2 %v5001_v19  ;;  %5535 = vmatpush.msrb.mxu3 %v5153_v16 }
 0x6f3   :  { %5479 = vmatpush.msrb.mxu0 %v4992_v60  ;;  %5496 = vmatpush.msrb.mxu1 %v5144_v39  ;;  %v6770_v60 = vld [vmem:[#allocation35_spill] sm:$0xff] }
 0x6f4   :  { %5519 = vmatpush.msrb.mxu2 %v4993_v15  ;;  %5536 = vmatpush.msrb.mxu3 %v5145_v22  ;;  %v402_v10 = vadd.f32 %v6770_v60, %v6325_v59 }
 0x6f5   :  { %5480 = vmatpush.msrb.mxu0 %v4984_v61  ;;  %5497 = vmatpush.msrb.mxu1 %v5136_v34  ;;  %v6771_v34 = vld [vmem:[#allocation24_spill] sm:$0xff] }
 0x6f6   :  { %5520 = vmatpush.msrb.mxu2 %v4985_v56  ;;  %5537 = vmatpush.msrb.mxu3 %v5137_v45  ;;  %v340_v56 = vadd.f32 %v6771_v34, %v6332_v62 }
 0x6f7   :  { %5481 = vmatpush.msrb.mxu0 %v4976_v18  ;;  %5498 = vmatpush.msrb.mxu1 %v5128_v32 }
 0x6f8   :  { %5521 = vmatpush.msrb.mxu2 %v4977_v47  ;;  %5538 = vmatpush.msrb.mxu3 %v5129_v49 }
 0x6f9   :  { %5482 = vmatmul.f32.vlgmr.msrb.gmra.mxu0 %v6677_v30  ;;  %5522 = vmatmul.f32.vlgmr.msrb.gmra.mxu2 %v6677_v30 }
 0x6fa   :  { %5499 = vmatpush.msrb.mxu1 %v5120_v54  ;;  %5539 = vmatpush.msrb.mxu3 %v5121_v36  ;;  %v6772_v36 = vld [vmem:[#allocation25_spill] sm:$0xff] }
 0x6fb   :  { %v422_v59 = vadd.f32 %v6772_v36, %v6337_v7 }
 0x6fc   :  { %5500 = vmatpush.msrb.mxu1 %v5112_v3  ;;  %5540 = vmatpush.msrb.mxu3 %v5113_v58 }
 0x6fe   :  { %5501 = vmatpush.msrb.mxu1 %v5104_v0  ;;  %5541 = vmatpush.msrb.mxu3 %v5105_v13 }
 0x6ff   :  { %5502 = vmatmul.f32.vlgmr.msrb.gmra.mxu1 %v6682_v23  ;;  %5542 = vmatmul.f32.vlgmr.msrb.gmra.mxu3 %v6682_v23  ;;  %v6767_v23 = vld [vmem:[#allocation13_spill] sm:$0xff] }
 0x700   :  { %v258_v50 = vadd.f32 %v6767_v23, %v6310_v27 }
 0x731   :  { %v5243_v53 = vpop.f32.mrf.mxu0 }
 0x737   :  { %v5263_v55 = vpop.f32.mrf.mxu1  ;;  %v5283_v44 = vpop.f32.mrf.mxu2 }
 0x738   :  { %v5264_v24 = vadd.f32 %v5263_v55, %v5243_v53 }
 0x73a   :  { %v5323_v30 = vpop.f32.mrf.mxu0  ;;  %v5546_v37 = vadd.f32 %v5264_v24, %v156_v46 }
 0x73c   :  { %v5554_v8 = vmul.f32 0.5, %v5546_v37 }
 0x73d   :  { %v5303_v51 = vpop.f32.mrf.mxu3 }
 0x73e   :  { %v5304_v48 = vadd.f32 %v5303_v51, %v5283_v44 }
 0x740   :  { %v5363_v42 = vpop.f32.mrf.mxu2  ;;  %v5547_v25 = vadd.f32 %v5304_v48, %v176_v41 }
 0x741   :  { %v5343_v31 = vpop.f32.mrf.mxu1 }
 0x742   :  { %v5344_v28 = vadd.f32 %v5343_v31, %v5323_v30  ;;  %v5555_v27 = vmul.f32 0.5, %v5547_v25 }
 0x744   :  { %v5548_v21 = vadd.f32 %v5344_v28, %v238_v43 }
 0x746   :  { %v5556_v9 = vmul.f32 0.5, %v5548_v21 }
 0x747   :  { %v5383_v33 = vpop.f32.mrf.mxu3 }
 0x748   :  { %v5384_v35 = vadd.f32 %v5383_v33, %v5363_v42  ;;  %5835 = vtanh.f32 %v5556_v9 }
 0x749   :  { %5837 = vtanh.f32 %v5554_v8 }
 0x74a   :  { %v5549_v52 = vadd.f32 %v5384_v35, %v258_v50 }
 0x74c   :  { %v5557_v17 = vmul.f32 0.5, %v5549_v52 }
 0x74e   :  { %v5836_v16 = vpop.eup %5835  ;;  %5839 = vtanh.f32 %v5557_v17 }
 0x74f   :  { %v5838_v22 = vpop.eup %5837  ;;  %5841 = vtanh.f32 %v5555_v27  ;;  %v5568_v11 = vadd.f32 1.0, %v5836_v16 }
 0x750   :  { %v5566_v18 = vadd.f32 1.0, %v5838_v22 }
 0x751   :  { %v5574_v58 = vmul.f32 0.5, %v5568_v11 }
 0x752   :  { %v5572_v55 = vmul.f32 0.5, %v5566_v18 }
 0x753   :  { %v5580_v31 = vmul.f32 %v5574_v58, %v6670_v1  ;;  %v5590_v1 = vld [vmem:[#allocation8 + $0x38] sm:$0xff] }
 0x754   :  { %v5403_v20 = vpop.f32.mrf.mxu0  ;;  %v5840_v54 = vpop.eup %5839 }
 0x755   :  { %v5842_v0 = vpop.eup %5841  ;;  %v5569_v53 = vadd.f32 1.0, %v5840_v54 }
 0x756   :  { %v5567_v44 = vadd.f32 1.0, %v5842_v0 }
 0x757   :  { %v5575_v2 = vmul.f32 0.5, %v5569_v53 }
 0x758   :  { %v5573_v24 = vmul.f32 0.5, %v5567_v44 }
 0x759   :  { %v5581_v5 = vmul.f32 %v5575_v2, %v6674_v14 }
 0x75a   :  { %v5443_v40 = vpop.f32.mrf.mxu2 }
 0x75b   :  { %v5423_v6 = vpop.f32.mrf.mxu1 }
 0x75c   :  { %v5424_v29 = vadd.f32 %v5423_v6, %v5403_v20  ;;  %v5593_v6 = vld [vmem:[#allocation8] sm:$0xff] }
 0x75e   :  { %v5550_v38 = vadd.f32 %v5424_v29, %v320_v12 }
 0x760   :  { %v5558_v45 = vmul.f32 0.5, %v5550_v38 }
 0x761   :  { %v5463_v57 = vpop.f32.mrf.mxu3 }
 0x762   :  { %v5464_v15 = vadd.f32 %v5463_v57, %v5443_v40 }
 0x764   :  { %v5551_v32 = vadd.f32 %v5464_v15, %v340_v56 }
 0x766   :  { %v5559_v51 = vmul.f32 0.5, %v5551_v32 }
 0x776   :  { %v5483_v4 = vpop.f32.mrf.mxu0 }
 0x77c   :  { %v5503_v19 = vpop.f32.mrf.mxu1  ;;  %v5523_v47 = vpop.f32.mrf.mxu2 }
 0x77d   :  { %v5504_v39 = vadd.f32 %v5503_v19, %v5483_v4 }
 0x77f   :  { %v5552_v61 = vadd.f32 %v5504_v39, %v402_v10 }
 0x781   :  { %5843 = vtanh.f32 %v5552_v61 }
 0x782   :  { %v5543_v49 = vpop.f32.mrf.mxu3  ;;  %5845 = vtanh.f32 %v5558_v45 }
 0x783   :  { %v5544_v3 = vadd.f32 %v5543_v49, %v5523_v47 }
 0x785   :  { %v5553_v13 = vadd.f32 %v5544_v3, %v422_v59 }
 0x787   :  { %v5844_v62 = vpop.eup %5843  ;;  %5847 = vtanh.f32 %v5553_v13 }
 0x788   :  { %v5582_v30 = vmul.f32 %v5844_v62, %v5572_v55  ;;  %v5846_v28 = vpop.eup %5845  ;;  %5849 = vtanh.f32 %v5559_v51 }
 0x789   :  { %v5570_v33 = vadd.f32 1.0, %v5846_v28 }
 0x78a   :  { %v5584_v43 = vadd.f32 %v5582_v30, %v5580_v31 }
 0x78b   :  { %v5576_v37 = vmul.f32 0.5, %v5570_v33 }
 0x78c   :  { %5851 = vtanh.f32 %v5584_v43 }
 0x78d   :  { %v5848_v7 = vpop.eup %5847 }
 0x78e   :  { %v5583_v46 = vmul.f32 %v5848_v7, %v5573_v24  ;;  %v5850_v21 = vpop.eup %5849 }
 0x78f   :  { %v5571_v23 = vadd.f32 1.0, %v5850_v21 }
 0x790   :  { %v5585_v42 = vadd.f32 %v5583_v46, %v5581_v5 }
 0x791   :  { %v5577_v9 = vmul.f32 0.5, %v5571_v23 }
 0x792   :  { %v5852_v35 = vpop.eup %5851  ;;  %5853 = vtanh.f32 %v5585_v42 }
 0x793   :  { %v5588_v50 = vmul.f32 %v5852_v35, %v5576_v37 }
 0x795   :  { %v5591_v48 = vadd.f32 %v5590_v1, %v5588_v50 }
 0x797   :  { %5592 = vst [vmem:[#allocation8 + $0x38] sm:$0xff] %v5591_v48 }
 0x798   :  { %v5854_v20 = vpop.eup %5853 }
 0x799   :  { %v5589_v14 = vmul.f32 %v5854_v20, %v5577_v9 }
 0x79b   :  { %v5594_v63 = vadd.f32 %v5593_v6, %v5589_v14 }
 0x79d   :  { %5595 = vst [vmem:[#allocation8] sm:$0xff] %v5594_v63 }
 0x79e   :  { %5608 = dma.vmem_to_hbm [thread:$0]  %s5601_s16, 1024, %s5603_s19, [#allocation5], %s5939_s20, %s5939_s20, %s5940_s21  }
 0x79f   :  { %5931 = dma.done.wait [#allocation5], 1024  }
 0x7a0   :  { %5932 = vsyncadd [#allocation5], 4294966272 }
 0x7a1   :  { %5613 = vsyncpa [#allocation4], 1 }
 0x7a2   :  { %5614 = vsyncpa [#allocation7], 1 }
 0x7a3   :  { %5615 = vsyncpa [#allocation5], 1 }

</bundles_post_ra>
